<compile_context>
chip_gen: v7x
topology: tpu7x:2x2x1
jax: 0.10.0
libtpu: 0.0.40
codegen_flags: <defaults>
</compile_context>

<pallas_src>
import math
from functools import partial

import numpy as np
import jax
import jax.numpy as jnp
from jax.experimental import pallas as pl
from jax.experimental.pallas import tpu as pltpu

# ---------------- small config consistent with the DiffWave forward ----------
B = 2             # batch
C = 16            # residual_channels
N_MELS = 8        # n_mels
L_MEL = 2         # mel frames
T = 256 * L_MEL   # audio length (two 16x transposed convs -> 256x upsample)
N_LAYERS = 4      # residual_layers
DIL_CYCLE = 2     # dilation_cycle_length
MAX_STEPS = 50    # len(noise_schedule)
PROJ_PAD = 128    # lane-dense padding of the hoisted per-layer diffusion projections
UP1_SHAPE = (3 * L_MEL, 16 * L_MEL)     # fused ConvTranspose2d time operator, layer 1
UP2_SHAPE = (3 * 16 * L_MEL, T)         # fused ConvTranspose2d time operator, layer 2


def _batch_per_grid_step():
    """v7x has 2 TensorCores/chip: keep batch as a 'parallel' grid axis so each core
    takes one element.  Single-TC v5e/v6e: fold the whole batch along the time/lane
    axis into one grid step (saves per-step overhead, doubles matmul N)."""
    try:
        kind = jax.devices()[0].device_kind.lower()
    except Exception:
        kind = ""
    multi_tc = ("v7" in kind) or ("7x" in kind)
    return 1 if multi_tc else B


SEG = _batch_per_grid_step()          # batch elements processed per body grid step


# ================================ kernels =====================================
def diff_embed_kernel(x_ref, w1t_ref, b1_ref, w2t_ref, b2_ref, dpwt_ref, dpb_ref,
                      demb_ref, proj_ref):
    """DiffusionEmbedding MLP (Linear 128->512, silu, Linear 512->512, silu) plus the
    hoisted per-layer diffusion_projection for all residual layers, in one call.
    Weights are bf16 (halves the dominant HBM weight DMA); accumulation stays f32."""
    bf16 = jnp.bfloat16
    h = jnp.dot(x_ref[...].astype(bf16), w1t_ref[...],
                preferred_element_type=jnp.float32) + b1_ref[...]
    h = h * jax.nn.sigmoid(h)                                      # silu (f32)
    h = jnp.dot(h.astype(bf16), w2t_ref[...],
                preferred_element_type=jnp.float32) + b2_ref[...]
    h = h * jax.nn.sigmoid(h)                                      # silu (f32)
    demb_ref[...] = h                                              # [B, 512] lane-dense
    # All layers' diffusion_projection in one K=512 matmul; zero-padded to 128 lanes so
    # the store is a dense (unmasked) vst.
    proj_ref[...] = jnp.dot(h.astype(bf16), dpwt_ref[...],
                            preferred_element_type=jnp.float32) + dpb_ref[...]


def diffwave_body_kernel(a_ref, spec_ref, proj_ref,
                         inw_ref, inb_ref,
                         upw1_ref, upb1_ref, upw2_ref, upb2_ref,
                         wfc_ref, bfc_ref, wout_ref, bout_ref,
                         wskip_ref, bskip_ref, whead_ref, bhead_ref,
                         o_ref, op_ref,
                         *, dilations, ch, t_len, n_layers, n_mels, seg):
    segt = seg * t_len
    f32 = jnp.float32
    bf16 = jnp.bfloat16

    def pmod(idx, m):                      # cheap modulo (power-of-two -> bitwise AND)
        return jnp.bitwise_and(idx, m - 1) if (m & (m - 1)) == 0 else idx % m

    # ---- SpectrogramUpsampler fused in: 2x ConvTranspose2d([3,32],[1,16],[1,8]) +
    #      leaky_relu(0.4).  Batch segments are stacked along the frequency (sublane)
    #      axis; +/-1 frequency taps via pltpu.roll + boundary mask (XLU, no MXU),
    #      time axis as one dense-operator matmul (bf16 weights, f32 accumulation).
    if seg > 1:
        spec2d = jnp.concatenate([spec_ref[s] for s in range(seg)], axis=0)  # [seg*F, L]
    else:
        spec2d = spec_ref[0]

    def up_layer(x, w_ref, b_ref):
        nrow = x.shape[0]
        f_loc = pmod(jax.lax.broadcasted_iota(jnp.int32, x.shape, 0), n_mels)
        x_up = jnp.where(f_loc < n_mels - 1, pltpu.roll(x, shift=nrow - 1, axis=0), 0.0)
        x_dn = jnp.where(f_loc >= 1, pltpu.roll(x, shift=1, axis=0), 0.0)
        op = jnp.concatenate([x_up, x, x_dn], axis=1)              # [nrow, 3*L_in]
        y = jnp.dot(op.astype(bf16), w_ref[...], preferred_element_type=f32) + b_ref[...]
        return jnp.where(y >= 0.0, y, 0.4 * y)                     # leaky_relu(0.4)

    cond = up_layer(up_layer(spec2d, upw1_ref, upb1_ref), upw2_ref, upb2_ref)  # [seg*F, T]

    # ---- persistent fused-conv operand scratch: write conditioner rows ONCE ----
    for s in range(seg):
        op_ref[3 * ch:3 * ch + n_mels, s * t_len:(s + 1) * t_len] = \
            cond[s * n_mels:(s + 1) * n_mels, :]

    # ---- input_projection: Conv1d(1, C, 1) + ReLU ----
    a = a_ref[0]                                                   # [1, segT]
    x = jnp.maximum(inw_ref[...] * a + inb_ref[...], 0.0)          # [C, segT]
    skip = jnp.zeros_like(x)

    t_idx = jax.lax.broadcasted_iota(jnp.int32, (ch, segt), 1)
    t_loc = pmod(t_idx, t_len) if seg > 1 else t_idx
    # boundary masks for the distinct dilations, computed once (dilation cycle reuses them)
    mask_l = {d: t_loc >= d for d in sorted(set(dilations))}
    mask_r = {d: t_loc < t_len - d for d in sorted(set(dilations))}
    inv_sqrt2 = 1.0 / math.sqrt(2.0)

    # ---- residual stack: unrolled in-kernel, x/skip stay resident ----
    for l, d in enumerate(dilations):
        # per-layer diffusion-step bias, per batch segment
        p = proj_ref[0, l * ch:(l + 1) * ch, :]                    # [C, 1]
        for s in range(1, seg):
            p = jnp.where(t_idx < s * t_len, p, proj_ref[s, l * ch:(l + 1) * ch, :])
        y = x + p
        # in-kernel dilation shifts: only the 3*C "y" rows of the operand are rewritten
        op_ref[0:ch, :] = jnp.where(mask_l[d], pltpu.roll(y, shift=d, axis=1), 0.0)
        op_ref[ch:2 * ch, :] = y
        op_ref[2 * ch:3 * ch, :] = jnp.where(
            mask_r[d], pltpu.roll(y, shift=segt - d, axis=1), 0.0)
        # fused dilated Conv1d(C,2C,3,dil=d) + conditioner Conv1d(n_mels,2C,1): K=3C+NM
        conv = jnp.dot(wfc_ref[l], op_ref[...], preferred_element_type=f32) + bfc_ref[l]
        z = jax.nn.sigmoid(conv[:ch]) * jnp.tanh(conv[ch:])        # gated tanh
        out = jnp.dot(wout_ref[l], z, preferred_element_type=f32) + bout_ref[l]
        x = (x + out[:ch]) * inv_sqrt2
        skip = skip + out[ch:]

    # ---- head: skip_projection + ReLU, then a VPU/XLU reduction (no M=1 MXU GEMV) ----
    s_ = skip * (1.0 / math.sqrt(n_layers))
    h = jnp.maximum(jnp.dot(wskip_ref[...], s_, preferred_element_type=f32)
                    + bskip_ref[...], 0.0)
    o_ref[0] = jnp.sum(whead_ref[...] * h, axis=0, keepdims=True) + bhead_ref[...]


# ================================ wrappers ====================================
def diffusion_embedding(q, diffusion_step):
    table = q['emb_table']                                        # [MAX_STEPS, 128]
    if jnp.issubdtype(diffusion_step.dtype, jnp.floating):        # _lerp_embedding path
        # clamp to the schedule range (fix from the correctness review)
        low = jnp.clip(jnp.floor(diffusion_step), 0, MAX_STEPS - 1).astype(jnp.int32)
        high = jnp.clip(jnp.ceil(diffusion_step), 0, MAX_STEPS - 1).astype(jnp.int32)
        frac = (diffusion_step - jnp.floor(diffusion_step))[:, None]
        lo_e = table[low]
        x = lo_e + (table[high] - lo_e) * frac
    else:                                                         # integer gather path
        x = table[diffusion_step]                                 # [B, 128]
    b_ = x.shape[0]
    demb, proj = pl.pallas_call(
        diff_embed_kernel,
        out_shape=(jax.ShapeDtypeStruct((b_, 512), jnp.float32),
                   jax.ShapeDtypeStruct((b_, PROJ_PAD), jnp.float32)),
    )(x, q['de_w1t'], q['de_b1'], q['de_w2t'], q['de_b2'], q['dp_wt'], q['dp_b'])
    return demb, proj


def diffwave_body(q, audio, spectrogram, proj):
    seg = SEG
    nsteps = B // seg
    segt = seg * T
    kern = partial(diffwave_body_kernel,
                   dilations=tuple(2 ** (i % DIL_CYCLE) for i in range(N_LAYERS)),
                   ch=C, t_len=T, n_layers=N_LAYERS, n_mels=N_MELS, seg=seg)
    cfix = lambda i: (0, 0)
    cfix3 = lambda i: (0, 0, 0)
    out = pl.pallas_call(
        kern,
        out_shape=jax.ShapeDtypeStruct((nsteps, 1, segt), jnp.float32),
        grid=(nsteps,),
        in_specs=[
            pl.BlockSpec((1, 1, segt), lambda i: (i, 0, 0)),            # audio
            pl.BlockSpec((seg, N_MELS, L_MEL), lambda i: (i, 0, 0)),    # mel spectrogram
            pl.BlockSpec((seg, PROJ_PAD, 1), lambda i: (i, 0, 0)),      # hoisted diff proj
            pl.BlockSpec((C, 1), cfix), pl.BlockSpec((C, 1), cfix),     # input proj W, b
            pl.BlockSpec(UP1_SHAPE, cfix), pl.BlockSpec((1, 1), cfix),  # upsampler layer 1
            pl.BlockSpec(UP2_SHAPE, cfix), pl.BlockSpec((1, 1), cfix),  # upsampler layer 2
            pl.BlockSpec((N_LAYERS, 2 * C, 3 * C + N_MELS), cfix3),     # fused conv W
            pl.BlockSpec((N_LAYERS, 2 * C, 1), cfix3),                  # fused conv b
            pl.BlockSpec((N_LAYERS, 2 * C, C), cfix3),                  # output proj W
            pl.BlockSpec((N_LAYERS, 2 * C, 1), cfix3),                  # output proj b
            pl.BlockSpec((C, C), cfix), pl.BlockSpec((C, 1), cfix),     # skip proj W, b
            pl.BlockSpec((C, 1), cfix), pl.BlockSpec((1, 1), cfix),     # head W (col), b
        ],
        out_specs=pl.BlockSpec((1, 1, segt), lambda i: (i, 0, 0)),
        scratch_shapes=[pltpu.VMEM((3 * C + N_MELS, segt), jnp.float32)],
        compiler_params=pltpu.CompilerParams(dimension_semantics=("parallel",)),
    )(audio.reshape(nsteps, 1, segt), spectrogram, proj,
      q['in_w'], q['in_b'],
      q['up_w1'], q['up_b1'], q['up_w2'], q['up_b2'],
      q['res_wfc'], q['res_bfc'], q['res_wout'], q['res_bout'],
      q['skip_w'], q['skip_b'], q['head_w'], q['head_b'])
    return out.reshape(B, 1, T)


def diffwave_forward(q, audio, diffusion_step, spectrogram):
    demb, proj = diffusion_embedding(q, diffusion_step)            # [B,512], [B,128]
    # 1-KiB trailing-unit-dim reshape so the body reads per-layer [C,1] columns directly
    proj_col = proj.reshape(B, PROJ_PAD, 1)
    out = diffwave_body(q, audio, spectrogram, proj_col)           # [B, 1, T]
    return out, demb


# ============================ parameter init / packing ========================
def init_params(key):
    ks = iter(jax.random.split(key, 64))

    def nrm(shape, fan_in):
        return jax.random.normal(next(ks), shape, jnp.float32) * math.sqrt(2.0 / fan_in)

    def unif(shape, fan_in):
        bound = 1.0 / math.sqrt(fan_in)
        return jax.random.uniform(next(ks), shape, jnp.float32, -bound, bound)

    p = {}
    p['in_w'] = nrm((C, 1, 1), 1)                    # Conv1d(1, C, 1)
    p['in_b'] = unif((C,), 1)
    p['de_w1'] = nrm((512, 128), 128); p['de_b1'] = unif((512,), 128)   # Linear(128,512)
    p['de_w2'] = nrm((512, 512), 512); p['de_b2'] = unif((512,), 512)   # Linear(512,512)
    p['up1_w'] = nrm((1, 1, 3, 32), 96); p['up1_b'] = unif((1,), 96)    # ConvTranspose2d
    p['up2_w'] = nrm((1, 1, 3, 32), 96); p['up2_b'] = unif((1,), 96)
    p['layers'] = []
    for _ in range(N_LAYERS):
        p['layers'].append({
            'dil_w': nrm((2 * C, C, 3), C * 3), 'dil_b': unif((2 * C,), C * 3),
            'diff_w': nrm((C, 512), 512), 'diff_b': unif((C,), 512),
            'cond_w': nrm((2 * C, N_MELS, 1), N_MELS), 'cond_b': unif((2 * C,), N_MELS),
            'out_w': nrm((2 * C, C, 1), C), 'out_b': unif((2 * C,), C),
        })
    p['skip_w'] = nrm((C, C, 1), C); p['skip_b'] = unif((C,), C)
    p['out_w'] = jnp.zeros((1, C, 1), jnp.float32)   # nn.init.zeros_(output_projection.weight)
    p['out_b'] = unif((1,), C)
    return p


def _build_time_matrices(w_np, l_in, stride=16, pad=8):
    # Dense operator for the time axis of ConvTranspose2d([3,32], stride=[1,16], pad=[1,8]).
    kh, kw = w_np.shape
    l_out = (l_in - 1) * stride - 2 * pad + kw
    m = np.zeros((kh, l_in, l_out), dtype=np.float32)
    for kf in range(kh):
        for i in range(l_in):
            for k in range(kw):
                o = i * stride - pad + k
                if 0 <= o < l_out:
                    m[kf, i, o] = w_np[kf, k]
    return m


def pack_params(p):
    """One-time weight re-layout: fused/stacked slabs, bf16 for the big matmul weights."""
    bf16 = jnp.bfloat16
    q = {}
    # sinusoidal embedding table (matches _build_embedding)
    steps = np.arange(MAX_STEPS, dtype=np.float32)[:, None]
    dims = np.arange(64, dtype=np.float32)[None, :]
    tab = steps * 10.0 ** (dims * 4.0 / 63.0)
    q['emb_table'] = jnp.asarray(np.concatenate([np.sin(tab), np.cos(tab)], axis=1))

    # DiffusionEmbedding projections (bf16 weights, f32 biases)
    q['de_w1t'] = p['de_w1'].T.astype(bf16)
    q['de_b1'] = p['de_b1'].reshape(1, 512)
    q['de_w2t'] = p['de_w2'].T.astype(bf16)
    q['de_b2'] = p['de_b2'].reshape(1, 512)
    # hoisted per-layer diffusion_projection, stacked and zero-padded to 128 lanes
    dp_w = jnp.concatenate([lp['diff_w'] for lp in p['layers']], axis=0)   # [L*C, 512]
    dp_b = jnp.concatenate([lp['diff_b'] for lp in p['layers']], axis=0)   # [L*C]
    q['dp_wt'] = (jnp.zeros((512, PROJ_PAD), jnp.float32)
                  .at[:, :N_LAYERS * C].set(dp_w.T)).astype(bf16)
    q['dp_b'] = jnp.zeros((1, PROJ_PAD), jnp.float32).at[:, :N_LAYERS * C].set(dp_b)

    # input projection Conv1d(1, C, 1)
    q['in_w'] = p['in_w'][:, :, 0]
    q['in_b'] = p['in_b'].reshape(C, 1)

    # residual layers: fused [dilated conv taps | conditioner] weight + fused bias
    wfc, bfc, wo, bo = [], [], [], []
    for lp in p['layers']:
        wfc.append(jnp.concatenate([lp['dil_w'][:, :, 0], lp['dil_w'][:, :, 1],
                                    lp['dil_w'][:, :, 2], lp['cond_w'][:, :, 0]], axis=1))
        bfc.append((lp['dil_b'] + lp['cond_b']).reshape(2 * C, 1))
        wo.append(lp['out_w'][:, :, 0])
        bo.append(lp['out_b'].reshape(2 * C, 1))
    q['res_wfc'] = jnp.stack(wfc)       # [L, 2C, 3C+N_MELS]
    q['res_bfc'] = jnp.stack(bfc)       # [L, 2C, 1]
    q['res_wout'] = jnp.stack(wo)       # [L, 2C, C]
    q['res_bout'] = jnp.stack(bo)       # [L, 2C, 1]

    # head (head_w stored as a [C,1] column for the in-kernel VPU reduction)
    q['skip_w'] = p['skip_w'][:, :, 0]
    q['skip_b'] = p['skip_b'].reshape(C, 1)
    q['head_w'] = p['out_w'][0]
    q['head_b'] = p['out_b'].reshape(1, 1)

    # upsampler: stacked time-operator matrices [3*L_in, L_out] (bf16)
    m1 = _build_time_matrices(np.asarray(p['up1_w'])[0, 0], L_MEL)
    q['up_w1'] = jnp.asarray(m1.reshape(-1, m1.shape[-1])).astype(bf16)
    q['up_b1'] = p['up1_b'].reshape(1, 1)
    m2 = _build_time_matrices(np.asarray(p['up2_w'])[0, 0], 16 * L_MEL)
    q['up_w2'] = jnp.asarray(m2.reshape(-1, m2.shape[-1])).astype(bf16)
    q['up_b2'] = p['up2_b'].reshape(1, 1)
    return q


# ================================= main =======================================
if __name__ == "__main__":
    key = jax.random.PRNGKey(0)
    kp, ka, ksp = jax.random.split(key, 3)
    params = init_params(kp)
    packed = pack_params(params)

    audio = jax.random.normal(ka, (B, T), jnp.float32)                 # [B, T]
    spectrogram = jax.random.normal(ksp, (B, N_MELS, L_MEL), jnp.float32)
    diffusion_step = jnp.array([3, 17], dtype=jnp.int32)               # [B] (int path)

    fwd = jax.jit(diffwave_forward)
    out, demb = fwd(packed, audio, diffusion_step, spectrogram)
    out, demb = jax.block_until_ready((out, demb))
    assert out.shape == (B, 1, T) and out.dtype == jnp.float32
    assert demb.shape == (B, 512) and demb.dtype == jnp.float32        # DiffusionEmbedding out
    assert bool(jnp.all(jnp.isfinite(out))) and bool(jnp.all(jnp.isfinite(demb)))

    # also exercise the float (_lerp_embedding) path, incl. the clamped schedule boundary
    step_f = jnp.array([3.25, float(MAX_STEPS - 1)], dtype=jnp.float32)
    out_f, demb_f = jax.block_until_ready(fwd(packed, audio, step_f, spectrogram))
    assert demb_f.shape == (B, 512) and bool(jnp.all(jnp.isfinite(demb_f)))

    print("KERNEL_OK")
</pallas_src>

<mosaic_0001>
module attributes {stable_mosaic.version = 11 : i64} {
  func.func @diff_embed_kernel(%arg0: memref<2x128xf32, #tpu.memory_space<vmem>>, %arg1: memref<128x512xbf16, #tpu.memory_space<vmem>>, %arg2: memref<1x512xf32, #tpu.memory_space<vmem>>, %arg3: memref<512x512xbf16, #tpu.memory_space<vmem>>, %arg4: memref<1x512xf32, #tpu.memory_space<vmem>>, %arg5: memref<512x128xbf16, #tpu.memory_space<vmem>>, %arg6: memref<1x128xf32, #tpu.memory_space<vmem>>, %arg7: memref<2x512xf32, #tpu.memory_space<vmem>>, %arg8: memref<2x128xf32, #tpu.memory_space<vmem>>) attributes {dimension_semantics = [], scalar_prefetch = 0 : i64, scratch_operands = 0 : i64, tpu.core_type = #tpu.core_type<tc>} {
    %c0 = arith.constant 0 : index
    %c0_0 = arith.constant 0 : index
    %0 = vector.load %arg0[%c0, %c0_0] : memref<2x128xf32, #tpu.memory_space<vmem>>, vector<2x128xf32>
    %1 = arith.truncf %0 : vector<2x128xf32> to vector<2x128xbf16>
    %c0_1 = arith.constant 0 : index
    %c0_2 = arith.constant 0 : index
    %2 = vector.load %arg1[%c0_1, %c0_2] : memref<128x512xbf16, #tpu.memory_space<vmem>>, vector<128x512xbf16>
    %cst = arith.constant dense<0.000000e+00> : vector<2x512xf32>
    %3 = tpu.matmul %1, %2, %cst {dimension_numbers = #tpu.dot_dimension_numbers<[1], [0], [0], [1], [0, 0, 1, 1], [], []>} : vector<2x128xbf16>, vector<128x512xbf16>, vector<2x512xf32> -> vector<2x512xf32>
    %c0_3 = arith.constant 0 : index
    %c0_4 = arith.constant 0 : index
    %4 = vector.load %arg2[%c0_3, %c0_4] : memref<1x512xf32, #tpu.memory_space<vmem>>, vector<1x512xf32>
    %5 = vector.broadcast %4 : vector<1x512xf32> to vector<2x512xf32>
    %6 = arith.addf %3, %5 : vector<2x512xf32>
    %7 = arith.negf %6 : vector<2x512xf32>
    %8 = math.exp %7 : vector<2x512xf32>
    %cst_5 = arith.constant 1.000000e+00 : f32
    %9 = vector.broadcast %cst_5 : f32 to vector<2x512xf32>
    %10 = arith.addf %9, %8 : vector<2x512xf32>
    %11 = arith.divf %9, %10 : vector<2x512xf32>
    %12 = arith.mulf %6, %11 : vector<2x512xf32>
    %13 = arith.truncf %12 : vector<2x512xf32> to vector<2x512xbf16>
    %c0_6 = arith.constant 0 : index
    %c0_7 = arith.constant 0 : index
    %14 = vector.load %arg3[%c0_6, %c0_7] : memref<512x512xbf16, #tpu.memory_space<vmem>>, vector<512x512xbf16>
    %cst_8 = arith.constant dense<0.000000e+00> : vector<2x512xf32>
    %15 = tpu.matmul %13, %14, %cst_8 {dimension_numbers = #tpu.dot_dimension_numbers<[1], [0], [0], [1], [0, 0, 1, 1], [], []>} : vector<2x512xbf16>, vector<512x512xbf16>, vector<2x512xf32> -> vector<2x512xf32>
    %c0_9 = arith.constant 0 : index
    %c0_10 = arith.constant 0 : index
    %16 = vector.load %arg4[%c0_9, %c0_10] : memref<1x512xf32, #tpu.memory_space<vmem>>, vector<1x512xf32>
    %17 = vector.broadcast %16 : vector<1x512xf32> to vector<2x512xf32>
    %18 = arith.addf %15, %17 : vector<2x512xf32>
    %19 = arith.negf %18 : vector<2x512xf32>
    %20 = math.exp %19 : vector<2x512xf32>
    %cst_11 = arith.constant 1.000000e+00 : f32
    %21 = vector.broadcast %cst_11 : f32 to vector<2x512xf32>
    %22 = arith.addf %21, %20 : vector<2x512xf32>
    %23 = arith.divf %21, %22 : vector<2x512xf32>
    %24 = arith.mulf %18, %23 : vector<2x512xf32>
    %c0_12 = arith.constant 0 : index
    %c0_13 = arith.constant 0 : index
    %25 = vector.load %arg7[%c0_12, %c0_13] : memref<2x512xf32, #tpu.memory_space<vmem>>, vector<2x512xf32>
    tpu.vector_store %arg7[%c0_12, %c0_13], %24 {strides = array<i32>} : memref<2x512xf32, #tpu.memory_space<vmem>>, vector<2x512xf32>,
    %26 = arith.truncf %24 : vector<2x512xf32> to vector<2x512xbf16>
    %c0_14 = arith.constant 0 : index
    %c0_15 = arith.constant 0 : index
    %27 = vector.load %arg5[%c0_14, %c0_15] : memref<512x128xbf16, #tpu.memory_space<vmem>>, vector<512x128xbf16>
    %cst_16 = arith.constant dense<0.000000e+00> : vector<2x128xf32>
    %28 = tpu.matmul %26, %27, %cst_16 {dimension_numbers = #tpu.dot_dimension_numbers<[1], [0], [0], [1], [0, 0, 1, 1], [], []>} : vector<2x512xbf16>, vector<512x128xbf16>, vector<2x128xf32> -> vector<2x128xf32>
    %c0_17 = arith.constant 0 : index
    %c0_18 = arith.constant 0 : index
    %29 = vector.load %arg6[%c0_17, %c0_18] : memref<1x128xf32, #tpu.memory_space<vmem>>, vector<1x128xf32>
    %30 = vector.broadcast %29 : vector<1x128xf32> to vector<2x128xf32>
    %31 = arith.addf %28, %30 : vector<2x128xf32>
    %c0_19 = arith.constant 0 : index
    %c0_20 = arith.constant 0 : index
    %32 = vector.load %arg8[%c0_19, %c0_20] : memref<2x128xf32, #tpu.memory_space<vmem>>, vector<2x128xf32>
    tpu.vector_store %arg8[%c0_19, %c0_20], %31 {strides = array<i32>} : memref<2x128xf32, #tpu.memory_space<vmem>>, vector<2x128xf32>,
    return
  }
}

module attributes {stable_mosaic.version = 11 : i64} {
  func.func @diffwave_body_kernel(%arg0: i32, %arg1: memref<1x1x1024xf32, #tpu.memory_space<vmem>>, %arg2: memref<2x8x2xf32, #tpu.memory_space<vmem>>, %arg3: memref<2x128x1xf32, #tpu.memory_space<vmem>>, %arg4: memref<16x1xf32, #tpu.memory_space<vmem>>, %arg5: memref<16x1xf32, #tpu.memory_space<vmem>>, %arg6: memref<6x32xbf16, #tpu.memory_space<vmem>>, %arg7: memref<1x1xf32, #tpu.memory_space<vmem>>, %arg8: memref<96x512xbf16, #tpu.memory_space<vmem>>, %arg9: memref<1x1xf32, #tpu.memory_space<vmem>>, %arg10: memref<4x32x56xf32, #tpu.memory_space<vmem>>, %arg11: memref<4x32x1xf32, #tpu.memory_space<vmem>>, %arg12: memref<4x32x16xf32, #tpu.memory_space<vmem>>, %arg13: memref<4x32x1xf32, #tpu.memory_space<vmem>>, %arg14: memref<16x16xf32, #tpu.memory_space<vmem>>, %arg15: memref<16x1xf32, #tpu.memory_space<vmem>>, %arg16: memref<16x1xf32, #tpu.memory_space<vmem>>, %arg17: memref<1x1xf32, #tpu.memory_space<vmem>>, %arg18: memref<1x1x1024xf32, #tpu.memory_space<vmem>>, %arg19: memref<56x1024xf32, #tpu.memory_space<vmem>>) attributes {dimension_semantics = [#tpu.dimension_semantics<parallel>], iteration_bounds = array<i64: 1>, scalar_prefetch = 0 : i64, scratch_operands = 1 : i64, tpu.core_type = #tpu.core_type<tc>, window_params = [{transform_indices = @transform_0, window_bounds = array<i64: 1, 1, 1024>}, {transform_indices = @transform_1, window_bounds = array<i64: 2, 8, 2>}, {transform_indices = @transform_2, window_bounds = array<i64: 2, 128, 1>}, {pipeline_mode = #tpu.pipeline_mode<synchronous>, transform_indices = @transform_3, window_bounds = array<i64: 16, 1>}, {pipeline_mode = #tpu.pipeline_mode<synchronous>, transform_indices = @transform_4, window_bounds = array<i64: 16, 1>}, {pipeline_mode = #tpu.pipeline_mode<synchronous>, transform_indices = @transform_5, window_bounds = array<i64: 6, 32>}, {pipeline_mode = #tpu.pipeline_mode<synchronous>, transform_indices = @transform_6, window_bounds = array<i64: 1, 1>}, {pipeline_mode = #tpu.pipeline_mode<synchronous>, transform_indices = @transform_7, window_bounds = array<i64: 96, 512>}, {pipeline_mode = #tpu.pipeline_mode<synchronous>, transform_indices = @transform_8, window_bounds = array<i64: 1, 1>}, {pipeline_mode = #tpu.pipeline_mode<synchronous>, transform_indices = @transform_9, window_bounds = array<i64: 4, 32, 56>}, {pipeline_mode = #tpu.pipeline_mode<synchronous>, transform_indices = @transform_10, window_bounds = array<i64: 4, 32, 1>}, {pipeline_mode = #tpu.pipeline_mode<synchronous>, transform_indices = @transform_11, window_bounds = array<i64: 4, 32, 16>}, {pipeline_mode = #tpu.pipeline_mode<synchronous>, transform_indices = @transform_12, window_bounds = array<i64: 4, 32, 1>}, {pipeline_mode = #tpu.pipeline_mode<synchronous>, transform_indices = @transform_13, window_bounds = array<i64: 16, 16>}, {pipeline_mode = #tpu.pipeline_mode<synchronous>, transform_indices = @transform_14, window_bounds = array<i64: 16, 1>}, {pipeline_mode = #tpu.pipeline_mode<synchronous>, transform_indices = @transform_15, window_bounds = array<i64: 16, 1>}, {pipeline_mode = #tpu.pipeline_mode<synchronous>, transform_indices = @transform_16, window_bounds = array<i64: 1, 1>}, {transform_indices = @transform_17, window_bounds = array<i64: 1, 1, 1024>}]} {
    %c0 = arith.constant 0 : index
    %c0_0 = arith.constant 0 : index
    %c0_1 = arith.constant 0 : index
    %0 = vector.load %arg2[%c0, %c0_0, %c0_1] : memref<2x8x2xf32, #tpu.memory_space<vmem>>, vector<1x8x2xf32>
    %1 = vector.shape_cast %0 : vector<1x8x2xf32> to vector<8x2xf32>
    %c1 = arith.constant 1 : index
    %c0_2 = arith.constant 0 : index
    %c0_3 = arith.constant 0 : index
    %2 = vector.load %arg2[%c1, %c0_2, %c0_3] : memref<2x8x2xf32, #tpu.memory_space<vmem>>, vector<1x8x2xf32>
    %3 = vector.shape_cast %2 : vector<1x8x2xf32> to vector<8x2xf32>
    %4 = tpu.concatenate %1, %3 in 0 : vector<8x2xf32>, vector<8x2xf32> -> vector<16x2xf32>
    %5 = tpu.iota {dimensions = array<i32: 0>} : vector<16x2xi32>
    %c7_i32 = arith.constant 7 : i32
    %6 = vector.broadcast %c7_i32 : i32 to vector<16x2xi32>
    %7 = arith.andi %5, %6 : vector<16x2xi32>
    %c7_i32_4 = arith.constant 7 : i32
    %8 = vector.broadcast %c7_i32_4 : i32 to vector<16x2xi32>
    %9 = arith.cmpi slt, %7, %8 : vector<16x2xi32>
    %c15_i32 = arith.constant 15 : i32
    %10 = tpu.dynamic_rotate %4 by %c15_i32 dim 0 : vector<16x2xf32>, i32 -> vector<16x2xf32>
    %cst = arith.constant 0.000000e+00 : f32
    %11 = vector.broadcast %cst : f32 to vector<16x2xf32>
    %12 = arith.select %9, %10, %11 : vector<16x2xi1>, vector<16x2xf32>
    %c1_i32 = arith.constant 1 : i32
    %13 = vector.broadcast %c1_i32 : i32 to vector<16x2xi32>
    %14 = arith.cmpi sge, %7, %13 : vector<16x2xi32>
    %c1_i32_5 = arith.constant 1 : i32
    %15 = tpu.dynamic_rotate %4 by %c1_i32_5 dim 0 : vector<16x2xf32>, i32 -> vector<16x2xf32>
    %cst_6 = arith.constant 0.000000e+00 : f32
    %16 = vector.broadcast %cst_6 : f32 to vector<16x2xf32>
    %17 = arith.select %14, %15, %16 : vector<16x2xi1>, vector<16x2xf32>
    %18 = tpu.concatenate %12, %4, %17 in 1 : vector<16x2xf32>, vector<16x2xf32>, vector<16x2xf32> -> vector<16x6xf32>
    %19 = arith.truncf %18 : vector<16x6xf32> to vector<16x6xbf16>
    %c0_7 = arith.constant 0 : index
    %c0_8 = arith.constant 0 : index
    %20 = vector.load %arg6[%c0_7, %c0_8] : memref<6x32xbf16, #tpu.memory_space<vmem>>, vector<6x32xbf16>
    %cst_9 = arith.constant dense<0.000000e+00> : vector<16x32xf32>
    %21 = tpu.matmul %19, %20, %cst_9 {dimension_numbers = #tpu.dot_dimension_numbers<[1], [0], [0], [1], [0, 0, 1, 1], [], []>} : vector<16x6xbf16>, vector<6x32xbf16>, vector<16x32xf32> -> vector<16x32xf32>
    %c0_10 = arith.constant 0 : index
    %c0_11 = arith.constant 0 : index
    %22 = vector.load %arg7[%c0_10, %c0_11] : memref<1x1xf32, #tpu.memory_space<vmem>>, vector<1x1xf32>
    %23 = vector.broadcast %22 : vector<1x1xf32> to vector<16x32xf32>
    %24 = arith.addf %21, %23 : vector<16x32xf32>
    %cst_12 = arith.constant 0.000000e+00 : f32
    %25 = vector.broadcast %cst_12 : f32 to vector<16x32xf32>
    %26 = arith.cmpf oge, %24, %25 : vector<16x32xf32>
    %cst_13 = arith.constant 4.000000e-01 : f32
    %27 = vector.broadcast %cst_13 : f32 to vector<16x32xf32>
    %28 = arith.mulf %27, %24 : vector<16x32xf32>
    %29 = arith.select %26, %24, %28 : vector<16x32xi1>, vector<16x32xf32>
    %30 = tpu.iota {dimensions = array<i32: 0>} : vector<16x32xi32>
    %c7_i32_14 = arith.constant 7 : i32
    %31 = vector.broadcast %c7_i32_14 : i32 to vector<16x32xi32>
    %32 = arith.andi %30, %31 : vector<16x32xi32>
    %c7_i32_15 = arith.constant 7 : i32
    %33 = vector.broadcast %c7_i32_15 : i32 to vector<16x32xi32>
    %34 = arith.cmpi slt, %32, %33 : vector<16x32xi32>
    %c15_i32_16 = arith.constant 15 : i32
    %35 = tpu.dynamic_rotate %29 by %c15_i32_16 dim 0 : vector<16x32xf32>, i32 -> vector<16x32xf32>
    %cst_17 = arith.constant 0.000000e+00 : f32
    %36 = vector.broadcast %cst_17 : f32 to vector<16x32xf32>
    %37 = arith.select %34, %35, %36 : vector<16x32xi1>, vector<16x32xf32>
    %c1_i32_18 = arith.constant 1 : i32
    %38 = vector.broadcast %c1_i32_18 : i32 to vector<16x32xi32>
    %39 = arith.cmpi sge, %32, %38 : vector<16x32xi32>
    %c1_i32_19 = arith.constant 1 : i32
    %40 = tpu.dynamic_rotate %29 by %c1_i32_19 dim 0 : vector<16x32xf32>, i32 -> vector<16x32xf32>
    %cst_20 = arith.constant 0.000000e+00 : f32
    %41 = vector.broadcast %cst_20 : f32 to vector<16x32xf32>
    %42 = arith.select %39, %40, %41 : vector<16x32xi1>, vector<16x32xf32>
    %43 = tpu.concatenate %37, %29, %42 in 1 : vector<16x32xf32>, vector<16x32xf32>, vector<16x32xf32> -> vector<16x96xf32>
    %44 = arith.truncf %43 : vector<16x96xf32> to vector<16x96xbf16>
    %c0_21 = arith.constant 0 : index
    %c0_22 = arith.constant 0 : index
    %45 = vector.load %arg8[%c0_21, %c0_22] : memref<96x512xbf16, #tpu.memory_space<vmem>>, vector<96x512xbf16>
    %cst_23 = arith.constant dense<0.000000e+00> : vector<16x512xf32>
    %46 = tpu.matmul %44, %45, %cst_23 {dimension_numbers = #tpu.dot_dimension_numbers<[1], [0], [0], [1], [0, 0, 1, 1], [], []>} : vector<16x96xbf16>, vector<96x512xbf16>, vector<16x512xf32> -> vector<16x512xf32>
    %c0_24 = arith.constant 0 : index
    %c0_25 = arith.constant 0 : index
    %47 = vector.load %arg9[%c0_24, %c0_25] : memref<1x1xf32, #tpu.memory_space<vmem>>, vector<1x1xf32>
    %48 = vector.broadcast %47 : vector<1x1xf32> to vector<16x512xf32>
    %49 = arith.addf %46, %48 : vector<16x512xf32>
    %cst_26 = arith.constant 0.000000e+00 : f32
    %50 = vector.broadcast %cst_26 : f32 to vector<16x512xf32>
    %51 = arith.cmpf oge, %49, %50 : vector<16x512xf32>
    %cst_27 = arith.constant 4.000000e-01 : f32
    %52 = vector.broadcast %cst_27 : f32 to vector<16x512xf32>
    %53 = arith.mulf %52, %49 : vector<16x512xf32>
    %54 = arith.select %51, %49, %53 : vector<16x512xi1>, vector<16x512xf32>
    %55 = vector.extract_strided_slice %54 {offsets = [0, 0], sizes = [8, 512], strides = [1, 1]} : vector<16x512xf32> to vector<8x512xf32>
    %c48 = arith.constant 48 : index
    %c0_28 = arith.constant 0 : index
    %56 = vector.load %arg19[%c48, %c0_28] : memref<56x1024xf32, #tpu.memory_space<vmem>>, vector<8x512xf32>
    tpu.vector_store %arg19[%c48, %c0_28], %55 {strides = array<i32>} : memref<56x1024xf32, #tpu.memory_space<vmem>>, vector<8x512xf32>,
    %57 = vector.extract_strided_slice %54 {offsets = [8, 0], sizes = [8, 512], strides = [1, 1]} : vector<16x512xf32> to vector<8x512xf32>
    %c48_29 = arith.constant 48 : index
    %c512 = arith.constant 512 : index
    %58 = vector.load %arg19[%c48_29, %c512] : memref<56x1024xf32, #tpu.memory_space<vmem>>, vector<8x512xf32>
    tpu.vector_store %arg19[%c48_29, %c512], %57 {strides = array<i32>} : memref<56x1024xf32, #tpu.memory_space<vmem>>, vector<8x512xf32>,
    %c0_30 = arith.constant 0 : index
    %c0_31 = arith.constant 0 : index
    %c0_32 = arith.constant 0 : index
    %59 = vector.load %arg1[%c0_30, %c0_31, %c0_32] : memref<1x1x1024xf32, #tpu.memory_space<vmem>>, vector<1x1x1024xf32>
    %60 = vector.shape_cast %59 : vector<1x1x1024xf32> to vector<1x1024xf32>
    %c0_33 = arith.constant 0 : index
    %c0_34 = arith.constant 0 : index
    %61 = vector.load %arg4[%c0_33, %c0_34] : memref<16x1xf32, #tpu.memory_space<vmem>>, vector<16x1xf32>
    %62 = vector.broadcast %61 : vector<16x1xf32> to vector<16x1024xf32>
    %63 = vector.broadcast %60 : vector<1x1024xf32> to vector<16x1024xf32>
    %64 = arith.mulf %62, %63 : vector<16x1024xf32>
    %c0_35 = arith.constant 0 : index
    %c0_36 = arith.constant 0 : index
    %65 = vector.load %arg5[%c0_35, %c0_36] : memref<16x1xf32, #tpu.memory_space<vmem>>, vector<16x1xf32>
    %66 = vector.broadcast %65 : vector<16x1xf32> to vector<16x1024xf32>
    %67 = arith.addf %64, %66 : vector<16x1024xf32>
    %cst_37 = arith.constant 0.000000e+00 : f32
    %68 = vector.broadcast %cst_37 : f32 to vector<16x1024xf32>
    %69 = arith.maximumf %67, %68 : vector<16x1024xf32>
    %cst_38 = arith.constant 0.000000e+00 : f32
    %70 = vector.broadcast %cst_38 : f32 to vector<16x1024xf32>
    %71 = tpu.iota {dimensions = array<i32: 1>} : vector<16x1024xi32>
    %c511_i32 = arith.constant 511 : i32
    %72 = vector.broadcast %c511_i32 : i32 to vector<16x1024xi32>
    %73 = arith.andi %71, %72 : vector<16x1024xi32>
    %c1_i32_39 = arith.constant 1 : i32
    %74 = vector.broadcast %c1_i32_39 : i32 to vector<16x1024xi32>
    %75 = arith.cmpi sge, %73, %74 : vector<16x1024xi32>
    %c2_i32 = arith.constant 2 : i32
    %76 = vector.broadcast %c2_i32 : i32 to vector<16x1024xi32>
    %77 = arith.cmpi sge, %73, %76 : vector<16x1024xi32>
    %c511_i32_40 = arith.constant 511 : i32
    %78 = vector.broadcast %c511_i32_40 : i32 to vector<16x1024xi32>
    %79 = arith.cmpi slt, %73, %78 : vector<16x1024xi32>
    %c510_i32 = arith.constant 510 : i32
    %80 = vector.broadcast %c510_i32 : i32 to vector<16x1024xi32>
    %81 = arith.cmpi slt, %73, %80 : vector<16x1024xi32>
    %c0_41 = arith.constant 0 : index
    %c0_42 = arith.constant 0 : index
    %c0_43 = arith.constant 0 : index
    %82 = vector.load %arg3[%c0_41, %c0_42, %c0_43] : memref<2x128x1xf32, #tpu.memory_space<vmem>>, vector<1x16x1xf32>
    %83 = vector.shape_cast %82 : vector<1x16x1xf32> to vector<16x1xf32>
    %c512_i32 = arith.constant 512 : i32
    %84 = vector.broadcast %c512_i32 : i32 to vector<16x1024xi32>
    %85 = arith.cmpi slt, %71, %84 : vector<16x1024xi32>
    %c1_44 = arith.constant 1 : index
    %c0_45 = arith.constant 0 : index
    %c0_46 = arith.constant 0 : index
    %86 = vector.load %arg3[%c1_44, %c0_45, %c0_46] : memref<2x128x1xf32, #tpu.memory_space<vmem>>, vector<1x16x1xf32>
    %87 = vector.shape_cast %86 : vector<1x16x1xf32> to vector<16x1xf32>
    %88 = vector.shape_cast %83 : vector<16x1xf32> to vector<16x1xf32>
    %89 = vector.broadcast %88 : vector<16x1xf32> to vector<16x1024xf32>
    %90 = vector.shape_cast %87 : vector<16x1xf32> to vector<16x1xf32>
    %91 = vector.broadcast %90 : vector<16x1xf32> to vector<16x1024xf32>
    %92 = arith.select %85, %89, %91 : vector<16x1024xi1>, vector<16x1024xf32>
    %93 = arith.addf %69, %92 : vector<16x1024xf32>
    %c1_i32_47 = arith.constant 1 : i32
    %94 = tpu.dynamic_rotate %93 by %c1_i32_47 dim 1 : vector<16x1024xf32>, i32 -> vector<16x1024xf32>
    %cst_48 = arith.constant 0.000000e+00 : f32
    %95 = vector.broadcast %cst_48 : f32 to vector<16x1024xf32>
    %96 = arith.select %75, %94, %95 : vector<16x1024xi1>, vector<16x1024xf32>
    %c0_49 = arith.constant 0 : index
    %c0_50 = arith.constant 0 : index
    %97 = vector.load %arg19[%c0_49, %c0_50] : memref<56x1024xf32, #tpu.memory_space<vmem>>, vector<16x1024xf32>
    tpu.vector_store %arg19[%c0_49, %c0_50], %96 {strides = array<i32>} : memref<56x1024xf32, #tpu.memory_space<vmem>>, vector<16x1024xf32>,
    %c16 = arith.constant 16 : index
    %c0_51 = arith.constant 0 : index
    %98 = vector.load %arg19[%c16, %c0_51] : memref<56x1024xf32, #tpu.memory_space<vmem>>, vector<16x1024xf32>
    tpu.vector_store %arg19[%c16, %c0_51], %93 {strides = array<i32>} : memref<56x1024xf32, #tpu.memory_space<vmem>>, vector<16x1024xf32>,
    %c1023_i32 = arith.constant 1023 : i32
    %99 = tpu.dynamic_rotate %93 by %c1023_i32 dim 1 : vector<16x1024xf32>, i32 -> vector<16x1024xf32>
    %cst_52 = arith.constant 0.000000e+00 : f32
    %100 = vector.broadcast %cst_52 : f32 to vector<16x1024xf32>
    %101 = arith.select %79, %99, %100 : vector<16x1024xi1>, vector<16x1024xf32>
    %c32 = arith.constant 32 : index
    %c0_53 = arith.constant 0 : index
    %102 = vector.load %arg19[%c32, %c0_53] : memref<56x1024xf32, #tpu.memory_space<vmem>>, vector<16x1024xf32>
    tpu.vector_store %arg19[%c32, %c0_53], %101 {strides = array<i32>} : memref<56x1024xf32, #tpu.memory_space<vmem>>, vector<16x1024xf32>,
    %c0_54 = arith.constant 0 : index
    %c0_55 = arith.constant 0 : index
    %c0_56 = arith.constant 0 : index
    %103 = vector.load %arg10[%c0_54, %c0_55, %c0_56] : memref<4x32x56xf32, #tpu.memory_space<vmem>>, vector<1x32x56xf32>
    %104 = vector.shape_cast %103 : vector<1x32x56xf32> to vector<32x56xf32>
    %c0_57 = arith.constant 0 : index
    %c0_58 = arith.constant 0 : index
    %105 = vector.load %arg19[%c0_57, %c0_58] : memref<56x1024xf32, #tpu.memory_space<vmem>>, vector<56x1024xf32>
    %cst_59 = arith.constant dense<0.000000e+00> : vector<32x1024xf32>
    %106 = tpu.matmul %104, %105, %cst_59 {dimension_numbers = #tpu.dot_dimension_numbers<[1], [0], [0], [1], [0, 0, 1, 1], [], []>} : vector<32x56xf32>, vector<56x1024xf32>, vector<32x1024xf32> -> vector<32x1024xf32>
    %c0_60 = arith.constant 0 : index
    %c0_61 = arith.constant 0 : index
    %c0_62 = arith.constant 0 : index
    %107 = vector.load %arg11[%c0_60, %c0_61, %c0_62] : memref<4x32x1xf32, #tpu.memory_space<vmem>>, vector<1x32x1xf32>
    %108 = vector.shape_cast %107 : vector<1x32x1xf32> to vector<32x1xf32>
    %109 = vector.broadcast %108 : vector<32x1xf32> to vector<32x1024xf32>
    %110 = arith.addf %106, %109 : vector<32x1024xf32>
    %111 = vector.extract_strided_slice %110 {offsets = [0, 0], sizes = [16, 1024], strides = [1, 1]} : vector<32x1024xf32> to vector<16x1024xf32>
    %112 = arith.negf %111 : vector<16x1024xf32>
    %113 = math.exp %112 : vector<16x1024xf32>
    %cst_63 = arith.constant 1.000000e+00 : f32
    %114 = vector.broadcast %cst_63 : f32 to vector<16x1024xf32>
    %115 = arith.addf %114, %113 : vector<16x1024xf32>
    %116 = arith.divf %114, %115 : vector<16x1024xf32>
    %117 = vector.extract_strided_slice %110 {offsets = [16, 0], sizes = [16, 1024], strides = [1, 1]} : vector<32x1024xf32> to vector<16x1024xf32>
    %118 = math.tanh %117 : vector<16x1024xf32>
    %119 = arith.mulf %116, %118 : vector<16x1024xf32>
    %c0_64 = arith.constant 0 : index
    %c0_65 = arith.constant 0 : index
    %c0_66 = arith.constant 0 : index
    %120 = vector.load %arg12[%c0_64, %c0_65, %c0_66] : memref<4x32x16xf32, #tpu.memory_space<vmem>>, vector<1x32x16xf32>
    %121 = vector.shape_cast %120 : vector<1x32x16xf32> to vector<32x16xf32>
    %cst_67 = arith.constant dense<0.000000e+00> : vector<32x1024xf32>
    %122 = tpu.matmul %121, %119, %cst_67 {dimension_numbers = #tpu.dot_dimension_numbers<[1], [0], [0], [1], [0, 0, 1, 1], [], []>} : vector<32x16xf32>, vector<16x1024xf32>, vector<32x1024xf32> -> vector<32x1024xf32>
    %c0_68 = arith.constant 0 : index
    %c0_69 = arith.constant 0 : index
    %c0_70 = arith.constant 0 : index
    %123 = vector.load %arg13[%c0_68, %c0_69, %c0_70] : memref<4x32x1xf32, #tpu.memory_space<vmem>>, vector<1x32x1xf32>
    %124 = vector.shape_cast %123 : vector<1x32x1xf32> to vector<32x1xf32>
    %125 = vector.broadcast %124 : vector<32x1xf32> to vector<32x1024xf32>
    %126 = arith.addf %122, %125 : vector<32x1024xf32>
    %127 = vector.extract_strided_slice %126 {offsets = [0, 0], sizes = [16, 1024], strides = [1, 1]} : vector<32x1024xf32> to vector<16x1024xf32>
    %128 = arith.addf %69, %127 : vector<16x1024xf32>
    %cst_71 = arith.constant 0.707106769 : f32
    %129 = vector.broadcast %cst_71 : f32 to vector<16x1024xf32>
    %130 = arith.mulf %128, %129 : vector<16x1024xf32>
    %131 = vector.extract_strided_slice %126 {offsets = [16, 0], sizes = [16, 1024], strides = [1, 1]} : vector<32x1024xf32> to vector<16x1024xf32>
    %132 = arith.addf %70, %131 : vector<16x1024xf32>
    %c0_72 = arith.constant 0 : index
    %c16_73 = arith.constant 16 : index
    %c0_74 = arith.constant 0 : index
    %133 = vector.load %arg3[%c0_72, %c16_73, %c0_74] : memref<2x128x1xf32, #tpu.memory_space<vmem>>, vector<1x16x1xf32>
    %134 = vector.shape_cast %133 : vector<1x16x1xf32> to vector<16x1xf32>
    %c512_i32_75 = arith.constant 512 : i32
    %135 = vector.broadcast %c512_i32_75 : i32 to vector<16x1024xi32>
    %136 = arith.cmpi slt, %71, %135 : vector<16x1024xi32>
    %c1_76 = arith.constant 1 : index
    %c16_77 = arith.constant 16 : index
    %c0_78 = arith.constant 0 : index
    %137 = vector.load %arg3[%c1_76, %c16_77, %c0_78] : memref<2x128x1xf32, #tpu.memory_space<vmem>>, vector<1x16x1xf32>
    %138 = vector.shape_cast %137 : vector<1x16x1xf32> to vector<16x1xf32>
    %139 = vector.shape_cast %134 : vector<16x1xf32> to vector<16x1xf32>
    %140 = vector.broadcast %139 : vector<16x1xf32> to vector<16x1024xf32>
    %141 = vector.shape_cast %138 : vector<16x1xf32> to vector<16x1xf32>
    %142 = vector.broadcast %141 : vector<16x1xf32> to vector<16x1024xf32>
    %143 = arith.select %136, %140, %142 : vector<16x1024xi1>, vector<16x1024xf32>
    %144 = arith.addf %130, %143 : vector<16x1024xf32>
    %c2_i32_79 = arith.constant 2 : i32
    %145 = tpu.dynamic_rotate %144 by %c2_i32_79 dim 1 : vector<16x1024xf32>, i32 -> vector<16x1024xf32>
    %cst_80 = arith.constant 0.000000e+00 : f32
    %146 = vector.broadcast %cst_80 : f32 to vector<16x1024xf32>
    %147 = arith.select %77, %145, %146 : vector<16x1024xi1>, vector<16x1024xf32>
    %c0_81 = arith.constant 0 : index
    %c0_82 = arith.constant 0 : index
    %148 = vector.load %arg19[%c0_81, %c0_82] : memref<56x1024xf32, #tpu.memory_space<vmem>>, vector<16x1024xf32>
    tpu.vector_store %arg19[%c0_81, %c0_82], %147 {strides = array<i32>} : memref<56x1024xf32, #tpu.memory_space<vmem>>, vector<16x1024xf32>,
    %c16_83 = arith.constant 16 : index
    %c0_84 = arith.constant 0 : index
    %149 = vector.load %arg19[%c16_83, %c0_84] : memref<56x1024xf32, #tpu.memory_space<vmem>>, vector<16x1024xf32>
    tpu.vector_store %arg19[%c16_83, %c0_84], %144 {strides = array<i32>} : memref<56x1024xf32, #tpu.memory_space<vmem>>, vector<16x1024xf32>,
    %c1022_i32 = arith.constant 1022 : i32
    %150 = tpu.dynamic_rotate %144 by %c1022_i32 dim 1 : vector<16x1024xf32>, i32 -> vector<16x1024xf32>
    %cst_85 = arith.constant 0.000000e+00 : f32
    %151 = vector.broadcast %cst_85 : f32 to vector<16x1024xf32>
    %152 = arith.select %81, %150, %151 : vector<16x1024xi1>, vector<16x1024xf32>
    %c32_86 = arith.constant 32 : index
    %c0_87 = arith.constant 0 : index
    %153 = vector.load %arg19[%c32_86, %c0_87] : memref<56x1024xf32, #tpu.memory_space<vmem>>, vector<16x1024xf32>
    tpu.vector_store %arg19[%c32_86, %c0_87], %152 {strides = array<i32>} : memref<56x1024xf32, #tpu.memory_space<vmem>>, vector<16x1024xf32>,
    %c1_88 = arith.constant 1 : index
    %c0_89 = arith.constant 0 : index
    %c0_90 = arith.constant 0 : index
    %154 = vector.load %arg10[%c1_88, %c0_89, %c0_90] : memref<4x32x56xf32, #tpu.memory_space<vmem>>, vector<1x32x56xf32>
    %155 = vector.shape_cast %154 : vector<1x32x56xf32> to vector<32x56xf32>
    %c0_91 = arith.constant 0 : index
    %c0_92 = arith.constant 0 : index
    %156 = vector.load %arg19[%c0_91, %c0_92] : memref<56x1024xf32, #tpu.memory_space<vmem>>, vector<56x1024xf32>
    %cst_93 = arith.constant dense<0.000000e+00> : vector<32x1024xf32>
    %157 = tpu.matmul %155, %156, %cst_93 {dimension_numbers = #tpu.dot_dimension_numbers<[1], [0], [0], [1], [0, 0, 1, 1], [], []>} : vector<32x56xf32>, vector<56x1024xf32>, vector<32x1024xf32> -> vector<32x1024xf32>
    %c1_94 = arith.constant 1 : index
    %c0_95 = arith.constant 0 : index
    %c0_96 = arith.constant 0 : index
    %158 = vector.load %arg11[%c1_94, %c0_95, %c0_96] : memref<4x32x1xf32, #tpu.memory_space<vmem>>, vector<1x32x1xf32>
    %159 = vector.shape_cast %158 : vector<1x32x1xf32> to vector<32x1xf32>
    %160 = vector.broadcast %159 : vector<32x1xf32> to vector<32x1024xf32>
    %161 = arith.addf %157, %160 : vector<32x1024xf32>
    %162 = vector.extract_strided_slice %161 {offsets = [0, 0], sizes = [16, 1024], strides = [1, 1]} : vector<32x1024xf32> to vector<16x1024xf32>
    %163 = arith.negf %162 : vector<16x1024xf32>
    %164 = math.exp %163 : vector<16x1024xf32>
    %cst_97 = arith.constant 1.000000e+00 : f32
    %165 = vector.broadcast %cst_97 : f32 to vector<16x1024xf32>
    %166 = arith.addf %165, %164 : vector<16x1024xf32>
    %167 = arith.divf %165, %166 : vector<16x1024xf32>
    %168 = vector.extract_strided_slice %161 {offsets = [16, 0], sizes = [16, 1024], strides = [1, 1]} : vector<32x1024xf32> to vector<16x1024xf32>
    %169 = math.tanh %168 : vector<16x1024xf32>
    %170 = arith.mulf %167, %169 : vector<16x1024xf32>
    %c1_98 = arith.constant 1 : index
    %c0_99 = arith.constant 0 : index
    %c0_100 = arith.constant 0 : index
    %171 = vector.load %arg12[%c1_98, %c0_99, %c0_100] : memref<4x32x16xf32, #tpu.memory_space<vmem>>, vector<1x32x16xf32>
    %172 = vector.shape_cast %171 : vector<1x32x16xf32> to vector<32x16xf32>
    %cst_101 = arith.constant dense<0.000000e+00> : vector<32x1024xf32>
    %173 = tpu.matmul %172, %170, %cst_101 {dimension_numbers = #tpu.dot_dimension_numbers<[1], [0], [0], [1], [0, 0, 1, 1], [], []>} : vector<32x16xf32>, vector<16x1024xf32>, vector<32x1024xf32> -> vector<32x1024xf32>
    %c1_102 = arith.constant 1 : index
    %c0_103 = arith.constant 0 : index
    %c0_104 = arith.constant 0 : index
    %174 = vector.load %arg13[%c1_102, %c0_103, %c0_104] : memref<4x32x1xf32, #tpu.memory_space<vmem>>, vector<1x32x1xf32>
    %175 = vector.shape_cast %174 : vector<1x32x1xf32> to vector<32x1xf32>
    %176 = vector.broadcast %175 : vector<32x1xf32> to vector<32x1024xf32>
    %177 = arith.addf %173, %176 : vector<32x1024xf32>
    %178 = vector.extract_strided_slice %177 {offsets = [0, 0], sizes = [16, 1024], strides = [1, 1]} : vector<32x1024xf32> to vector<16x1024xf32>
    %179 = arith.addf %130, %178 : vector<16x1024xf32>
    %cst_105 = arith.constant 0.707106769 : f32
    %180 = vector.broadcast %cst_105 : f32 to vector<16x1024xf32>
    %181 = arith.mulf %179, %180 : vector<16x1024xf32>
    %182 = vector.extract_strided_slice %177 {offsets = [16, 0], sizes = [16, 1024], strides = [1, 1]} : vector<32x1024xf32> to vector<16x1024xf32>
    %183 = arith.addf %132, %182 : vector<16x1024xf32>
    %c0_106 = arith.constant 0 : index
    %c32_107 = arith.constant 32 : index
    %c0_108 = arith.constant 0 : index
    %184 = vector.load %arg3[%c0_106, %c32_107, %c0_108] : memref<2x128x1xf32, #tpu.memory_space<vmem>>, vector<1x16x1xf32>
    %185 = vector.shape_cast %184 : vector<1x16x1xf32> to vector<16x1xf32>
    %c512_i32_109 = arith.constant 512 : i32
    %186 = vector.broadcast %c512_i32_109 : i32 to vector<16x1024xi32>
    %187 = arith.cmpi slt, %71, %186 : vector<16x1024xi32>
    %c1_110 = arith.constant 1 : index
    %c32_111 = arith.constant 32 : index
    %c0_112 = arith.constant 0 : index
    %188 = vector.load %arg3[%c1_110, %c32_111, %c0_112] : memref<2x128x1xf32, #tpu.memory_space<vmem>>, vector<1x16x1xf32>
    %189 = vector.shape_cast %188 : vector<1x16x1xf32> to vector<16x1xf32>
    %190 = vector.shape_cast %185 : vector<16x1xf32> to vector<16x1xf32>
    %191 = vector.broadcast %190 : vector<16x1xf32> to vector<16x1024xf32>
    %192 = vector.shape_cast %189 : vector<16x1xf32> to vector<16x1xf32>
    %193 = vector.broadcast %192 : vector<16x1xf32> to vector<16x1024xf32>
    %194 = arith.select %187, %191, %193 : vector<16x1024xi1>, vector<16x1024xf32>
    %195 = arith.addf %181, %194 : vector<16x1024xf32>
    %c1_i32_113 = arith.constant 1 : i32
    %196 = tpu.dynamic_rotate %195 by %c1_i32_113 dim 1 : vector<16x1024xf32>, i32 -> vector<16x1024xf32>
    %cst_114 = arith.constant 0.000000e+00 : f32
    %197 = vector.broadcast %cst_114 : f32 to vector<16x1024xf32>
    %198 = arith.select %75, %196, %197 : vector<16x1024xi1>, vector<16x1024xf32>
    %c0_115 = arith.constant 0 : index
    %c0_116 = arith.constant 0 : index
    %199 = vector.load %arg19[%c0_115, %c0_116] : memref<56x1024xf32, #tpu.memory_space<vmem>>, vector<16x1024xf32>
    tpu.vector_store %arg19[%c0_115, %c0_116], %198 {strides = array<i32>} : memref<56x1024xf32, #tpu.memory_space<vmem>>, vector<16x1024xf32>,
    %c16_117 = arith.constant 16 : index
    %c0_118 = arith.constant 0 : index
    %200 = vector.load %arg19[%c16_117, %c0_118] : memref<56x1024xf32, #tpu.memory_space<vmem>>, vector<16x1024xf32>
    tpu.vector_store %arg19[%c16_117, %c0_118], %195 {strides = array<i32>} : memref<56x1024xf32, #tpu.memory_space<vmem>>, vector<16x1024xf32>,
    %c1023_i32_119 = arith.constant 1023 : i32
    %201 = tpu.dynamic_rotate %195 by %c1023_i32_119 dim 1 : vector<16x1024xf32>, i32 -> vector<16x1024xf32>
    %cst_120 = arith.constant 0.000000e+00 : f32
    %202 = vector.broadcast %cst_120 : f32 to vector<16x1024xf32>
    %203 = arith.select %79, %201, %202 : vector<16x1024xi1>, vector<16x1024xf32>
    %c32_121 = arith.constant 32 : index
    %c0_122 = arith.constant 0 : index
    %204 = vector.load %arg19[%c32_121, %c0_122] : memref<56x1024xf32, #tpu.memory_space<vmem>>, vector<16x1024xf32>
    tpu.vector_store %arg19[%c32_121, %c0_122], %203 {strides = array<i32>} : memref<56x1024xf32, #tpu.memory_space<vmem>>, vector<16x1024xf32>,
    %c2 = arith.constant 2 : index
    %c0_123 = arith.constant 0 : index
    %c0_124 = arith.constant 0 : index
    %205 = vector.load %arg10[%c2, %c0_123, %c0_124] : memref<4x32x56xf32, #tpu.memory_space<vmem>>, vector<1x32x56xf32>
    %206 = vector.shape_cast %205 : vector<1x32x56xf32> to vector<32x56xf32>
    %c0_125 = arith.constant 0 : index
    %c0_126 = arith.constant 0 : index
    %207 = vector.load %arg19[%c0_125, %c0_126] : memref<56x1024xf32, #tpu.memory_space<vmem>>, vector<56x1024xf32>
    %cst_127 = arith.constant dense<0.000000e+00> : vector<32x1024xf32>
    %208 = tpu.matmul %206, %207, %cst_127 {dimension_numbers = #tpu.dot_dimension_numbers<[1], [0], [0], [1], [0, 0, 1, 1], [], []>} : vector<32x56xf32>, vector<56x1024xf32>, vector<32x1024xf32> -> vector<32x1024xf32>
    %c2_128 = arith.constant 2 : index
    %c0_129 = arith.constant 0 : index
    %c0_130 = arith.constant 0 : index
    %209 = vector.load %arg11[%c2_128, %c0_129, %c0_130] : memref<4x32x1xf32, #tpu.memory_space<vmem>>, vector<1x32x1xf32>
    %210 = vector.shape_cast %209 : vector<1x32x1xf32> to vector<32x1xf32>
    %211 = vector.broadcast %210 : vector<32x1xf32> to vector<32x1024xf32>
    %212 = arith.addf %208, %211 : vector<32x1024xf32>
    %213 = vector.extract_strided_slice %212 {offsets = [0, 0], sizes = [16, 1024], strides = [1, 1]} : vector<32x1024xf32> to vector<16x1024xf32>
    %214 = arith.negf %213 : vector<16x1024xf32>
    %215 = math.exp %214 : vector<16x1024xf32>
    %cst_131 = arith.constant 1.000000e+00 : f32
    %216 = vector.broadcast %cst_131 : f32 to vector<16x1024xf32>
    %217 = arith.addf %216, %215 : vector<16x1024xf32>
    %218 = arith.divf %216, %217 : vector<16x1024xf32>
    %219 = vector.extract_strided_slice %212 {offsets = [16, 0], sizes = [16, 1024], strides = [1, 1]} : vector<32x1024xf32> to vector<16x1024xf32>
    %220 = math.tanh %219 : vector<16x1024xf32>
    %221 = arith.mulf %218, %220 : vector<16x1024xf32>
    %c2_132 = arith.constant 2 : index
    %c0_133 = arith.constant 0 : index
    %c0_134 = arith.constant 0 : index
    %222 = vector.load %arg12[%c2_132, %c0_133, %c0_134] : memref<4x32x16xf32, #tpu.memory_space<vmem>>, vector<1x32x16xf32>
    %223 = vector.shape_cast %222 : vector<1x32x16xf32> to vector<32x16xf32>
    %cst_135 = arith.constant dense<0.000000e+00> : vector<32x1024xf32>
    %224 = tpu.matmul %223, %221, %cst_135 {dimension_numbers = #tpu.dot_dimension_numbers<[1], [0], [0], [1], [0, 0, 1, 1], [], []>} : vector<32x16xf32>, vector<16x1024xf32>, vector<32x1024xf32> -> vector<32x1024xf32>
    %c2_136 = arith.constant 2 : index
    %c0_137 = arith.constant 0 : index
    %c0_138 = arith.constant 0 : index
    %225 = vector.load %arg13[%c2_136, %c0_137, %c0_138] : memref<4x32x1xf32, #tpu.memory_space<vmem>>, vector<1x32x1xf32>
    %226 = vector.shape_cast %225 : vector<1x32x1xf32> to vector<32x1xf32>
    %227 = vector.broadcast %226 : vector<32x1xf32> to vector<32x1024xf32>
    %228 = arith.addf %224, %227 : vector<32x1024xf32>
    %229 = vector.extract_strided_slice %228 {offsets = [0, 0], sizes = [16, 1024], strides = [1, 1]} : vector<32x1024xf32> to vector<16x1024xf32>
    %230 = arith.addf %181, %229 : vector<16x1024xf32>
    %cst_139 = arith.constant 0.707106769 : f32
    %231 = vector.broadcast %cst_139 : f32 to vector<16x1024xf32>
    %232 = arith.mulf %230, %231 : vector<16x1024xf32>
    %233 = vector.extract_strided_slice %228 {offsets = [16, 0], sizes = [16, 1024], strides = [1, 1]} : vector<32x1024xf32> to vector<16x1024xf32>
    %234 = arith.addf %183, %233 : vector<16x1024xf32>
    %c0_140 = arith.constant 0 : index
    %c48_141 = arith.constant 48 : index
    %c0_142 = arith.constant 0 : index
    %235 = vector.load %arg3[%c0_140, %c48_141, %c0_142] : memref<2x128x1xf32, #tpu.memory_space<vmem>>, vector<1x16x1xf32>
    %236 = vector.shape_cast %235 : vector<1x16x1xf32> to vector<16x1xf32>
    %c512_i32_143 = arith.constant 512 : i32
    %237 = vector.broadcast %c512_i32_143 : i32 to vector<16x1024xi32>
    %238 = arith.cmpi slt, %71, %237 : vector<16x1024xi32>
    %c1_144 = arith.constant 1 : index
    %c48_145 = arith.constant 48 : index
    %c0_146 = arith.constant 0 : index
    %239 = vector.load %arg3[%c1_144, %c48_145, %c0_146] : memref<2x128x1xf32, #tpu.memory_space<vmem>>, vector<1x16x1xf32>
    %240 = vector.shape_cast %239 : vector<1x16x1xf32> to vector<16x1xf32>
    %241 = vector.shape_cast %236 : vector<16x1xf32> to vector<16x1xf32>
    %242 = vector.broadcast %241 : vector<16x1xf32> to vector<16x1024xf32>
    %243 = vector.shape_cast %240 : vector<16x1xf32> to vector<16x1xf32>
    %244 = vector.broadcast %243 : vector<16x1xf32> to vector<16x1024xf32>
    %245 = arith.select %238, %242, %244 : vector<16x1024xi1>, vector<16x1024xf32>
    %246 = arith.addf %232, %245 : vector<16x1024xf32>
    %c2_i32_147 = arith.constant 2 : i32
    %247 = tpu.dynamic_rotate %246 by %c2_i32_147 dim 1 : vector<16x1024xf32>, i32 -> vector<16x1024xf32>
    %cst_148 = arith.constant 0.000000e+00 : f32
    %248 = vector.broadcast %cst_148 : f32 to vector<16x1024xf32>
    %249 = arith.select %77, %247, %248 : vector<16x1024xi1>, vector<16x1024xf32>
    %c0_149 = arith.constant 0 : index
    %c0_150 = arith.constant 0 : index
    %250 = vector.load %arg19[%c0_149, %c0_150] : memref<56x1024xf32, #tpu.memory_space<vmem>>, vector<16x1024xf32>
    tpu.vector_store %arg19[%c0_149, %c0_150], %249 {strides = array<i32>} : memref<56x1024xf32, #tpu.memory_space<vmem>>, vector<16x1024xf32>,
    %c16_151 = arith.constant 16 : index
    %c0_152 = arith.constant 0 : index
    %251 = vector.load %arg19[%c16_151, %c0_152] : memref<56x1024xf32, #tpu.memory_space<vmem>>, vector<16x1024xf32>
    tpu.vector_store %arg19[%c16_151, %c0_152], %246 {strides = array<i32>} : memref<56x1024xf32, #tpu.memory_space<vmem>>, vector<16x1024xf32>,
    %c1022_i32_153 = arith.constant 1022 : i32
    %252 = tpu.dynamic_rotate %246 by %c1022_i32_153 dim 1 : vector<16x1024xf32>, i32 -> vector<16x1024xf32>
    %cst_154 = arith.constant 0.000000e+00 : f32
    %253 = vector.broadcast %cst_154 : f32 to vector<16x1024xf32>
    %254 = arith.select %81, %252, %253 : vector<16x1024xi1>, vector<16x1024xf32>
    %c32_155 = arith.constant 32 : index
    %c0_156 = arith.constant 0 : index
    %255 = vector.load %arg19[%c32_155, %c0_156] : memref<56x1024xf32, #tpu.memory_space<vmem>>, vector<16x1024xf32>
    tpu.vector_store %arg19[%c32_155, %c0_156], %254 {strides = array<i32>} : memref<56x1024xf32, #tpu.memory_space<vmem>>, vector<16x1024xf32>,
    %c3 = arith.constant 3 : index
    %c0_157 = arith.constant 0 : index
    %c0_158 = arith.constant 0 : index
    %256 = vector.load %arg10[%c3, %c0_157, %c0_158] : memref<4x32x56xf32, #tpu.memory_space<vmem>>, vector<1x32x56xf32>
    %257 = vector.shape_cast %256 : vector<1x32x56xf32> to vector<32x56xf32>
    %c0_159 = arith.constant 0 : index
    %c0_160 = arith.constant 0 : index
    %258 = vector.load %arg19[%c0_159, %c0_160] : memref<56x1024xf32, #tpu.memory_space<vmem>>, vector<56x1024xf32>
    %cst_161 = arith.constant dense<0.000000e+00> : vector<32x1024xf32>
    %259 = tpu.matmul %257, %258, %cst_161 {dimension_numbers = #tpu.dot_dimension_numbers<[1], [0], [0], [1], [0, 0, 1, 1], [], []>} : vector<32x56xf32>, vector<56x1024xf32>, vector<32x1024xf32> -> vector<32x1024xf32>
    %c3_162 = arith.constant 3 : index
    %c0_163 = arith.constant 0 : index
    %c0_164 = arith.constant 0 : index
    %260 = vector.load %arg11[%c3_162, %c0_163, %c0_164] : memref<4x32x1xf32, #tpu.memory_space<vmem>>, vector<1x32x1xf32>
    %261 = vector.shape_cast %260 : vector<1x32x1xf32> to vector<32x1xf32>
    %262 = vector.broadcast %261 : vector<32x1xf32> to vector<32x1024xf32>
    %263 = arith.addf %259, %262 : vector<32x1024xf32>
    %264 = vector.extract_strided_slice %263 {offsets = [0, 0], sizes = [16, 1024], strides = [1, 1]} : vector<32x1024xf32> to vector<16x1024xf32>
    %265 = arith.negf %264 : vector<16x1024xf32>
    %266 = math.exp %265 : vector<16x1024xf32>
    %cst_165 = arith.constant 1.000000e+00 : f32
    %267 = vector.broadcast %cst_165 : f32 to vector<16x1024xf32>
    %268 = arith.addf %267, %266 : vector<16x1024xf32>
    %269 = arith.divf %267, %268 : vector<16x1024xf32>
    %270 = vector.extract_strided_slice %263 {offsets = [16, 0], sizes = [16, 1024], strides = [1, 1]} : vector<32x1024xf32> to vector<16x1024xf32>
    %271 = math.tanh %270 : vector<16x1024xf32>
    %272 = arith.mulf %269, %271 : vector<16x1024xf32>
    %c3_166 = arith.constant 3 : index
    %c0_167 = arith.constant 0 : index
    %c0_168 = arith.constant 0 : index
    %273 = vector.load %arg12[%c3_166, %c0_167, %c0_168] : memref<4x32x16xf32, #tpu.memory_space<vmem>>, vector<1x32x16xf32>
    %274 = vector.shape_cast %273 : vector<1x32x16xf32> to vector<32x16xf32>
    %cst_169 = arith.constant dense<0.000000e+00> : vector<32x1024xf32>
    %275 = tpu.matmul %274, %272, %cst_169 {dimension_numbers = #tpu.dot_dimension_numbers<[1], [0], [0], [1], [0, 0, 1, 1], [], []>} : vector<32x16xf32>, vector<16x1024xf32>, vector<32x1024xf32> -> vector<32x1024xf32>
    %c3_170 = arith.constant 3 : index
    %c0_171 = arith.constant 0 : index
    %c0_172 = arith.constant 0 : index
    %276 = vector.load %arg13[%c3_170, %c0_171, %c0_172] : memref<4x32x1xf32, #tpu.memory_space<vmem>>, vector<1x32x1xf32>
    %277 = vector.shape_cast %276 : vector<1x32x1xf32> to vector<32x1xf32>
    %278 = vector.broadcast %277 : vector<32x1xf32> to vector<32x1024xf32>
    %279 = arith.addf %275, %278 : vector<32x1024xf32>
    %280 = vector.extract_strided_slice %279 {offsets = [16, 0], sizes = [16, 1024], strides = [1, 1]} : vector<32x1024xf32> to vector<16x1024xf32>
    %281 = arith.addf %234, %280 : vector<16x1024xf32>
    %cst_173 = arith.constant 5.000000e-01 : f32
    %282 = vector.broadcast %cst_173 : f32 to vector<16x1024xf32>
    %283 = arith.mulf %281, %282 : vector<16x1024xf32>
    %c0_174 = arith.constant 0 : index
    %c0_175 = arith.constant 0 : index
    %284 = vector.load %arg14[%c0_174, %c0_175] : memref<16x16xf32, #tpu.memory_space<vmem>>, vector<16x16xf32>
    %cst_176 = arith.constant dense<0.000000e+00> : vector<16x1024xf32>
    %285 = tpu.matmul %284, %283, %cst_176 {dimension_numbers = #tpu.dot_dimension_numbers<[1], [0], [0], [1], [0, 0, 1, 1], [], []>} : vector<16x16xf32>, vector<16x1024xf32>, vector<16x1024xf32> -> vector<16x1024xf32>
    %c0_177 = arith.constant 0 : index
    %c0_178 = arith.constant 0 : index
    %286 = vector.load %arg15[%c0_177, %c0_178] : memref<16x1xf32, #tpu.memory_space<vmem>>, vector<16x1xf32>
    %287 = vector.broadcast %286 : vector<16x1xf32> to vector<16x1024xf32>
    %288 = arith.addf %285, %287 : vector<16x1024xf32>
    %cst_179 = arith.constant 0.000000e+00 : f32
    %289 = vector.broadcast %cst_179 : f32 to vector<16x1024xf32>
    %290 = arith.maximumf %288, %289 : vector<16x1024xf32>
    %c0_180 = arith.constant 0 : index
    %c0_181 = arith.constant 0 : index
    %291 = vector.load %arg16[%c0_180, %c0_181] : memref<16x1xf32, #tpu.memory_space<vmem>>, vector<16x1xf32>
    %292 = vector.broadcast %291 : vector<16x1xf32> to vector<16x1024xf32>
    %293 = arith.mulf %292, %290 : vector<16x1024xf32>
    %cst_182 = arith.constant dense<0.000000e+00> : vector<1024xf32>
    %294 = vector.multi_reduction <add>, %293, %cst_182 [0] : vector<16x1024xf32> to vector<1024xf32>
    %295 = vector.shape_cast %294 : vector<1024xf32> to vector<1x1024xf32>
    %c0_183 = arith.constant 0 : index
    %c0_184 = arith.constant 0 : index
    %296 = vector.load %arg17[%c0_183, %c0_184] : memref<1x1xf32, #tpu.memory_space<vmem>>, vector<1x1xf32>
    %297 = vector.broadcast %296 : vector<1x1xf32> to vector<1x1024xf32>
    %298 = arith.addf %295, %297 : vector<1x1024xf32>
    %c0_185 = arith.constant 0 : index
    %c0_186 = arith.constant 0 : index
    %c0_187 = arith.constant 0 : index
    %299 = vector.load %arg18[%c0_185, %c0_186, %c0_187] : memref<1x1x1024xf32, #tpu.memory_space<vmem>>, vector<1x1x1024xf32>
    %300 = vector.shape_cast %299 : vector<1x1x1024xf32> to vector<1x1024xf32>
    %301 = vector.shape_cast %298 : vector<1x1024xf32> to vector<1x1x1024xf32>
    tpu.vector_store %arg18[%c0_185, %c0_186, %c0_187], %301 {strides = array<i32>} : memref<1x1x1024xf32, #tpu.memory_space<vmem>>, vector<1x1x1024xf32>,
    return
  }
  func.func @transform_0(%arg0: i32) -> (i32, i32, i32) {
    %c0_i32 = arith.constant 0 : i32
    %c0_i32_0 = arith.constant 0 : i32
    %c0_i32_1 = arith.constant 0 : i32
    return %arg0, %c0_i32, %c0_i32_0 : i32, i32, i32
  }
  func.func @transform_1(%arg0: i32) -> (i32, i32, i32) {
    %c0_i32 = arith.constant 0 : i32
    %c0_i32_0 = arith.constant 0 : i32
    %c0_i32_1 = arith.constant 0 : i32
    return %arg0, %c0_i32, %c0_i32_0 : i32, i32, i32
  }
  func.func @transform_2(%arg0: i32) -> (i32, i32, i32) {
    %c0_i32 = arith.constant 0 : i32
    %c0_i32_0 = arith.constant 0 : i32
    %c0_i32_1 = arith.constant 0 : i32
    return %arg0, %c0_i32, %c0_i32_0 : i32, i32, i32
  }
  func.func @transform_3(%arg0: i32) -> (i32, i32) {
    %c0_i32 = arith.constant 0 : i32
    %c0_i32_0 = arith.constant 0 : i32
    %c0_i32_1 = arith.constant 0 : i32
    return %c0_i32, %c0_i32_0 : i32, i32
  }
  func.func @transform_4(%arg0: i32) -> (i32, i32) {
    %c0_i32 = arith.constant 0 : i32
    %c0_i32_0 = arith.constant 0 : i32
    %c0_i32_1 = arith.constant 0 : i32
    return %c0_i32, %c0_i32_0 : i32, i32
  }
  func.func @transform_5(%arg0: i32) -> (i32, i32) {
    %c0_i32 = arith.constant 0 : i32
    %c0_i32_0 = arith.constant 0 : i32
    %c0_i32_1 = arith.constant 0 : i32
    return %c0_i32, %c0_i32_0 : i32, i32
  }
  func.func @transform_6(%arg0: i32) -> (i32, i32) {
    %c0_i32 = arith.constant 0 : i32
    %c0_i32_0 = arith.constant 0 : i32
    %c0_i32_1 = arith.constant 0 : i32
    return %c0_i32, %c0_i32_0 : i32, i32
  }
  func.func @transform_7(%arg0: i32) -> (i32, i32) {
    %c0_i32 = arith.constant 0 : i32
    %c0_i32_0 = arith.constant 0 : i32
    %c0_i32_1 = arith.constant 0 : i32
    return %c0_i32, %c0_i32_0 : i32, i32
  }
  func.func @transform_8(%arg0: i32) -> (i32, i32) {
    %c0_i32 = arith.constant 0 : i32
    %c0_i32_0 = arith.constant 0 : i32
    %c0_i32_1 = arith.constant 0 : i32
    return %c0_i32, %c0_i32_0 : i32, i32
  }
  func.func @transform_9(%arg0: i32) -> (i32, i32, i32) {
    %c0_i32 = arith.constant 0 : i32
    %c0_i32_0 = arith.constant 0 : i32
    %c0_i32_1 = arith.constant 0 : i32
    %c0_i32_2 = arith.constant 0 : i32
    return %c0_i32, %c0_i32_0, %c0_i32_1 : i32, i32, i32
  }
  func.func @transform_10(%arg0: i32) -> (i32, i32, i32) {
    %c0_i32 = arith.constant 0 : i32
    %c0_i32_0 = arith.constant 0 : i32
    %c0_i32_1 = arith.constant 0 : i32
    %c0_i32_2 = arith.constant 0 : i32
    return %c0_i32, %c0_i32_0, %c0_i32_1 : i32, i32, i32
  }
  func.func @transform_11(%arg0: i32) -> (i32, i32, i32) {
    %c0_i32 = arith.constant 0 : i32
    %c0_i32_0 = arith.constant 0 : i32
    %c0_i32_1 = arith.constant 0 : i32
    %c0_i32_2 = arith.constant 0 : i32
    return %c0_i32, %c0_i32_0, %c0_i32_1 : i32, i32, i32
  }
  func.func @transform_12(%arg0: i32) -> (i32, i32, i32) {
    %c0_i32 = arith.constant 0 : i32
    %c0_i32_0 = arith.constant 0 : i32
    %c0_i32_1 = arith.constant 0 : i32
    %c0_i32_2 = arith.constant 0 : i32
    return %c0_i32, %c0_i32_0, %c0_i32_1 : i32, i32, i32
  }
  func.func @transform_13(%arg0: i32) -> (i32, i32) {
    %c0_i32 = arith.constant 0 : i32
    %c0_i32_0 = arith.constant 0 : i32
    %c0_i32_1 = arith.constant 0 : i32
    return %c0_i32, %c0_i32_0 : i32, i32
  }
  func.func @transform_14(%arg0: i32) -> (i32, i32) {
    %c0_i32 = arith.constant 0 : i32
    %c0_i32_0 = arith.constant 0 : i32
    %c0_i32_1 = arith.constant 0 : i32
    return %c0_i32, %c0_i32_0 : i32, i32
  }
  func.func @transform_15(%arg0: i32) -> (i32, i32) {
    %c0_i32 = arith.constant 0 : i32
    %c0_i32_0 = arith.constant 0 : i32
    %c0_i32_1 = arith.constant 0 : i32
    return %c0_i32, %c0_i32_0 : i32, i32
  }
  func.func @transform_16(%arg0: i32) -> (i32, i32) {
    %c0_i32 = arith.constant 0 : i32
    %c0_i32_0 = arith.constant 0 : i32
    %c0_i32_1 = arith.constant 0 : i32
    return %c0_i32, %c0_i32_0 : i32, i32
  }
  func.func @transform_17(%arg0: i32) -> (i32, i32, i32) {
    %c0_i32 = arith.constant 0 : i32
    %c0_i32_0 = arith.constant 0 : i32
    %c0_i32_1 = arith.constant 0 : i32
    return %arg0, %c0_i32, %c0_i32_0 : i32, i32, i32
  }
}

</mosaic_0001>

<bundles_post_ra>
// kernel: diffwave_forward.2
= control target key start
LH: loop header
LB: loop body
LE: loop exit
PB: predicated region body
PF: predicated region fallthrough
CT: control target
= control target key end

     0   :  { %14 = vsyncpa [#allocation3], 0  ;;  %s2600_s0 = inlined_call_operand.vmem [shape: f32[2,128], index: 0, kind: input, shape index: {}]   ;;  %s2601_s1 = inlined_call_operand.hbm [shape: bf16[128,512], index: 1, kind: input, shape index: {}]   ;;  %s2602_s2 = inlined_call_operand.vmem [shape: f32[1,512], index: 2, kind: input, shape index: {}]   ;;  %s2603_s3 = inlined_call_operand.hbm [shape: bf16[512,512], index: 3, kind: input, shape index: {}]   ;;  %s2604_s4 = inlined_call_operand.vmem [shape: f32[1,512], index: 4, kind: input, shape index: {}]   ;;  %s2605_s5 = inlined_call_operand.hbm [shape: bf16[512,128], index: 5, kind: input, shape index: {}]   ;;  %s2606_s6 = inlined_call_operand.vmem [shape: f32[1,128], index: 6, kind: input, shape index: {}]   ;;  %s2607_s7 = inlined_call_operand.hbm [shape: f32[2,512], index: 7, kind: output, shape index: {0}]   ;;  %s2608_s8 = inlined_call_operand.vmem [shape: f32[2,128], index: 8, kind: output, shape index: {1}]  }
   0x1   :  { %15 = vsyncpa [#allocation6], 0 }
   0x2   :  { %16 = vsyncpa [#allocation4], 0  ;;  %s2439_s27 = smov [#allocation5]   ;;  %s2440_s29 = smov [#allocation2]  }
   0x3   :  { %s38_s28 = sshll.u32 %s2439_s27, 4  ;;  %s24_s30 = sshll.u32 %s2440_s29, 4  ;;  %s39_s28 = int_to_ptr.vmem [resolvable:$true] %s38_s28  ;;  %s2494_s30 = int_to_ptr.vmem [resolvable:$true] %s24_s30 }
   0x4   :  { %s2345_s11 = scalar_lea.hbm %s2603_s3, 16384 }
   0x5   :  { %p2346_p0 = scmp.ne.s32.totalorder %s2603_s3, %s2345_s11  ;;  %p2349_p1 = scmp.lt.u32.totalorder %s2345_s11, %s2603_s3 }
   0x7   :  { %p2351_p2 = pnand %p2349_p1, %p2346_p0 }
   0x9   :  { %2354 = shalt.err (!%p2351_p2)
}
   0xa   :  { %s2355_s16 = scalar_lea.vmem %s39_s28, 16384  ;;  %p2360_p4 = scmp.lt.s32.totalorder %s39_s28, %s39_s28 }
   0xb   :  { %p2356_p3 = scmp.ne.s32.totalorder %s39_s28, %s2355_s16  ;;  %p2361_p5 = scmp.lt.s32.totalorder %s2355_s16, %s2355_s16 }
   0xd   :  { %p2362_p6 = por %p2361_p5, %p2360_p4 }
   0xf   :  { %p2363_p7 = pnand %p2362_p6, %p2356_p3 }
  0x11   :  { %2366 = shalt.err (!%p2363_p7)
}
  0x12   :  { %s2441_s17 = smov 256   ;;  %s2442_s18 = smov 16  }
  0x13   :  { %44 = dma.hbm_to_vmem [thread:$0]  %s2603_s3, 16384, %s39_s28, [#allocation6], %s2441_s17, %s2441_s17, %s2442_s18  }
  0x14   :  { %s2367_s23 = scalar_lea.hbm %s2601_s1, 4096 }
  0x15   :  { %p2368_p8 = scmp.ne.s32.totalorder %s2601_s1, %s2367_s23  ;;  %p2371_p9 = scmp.lt.u32.totalorder %s2367_s23, %s2601_s1 }
  0x17   :  { %p2373_p10 = pnand %p2371_p9, %p2368_p8 }
  0x19   :  { %2376 = shalt.err (!%p2373_p10)
}
  0x1a   :  { %s2377_s29 = scalar_lea.vmem %s2494_s30, 4096  ;;  %p2382_p12 = scmp.lt.s32.totalorder %s2494_s30, %s2494_s30 }
  0x1b   :  { %p2378_p11 = scmp.ne.s32.totalorder %s2494_s30, %s2377_s29  ;;  %p2383_p13 = scmp.lt.s32.totalorder %s2377_s29, %s2377_s29 }
  0x1d   :  { %p2384_p0 = por %p2383_p13, %p2382_p12 }
  0x1f   :  { %p2385_p1 = pnand %p2384_p0, %p2378_p11 }
  0x21   :  { %2388 = shalt.err (!%p2385_p1)
}
  0x22   :  { %30 = dma.hbm_to_vmem [thread:$0]  %s2601_s1, 4096, %s2494_s30, [#allocation3], %s2441_s17, %s2441_s17, %s2442_s18  }
  0x23   :  { %s2443_s9 = smov [#allocation7]   ;;  %s2389_s13 = scalar_lea.hbm %s2605_s5, 4096 }
  0x24   :  { %s52_s10 = sshll.u32 %s2443_s9, 4  ;;  %p2390_p2 = scmp.ne.s32.totalorder %s2605_s5, %s2389_s13  ;;  %s53_s10 = int_to_ptr.vmem [resolvable:$true] %s52_s10 }
  0x25   :  { %p2393_p3 = scmp.lt.u32.totalorder %s2389_s13, %s2605_s5 }
  0x27   :  { %p2395_p4 = pnand %p2393_p3, %p2390_p2 }
  0x29   :  { %2398 = shalt.err (!%p2395_p4)
}
  0x2a   :  { %s2399_s20 = scalar_lea.vmem %s53_s10, 4096  ;;  %p2404_p6 = scmp.lt.s32.totalorder %s53_s10, %s53_s10 }
  0x2b   :  { %p2400_p5 = scmp.ne.s32.totalorder %s53_s10, %s2399_s20  ;;  %p2405_p7 = scmp.lt.s32.totalorder %s2399_s20, %s2399_s20 }
  0x2d   :  { %p2406_p8 = por %p2405_p7, %p2404_p6 }
  0x2f   :  { %p2407_p9 = pnand %p2406_p8, %p2400_p5 }
  0x31   :  { %2410 = shalt.err (!%p2407_p9)
}
  0x32   :  { %s2444_s1 = smov 64   ;;  %s2445_s30 = smov 4  }
  0x33   :  { %58 = dma.hbm_to_vmem [thread:$0]  %s2605_s5, 4096, %s53_s10, [#allocation6], %s2444_s1, %s2444_s1, %s2445_s30  }
  0x34   :  { %2433 = dma.done.wait [#allocation3], 4096  }
  0x35   :  { %2434 = vsyncadd [#allocation3], 4294963200 }
  0x36   :  { %2435 = dma.done.wait [#allocation6], 20480  }
  0x37   :  { %2436 = vsyncadd [#allocation6], 4294946816  ;;  %v2446_v0 = vmov 0   ;;  %v2041_v1 = vld [vmem:[#allocation2 + $0x4] ss:$16 sps:$4 sm:$0xff]  }
  0x38   :  { %319 = vmatprep.mubr.bf16.mxu0 %v2446_v0  ;;  %360 = vmatprep.mubr.bf16.mxu1 %v2446_v0  ;;  %v2043_v2 = vld [vmem:[#allocation2] ss:$16 sps:$4 sm:$0xff]   ;;  %v2044_v3 = vld [vmem:[#allocation2 + $0x24] ss:$16 sps:$4 sm:$0xff]   ;;  %v2065_v10 = vld [vmem:[#allocation2 + $0xc] ss:$16 sps:$4 sm:$0xff]  }
  0x39   :  { %287 = vmatprep.subr.bf16.mxu0 %v2041_v1  ;;  %v2046_v4 = vld [vmem:[#allocation2 + $0x20] ss:$16 sps:$4 sm:$0xff]   ;;  %v2047_v5 = vld [vmem:[#allocation2 + $0x44] ss:$16 sps:$4 sm:$0xff]   ;;  %v2067_v11 = vld [vmem:[#allocation2 + $0x8] ss:$16 sps:$4 sm:$0xff]   ;;  %328 = vmatprep.subr.bf16.mxu1 %v2065_v10 }
  0x3a   :  { %288 = vmatpush1.bf16.msra.mxu0 %v2043_v2  ;;  %v2049_v6 = vld [vmem:[#allocation2 + $0x40] ss:$16 sps:$4 sm:$0xff]   ;;  %v2050_v7 = vld [vmem:[#allocation2 + $0x64] ss:$16 sps:$4 sm:$0xff]   ;;  %v2068_v12 = vld [vmem:[#allocation2 + $0x2c] ss:$16 sps:$4 sm:$0xff]   ;;  %329 = vmatpush1.bf16.msra.mxu1 %v2067_v11 }
  0x3b   :  { %289 = vmatprep.subr.bf16.mxu0 %v2044_v3  ;;  %v2052_v8 = vld [vmem:[#allocation2 + $0x60] ss:$16 sps:$4 sm:$0xff]   ;;  %v2053_v9 = vld [vmem:[#allocation2 + $0x84] ss:$16 sps:$4 sm:$0xff]   ;;  %v2070_v14 = vld [vmem:[#allocation2 + $0x28] ss:$16 sps:$4 sm:$0xff]   ;;  %330 = vmatprep.subr.bf16.mxu1 %v2068_v12 }
  0x3c   :  { %v2055_v13 = vld [vmem:[#allocation2 + $0x80] ss:$16 sps:$4 sm:$0xff]   ;;  %v2071_v15 = vld [vmem:[#allocation2 + $0x4c] ss:$16 sps:$4 sm:$0xff]   ;;  %v2056_v16 = vld [vmem:[#allocation2 + $0xa4] ss:$16 sps:$4 sm:$0xff]  }
  0x3d   :  { %v2058_v17 = vld [vmem:[#allocation2 + $0xa0] ss:$16 sps:$4 sm:$0xff]   ;;  %v2073_v18 = vld [vmem:[#allocation2 + $0x48] ss:$16 sps:$4 sm:$0xff]   ;;  %v2074_v19 = vld [vmem:[#allocation2 + $0x6c] ss:$16 sps:$4 sm:$0xff]  }
  0x3e   :  { %290 = vmatpush1.bf16.msra.mxu0 %v2046_v4  ;;  %331 = vmatpush1.bf16.msra.mxu1 %v2070_v14  ;;  %v2059_v20 = vld [vmem:[#allocation2 + $0xc4] ss:$16 sps:$4 sm:$0xff]   ;;  %v2061_v21 = vld [vmem:[#allocation2 + $0xc0] ss:$16 sps:$4 sm:$0xff]   ;;  %v2076_v22 = vld [vmem:[#allocation2 + $0x68] ss:$16 sps:$4 sm:$0xff]  }
  0x3f   :  { %291 = vmatprep.subr.bf16.mxu0 %v2047_v5  ;;  %332 = vmatprep.subr.bf16.mxu1 %v2071_v15  ;;  %v2077_v23 = vld [vmem:[#allocation2 + $0x8c] ss:$16 sps:$4 sm:$0xff]   ;;  %v2062_v24 = vld [vmem:[#allocation2 + $0xe4] ss:$16 sps:$4 sm:$0xff]   ;;  %v2064_v25 = vld [vmem:[#allocation2 + $0xe0] ss:$16 sps:$4 sm:$0xff]  }
  0x40   :  { %v71_v26 = vld [vmem:[%s2600_s0] sm:$0x3]  ;;  %v2079_v27 = vld [vmem:[#allocation2 + $0x88] ss:$16 sps:$4 sm:$0xff]   ;;  %v2080_v28 = vld [vmem:[#allocation2 + $0xac] ss:$16 sps:$4 sm:$0xff]  }
  0x41   :  { %v2091_v29 = vld [vmem:[#allocation5 + $0x4] ss:$16 sps:$4 sm:$0xff]   ;;  %v72_v30 = vpack.c.bf16 %v71_v26, %v71_v26  ;;  %v2082_v31 = vld [vmem:[#allocation2 + $0xa8] ss:$16 sps:$4 sm:$0xff]   ;;  %v2083_v32 = vld [vmem:[#allocation2 + $0xcc] ss:$16 sps:$4 sm:$0xff]  }
  0x42   :  { %292 = vmatpush1.bf16.msra.mxu0 %v2049_v6  ;;  %333 = vmatpush1.bf16.msra.mxu1 %v2073_v18  ;;  %v2089_v33 = vld [vmem:[#allocation5] ss:$16 sps:$4 sm:$0xff]   ;;  %v2097_v34 = vld [vmem:[#allocation5 + $0x24] ss:$16 sps:$4 sm:$0xff]   ;;  %v2085_v35 = vld [vmem:[#allocation2 + $0xc8] ss:$16 sps:$4 sm:$0xff]  }
  0x43   :  { %293 = vmatprep.subr.bf16.mxu0 %v2050_v7  ;;  %334 = vmatprep.subr.bf16.mxu1 %v2074_v19  ;;  %v2086_v36 = vld [vmem:[#allocation2 + $0xec] ss:$16 sps:$4 sm:$0xff]   ;;  %v2095_v37 = vld [vmem:[#allocation5 + $0x20] ss:$16 sps:$4 sm:$0xff]   ;;  %v2103_v38 = vld [vmem:[#allocation5 + $0x44] ss:$16 sps:$4 sm:$0xff]  }
  0x44   :  { %v2088_v39 = vld [vmem:[#allocation2 + $0xe8] ss:$16 sps:$4 sm:$0xff]   ;;  %v2094_v40 = vld [vmem:[#allocation5 + $0xc] ss:$16 sps:$4 sm:$0xff]   ;;  %v2101_v41 = vld [vmem:[#allocation5 + $0x40] ss:$16 sps:$4 sm:$0xff]  }
  0x45   :  { %v2109_v42 = vld [vmem:[#allocation5 + $0x64] ss:$16 sps:$4 sm:$0xff]   ;;  %v2092_v43 = vld [vmem:[#allocation5 + $0x8] ss:$16 sps:$4 sm:$0xff]   ;;  %v2100_v44 = vld [vmem:[#allocation5 + $0x2c] ss:$16 sps:$4 sm:$0xff]  }
  0x46   :  { %294 = vmatpush1.bf16.msra.mxu0 %v2052_v8  ;;  %335 = vmatpush1.bf16.msra.mxu1 %v2076_v22  ;;  %v2107_v45 = vld [vmem:[#allocation5 + $0x60] ss:$16 sps:$4 sm:$0xff]   ;;  %v2115_v46 = vld [vmem:[#allocation5 + $0x84] ss:$16 sps:$4 sm:$0xff]   ;;  %v2098_v47 = vld [vmem:[#allocation5 + $0x28] ss:$16 sps:$4 sm:$0xff]  }
  0x47   :  { %295 = vmatprep.subr.bf16.mxu0 %v2053_v9  ;;  %336 = vmatprep.subr.bf16.mxu1 %v2077_v23  ;;  %v2106_v48 = vld [vmem:[#allocation5 + $0x4c] ss:$16 sps:$4 sm:$0xff]   ;;  %v2113_v49 = vld [vmem:[#allocation5 + $0x80] ss:$16 sps:$4 sm:$0xff]   ;;  %v2121_v50 = vld [vmem:[#allocation5 + $0xa4] ss:$16 sps:$4 sm:$0xff]  }
  0x48   :  { %v2104_v51 = vld [vmem:[#allocation5 + $0x48] ss:$16 sps:$4 sm:$0xff]   ;;  %v2112_v52 = vld [vmem:[#allocation5 + $0x6c] ss:$16 sps:$4 sm:$0xff]   ;;  %v2119_v53 = vld [vmem:[#allocation5 + $0xa0] ss:$16 sps:$4 sm:$0xff]  }
  0x49   :  { %v2127_v54 = vld [vmem:[#allocation5 + $0xc4] ss:$16 sps:$4 sm:$0xff]   ;;  %v2110_v55 = vld [vmem:[#allocation5 + $0x68] ss:$16 sps:$4 sm:$0xff]   ;;  %v2118_v56 = vld [vmem:[#allocation5 + $0x8c] ss:$16 sps:$4 sm:$0xff]  }
  0x4a   :  { %296 = vmatpush1.bf16.msra.mxu0 %v2055_v13  ;;  %337 = vmatpush1.bf16.msra.mxu1 %v2079_v27  ;;  %v2125_v57 = vld [vmem:[#allocation5 + $0xc0] ss:$16 sps:$4 sm:$0xff]   ;;  %v2133_v58 = vld [vmem:[#allocation5 + $0xe4] ss:$16 sps:$4 sm:$0xff]   ;;  %v2116_v59 = vld [vmem:[#allocation5 + $0x88] ss:$16 sps:$4 sm:$0xff]  }
  0x4b   :  { %297 = vmatprep.subr.bf16.mxu0 %v2056_v16  ;;  %338 = vmatprep.subr.bf16.mxu1 %v2080_v28  ;;  %v2124_v60 = vld [vmem:[#allocation5 + $0xac] ss:$16 sps:$4 sm:$0xff]   ;;  %v2131_v61 = vld [vmem:[#allocation5 + $0xe0] ss:$16 sps:$4 sm:$0xff]   ;;  %v2122_v62 = vld [vmem:[#allocation5 + $0xa8] ss:$16 sps:$4 sm:$0xff]  }
  0x4c   :  { %v2130_v63 = vld [vmem:[#allocation5 + $0xcc] ss:$16 sps:$4 sm:$0xff]   ;;  %v2128_v0 = vld [vmem:[#allocation5 + $0xc8] ss:$16 sps:$4 sm:$0xff]   ;;  %v2139_v3 = vld [vmem:[#allocation5 + $0x104] ss:$16 sps:$4 sm:$0xff]  }
  0x4d   :  { %v2136_v1 = vld [vmem:[#allocation5 + $0xec] ss:$16 sps:$4 sm:$0xff]   ;;  %v2134_v2 = vld [vmem:[#allocation5 + $0xe8] ss:$16 sps:$4 sm:$0xff]   ;;  %v2137_v5 = vld [vmem:[#allocation5 + $0x100] ss:$16 sps:$4 sm:$0xff]  }
  0x4e   :  { %298 = vmatpush1.bf16.msra.mxu0 %v2058_v17  ;;  %339 = vmatpush1.bf16.msra.mxu1 %v2082_v31  ;;  %v2142_v4 = vld [vmem:[#allocation5 + $0x10c] ss:$16 sps:$4 sm:$0xff]   ;;  %v2140_v6 = vld [vmem:[#allocation5 + $0x108] ss:$16 sps:$4 sm:$0xff]   ;;  %v2145_v7 = vld [vmem:[#allocation5 + $0x124] ss:$16 sps:$4 sm:$0xff]  }
  0x4f   :  { %299 = vmatprep.subr.bf16.mxu0 %v2059_v20  ;;  %340 = vmatprep.subr.bf16.mxu1 %v2083_v32  ;;  %v2148_v8 = vld [vmem:[#allocation5 + $0x12c] ss:$16 sps:$4 sm:$0xff]   ;;  %v2143_v9 = vld [vmem:[#allocation5 + $0x120] ss:$16 sps:$4 sm:$0xff]   ;;  %v2146_v10 = vld [vmem:[#allocation5 + $0x128] ss:$16 sps:$4 sm:$0xff]  }
  0x50   :  { %v2151_v11 = vld [vmem:[#allocation5 + $0x144] ss:$16 sps:$4 sm:$0xff]   ;;  %v2154_v12 = vld [vmem:[#allocation5 + $0x14c] ss:$16 sps:$4 sm:$0xff]   ;;  %v2149_v13 = vld [vmem:[#allocation5 + $0x140] ss:$16 sps:$4 sm:$0xff]  }
  0x51   :  { %v2152_v14 = vld [vmem:[#allocation5 + $0x148] ss:$16 sps:$4 sm:$0xff]   ;;  %v2157_v15 = vld [vmem:[#allocation5 + $0x164] ss:$16 sps:$4 sm:$0xff]   ;;  %v2160_v16 = vld [vmem:[#allocation5 + $0x16c] ss:$16 sps:$4 sm:$0xff]  }
  0x52   :  { %300 = vmatpush1.bf16.msra.mxu0 %v2061_v21  ;;  %341 = vmatpush1.bf16.msra.mxu1 %v2085_v35  ;;  %v2155_v17 = vld [vmem:[#allocation5 + $0x160] ss:$16 sps:$4 sm:$0xff]   ;;  %v2158_v18 = vld [vmem:[#allocation5 + $0x168] ss:$16 sps:$4 sm:$0xff]   ;;  %v2163_v19 = vld [vmem:[#allocation5 + $0x184] ss:$16 sps:$4 sm:$0xff]  }
  0x53   :  { %301 = vmatprep.subr.bf16.mxu0 %v2062_v24  ;;  %342 = vmatprep.subr.bf16.mxu1 %v2086_v36  ;;  %v2166_v20 = vld [vmem:[#allocation5 + $0x18c] ss:$16 sps:$4 sm:$0xff]   ;;  %v2161_v21 = vld [vmem:[#allocation5 + $0x180] ss:$16 sps:$4 sm:$0xff]   ;;  %v2164_v22 = vld [vmem:[#allocation5 + $0x188] ss:$16 sps:$4 sm:$0xff]  }
  0x54   :  { %v2169_v23 = vld [vmem:[#allocation5 + $0x1a4] ss:$16 sps:$4 sm:$0xff]   ;;  %v2172_v24 = vld [vmem:[#allocation5 + $0x1ac] ss:$16 sps:$4 sm:$0xff]   ;;  %v2170_v26 = vld [vmem:[#allocation5 + $0x1a8] ss:$16 sps:$4 sm:$0xff]  }
  0x55   :  { %v2175_v27 = vld [vmem:[#allocation5 + $0x1c4] ss:$16 sps:$4 sm:$0xff]   ;;  %v2178_v28 = vld [vmem:[#allocation5 + $0x1cc] ss:$16 sps:$4 sm:$0xff]  }
  0x56   :  { %302 = vmatpush1.bf16.msra.mxu0 %v2064_v25  ;;  %343 = vmatpush1.bf16.msra.mxu1 %v2088_v39  ;;  %v2167_v25 = vld [vmem:[#allocation5 + $0x1a0] ss:$16 sps:$4 sm:$0xff]   ;;  %v2181_v31 = vld [vmem:[#allocation5 + $0x1e4] ss:$16 sps:$4 sm:$0xff]   ;;  %v2184_v32 = vld [vmem:[#allocation5 + $0x1ec] ss:$16 sps:$4 sm:$0xff]  }
  0x57   :  { %1191 = vmatprep.subr.bf16.mxu0 %v2091_v29  ;;  %1273 = vmatprep.subr.bf16.mxu1 %v2094_v40  ;;  %v2173_v29 = vld [vmem:[#allocation5 + $0x1c0] ss:$16 sps:$4 sm:$0xff]   ;;  %v2187_v35 = vld [vmem:[#allocation5 + $0x204] ss:$16 sps:$4 sm:$0xff]   ;;  %v2190_v36 = vld [vmem:[#allocation5 + $0x20c] ss:$16 sps:$4 sm:$0xff]  }
  0x58   :  { %v2546_v40 = vld [vmem:[%s2602_s2] sm:$0xf] }
  0x59   :  { %320 = vmatmul.mubr.bf16.vlgmr.msra.gmra.mrb[0].mxu0 %v72_v30  ;;  %361 = vmatmul.mubr.bf16.vlgmr.msra.gmra.mrb[0].mxu1 %v72_v30  ;;  %v2176_v30 = vld [vmem:[#allocation5 + $0x1c8] ss:$16 sps:$4 sm:$0xff]  }
  0x5a   :  { %1192 = vmatpush1.bf16.msra.mxu0 %v2089_v33  ;;  %1274 = vmatpush1.bf16.msra.mxu1 %v2092_v43  ;;  %v2179_v33 = vld [vmem:[#allocation5 + $0x1e0] ss:$16 sps:$4 sm:$0xff]  }
  0x5b   :  { %1193 = vmatprep.subr.bf16.mxu0 %v2097_v34  ;;  %1275 = vmatprep.subr.bf16.mxu1 %v2100_v44  ;;  %v2182_v34 = vld [vmem:[#allocation5 + $0x1e8] ss:$16 sps:$4 sm:$0xff]  }
  0x5e   :  { %1194 = vmatpush1.bf16.msra.mxu0 %v2095_v37  ;;  %1276 = vmatpush1.bf16.msra.mxu1 %v2098_v47  ;;  %v107_v37 = vlaneseq }
  0x5f   :  { %1195 = vmatprep.subr.bf16.mxu0 %v2103_v38  ;;  %1277 = vmatprep.subr.bf16.mxu1 %v2106_v48 }
  0x60   :  { %v2540_v38 = vshrl.u32 %v107_v37, 7 }
  0x62   :  { %1196 = vmatpush1.bf16.msra.mxu0 %v2101_v41  ;;  %1278 = vmatpush1.bf16.msra.mxu1 %v2104_v51  ;;  %v109_v39 = vsub.s32 0, %v2540_v38  ;;  %v113_v41 = vsub.s32 1, %v2540_v38 }
  0x63   :  { %1197 = vmatprep.subr.bf16.mxu0 %v2109_v42  ;;  %1279 = vmatprep.subr.bf16.mxu1 %v2112_v52  ;;  %v121_v52 = vsub.s32 3, %v2540_v38 }
  0x64   :  { %v110_v42 = vrot.slane %v2546_v40, %v109_v39  ;;  %v114_v43 = vrot.slane %v2546_v40, %v113_v41 }
  0x66   :  { %1198 = vmatpush1.bf16.msra.mxu0 %v2107_v45  ;;  %1280 = vmatpush1.bf16.msra.mxu1 %v2110_v55 }
  0x67   :  { %1199 = vmatprep.subr.bf16.mxu0 %v2115_v46  ;;  %1281 = vmatprep.subr.bf16.mxu1 %v2118_v56 }
  0x6a   :  { %1200 = vmatpush1.bf16.msra.mxu0 %v2113_v49  ;;  %1282 = vmatpush1.bf16.msra.mxu1 %v2116_v59 }
  0x6b   :  { %1201 = vmatprep.subr.bf16.mxu0 %v2121_v50  ;;  %1283 = vmatprep.subr.bf16.mxu1 %v2124_v60 }
  0x6e   :  { %1202 = vmatpush1.bf16.msra.mxu0 %v2119_v53  ;;  %1284 = vmatpush1.bf16.msra.mxu1 %v2122_v62  ;;  %v122_v53 = vrot.slane %v2546_v40, %v121_v52 }
  0x6f   :  { %1203 = vmatprep.subr.bf16.mxu0 %v2127_v54  ;;  %1285 = vmatprep.subr.bf16.mxu1 %v2130_v63 }
  0x72   :  { %1204 = vmatpush1.bf16.msra.mxu0 %v2125_v57  ;;  %1286 = vmatpush1.bf16.msra.mxu1 %v2128_v0 }
  0x73   :  { %1205 = vmatprep.subr.bf16.mxu0 %v2133_v58  ;;  %1287 = vmatprep.subr.bf16.mxu1 %v2136_v1 }
  0x76   :  { %1206 = vmatpush1.bf16.msra.mxu0 %v2131_v61  ;;  %1288 = vmatpush1.bf16.msra.mxu1 %v2134_v2 }
  0x77   :  { %1207 = vmatprep.subr.bf16.mxu0 %v2139_v3  ;;  %1289 = vmatprep.subr.bf16.mxu1 %v2142_v4 }
  0x7a   :  { %1208 = vmatpush1.bf16.msra.mxu0 %v2137_v5  ;;  %1290 = vmatpush1.bf16.msra.mxu1 %v2140_v6 }
  0x7b   :  { %1209 = vmatprep.subr.bf16.mxu0 %v2145_v7  ;;  %1291 = vmatprep.subr.bf16.mxu1 %v2148_v8  ;;  %v2185_v7 = vld [vmem:[#allocation5 + $0x200] ss:$16 sps:$4 sm:$0xff]   ;;  %v2188_v8 = vld [vmem:[#allocation5 + $0x208] ss:$16 sps:$4 sm:$0xff]  }
  0x7e   :  { %1210 = vmatpush1.bf16.msra.mxu0 %v2143_v9  ;;  %1292 = vmatpush1.bf16.msra.mxu1 %v2146_v10  ;;  %v2193_v10 = vld [vmem:[#allocation5 + $0x224] ss:$16 sps:$4 sm:$0xff]  }
  0x7f   :  { %1211 = vmatprep.subr.bf16.mxu0 %v2151_v11  ;;  %1293 = vmatprep.subr.bf16.mxu1 %v2154_v12  ;;  %v2196_v11 = vld [vmem:[#allocation5 + $0x22c] ss:$16 sps:$4 sm:$0xff]   ;;  %v2191_v12 = vld [vmem:[#allocation5 + $0x220] ss:$16 sps:$4 sm:$0xff]  }
  0x82   :  { %1212 = vmatpush1.bf16.msra.mxu0 %v2149_v13  ;;  %1294 = vmatpush1.bf16.msra.mxu1 %v2152_v14  ;;  %v2194_v13 = vld [vmem:[#allocation5 + $0x228] ss:$16 sps:$4 sm:$0xff]   ;;  %v2199_v14 = vld [vmem:[#allocation5 + $0x244] ss:$16 sps:$4 sm:$0xff]  }
  0x83   :  { %1213 = vmatprep.subr.bf16.mxu0 %v2157_v15  ;;  %1295 = vmatprep.subr.bf16.mxu1 %v2160_v16  ;;  %v2202_v15 = vld [vmem:[#allocation5 + $0x24c] ss:$16 sps:$4 sm:$0xff]  }
  0x86   :  { %1214 = vmatpush1.bf16.msra.mxu0 %v2155_v17  ;;  %1296 = vmatpush1.bf16.msra.mxu1 %v2158_v18  ;;  %v2197_v17 = vld [vmem:[#allocation5 + $0x240] ss:$16 sps:$4 sm:$0xff]   ;;  %v2200_v18 = vld [vmem:[#allocation5 + $0x248] ss:$16 sps:$4 sm:$0xff]  }
  0x87   :  { %1215 = vmatprep.subr.bf16.mxu0 %v2163_v19  ;;  %1297 = vmatprep.subr.bf16.mxu1 %v2166_v20  ;;  %v2205_v20 = vld [vmem:[#allocation5 + $0x264] ss:$16 sps:$4 sm:$0xff]  }
  0x8a   :  { %1216 = vmatpush1.bf16.msra.mxu0 %v2161_v21  ;;  %1298 = vmatpush1.bf16.msra.mxu1 %v2164_v22  ;;  %v2208_v21 = vld [vmem:[#allocation5 + $0x26c] ss:$16 sps:$4 sm:$0xff]  }
  0x8b   :  { %1217 = vmatprep.subr.bf16.mxu0 %v2169_v23  ;;  %1299 = vmatprep.subr.bf16.mxu1 %v2172_v24  ;;  %v2203_v23 = vld [vmem:[#allocation5 + $0x260] ss:$16 sps:$4 sm:$0xff]   ;;  %v2206_v24 = vld [vmem:[#allocation5 + $0x268] ss:$16 sps:$4 sm:$0xff]  }
  0x8e   :  { %1218 = vmatpush1.bf16.msra.mxu0 %v2167_v25  ;;  %1300 = vmatpush1.bf16.msra.mxu1 %v2170_v26  ;;  %v2211_v25 = vld [vmem:[#allocation5 + $0x284] ss:$16 sps:$4 sm:$0xff]   ;;  %v2214_v26 = vld [vmem:[#allocation5 + $0x28c] ss:$16 sps:$4 sm:$0xff]  }
  0x8f   :  { %1219 = vmatprep.subr.bf16.mxu0 %v2175_v27  ;;  %1301 = vmatprep.subr.bf16.mxu1 %v2178_v28  ;;  %v117_v27 = vsub.s32 2, %v2540_v38  ;;  %v2209_v28 = vld [vmem:[#allocation5 + $0x280] ss:$16 sps:$4 sm:$0xff]  }
  0x92   :  { %1220 = vmatpush1.bf16.msra.mxu0 %v2173_v29  ;;  %1302 = vmatpush1.bf16.msra.mxu1 %v2176_v30  ;;  %v2212_v29 = vld [vmem:[#allocation5 + $0x288] ss:$16 sps:$4 sm:$0xff]   ;;  %v2217_v30 = vld [vmem:[#allocation5 + $0x2a4] ss:$16 sps:$4 sm:$0xff]  }
  0x93   :  { %1221 = vmatprep.subr.bf16.mxu0 %v2181_v31  ;;  %1303 = vmatprep.subr.bf16.mxu1 %v2184_v32  ;;  %v2220_v31 = vld [vmem:[#allocation5 + $0x2ac] ss:$16 sps:$4 sm:$0xff]   ;;  %v118_v32 = vrot.slane %v2546_v40, %v117_v27 }
  0x96   :  { %1222 = vmatpush1.bf16.msra.mxu0 %v2179_v33  ;;  %1304 = vmatpush1.bf16.msra.mxu1 %v2182_v34  ;;  %v2215_v33 = vld [vmem:[#allocation5 + $0x2a0] ss:$16 sps:$4 sm:$0xff]   ;;  %v2218_v34 = vld [vmem:[#allocation5 + $0x2a8] ss:$16 sps:$4 sm:$0xff]  }
  0x97   :  { %1232 = vmatprep.subr.bf16.mxu0 %v2187_v35  ;;  %1314 = vmatprep.subr.bf16.mxu1 %v2190_v36  ;;  %v2223_v35 = vld [vmem:[#allocation5 + $0x2c4] ss:$16 sps:$4 sm:$0xff]   ;;  %v2226_v36 = vld [vmem:[#allocation5 + $0x2cc] ss:$16 sps:$4 sm:$0xff]  }
 0x12c   :  { %v321_v44 = vpop.f32.mrb[0].mxu0  ;;  %v2559_v54 = vpop.f32.mrb[0].mxu1 }
 0x12d   :  { %v322_v45 = vadd.f32 %v321_v44, %v110_v42  ;;  %v323_v46 = vpop.f32.mrb[1].mxu0  ;;  %v364_v55 = vpop.f32.mrb[1].mxu1  ;;  %v2566_v37 = vadd.f32 %v2559_v54, %v118_v32  ;;  %v2221_v42 = vld [vmem:[#allocation5 + $0x2c0] ss:$16 sps:$4 sm:$0xff]   ;;  %v2229_v44 = vld [vmem:[#allocation5 + $0x2e4] ss:$16 sps:$4 sm:$0xff]  }
 0x12e   :  { %v324_v47 = vadd.f32 %v323_v46, %v114_v43  ;;  %v325_v48 = vpop.f32.mrb[2].mxu0  ;;  %v365_v56 = vadd.f32 %v364_v55, %v122_v53  ;;  %v366_v57 = vpop.f32.mrb[2].mxu1  ;;  %v2224_v43 = vld [vmem:[#allocation5 + $0x2c8] ss:$16 sps:$4 sm:$0xff]   ;;  %v2227_v46 = vld [vmem:[#allocation5 + $0x2e0] ss:$16 sps:$4 sm:$0xff]  }
 0x12f   :  { %v1806_v49 = vmul.f32 -1.442695, %v322_v45  ;;  %v326_v50 = vpop.f32.mrb[3].mxu0  ;;  %v367_v58 = vpop.f32.mrb[3].mxu1  ;;  %v1808_v40 = vmul.f32 -1.442695, %v2566_v37 }
 0x130   :  { %v1807_v51 = vmul.f32 -1.442695, %v324_v47  ;;  %v1809_v60 = vmul.f32 -1.442695, %v365_v56  ;;  %v2235_v48 = vld [vmem:[#allocation5 + $0x304] ss:$16 sps:$4 sm:$0xff]  }
 0x131   :  { %2313 = vpow2.f32 %v1806_v49  ;;  %v2238_v49 = vld [vmem:[#allocation5 + $0x30c] ss:$16 sps:$4 sm:$0xff]   ;;  %v2233_v50 = vld [vmem:[#allocation5 + $0x300] ss:$16 sps:$4 sm:$0xff]   ;;  %v2241_v53 = vld [vmem:[#allocation5 + $0x324] ss:$16 sps:$4 sm:$0xff]  }
 0x132   :  { %2315 = vpow2.f32 %v1807_v51  ;;  %v2236_v51 = vld [vmem:[#allocation5 + $0x308] ss:$16 sps:$4 sm:$0xff]   ;;  %v2244_v54 = vld [vmem:[#allocation5 + $0x32c] ss:$16 sps:$4 sm:$0xff]   ;;  %v2239_v55 = vld [vmem:[#allocation5 + $0x320] ss:$16 sps:$4 sm:$0xff]  }
 0x133   :  { %2317 = vpow2.f32 %v1809_v60  ;;  %v2247_v57 = vld [vmem:[#allocation5 + $0x344] ss:$16 sps:$4 sm:$0xff]   ;;  %v2250_v58 = vld [vmem:[#allocation5 + $0x34c] ss:$16 sps:$4 sm:$0xff]   ;;  %v2248_v60 = vld [vmem:[#allocation5 + $0x348] ss:$16 sps:$4 sm:$0xff]  }
 0x134   :  { %v2290_v32 = vld [vmem:[#allocation7 + $0xd0] sm:$0xff]  }
 0x13b   :  { %v2314_v59 = vpop.eup %2313 }
 0x13c   :  { %v2316_v61 = vpop.eup %2315  ;;  %v381_v62 = vadd.f32 1.0, %v2314_v59  ;;  %v2245_v59 = vld [vmem:[#allocation5 + $0x340] ss:$16 sps:$4 sm:$0xff]  }
 0x13d   :  { %v382_v63 = vadd.f32 1.0, %v2316_v61  ;;  %v2318_v0 = vpop.eup %2317 }
 0x13e   :  { %2319 = vrcp.f32 %v381_v62  ;;  %v384_v2 = vadd.f32 1.0, %v2318_v0  ;;  %v2253_v62 = vld [vmem:[#allocation5 + $0x364] ss:$16 sps:$4 sm:$0xff]  }
 0x13f   :  { %2321 = vrcp.f32 %v382_v63  ;;  %v2256_v63 = vld [vmem:[#allocation5 + $0x36c] ss:$16 sps:$4 sm:$0xff]  }
 0x140   :  { %2323 = vrcp.f32 %v384_v2  ;;  %v2254_v2 = vld [vmem:[#allocation5 + $0x368] ss:$16 sps:$4 sm:$0xff]  }
 0x141   :  { %2325 = vpow2.f32 %v1808_v40  ;;  %v2300_v40 = vld [vmem:[#allocation7 + $0xa0] sm:$0xff]  }
 0x148   :  { %v2320_v1 = vpop.eup %2319 }
 0x149   :  { %v2322_v3 = vpop.eup %2321  ;;  %v393_v4 = vmul.f32 %v2320_v1, %v322_v45  ;;  %v2232_v45 = vld [vmem:[#allocation5 + $0x2ec] ss:$16 sps:$4 sm:$0xff]   ;;  %v2251_v1 = vld [vmem:[#allocation5 + $0x360] ss:$16 sps:$4 sm:$0xff]  }
 0x14a   :  { %v394_v5 = vmul.f32 %v2322_v3, %v324_v47  ;;  %v2324_v16 = vpop.eup %2323  ;;  %v2230_v47 = vld [vmem:[#allocation5 + $0x2e8] ss:$16 sps:$4 sm:$0xff]   ;;  %v2259_v3 = vld [vmem:[#allocation5 + $0x384] ss:$16 sps:$4 sm:$0xff]  }
 0x14b   :  { %v397_v9 = vpack.c.bf16 %v393_v4, %v393_v4  ;;  %v396_v19 = vmul.f32 %v2324_v16, %v365_v56  ;;  %v2242_v56 = vld [vmem:[#allocation5 + $0x328] ss:$16 sps:$4 sm:$0xff]   ;;  %v2326_v61 = vpop.eup %2325  ;;  %v2262_v4 = vld [vmem:[#allocation5 + $0x38c] ss:$16 sps:$4 sm:$0xff]  }
 0x14c   :  { %v398_v6 = vpack.c.bf16 %v394_v5, %v394_v5  ;;  %v383_v0 = vadd.f32 1.0, %v2326_v61  ;;  %v2257_v5 = vld [vmem:[#allocation5 + $0x380] ss:$16 sps:$4 sm:$0xff]   ;;  %v2280_v16 = vld [vmem:[#allocation5 + $0x3ec] ss:$16 sps:$4 sm:$0xff]  }
 0x14d   :  { %v400_v22 = vpack.c.bf16 %v396_v19, %v396_v19  ;;  %v2278_v19 = vld [vmem:[#allocation5 + $0x3e8] ss:$16 sps:$4 sm:$0xff]  }
 0x14e   :  { %1223 = vmatprep.mubr.bf16.mxu0 %v398_v6  ;;  %1305 = vmatprep.mubr.bf16.mxu1 %v398_v6  ;;  %2327 = vrcp.f32 %v383_v0  ;;  %v2260_v6 = vld [vmem:[#allocation5 + $0x388] ss:$16 sps:$4 sm:$0xff]  }
 0x14f   :  { %1224 = vmatmul.mubr.bf16.vlgmr.msra.gmra.mrb[4].mxu0 %v397_v9  ;;  %1306 = vmatmul.mubr.bf16.vlgmr.msra.gmra.mrb[4].mxu1 %v397_v9  ;;  %v2263_v9 = vld [vmem:[#allocation5 + $0x3a0] ss:$16 sps:$4 sm:$0xff]  }
 0x150   :  { %1233 = vmatpush1.bf16.msra.mxu0 %v2185_v7  ;;  %1315 = vmatpush1.bf16.msra.mxu1 %v2188_v8  ;;  %v2265_v7 = vld [vmem:[#allocation5 + $0x3a4] ss:$16 sps:$4 sm:$0xff]   ;;  %v2268_v8 = vld [vmem:[#allocation5 + $0x3ac] ss:$16 sps:$4 sm:$0xff]  }
 0x151   :  { %1234 = vmatprep.subr.bf16.mxu0 %v2193_v10  ;;  %1316 = vmatprep.subr.bf16.mxu1 %v2196_v11  ;;  %v2266_v10 = vld [vmem:[#allocation5 + $0x3a8] ss:$16 sps:$4 sm:$0xff]   ;;  %v2271_v11 = vld [vmem:[#allocation5 + $0x3c4] ss:$16 sps:$4 sm:$0xff]  }
 0x152   :  { %1264 = vmatprep.mubr.bf16.mxu0 %v400_v22  ;;  %1346 = vmatprep.mubr.bf16.mxu1 %v400_v22  ;;  %v2281_v22 = vld [vmem:[#allocation7 + $0x40] sm:$0xff]  }
 0x154   :  { %1235 = vmatpush1.bf16.msra.mxu0 %v2191_v12  ;;  %1317 = vmatpush1.bf16.msra.mxu1 %v2194_v13  ;;  %v2274_v12 = vld [vmem:[#allocation5 + $0x3cc] ss:$16 sps:$4 sm:$0xff]   ;;  %v2269_v13 = vld [vmem:[#allocation5 + $0x3c0] ss:$16 sps:$4 sm:$0xff]  }
 0x155   :  { %1236 = vmatprep.subr.bf16.mxu0 %v2199_v14  ;;  %1318 = vmatprep.subr.bf16.mxu1 %v2202_v15  ;;  %v2272_v14 = vld [vmem:[#allocation5 + $0x3c8] ss:$16 sps:$4 sm:$0xff]   ;;  %v2277_v15 = vld [vmem:[#allocation5 + $0x3e4] ss:$16 sps:$4 sm:$0xff]  }
 0x158   :  { %1237 = vmatpush1.bf16.msra.mxu0 %v2197_v17  ;;  %1319 = vmatpush1.bf16.msra.mxu1 %v2200_v18  ;;  %v2328_v17 = vpop.eup %2327  ;;  %v2275_v18 = vld [vmem:[#allocation5 + $0x3e0] ss:$16 sps:$4 sm:$0xff]  }
 0x159   :  { %1238 = vmatprep.subr.bf16.mxu0 %v2205_v20  ;;  %1320 = vmatprep.subr.bf16.mxu1 %v2208_v21  ;;  %v395_v20 = vmul.f32 %v2328_v17, %v2566_v37  ;;  %v2295_v37 = vld [vmem:[#allocation7 + $0x18] sm:$0xff]  }
 0x15b   :  { %v399_v21 = vpack.c.bf16 %v395_v20, %v395_v20  ;;  %v2447_v20 = vmov 1983009808  }
 0x15c   :  { %1239 = vmatpush1.bf16.msra.mxu0 %v2203_v23  ;;  %1321 = vmatpush1.bf16.msra.mxu1 %v2206_v24  ;;  %v2282_v23 = vld [vmem:[#allocation7 + $0xc0] sm:$0xff]  }
 0x15d   :  { %1240 = vmatprep.subr.bf16.mxu0 %v2211_v25  ;;  %1322 = vmatprep.subr.bf16.mxu1 %v2214_v26  ;;  %v2283_v24 = vld [vmem:[#allocation7] sm:$0xff]   ;;  %v2285_v26 = vld [vmem:[#allocation7 + $0x48] sm:$0xff]  }
 0x15e   :  { %v2284_v25 = vld [vmem:[#allocation7 + $0x80] sm:$0xff]  }
 0x160   :  { %1241 = vmatpush1.bf16.msra.mxu0 %v2209_v28  ;;  %1323 = vmatpush1.bf16.msra.mxu1 %v2212_v29  ;;  %v2286_v28 = vld [vmem:[#allocation7 + $0xc8] sm:$0xff]  }
 0x161   :  { %1242 = vmatprep.subr.bf16.mxu0 %v2217_v30  ;;  %1324 = vmatprep.subr.bf16.mxu1 %v2220_v31  ;;  %v2287_v29 = vld [vmem:[#allocation7 + $0x8] sm:$0xff]   ;;  %v2289_v31 = vld [vmem:[#allocation7 + $0x50] sm:$0xff]  }
 0x162   :  { %v2288_v30 = vld [vmem:[#allocation7 + $0x88] sm:$0xff]  }
 0x164   :  { %1243 = vmatpush1.bf16.msra.mxu0 %v2215_v33  ;;  %1325 = vmatpush1.bf16.msra.mxu1 %v2218_v34  ;;  %v2291_v33 = vld [vmem:[#allocation7 + $0x10] sm:$0xff]  }
 0x165   :  { %1244 = vmatprep.subr.bf16.mxu0 %v2223_v35  ;;  %1326 = vmatprep.subr.bf16.mxu1 %v2226_v36  ;;  %v2292_v34 = vld [vmem:[#allocation7 + $0x90] sm:$0xff]   ;;  %v2293_v35 = vld [vmem:[#allocation7 + $0x58] sm:$0xff]  }
 0x166   :  { %v2294_v36 = vld [vmem:[#allocation7 + $0xd8] sm:$0xff]  }
 0x168   :  { %1245 = vmatpush1.bf16.msra.mxu0 %v2221_v42  ;;  %1327 = vmatpush1.bf16.msra.mxu1 %v2224_v43  ;;  %v2296_v42 = vld [vmem:[#allocation7 + $0x98] sm:$0xff]   ;;  %v2297_v43 = vld [vmem:[#allocation7 + $0x60] sm:$0xff]  }
 0x169   :  { %1246 = vmatprep.subr.bf16.mxu0 %v2229_v44  ;;  %1328 = vmatprep.subr.bf16.mxu1 %v2232_v45  ;;  %v2298_v44 = vld [vmem:[#allocation7 + $0xe0] sm:$0xff]  }
 0x16a   :  { %v2299_v45 = vld [vmem:[#allocation7 + $0x20] sm:$0xff]  }
 0x16c   :  { %1247 = vmatpush1.bf16.msra.mxu0 %v2227_v46  ;;  %1329 = vmatpush1.bf16.msra.mxu1 %v2230_v47  ;;  %v2301_v46 = vld [vmem:[#allocation7 + $0x68] sm:$0xff]  }
 0x16d   :  { %1248 = vmatprep.subr.bf16.mxu0 %v2235_v48  ;;  %1330 = vmatprep.subr.bf16.mxu1 %v2238_v49  ;;  %v2302_v47 = vld [vmem:[#allocation7 + $0xe8] sm:$0xff]  }
 0x16e   :  { %v2303_v48 = vld [vmem:[#allocation7 + $0x28] sm:$0xff]  }
 0x16f   :  { %v2304_v49 = vld [vmem:[#allocation7 + $0xa8] sm:$0xff]  }
 0x170   :  { %1249 = vmatpush1.bf16.msra.mxu0 %v2233_v50  ;;  %1331 = vmatpush1.bf16.msra.mxu1 %v2236_v51  ;;  %v2305_v50 = vld [vmem:[#allocation7 + $0x70] sm:$0xff]  }
 0x171   :  { %1250 = vmatprep.subr.bf16.mxu0 %v2241_v53  ;;  %1332 = vmatprep.subr.bf16.mxu1 %v2244_v54  ;;  %v2306_v51 = vld [vmem:[#allocation7 + $0xf0] sm:$0xff]  }
 0x172   :  { %v2307_v53 = vld [vmem:[#allocation7 + $0x30] sm:$0xff]  }
 0x173   :  { %v2308_v54 = vld [vmem:[#allocation7 + $0xb0] sm:$0xff]  }
 0x174   :  { %1251 = vmatpush1.bf16.msra.mxu0 %v2239_v55  ;;  %1333 = vmatpush1.bf16.msra.mxu1 %v2242_v56  ;;  %v2309_v55 = vld [vmem:[#allocation7 + $0x78] sm:$0xff]  }
 0x175   :  { %1252 = vmatprep.subr.bf16.mxu0 %v2247_v57  ;;  %1334 = vmatprep.subr.bf16.mxu1 %v2250_v58  ;;  %v2310_v56 = vld [vmem:[#allocation7 + $0xf8] sm:$0xff]  }
 0x176   :  { %v2311_v57 = vld [vmem:[#allocation7 + $0x38] sm:$0xff]  }
 0x177   :  { %v2312_v58 = vld [vmem:[#allocation7 + $0xb8] sm:$0xff]  }
 0x178   :  { %1253 = vmatpush1.bf16.msra.mxu0 %v2245_v59  ;;  %1335 = vmatpush1.bf16.msra.mxu1 %v2248_v60  ;;  %v529_v59 = vld [vmem:[%s2604_s4] sm:$0xf]  ;;  %s2448_s4 = smov [#allocation8]  }
 0x179   :  { %1254 = vmatprep.subr.bf16.mxu0 %v2253_v62  ;;  %1336 = vmatprep.subr.bf16.mxu1 %v2256_v63  ;;  %v534_v60 = vrot.slane %v529_v59, %v109_v39  ;;  %v542_v61 = vrot.slane %v529_v59, %v117_v27  ;;  %v538_v62 = vrot.slane %v529_v59, %v113_v41  ;;  %s1760_s24 = sshll.u32 %s2448_s4, 4  ;;  %s1761_s24 = int_to_ptr.vmem [resolvable:$true] %s1760_s24 }
 0x17a   :  { %v546_v63 = vrot.slane %v529_v59, %v121_v52  ;;  %s2411_s25 = scalar_lea.vmem %s1761_s24, 128  ;;  %p2416_p11 = scmp.lt.s32.totalorder %s1761_s24, %s1761_s24 }
 0x17b   :  { %p2412_p10 = scmp.ne.s32.totalorder %s1761_s24, %s2411_s25  ;;  %p2417_p12 = scmp.lt.s32.totalorder %s2411_s25, %s2411_s25 }
 0x17c   :  { %1255 = vmatpush1.bf16.msra.mxu0 %v2251_v1  ;;  %1337 = vmatpush1.bf16.msra.mxu1 %v2254_v2 }
 0x17d   :  { %1256 = vmatprep.subr.bf16.mxu0 %v2259_v3  ;;  %1338 = vmatprep.subr.bf16.mxu1 %v2262_v4  ;;  %p2418_p13 = por %p2417_p12, %p2416_p11 }
 0x17f   :  { %p2419_p0 = pnand %p2418_p13, %p2412_p10 }
 0x180   :  { %1257 = vmatpush1.bf16.msra.mxu0 %v2257_v5  ;;  %1339 = vmatpush1.bf16.msra.mxu1 %v2260_v6 }
 0x181   :  { %1258 = vmatprep.subr.bf16.mxu0 %v2265_v7  ;;  %1340 = vmatprep.subr.bf16.mxu1 %v2268_v8 }
 0x184   :  { %1259 = vmatpush1.bf16.msra.mxu0 %v2263_v9  ;;  %1341 = vmatpush1.bf16.msra.mxu1 %v2266_v10 }
 0x185   :  { %1260 = vmatprep.subr.bf16.mxu0 %v2271_v11  ;;  %1342 = vmatprep.subr.bf16.mxu1 %v2274_v12 }
 0x188   :  { %1261 = vmatpush1.bf16.msra.mxu0 %v2269_v13  ;;  %1343 = vmatpush1.bf16.msra.mxu1 %v2272_v14 }
 0x189   :  { %1262 = vmatprep.subr.bf16.mxu0 %v2277_v15  ;;  %1344 = vmatprep.subr.bf16.mxu1 %v2280_v16 }
 0x18c   :  { %1263 = vmatpush1.bf16.msra.mxu0 %v2275_v18  ;;  %1345 = vmatpush1.bf16.msra.mxu1 %v2278_v19 }
 0x18d   :  { %1975 = vmatprep.subr.bf16.mxu0 %v2281_v22  ;;  %1997 = vmatprep.subr.bf16.mxu1 %v2282_v23 }
 0x18f   :  { %1265 = vmatmul.mubr.bf16.vlgmr.msra.gmra.mrb[4].mxu0 %v399_v21  ;;  %1347 = vmatmul.mubr.bf16.vlgmr.msra.gmra.mrb[4].mxu1 %v399_v21  ;;  %v1390_v21 = vunpack.c.l.s4 %v2447_v20 }
 0x190   :  { %1976 = vmatpush3.bf16.msra.mxu0 %v2283_v24  ;;  %1998 = vmatpush3.bf16.msra.mxu1 %v2284_v25 }
 0x191   :  { %1977 = vmatprep.subr.bf16.mxu0 %v2285_v26  ;;  %1999 = vmatprep.subr.bf16.mxu1 %v2286_v28  ;;  %v1391_v22 = vunpack.c.0.s8 %v1390_v21 }
 0x194   :  { %1978 = vmatpush3.bf16.msra.mxu0 %v2287_v29  ;;  %2000 = vmatpush3.bf16.msra.mxu1 %v2288_v30 }
 0x195   :  { %1979 = vmatprep.subr.bf16.mxu0 %v2289_v31  ;;  %2001 = vmatprep.subr.bf16.mxu1 %v2290_v32  ;;  %v1394_v31 = vsub.s32 %v1391_v22, %v2540_v38 }
 0x198   :  { %1980 = vmatpush3.bf16.msra.mxu0 %v2291_v33  ;;  %2002 = vmatpush3.bf16.msra.mxu1 %v2292_v34 }
 0x199   :  { %1981 = vmatprep.subr.bf16.mxu0 %v2293_v35  ;;  %2003 = vmatprep.subr.bf16.mxu1 %v2294_v36 }
 0x19c   :  { %1982 = vmatpush3.bf16.msra.mxu0 %v2295_v37  ;;  %2004 = vmatpush3.bf16.msra.mxu1 %v2296_v42 }
 0x19d   :  { %1983 = vmatprep.subr.bf16.mxu0 %v2297_v43  ;;  %2005 = vmatprep.subr.bf16.mxu1 %v2298_v44 }
 0x1a0   :  { %1984 = vmatpush3.bf16.msra.mxu0 %v2299_v45  ;;  %2006 = vmatpush3.bf16.msra.mxu1 %v2300_v40 }
 0x1a1   :  { %1985 = vmatprep.subr.bf16.mxu0 %v2301_v46  ;;  %2007 = vmatprep.subr.bf16.mxu1 %v2302_v47 }
 0x1a4   :  { %1986 = vmatpush3.bf16.msra.mxu0 %v2303_v48  ;;  %2008 = vmatpush3.bf16.msra.mxu1 %v2304_v49 }
 0x1a5   :  { %1987 = vmatprep.subr.bf16.mxu0 %v2305_v50  ;;  %2009 = vmatprep.subr.bf16.mxu1 %v2306_v51 }
 0x1a8   :  { %1988 = vmatpush3.bf16.msra.mxu0 %v2307_v53  ;;  %2010 = vmatpush3.bf16.msra.mxu1 %v2308_v54 }
 0x1a9   :  { %1989 = vmatprep.subr.bf16.mxu0 %v2309_v55  ;;  %2011 = vmatprep.subr.bf16.mxu1 %v2310_v56 }
 0x1ac   :  { %1990 = vmatpush3.bf16.msra.mxu0 %v2311_v57  ;;  %2012 = vmatpush3.bf16.msra.mxu1 %v2312_v58 }
 0x262   :  { %v1266_v0 = vpop.f32.mrb[4].mxu0  ;;  %v1348_v1 = vpop.f32.mrb[4].mxu1 }
 0x263   :  { %v2019_v2 = vadd.f32 %v1266_v0, %v534_v60  ;;  %v2021_v3 = vadd.f32 %v1348_v1, %v542_v61  ;;  %v1268_v4 = vpop.f32.mrb[5].mxu0  ;;  %v1350_v5 = vpop.f32.mrb[5].mxu1 }
 0x264   :  { %v2020_v6 = vadd.f32 %v1268_v4, %v538_v62  ;;  %v2022_v7 = vadd.f32 %v1350_v5, %v546_v63  ;;  %v1270_v8 = vpop.f32.mrb[6].mxu0  ;;  %v1352_v9 = vpop.f32.mrb[6].mxu1 }
 0x265   :  { %v1938_v39 = vmul.f32 -1.442695, %v2019_v2  ;;  %v1940_v10 = vmul.f32 -1.442695, %v2021_v3  ;;  %v1271_v11 = vpop.f32.mrb[7].mxu0  ;;  %v1353_v27 = vpop.f32.mrb[7].mxu1 }
 0x266   :  { %v1939_v12 = vmul.f32 -1.442695, %v2020_v6  ;;  %v1941_v13 = vmul.f32 -1.442695, %v2022_v7 }
 0x267   :  { %2329 = vpow2.f32 %v1938_v39 }
 0x268   :  { %2331 = vpow2.f32 %v1940_v10 }
 0x269   :  { %2333 = vpow2.f32 %v1939_v12 }
 0x26a   :  { %2335 = vpow2.f32 %v1941_v13 }
 0x271   :  { %v2330_v41 = vpop.eup %2329 }
 0x272   :  { %v2332_v52 = vpop.eup %2331  ;;  %v1367_v14 = vadd.f32 1.0, %v2330_v41 }
 0x273   :  { %v2334_v15 = vpop.eup %2333  ;;  %v1369_v16 = vadd.f32 1.0, %v2332_v52 }
 0x274   :  { %v2336_v17 = vpop.eup %2335  ;;  %2337 = vrcp.f32 %v1367_v14  ;;  %v1368_v18 = vadd.f32 1.0, %v2334_v15 }
 0x275   :  { %2339 = vrcp.f32 %v1369_v16  ;;  %v1370_v19 = vadd.f32 1.0, %v2336_v17 }
 0x276   :  { %2341 = vrcp.f32 %v1368_v18 }
 0x277   :  { %2343 = vrcp.f32 %v1370_v19 }
 0x27e   :  { %v2338_v23 = vpop.eup %2337 }
 0x27f   :  { %v2340_v24 = vpop.eup %2339  ;;  %v1379_v25 = vmul.f32 %v2338_v23, %v2019_v2 }
 0x280   :  { %v2342_v26 = vpop.eup %2341  ;;  %v1381_v28 = vmul.f32 %v2340_v24, %v2021_v3 }
 0x281   :  { %v2344_v29 = vpop.eup %2343  ;;  %v1380_v30 = vmul.f32 %v2342_v26, %v2020_v6  ;;  %v1406_v35 = vpack.c.bf16 %v1379_v25, %v1379_v25 }
 0x282   :  { %v1382_v32 = vmul.f32 %v2344_v29, %v2022_v7  ;;  %v1408_v42 = vpack.c.bf16 %v1381_v28, %v1381_v28 }
 0x283   :  { %v1387_v33 = vcombine.low %v1379_v25, %v1380_v30  ;;  %v1407_v34 = vpack.c.bf16 %v1380_v30, %v1380_v30 }
 0x284   :  { %v1388_v36 = vcombine.low %v1381_v28, %v1382_v32  ;;  %v1409_v37 = vpack.c.bf16 %v1382_v32, %v1382_v32 }
 0x285   :  { %1705 = vmatprep.mubr.bf16.mxu0 %v1407_v34  ;;  %v1395_v43 = vrot.slane %v1387_v33, %v1394_v31 }
 0x286   :  { %1745 = vmatprep.mubr.bf16.mxu1 %v1409_v37  ;;  %1706 = vmatmul.mubr.bf16.vlgmr.msra.gmra.mrb[8].mxu0 %v1406_v35  ;;  %v1402_v44 = vrot.slane %v1388_v36, %v1394_v31 }
 0x287   :  { %1746 = vmatmul.mubr.bf16.vlgmr.msra.gmra.mrb[8].mxu1 %v1408_v42 }
 0x288   :  { %v1403_v45 = vcombine.low %v1395_v43, %v1402_v44 }
 0x28a   :  { %1405 = vst [vmem:[#allocation8] sm:$0xff] %v1403_v45 }
 0x28b   :  { %2422 = shalt.err (!%p2419_p0)
}
 0x28c   :  { %s2423_s29 = scalar_lea.hbm %s2607_s7, 128 }
 0x28d   :  { %p2424_p1 = scmp.ne.s32.totalorder %s2607_s7, %s2423_s29  ;;  %p2427_p2 = scmp.lt.u32.totalorder %s2423_s29, %s2607_s7 }
 0x28f   :  { %p2429_p3 = pnand %p2427_p2, %p2424_p1 }
 0x291   :  { %2432 = shalt.err (!%p2429_p3)
}
 0x292   :  { %1763 = dma.vmem_to_hbm [thread:$0]  %s1761_s24, 128, %s2607_s7, [#allocation4]   ;;  %v1942_v46 = vld [vmem:[%s2606_s6] ss:$0 sm:$0xff] }
 0x359   :  { %v1991_v38 = vpop.f32.mrb[8].mxu0 }
 0x35a   :  { %v2013_v40 = vpop.f32.mrb[8].mxu1  ;;  %v1992_v47 = vpop.f32.mrb[9].mxu0 }
 0x35b   :  { %v1993_v48 = vadd.f32 %v1992_v47, %v1991_v38  ;;  %v2014_v49 = vpop.f32.mrb[9].mxu1  ;;  %v1994_v50 = vpop.f32.mrb[10].mxu0 }
 0x35c   :  { %v2015_v51 = vadd.f32 %v2014_v49, %v2013_v40  ;;  %v2016_v53 = vpop.f32.mrb[10].mxu1  ;;  %v1995_v54 = vpop.f32.mrb[11].mxu0 }
 0x35d   :  { %v1708_v55 = vadd.f32 %v1993_v48, %v1942_v46  ;;  %v2017_v56 = vpop.f32.mrb[11].mxu1 }
 0x35f   :  { %v1748_v57 = vadd.f32 %v2015_v51, %v1708_v55 }
 0x361   :  { %1753 = vst [vmem:[%s2608_s8] sm:$0x3] %v1748_v57 }
 0x362   :  { %2437 = dma.done.wait [#allocation4], 128  }
 0x363   :  { %2438 = vsyncadd [#allocation4], 4294967168 }
 0x364   :  { %1771 = vsyncpa [#allocation3], 1 }
 0x365   :  { %1772 = vsyncpa [#allocation6], 1 }
 0x366   :  { %1773 = vsyncpa [#allocation4], 1 }

// kernel: diffwave_forward.3
= control target key start
LH: loop header
LB: loop body
LE: loop exit
PB: predicated region body
PF: predicated region fallthrough
CT: control target
= control target key end

     0   :  { %s10277_s0 = inlined_call_operand.vmem [shape: f32[1,1,1024], index: 0, kind: input, shape index: {}]   ;;  %s10278_s1 = inlined_call_operand.vmem [shape: f32[2,8,2], index: 1, kind: input, shape index: {}]   ;;  %s10279_s2 = inlined_call_operand.vmem [shape: f32[2,128,1], index: 2, kind: input, shape index: {}]   ;;  %s10280_s3 = inlined_call_operand.vmem [shape: f32[16,1], index: 3, kind: input, shape index: {}]   ;;  %s10281_s4 = inlined_call_operand.vmem [shape: f32[16,1], index: 4, kind: input, shape index: {}]   ;;  %s10282_s5 = inlined_call_operand.vmem [shape: bf16[6,32], index: 5, kind: input, shape index: {}]   ;;  %s10283_s6 = inlined_call_operand.<no memory space> [shape: f32[1,1], index: 6, kind: input, shape index: {}]   ;;  %s10284_s7 = inlined_call_operand.vmem [shape: bf16[96,512], index: 7, kind: input, shape index: {}]   ;;  %s10285_s9 = inlined_call_operand.vmem [shape: f32[4,32,56], index: 9, kind: input, shape index: {}]   ;;  %s10286_s10 = inlined_call_operand.vmem [shape: f32[4,32,1], index: 10, kind: input, shape index: {}]   ;;  %s10287_s11 = inlined_call_operand.vmem [shape: f32[4,32,16], index: 11, kind: input, shape index: {}]   ;;  %s10288_s12 = inlined_call_operand.vmem [shape: f32[4,32,1], index: 12, kind: input, shape index: {}]   ;;  %s10289_s13 = inlined_call_operand.vmem [shape: f32[16,16], index: 13, kind: input, shape index: {}]   ;;  %s10290_s14 = inlined_call_operand.vmem [shape: f32[16,1], index: 14, kind: input, shape index: {}]   ;;  %s10291_s15 = inlined_call_operand.vmem [shape: f32[16,1], index: 15, kind: input, shape index: {}]   ;;  %s10292_s17 = inlined_call_operand.hbm [shape: f32[1,1,1024], index: 17, kind: output, shape index: {}]   ;;  %s10293_s8 = inlined_call_operand.<no memory space> [shape: f32[1,1], index: 8, kind: input, shape index: {}]   ;;  %s10294_s16 = inlined_call_operand.<no memory space> [shape: f32[1,1], index: 16, kind: input, shape index: {}]  }
   0x1   :  { %10356 = sst [smem:[#allocation16_spill]] %s10277_s0  ;;  %v22_v0 = vstv %s10283_s6  ;;  %v24_v1 = vstv %s10293_s8  ;;  %v26_v2 = vstv %s10294_s16 }
   0x2   :  { %10357 = sst [smem:[#allocation17_spill]] %s10278_s1  ;;  %23 = vst [vmem:[#allocation3] sm:$0x1] %v22_v0  ;;  %25 = vst [vmem:[#allocation4] sm:$0x1] %v24_v1 }
   0x3   :  { %27 = vst [vmem:[#allocation5] sm:$0x1] %v26_v2 }
   0x4   :  { %s10358_s18 = sld [smem:[#allocation17_spill]]  ;;  %v67_v5 = vlaneseq  ;;  %v113_v11 = vld [vmem:[%s10282_s5] sm:$0x7]  ;;  %s7713_s16 = smov 2   ;;  %v10315_v13 = vmov 0.0   ;;  %vm128_vm0 = vcmask 1042432  }
   0x5   :  { %6509 = vmatprep.subr.bf16.mxu0 %v10315_v13  ;;  %vm7715_vm2 = vmmov 0   ;;  %v130_v19 = vsel %vm128_vm0, %v113_v11, 0  ;;  %v7716_v23 = vmov 0  }
   0x6   :  { %v7831_v10 = vshrl.u32 %v67_v5, 7  ;;  %6511 = vmatprep.mubr.msk.bf16.mxu0 %vm7715_vm2, %v10315_v13  ;;  %6510 = vmatpush3.bf16.msra.mxu0 %v130_v19 }
   0x7   :  { %6937 = vset.pattern.permute.xlu1 %v7716_v23  ;;  %6948 = vset.pattern.permute.xlu0 %v7716_v23 }
   0x8   :  { %10359 = vst [vmem:[#allocation9_spill] sm:$0xff] %v7831_v10  ;;  %vm76_vm1 = vcmp.lt.s32.totalorder %v7831_v10, 7  ;;  %v69_v16 = vadd.s32 8, %v7831_v10  ;;  %v70_v18 = vand.u32 7, %v7831_v10  ;;  %vm85_vm3 = vcmp.lt.s32.totalorder %v7831_v10, 1  ;;  %404 = vmatprep.mubr.bf16.mxu1 %v7716_v23 }
   0x9   :  { %v6190_v17 = vld [vmem:[#allocation3] ss:$0 sm:$0xff] }
   0xa   :  { %v64_v3 = vld [vmem:[%s10358_s18] sm:$0xff]  ;;  %v6189_v4 = vld [vmem:[%s10358_s18 + $0x8] sm:$0xff]  ;;  %v71_v20 = vand.u32 7, %v69_v16  ;;  %vm7851_vm4 = vcmp.ge.s32.totalorder %v70_v18, 1  ;;  %121 = vperm.xlu1 %6937, %v6190_v17  }
   0xb   :  { %v75_v6 = vrot.slane %v6189_v4, 1  ;;  %v84_v7 = vrot.slane %v6189_v4, 7  ;;  %v6927_v8 = vpack.i.bf16 %v6189_v4, %v64_v3  ;;  %v74_v9 = vrot.slane %v64_v3, 1 }
   0xc   :  { %v83_v12 = vrot.slane %v64_v3, 7  ;;  %vm7855_vm5 = vcmp.ge.s32.totalorder %v71_v20, 1 }
   0xd   :  { %6928 = vrot.lane.b32.xlu0 %v6927_v8, %s7713_s16  ;;  %v77_v14 = vsel %vm76_vm1, %v74_v9, %v75_v6  ;;  %v78_v15 = vsel %vm76_vm1, %v75_v6, %v74_v9 }
   0xe   :  { %v86_v21 = vsel %vm85_vm3, %v83_v12, %v84_v7  ;;  %v87_v22 = vsel %vm85_vm3, %v84_v7, %v83_v12 }
   0xf   :  { %v88_v26 = vsel %vm7851_vm4, %v87_v22, 0.0  ;;  %v89_v27 = vsel %vm7855_vm5, %v86_v21, 0.0 }
  0x10   :  { %v6932_v28 = vpack.i.bf16 %v89_v27, %v88_v26 }
  0x11   :  { %28 = vsyncpa [#allocation7], 0  ;;  %s7717_s5 = smov 4   ;;  %vm7863_vm6 = vcmp.lt.s32.totalorder %v70_v18, 7  ;;  %vm7867_vm7 = vcmp.lt.s32.totalorder %v71_v20, 7  ;;  %vm106_vm8 = vcmask 15360  }
  0x12   :  { %6933 = vrot.lane.b32.xlu0 %v6932_v28, %s7717_s5  ;;  %v79_v34 = vsel %vm7863_vm6, %v77_v14, 0.0  ;;  %v80_v35 = vsel %vm7867_vm7, %v78_v15, 0.0  ;;  %vm109_vm9 = vcmask 31744   ;;  %vm124_vm10 = vcmask 48128   ;;  %v7269_v44 = vld [vmem:[%s10284_s7 + $0x4] ss:$16 sps:$4 sm:$0xff]  }
  0x13   :  { %v7271_v45 = vld [vmem:[%s10284_s7 + $0x8] ss:$16 sps:$4 sm:$0xff]   ;;  %v7273_v46 = vld [vmem:[%s10284_s7 + $0xc] ss:$16 sps:$4 sm:$0xff]   ;;  %v7274_v47 = vld [vmem:[%s10284_s7] ss:$16 sps:$4 sm:$0xff]   ;;  %372 = vmatprep.subr.bf16.mxu1 %v7269_v44 }
  0x14   :  { %v7275_v48 = vld [vmem:[%s10284_s7 + $0x24] ss:$16 sps:$4 sm:$0xff]   ;;  %415 = vmatprep.subr.bf16.mxu0 %v7273_v46  ;;  %v7279_v49 = vld [vmem:[%s10284_s7 + $0x2c] ss:$16 sps:$4 sm:$0xff]   ;;  %373 = vmatpush1.bf16.msra.mxu1 %v7274_v47  ;;  %v7277_v50 = vld [vmem:[%s10284_s7 + $0x28] ss:$16 sps:$4 sm:$0xff]  }
  0x15   :  { %v7280_v51 = vld [vmem:[%s10284_s7 + $0x20] ss:$16 sps:$4 sm:$0xff]   ;;  %374 = vmatprep.subr.bf16.mxu1 %v7275_v48  ;;  %v7281_v52 = vld [vmem:[%s10284_s7 + $0x44] ss:$16 sps:$4 sm:$0xff]   ;;  %v7285_v53 = vld [vmem:[%s10284_s7 + $0x4c] ss:$16 sps:$4 sm:$0xff]  }
  0x16   :  { %v7283_v54 = vld [vmem:[%s10284_s7 + $0x48] ss:$16 sps:$4 sm:$0xff]   ;;  %v7286_v55 = vld [vmem:[%s10284_s7 + $0x40] ss:$16 sps:$4 sm:$0xff]   ;;  %v7287_v56 = vld [vmem:[%s10284_s7 + $0x64] ss:$16 sps:$4 sm:$0xff]  }
  0x17   :  { %v7291_v57 = vld [vmem:[%s10284_s7 + $0x6c] ss:$16 sps:$4 sm:$0xff]   ;;  %v7289_v58 = vld [vmem:[%s10284_s7 + $0x68] ss:$16 sps:$4 sm:$0xff]   ;;  %v7292_v59 = vld [vmem:[%s10284_s7 + $0x60] ss:$16 sps:$4 sm:$0xff]  }
  0x18   :  { %375 = vmatpush1.bf16.msra.mxu1 %v7280_v51  ;;  %v7293_v60 = vld [vmem:[%s10284_s7 + $0x84] ss:$16 sps:$4 sm:$0xff]   ;;  %v7297_v61 = vld [vmem:[%s10284_s7 + $0x8c] ss:$16 sps:$4 sm:$0xff]   ;;  %v7295_v62 = vld [vmem:[%s10284_s7 + $0x88] ss:$16 sps:$4 sm:$0xff]  }
  0x19   :  { %376 = vmatprep.subr.bf16.mxu1 %v7281_v52  ;;  %v7298_v63 = vld [vmem:[%s10284_s7 + $0x80] ss:$16 sps:$4 sm:$0xff]   ;;  %v7299_v2 = vld [vmem:[%s10284_s7 + $0xa4] ss:$16 sps:$4 sm:$0xff]   ;;  %v7303_v3 = vld [vmem:[%s10284_s7 + $0xac] ss:$16 sps:$4 sm:$0xff]  }
  0x1a   :  { %v7301_v7 = vld [vmem:[%s10284_s7 + $0xa8] ss:$16 sps:$4 sm:$0xff]   ;;  %v7304_v8 = vld [vmem:[%s10284_s7 + $0xa0] ss:$16 sps:$4 sm:$0xff]   ;;  %s7718_s18 = smov 32   ;;  %s7719_s1 = smov 64  }
  0x1b   :  { %v561_v24 = vld [vmem:[%s10281_s4 + $0x8] sm:$0xff]  ;;  %v653_v25 = vld [vmem:[%s10279_s2] sm:$0xff]  ;;  %vm207_vm13 = vcmask 261120   ;;  %vm210_vm14 = vcmask 523264   ;;  %vm368_vm15 = vcmask 785408   ;;  %v518_v30 = vsub.s32 3, %v7831_v10 }
  0x1c   :  { %377 = vmatpush1.bf16.msra.mxu1 %v7286_v55  ;;  %s10368_s30 = sld [smem:[#allocation16_spill]]  ;;  %v10296_v55 = vsub.s32 0, %v7831_v10  ;;  %s7721_s7 = smov 127  }
  0x1d   :  { %378 = vmatprep.subr.bf16.mxu1 %v7287_v56  ;;  %s7722_s0 = smov 126  }
  0x20   :  { %379 = vmatpush1.bf16.msra.mxu1 %v7292_v59 }
  0x21   :  { %380 = vmatprep.subr.bf16.mxu1 %v7293_v60  ;;  %v534_v60 = vsub.s32 7, %v7831_v10 }
  0x22   :  { %v490_v31 = vld [vmem:[%s10368_s30] sm:$0xff] }
  0x23   :  { %v519_v56 = vrot.slane %v490_v31, %v518_v30 }
  0x24   :  { %381 = vmatpush1.bf16.msra.mxu1 %v7298_v63 }
  0x25   :  { %382 = vmatprep.subr.bf16.mxu1 %v7299_v2 }
  0x28   :  { %383 = vmatpush1.bf16.msra.mxu1 %v7304_v8 }
  0x7f   :  { %v6929_v29 = vpop.permute.xlu0 %6928 }
  0x80   :  { %v6931_v32 = vunpack.i.h.bf16 %v6929_v29  ;;  %v6930_v33 = vunpack.i.l.bf16 %v6929_v29  ;;  %v491_v29 = vld [vmem:[%s10280_s3] sm:$0xff] }
  0x82   :  { %v107_v39 = vsel %vm106_vm8, %v79_v34, %v6930_v33  ;;  %v108_v40 = vsel %vm106_vm8, %v80_v35, %v6931_v32  ;;  %v560_v35 = vld [vmem:[%s10281_s4] sm:$0xff] }
  0x84   :  { %v6934_v36 = vpop.permute.xlu0 %6933 }
  0x85   :  { %v6936_v37 = vunpack.i.h.bf16 %v6934_v36  ;;  %v6935_v38 = vunpack.i.l.bf16 %v6934_v36  ;;  %v492_v36 = vld [vmem:[%s10280_s3 + $0x8] sm:$0xff] }
  0x87   :  { %v110_v41 = vsel %vm109_vm9, %v107_v39, %v6935_v38  ;;  %v111_v42 = vsel %vm109_vm9, %v108_v40, %v6936_v37  ;;  %v654_v37 = vld [vmem:[%s10279_s2 + $0x8] sm:$0xff]  ;;  %v6219_v38 = vld [vmem:[%s10279_s2 + $0x80] sm:$0xff] }
  0x88   :  { %v112_v43 = vpack.c.bf16 %v111_v42, %v110_v41  ;;  %v6220_v39 = vld [vmem:[%s10279_s2 + $0x88] sm:$0xff] }
  0x89   :  { %v122_v0 = vpop.permute.xlu1 %121 }
  0x8a   :  { %6512 = vmatmul.mubr.msk.bf16.vlgmr.msra.gmra.mrb[0].mxu0 %vm124_vm10, %v112_v43 }
  0x8b   :  { %447 = vmatprep.mubr.bf16.mxu0 %v7716_v23  ;;  %416 = vmatpush1.bf16.msra.mxu0 %v7271_v45 }
  0x8c   :  { %417 = vmatprep.subr.bf16.mxu0 %v7279_v49 }
  0x8f   :  { %418 = vmatpush1.bf16.msra.mxu0 %v7277_v50 }
  0x90   :  { %419 = vmatprep.subr.bf16.mxu0 %v7285_v53  ;;  %v514_v53 = vsub.s32 2, %v7831_v10 }
  0x93   :  { %420 = vmatpush1.bf16.msra.mxu0 %v7283_v54  ;;  %v510_v54 = vsub.s32 1, %v7831_v10 }
  0x94   :  { %421 = vmatprep.subr.bf16.mxu0 %v7291_v57  ;;  %v515_v57 = vrot.slane %v490_v31, %v514_v53 }
  0x95   :  { %v511_v59 = vrot.slane %v490_v31, %v510_v54 }
  0x97   :  { %422 = vmatpush1.bf16.msra.mxu0 %v7289_v58 }
  0x98   :  { %423 = vmatprep.subr.bf16.mxu0 %v7297_v61  ;;  %v507_v61 = vrot.slane %v490_v31, %v10296_v55 }
  0x9b   :  { %424 = vmatpush1.bf16.msra.mxu0 %v7295_v62  ;;  %v522_v62 = vsub.s32 4, %v7831_v10 }
  0x9c   :  { %425 = vmatprep.subr.bf16.mxu0 %v7303_v3 }
  0x9f   :  { %426 = vmatpush1.bf16.msra.mxu0 %v7301_v7  ;;  %v526_v7 = vsub.s32 5, %v7831_v10 }
 0x15d   :  { %v166_v1 = vpop.f32.mrb[0].mxu0 }
 0x15e   :  { %v167_v4 = vadd.f32 %v166_v1, %v122_v0  ;;  %v6513_v6 = vpop.f32.mrb[1].mxu0  ;;  %v530_v1 = vsub.s32 6, %v7831_v10 }
 0x15f   :  { %v169_v9 = vpop.f32.mrb[2].mxu0  ;;  %v535_v6 = vrot.slane %v490_v31, %v534_v60 }
 0x160   :  { %vm173_vm11 = vcmp.ge.f32.partialorder %v167_v4, 0.0  ;;  %v175_v11 = vmul.f32 0.4, %v167_v4  ;;  %v170_v12 = vadd.f32 %v169_v9, %v122_v0  ;;  %v6514_v14 = vpop.f32.mrb[3].mxu0 }
 0x162   :  { %v177_v15 = vsel %vm173_vm11, %v167_v4, %v175_v11  ;;  %vm174_vm12 = vcmp.ge.f32.partialorder %v170_v12, 0.0  ;;  %v176_v16 = vmul.f32 0.4, %v170_v12 }
 0x163   :  { %v179_v17 = vrot.slane %v177_v15, 1  ;;  %v185_v19 = vrot.slane %v177_v15, 7 }
 0x164   :  { %v178_v18 = vsel %vm174_vm12, %v170_v12, %v176_v16 }
 0x165   :  { %v180_v20 = vrot.slane %v178_v18, 1  ;;  %v186_v21 = vrot.slane %v178_v18, 7  ;;  %v6938_v22 = vpack.i.bf16 %v178_v18, %v177_v15 }
 0x167   :  { %6939 = vrot.lane.b32.xlu1 %v6938_v22, %s7718_s18  ;;  %v187_v23 = vsel %vm85_vm3, %v185_v19, %v186_v21  ;;  %v188_v26 = vsel %vm85_vm3, %v186_v21, %v185_v19  ;;  %v181_v27 = vsel %vm76_vm1, %v179_v17, %v180_v20  ;;  %v182_v28 = vsel %vm76_vm1, %v180_v20, %v179_v17  ;;  %s7720_s18 = smov 1  }
 0x168   :  { %v189_v32 = vsel %vm7851_vm4, %v188_v26, 0.0  ;;  %v190_v33 = vsel %vm7855_vm5, %v187_v23, 0.0  ;;  %v183_v44 = vsel %vm7863_vm6, %v181_v27, 0.0  ;;  %v184_v45 = vsel %vm7867_vm7, %v182_v28, 0.0 }
 0x169   :  { %v6943_v34 = vpack.i.bf16 %v190_v33, %v189_v32  ;;  %v523_v17 = vrot.slane %v490_v31, %v522_v62  ;;  %v531_v19 = vrot.slane %v490_v31, %v530_v1  ;;  %v527_v26 = vrot.slane %v490_v31, %v526_v7 }
 0x16a   :  { %vm980_vm6 = vcmask 457728  }
 0x16b   :  { %495 = vperm.xlu1 %6937, %v491_v29   ;;  %6944 = vrot.lane.b32.xlu0 %v6943_v34, %s7719_s1 }
 0x16f   :  { %564 = vperm.xlu1 %6937, %v560_v35   ;;  %500 = vperm.xlu0 %6948, %v492_v36  }
 0x173   :  { %569 = vperm.xlu1 %6937, %v561_v24   ;;  %668 = vperm.xlu0 %6948, %v653_v25  }
 0x177   :  { %673 = vperm.xlu1 %6937, %v654_v37   ;;  %678 = vperm.xlu0 %6948, %v6219_v38  }
 0x17b   :  { %683 = vperm.xlu1 %6937, %v6220_v39  }
 0x1d9   :  { %v6940_v40 = vpop.permute.xlu1 %6939 }
 0x1da   :  { %v6942_v41 = vunpack.i.h.bf16 %v6940_v40  ;;  %v6941_v42 = vunpack.i.l.bf16 %v6940_v40 }
 0x1dc   :  { %v208_v48 = vsel %vm207_vm13, %v183_v44, %v6941_v42  ;;  %v209_v49 = vsel %vm207_vm13, %v184_v45, %v6942_v41 }
 0x1dd   :  { %v6945_v43 = vpop.permute.xlu0 %6944 }
 0x1de   :  { %v6947_v46 = vunpack.i.h.bf16 %v6945_v43  ;;  %v6946_v47 = vunpack.i.l.bf16 %v6945_v43 }
 0x1e0   :  { %v211_v50 = vsel %vm210_vm14, %v208_v48, %v6946_v47  ;;  %v212_v51 = vsel %vm210_vm14, %v209_v49, %v6947_v46 }
 0x1e1   :  { %v213_v52 = vpack.c.bf16 %v212_v51, %v211_v50 }
 0x1e3   :  { %6217 = vmatmul.mubr.msk.bf16.vlgmr.msra.gmra.mrb[0].mxu1 %vm368_vm15, %v213_v52  ;;  %6218 = vmatmul.mubr.msk.bf16.vlgmr.msra.gmra.mrb[4].mxu0 %vm368_vm15, %v213_v52 }
 0x1e4   :  { %1057 = vmatprep.mubr.f32.mxu1 %v10315_v13  ;;  %1146 = vmatprep.mubr.f32.mxu0 %v10315_v13 }
 0x1ea   :  { %v496_v58 = vpop.permute.xlu1 %495 }
 0x1eb   :  { %v547_v63 = vmul.f32 %v519_v56, %v496_v58  ;;  %v546_v0 = vmul.f32 %v515_v57, %v496_v58  ;;  %v545_v4 = vmul.f32 %v511_v59, %v496_v58  ;;  %v544_v15 = vmul.f32 %v507_v61, %v496_v58 }
 0x1ec   :  { %v551_v23 = vmul.f32 %v535_v6, %v496_v58  ;;  %v548_v36 = vmul.f32 %v523_v17, %v496_v58  ;;  %v550_v51 = vmul.f32 %v531_v19, %v496_v58  ;;  %v549_v60 = vmul.f32 %v527_v26, %v496_v58 }
 0x1ee   :  { %v8001_v2 = vpop.permute.xlu1 %564  ;;  %v8003_v3 = vpop.permute.xlu0 %500 }
 0x1ef   :  { %v555_v8 = vmul.f32 %v519_v56, %v8003_v3  ;;  %v8008_v9 = vadd.f32 %v8001_v2, %v547_v63  ;;  %v554_v11 = vmul.f32 %v515_v57, %v8003_v3  ;;  %v8012_v12 = vadd.f32 %v8001_v2, %v546_v0 }
 0x1f0   :  { %v553_v14 = vmul.f32 %v511_v59, %v8003_v3  ;;  %v552_v16 = vmul.f32 %v507_v61, %v8003_v3  ;;  %v8017_v18 = vadd.f32 %v8001_v2, %v545_v4  ;;  %v8021_v22 = vadd.f32 %v8001_v2, %v544_v15  ;;  %v6192_v4 = vld [vmem:[#allocation4] ss:$0 sm:$0xff] }
 0x1f1   :  { %v10310_v21 = vmax.f32 %v8008_v9, 0.0  ;;  %v10312_v32 = vmax.f32 %v8012_v12, 0.0  ;;  %v559_v33 = vmul.f32 %v535_v6, %v8003_v3  ;;  %v556_v24 = vmul.f32 %v523_v17, %v8003_v3 }
 0x1f2   :  { %v570_v20 = vpop.permute.xlu1 %569  ;;  %v669_v27 = vpop.permute.xlu0 %668  ;;  %v10311_v38 = vmax.f32 %v8017_v18, 0.0  ;;  %v8038_v39 = vadd.f32 %v8001_v2, %v551_v23  ;;  %v10313_v43 = vmax.f32 %v8021_v22, 0.0  ;;  %v8047_v44 = vadd.f32 %v8001_v2, %v548_v36 }
 0x1f3   :  { %v8023_v28 = vadd.f32 %v570_v20, %v555_v8  ;;  %v8025_v29 = vadd.f32 %v570_v20, %v554_v11  ;;  %v8029_v34 = vadd.f32 %v570_v20, %v553_v14  ;;  %v8031_v35 = vadd.f32 %v570_v20, %v552_v16 }
 0x1f4   :  { %v8042_v41 = vadd.f32 %v669_v27, %v10310_v21  ;;  %v8055_v46 = vadd.f32 %v669_v27, %v10312_v32  ;;  %v8061_v48 = vadd.f32 %v570_v20, %v559_v33  ;;  %v8064_v50 = vadd.f32 %v570_v20, %v556_v24 }
 0x1f5   :  { %v10305_v25 = vmax.f32 %v8023_v28, 0.0  ;;  %v10307_v37 = vmax.f32 %v8025_v29, 0.0  ;;  %v10306_v42 = vmax.f32 %v8029_v34, 0.0  ;;  %v10308_v49 = vmax.f32 %v8031_v35, 0.0 }
 0x1f6   :  { %v674_v40 = vpop.permute.xlu1 %673  ;;  %10369 = vst [vmem:[#allocation10_spill] sm:$0xff] %v8061_v48  ;;  %v558_v31 = vmul.f32 %v531_v19, %v8003_v3  ;;  %v8077_v56 = vadd.f32 %v669_v27, %v10311_v38  ;;  %v8081_v57 = vadd.f32 %v669_v27, %v10313_v43  ;;  %v8084_v59 = vadd.f32 %v8001_v2, %v550_v51  ;;  %v679_v61 = vpop.permute.xlu0 %678 }
 0x1f7   :  { %v8051_v45 = vadd.f32 %v674_v40, %v10305_v25  ;;  %v8059_v47 = vadd.f32 %v674_v40, %v10307_v37  ;;  %v8072_v53 = vadd.f32 %v674_v40, %v10306_v42  ;;  %v10302_v62 = vmax.f32 %v8038_v39, 0.0 }
 0x1f8   :  { %v10297_v63 = vmax.f32 %v8061_v48, 0.0  ;;  %v10304_v0 = vmax.f32 %v8047_v44, 0.0  ;;  %v8091_v1 = vadd.f32 %v570_v20, %v558_v31  ;;  %v8095_v6 = vadd.f32 %v674_v40, %v10308_v49 }
 0x1f9   :  { %v6954_v52 = vpack.i.bf16 %v8051_v45, %v8042_v41  ;;  %v6949_v30 = vpack.i.bf16 %v8059_v47, %v8055_v46  ;;  %v10300_v58 = vmax.f32 %v8064_v50, 0.0  ;;  %v557_v7 = vmul.f32 %v527_v26, %v8003_v3 }
 0x1fa   :  { %v684_v54 = vpop.permute.xlu1 %683  ;;  %v8100_v8 = vadd.f32 %v8001_v2, %v549_v60  ;;  %v6959_v11 = vpack.i.bf16 %v8072_v53, %v8077_v56  ;;  %v10301_v15 = vmax.f32 %v8084_v59, 0.0  ;;  %v10299_v16 = vmax.f32 %v8091_v1, 0.0 }
 0x1fb   :  { %6955 = vrot.lane.b32.xlu1 %v6954_v52, %s7720_s18  ;;  %6950 = vrot.lane.b32.xlu0 %v6949_v30, %s7720_s18  ;;  %v8106_v14 = vadd.f32 %v684_v54, %v10297_v63  ;;  %v8112_v17 = vadd.f32 %v679_v61, %v10302_v62  ;;  %v8116_v3 = vadd.f32 %v679_v61, %v10304_v0  ;;  %v10375_v38 = vmov 0 }
 0x1fc   :  { %v8120_v2 = vadd.f32 %v684_v54, %v10300_v58  ;;  %v8122_v19 = vadd.f32 %v570_v20, %v557_v7  ;;  %v8127_v23 = vadd.f32 %v679_v61, %v10301_v15  ;;  %v8131_v26 = vadd.f32 %v684_v54, %v10299_v16  ;;  %v956_v16 = vld [vmem:[%s10286_s10] sm:$0xff] }
 0x1fd   :  { %v6532_v27 = vpack.c.bf16 %v8051_v45, %v8042_v41  ;;  %v10303_v33 = vmax.f32 %v8100_v8, 0.0  ;;  %v6534_v20 = vpack.c.bf16 %v8059_v47, %v8055_v46  ;;  %v6520_v24 = vpack.c.bf16 %v8072_v53, %v8077_v56 }
 0x1fe   :  { %10370 = vst [vmem:[#allocation11_spill] sm:$0xff] %v8122_v19  ;;  %v10298_v36 = vmax.f32 %v8122_v19, 0.0  ;;  %v6964_v40 = vpack.i.bf16 %v8095_v6, %v8081_v57  ;;  %v6522_v51 = vpack.c.bf16 %v8095_v6, %v8081_v57 }
 0x1ff   :  { %245 = vperm.xlu1 %6937, %v6192_v4   ;;  %6960 = vrot.lane.b32.xlu0 %v6959_v11, %s7720_s18  ;;  %v8149_v60 = vadd.f32 %v679_v61, %v10303_v33  ;;  %v6979_v61 = vpack.i.bf16 %v8106_v14, %v8112_v17 }
 0x200   :  { %v8153_v4 = vadd.f32 %v684_v54, %v10298_v36  ;;  %v6974_v54 = vpack.i.bf16 %v8120_v2, %v8116_v3  ;;  %v6989_v36 = vpack.i.bf16 %v8131_v26, %v8127_v23 }
 0x203   :  { %6970 = vrot.lane.b32.xlu1 %v6954_v52, %s7721_s7  ;;  %6965 = vrot.lane.b32.xlu0 %v6964_v40, %s7720_s18  ;;  %v6999_v52 = vpack.i.bf16 %v8153_v4, %v8149_v60 }
 0x207   :  { %6980 = vrot.lane.b32.xlu1 %v6979_v61, %s7720_s18  ;;  %6975 = vrot.lane.b32.xlu0 %v6974_v54, %s7721_s7 }
 0x20b   :  { %6990 = vrot.lane.b32.xlu1 %v6989_v36, %s7720_s18  ;;  %6985 = vrot.lane.b32.xlu0 %v6949_v30, %s7721_s7  ;;  %v958_v30 = vld [vmem:[%s10286_s10 + $0x10] sm:$0xff] }
 0x20f   :  { %7000 = vrot.lane.b32.xlu1 %v6999_v52, %s7720_s18  ;;  %6995 = vrot.lane.b32.xlu0 %v6959_v11, %s7721_s7  ;;  %v957_v11 = vld [vmem:[%s10286_s10 + $0x8] sm:$0xff] }
 0x213   :  { %7010 = vrot.lane.b32.xlu1 %v6974_v54, %s7720_s18  ;;  %7005 = vrot.lane.b32.xlu0 %v6964_v40, %s7721_s7  ;;  %v1922_v40 = vld [vmem:[%s10279_s2 + $0x10] sm:$0xff] }
 0x214   :  { %v6269_v54 = vld [vmem:[%s10279_s2 + $0x90] sm:$0xff] }
 0x217   :  { %7020 = vrot.lane.b32.xlu1 %v6989_v36, %s7721_s7  ;;  %7015 = vrot.lane.b32.xlu0 %v6979_v61, %s7721_s7  ;;  %v1481_v36 = vld [vmem:[%s10288_s12] sm:$0xff]  ;;  %v1482_v61 = vld [vmem:[%s10288_s12 + $0x8] sm:$0xff] }
 0x21b   :  { %962 = vperm.xlu1 %6937, %v956_v16   ;;  %7025 = vrot.lane.b32.xlu0 %v6999_v52, %s7721_s7  ;;  %v959_v16 = vld [vmem:[%s10286_s10 + $0x18] sm:$0xff] }
 0x21c   :  { %v1923_v52 = vld [vmem:[%s10279_s2 + $0x18] sm:$0xff] }
 0x21f   :  { %972 = vperm.xlu1 %6937, %v958_v30   ;;  %967 = vperm.xlu0 %6948, %v957_v11   ;;  %v6270_v30 = vld [vmem:[%s10279_s2 + $0x98] sm:$0xff]  ;;  %v8213_v11 = vand.u32 127, %v67_v5 }
 0x221   :  { %vm750_vm0 = vcmp.lt.s32.totalorder %v8213_v11, 1  ;;  %vm847_vm1 = vcmp.lt.s32.totalorder %v8213_v11, 127  ;;  %v10314_v46 = vand.u32 511, %v8213_v11 }
 0x223   :  { %1487 = vperm.xlu1 %6937, %v1481_v36   ;;  %977 = vperm.xlu0 %6948, %v959_v16   ;;  %vm8273_vm4 = vcmp.ge.s32.totalorder %v10314_v46, 1 }
 0x224   :  { %v10376_v38 = vsel %vm8273_vm4, 4294967295, %v10375_v38  ;;  %vm6518_vm5 = vmpackc.low %vm8273_vm4, %vm8273_vm4 }
 0x225   :  { %10377 = vst [vmem:[#allocation14_spill] sm:$0xff] %v10376_v38 }
 0x227   :  { %1928 = vperm.xlu1 %6937, %v1922_v40   ;;  %1492 = vperm.xlu0 %6948, %v1482_v61  }
 0x22b   :  { %1938 = vperm.xlu1 %6937, %v6269_v54   ;;  %1933 = vperm.xlu0 %6948, %v1923_v52  }
 0x22f   :  { %1943 = vperm.xlu0 %6948, %v6270_v30  }
 0x26d   :  { %v8216_v36 = vpop.permute.xlu1 %6955  ;;  %v6951_v16 = vpop.permute.xlu0 %6950 }
 0x26e   :  { %v6958_v40 = vunpack.i.h.bf16 %v8216_v36  ;;  %v6957_v61 = vunpack.i.l.bf16 %v8216_v36  ;;  %v6953_v58 = vunpack.i.h.bf16 %v6951_v16  ;;  %v6952_v54 = vunpack.i.l.bf16 %v6951_v16 }
 0x270   :  { %v759_v52 = vsel %vm750_vm0, %v6952_v54, %v6957_v61  ;;  %v760_v5 = vsel %vm750_vm0, %v6953_v58, %v6958_v40 }
 0x271   :  { %v6961_v30 = vpop.permute.xlu0 %6960  ;;  %v6528_v15 = vpack.c.bf16 %v760_v5, %v759_v52 }
 0x272   :  { %v6963_v62 = vunpack.i.h.bf16 %v6961_v30  ;;  %v6962_v33 = vunpack.i.l.bf16 %v6961_v30  ;;  %v8240_v30 = vadd.s32 384, %v8213_v11 }
 0x273   :  { %6529 = vmatprep.subr.bf16.mxu0 %v6528_v15 }
 0x274   :  { %v761_v0 = vsel %vm750_vm0, %v6962_v33, %v6952_v54  ;;  %v762_v16 = vsel %vm750_vm0, %v6963_v62, %v6953_v58  ;;  %10371 = vst [vmem:[#allocation12_spill] sm:$0xff] %v8240_v30  ;;  %v10309_v41 = vand.u32 511, %v8240_v30 }
 0x275   :  { %v6966_v25 = vpop.permute.xlu0 %6965  ;;  %v6530_v42 = vpack.c.bf16 %v762_v16, %v761_v0 }
 0x276   :  { %v6968_v37 = vunpack.i.h.bf16 %v6966_v25  ;;  %v6967_v49 = vunpack.i.l.bf16 %v6966_v25  ;;  %vm8251_vm2 = vcmp.lt.s32.totalorder %v10309_v41, 511 }
 0x277   :  { %6531 = vmatpush1.bf16.msra.mxu0 %v6530_v42  ;;  %vm6537_vm3 = vmpackc.low %vm8251_vm2, %vm8251_vm2 }
 0x278   :  { %6533 = vmatprep.subr.bf16.mxu0 %v6532_v27  ;;  %v763_v52 = vsel %vm750_vm0, %v6967_v49, %v6962_v33  ;;  %v764_v15 = vsel %vm750_vm0, %v6968_v37, %v6963_v62  ;;  %v10372_v27 = vmov 0 }
 0x279   :  { %v6976_v5 = vpop.permute.xlu0 %6975  ;;  %v6515_v54 = vpack.c.bf16 %v764_v15, %v763_v52  ;;  %v10373_v27 = vsel %vm8251_vm2, 4294967295, %v10372_v27 }
 0x27a   :  { %v6978_v0 = vunpack.i.h.bf16 %v6976_v5  ;;  %v6977_v62 = vunpack.i.l.bf16 %v6976_v5  ;;  %10374 = vst [vmem:[#allocation13_spill] sm:$0xff] %v10373_v27 }
 0x27b   :  { %6516 = vmatprep.subr.bf16.mxu1 %v6515_v54  ;;  %6535 = vmatpush1.bf16.msra.mxu0 %v6534_v20 }
 0x27d   :  { %v6986_v25 = vpop.permute.xlu0 %6985 }
 0x27e   :  { %v8245_v42 = vpop.permute.xlu1 %245  ;;  %v6988_v47 = vunpack.i.h.bf16 %v6986_v25  ;;  %v6987_v33 = vunpack.i.l.bf16 %v6986_v25 }
 0x281   :  { %v6996_v45 = vpop.permute.xlu0 %6995 }
 0x282   :  { %v6971_v58 = vpop.permute.xlu1 %6970  ;;  %v6998_v32 = vunpack.i.h.bf16 %v6996_v45  ;;  %v6997_v43 = vunpack.i.l.bf16 %v6996_v45 }
 0x283   :  { %v6973_v20 = vunpack.i.h.bf16 %v6971_v58  ;;  %v6972_v16 = vunpack.i.l.bf16 %v6971_v58 }
 0x285   :  { %v854_v52 = vsel %vm847_vm1, %v6972_v16, %v6977_v62  ;;  %v855_v15 = vsel %vm847_vm1, %v6973_v20, %v6978_v0  ;;  %v856_v5 = vsel %vm847_vm1, %v6987_v33, %v6972_v16  ;;  %v857_v54 = vsel %vm847_vm1, %v6988_v47, %v6973_v20  ;;  %v8264_v41 = vpop.permute.xlu0 %7005 }
 0x286   :  { %v8269_v25 = vpop.permute.xlu1 %6980  ;;  %v6536_v58 = vpack.c.bf16 %v855_v15, %v854_v52  ;;  %v6539_v21 = vpack.c.bf16 %v857_v54, %v856_v5  ;;  %v10321_v46 = vunpack.i.l.bf16 %v8264_v41 }
 0x287   :  { %v10322_v16 = vunpack.i.h.bf16 %v8269_v25  ;;  %v6982_v20 = vunpack.i.l.bf16 %v8269_v25  ;;  %v10381_v10 = vunpack.i.h.bf16 %v8269_v25 }
 0x288   :  { %6538 = vmatprep.subr.msk.bf16.mxu0 %vm6537_vm3, %v6536_v58  ;;  %v10320_v58 = vunpack.i.h.bf16 %v8264_v41 }
 0x289   :  { %v765_v52 = vsel %vm750_vm0, %v6982_v20, %v6967_v49  ;;  %v766_v15 = vsel %vm750_vm0, %v10322_v16, %v6968_v37  ;;  %v8290_v5 = vpop.permute.xlu0 %7015  ;;  %6540 = vmatpush1.bf16.msra.mxu0 %v6539_v21  ;;  %v858_v21 = vsel %vm847_vm1, %v6997_v43, %v6987_v33  ;;  %v859_v37 = vsel %vm847_vm1, %v6998_v32, %v6988_v47 }
 0x28a   :  { %v6517_v45 = vpack.c.bf16 %v766_v15, %v765_v52  ;;  %v8295_v54 = vpop.permute.xlu1 %6990  ;;  %v861_v47 = vsel %vm847_vm1, %v10320_v58, %v6998_v32  ;;  %v6524_v33 = vpack.c.bf16 %v859_v37, %v858_v21 }
 0x28b   :  { %v6993_v32 = vunpack.i.h.bf16 %v8295_v54 }
 0x28c   :  { %6519 = vmatpush1.bf16.msk.msra.mxu1 %vm6518_vm5, %v6517_v45  ;;  %v860_v45 = vsel %vm847_vm1, %v10321_v46, %v6997_v43 }
 0x28d   :  { %v8308_v49 = vpop.permute.xlu0 %7025  ;;  %6521 = vmatprep.subr.bf16.mxu1 %v6520_v24  ;;  %v6526_v24 = vpack.c.bf16 %v861_v47, %v860_v45  ;;  %v8359_v45 = vadd.s32 896, %v8213_v11  ;;  %v752_v38 = vsel %vm750_vm0, %v6993_v32, %v10381_v10 }
 0x28e   :  { %v10317_v52 = vunpack.i.h.bf16 %v8308_v49  ;;  %v10318_v15 = vunpack.i.l.bf16 %v8308_v49  ;;  %v7001_v55 = vpop.permute.xlu1 %7000 }
 0x28f   :  { %v7003_v7 = vunpack.i.h.bf16 %v7001_v55  ;;  %v7002_v6 = vunpack.i.l.bf16 %v7001_v55 }
 0x290   :  { %v8327_v53 = vsel %vm847_vm1, %v6977_v62, %v10318_v15  ;;  %v8333_v56 = vsel %vm847_vm1, %v6978_v0, %v10317_v52  ;;  %6523 = vmatpush1.bf16.msra.mxu1 %v6522_v51  ;;  %v8355_v51 = vadd.s32 512, %v8213_v11 }
 0x291   :  { %6525 = vmatprep.subr.bf16.mxu1 %v6524_v33  ;;  %v754_v55 = vsel %vm750_vm0, %v7003_v7, %v6993_v32 }
 0x292   :  { %v7011_v43 = vpop.permute.xlu1 %7010  ;;  %10378 = vst [vmem:[#allocation15_spill] sm:$0xff] %v8355_v51  ;;  %v10319_v0 = vand.u32 511, %v8355_v51 }
 0x293   :  { %v7013_v21 = vunpack.i.h.bf16 %v7011_v43  ;;  %v7012_v37 = vunpack.i.l.bf16 %v7011_v43 }
 0x294   :  { %6527 = vmatpush1.bf16.msra.mxu1 %v6526_v24  ;;  %vm8366_vm7 = vcmp.ge.s32.totalorder %v10319_v0, 1 }
 0x295   :  { %v8344_v62 = vsel %vm750_vm0, %v6958_v40, %v7013_v21  ;;  %v8350_v57 = vsel %vm750_vm0, %v6957_v61, %v7012_v37  ;;  %v6992_v40 = vunpack.i.l.bf16 %v8295_v54  ;;  %vm10336_vm12 = vmpackc.low %vm8366_vm7, %vm8366_vm7 }
 0x296   :  { %v7021_v24 = vpop.permute.xlu1 %7020 }
 0x297   :  { %v751_v47 = vsel %vm750_vm0, %v6992_v40, %v6982_v20  ;;  %v756_v20 = vsel %vm750_vm0, %v7013_v21, %v7003_v7  ;;  %v753_v27 = vsel %vm750_vm0, %v7002_v6, %v6992_v40  ;;  %v7022_v51 = vunpack.i.l.bf16 %v7021_v24 }
 0x298   :  { %v7023_v19 = vunpack.i.h.bf16 %v7021_v24  ;;  %v10385_v21 = vunpack.i.h.bf16 %v8290_v5  ;;  %v10386_v40 = vunpack.i.l.bf16 %v8308_v49 }
 0x2b6   :  { %v406_v61 = vpop.f32.mrb[0].mxu1  ;;  %v449_v33 = vpop.f32.mrb[4].mxu0 }
 0x2b7   :  { %v407_v13 = vadd.f32 %v406_v61, %v8245_v42  ;;  %v450_v31 = vadd.f32 %v449_v33, %v8245_v42  ;;  %v408_v63 = vpop.f32.mrb[1].mxu1  ;;  %v451_v52 = vpop.f32.mrb[5].mxu0 }
 0x2b8   :  { %v409_v15 = vadd.f32 %v408_v63, %v8245_v42  ;;  %v452_v36 = vadd.f32 %v451_v52, %v8245_v42  ;;  %v410_v0 = vpop.f32.mrb[2].mxu1  ;;  %v453_v58 = vpop.f32.mrb[6].mxu0  ;;  %v755_v52 = vsel %vm750_vm0, %v7012_v37, %v7002_v6  ;;  %v8397_v37 = vld [vmem:[%s10285_s9] sm:$0xff] }
 0x2b9   :  { %vm458_vm8 = vcmp.ge.f32.partialorder %v407_v13, 0.0  ;;  %v466_v54 = vmul.f32 0.4, %v407_v13  ;;  %vm460_vm9 = vcmp.ge.f32.partialorder %v450_v31, 0.0  ;;  %v468_v46 = vmul.f32 0.4, %v450_v31 }
 0x2ba   :  { %vm459_vm10 = vcmp.ge.f32.partialorder %v409_v15, 0.0  ;;  %v467_v61 = vmul.f32 0.4, %v409_v15  ;;  %vm461_vm11 = vcmp.ge.f32.partialorder %v452_v36, 0.0  ;;  %v469_v33 = vmul.f32 0.4, %v452_v36 }
 0x2bb   :  { %v412_v63 = vpop.f32.mrb[3].mxu1  ;;  %v455_v16 = vpop.f32.mrb[7].mxu0  ;;  %v8402_v10 = vsel %vm458_vm8, %v407_v13, %v466_v54  ;;  %v8405_v7 = vsel %vm460_vm9, %v450_v31, %v468_v46  ;;  %v6541_v25 = vpack.c.bf16 %v756_v20, %v755_v52  ;;  %v6556_v13 = vpack.c.bf16 %v754_v55, %v753_v27 }
 0x2bc   :  { %v8390_v30 = vsel %vm459_vm10, %v409_v15, %v467_v61  ;;  %v8392_v48 = vsel %vm461_vm11, %v452_v36, %v469_v33  ;;  %v6554_v15 = vpack.c.bf16 %v752_v38, %v751_v47  ;;  %v10382_v31 = vunpack.i.l.bf16 %v8264_v41  ;;  %v897_v61 = vld [vmem:[%s10285_s9 + $0x8] sm:$0xff]  ;;  %v6340_v47 = vld [vmem:[%s10285_s9 + $0x58] sm:$0xff] }
 0x2bd   :  { %1005 = vmatprep.subr.mxu1 %v8390_v30  ;;  %1094 = vmatprep.subr.mxu0 %v8392_v48  ;;  %v10383_v46 = vunpack.i.l.bf16 %v8290_v5  ;;  %v10384_v38 = vunpack.i.h.bf16 %v8264_v41  ;;  %v850_v27 = vsel %vm847_vm1, %v10386_v40, %v7022_v51  ;;  %v10387_v36 = vand.u32 511, %v8359_v45 }
 0x2be   :  { %1006 = vmatpush1.msra.mxu1 %v8402_v10  ;;  %1095 = vmatpush1.msra.mxu0 %v8405_v7  ;;  %v413_v41 = vadd.f32 %v412_v63, %v8245_v42  ;;  %v456_v24 = vadd.f32 %v455_v16, %v8245_v42  ;;  %v10390_v54 = vpack.c.bf16 %v8344_v62, %v8350_v57  ;;  %v10391_v33 = vunpack.i.h.bf16 %v8308_v49 }
 0x2bf   :  { %6221 = vmatmul.mubr.msk.f32.vlgmr.msra.gmra.mrb[4].mxu1 %vm980_vm6, %v8397_v37  ;;  %6225 = vmatmul.mubr.msk.f32.vlgmr.msra.gmra.mrb[8].mxu0 %vm980_vm6, %v8397_v37  ;;  %v862_v32 = vsel %vm847_vm1, %v10383_v46, %v10382_v31  ;;  %v863_v6 = vsel %vm847_vm1, %v10385_v21, %v10384_v38  ;;  %vm8434_vm13 = vcmp.lt.s32.totalorder %v10387_v36, 511  ;;  %v10392_v16 = vpack.c.bf16 %v8153_v4, %v8149_v60 }
 0x2c0   :  { %6542 = vmatprep.subr.bf16.mxu1 %v6541_v25  ;;  %6555 = vmatprep.subr.bf16.mxu0 %v6554_v15  ;;  %v851_v55 = vsel %vm847_vm1, %v10391_v33, %v7023_v19  ;;  %v10393_v62 = vpack.c.bf16 %v8106_v14, %v8112_v17  ;;  %v6562_v57 = vpack.c.bf16 %v863_v6, %v862_v32  ;;  %v10396_v25 = vmov 0.0   ;;  %vm10341_vm14 = vmpackc.low %vm8434_vm13, %vm8434_vm13  ;;  %v899_v15 = vld [vmem:[%s10285_s9 + $0x18] sm:$0xff] }
 0x2c1   :  { %6545 = vmatpush1.bf16.msk.msra.mxu1 %vm10336_vm12, %v10390_v54  ;;  %6557 = vmatpush1.bf16.msra.mxu0 %v6556_v13  ;;  %v10394_v63 = vmov %v10383_v46  ;;  %v10395_v20 = vmov %v10385_v21  ;;  %v411_v14 = vadd.f32 %v410_v0, %v8245_v42  ;;  %v454_v17 = vadd.f32 %v453_v58, %v8245_v42  ;;  %v898_v0 = vld [vmem:[%s10285_s9 + $0x10] sm:$0xff]  ;;  %vm10457_vm2 = vmpackc.low %vm8434_vm13, %vm8434_vm13 }
 0x2c2   :  { %6547 = vmatprep.subr.bf16.mxu1 %v10392_v16  ;;  %6559 = vmatprep.subr.bf16.mxu0 %v10393_v62  ;;  %v848_v52 = vsel %vm847_vm1, %v7022_v51, %v10394_v63  ;;  %v849_v49 = vsel %vm847_vm1, %v7023_v19, %v10395_v20  ;;  %v6550_v60 = vpack.c.bf16 %v851_v55, %v850_v27  ;;  %v471_v4 = vmul.f32 0.4, %v413_v41 }
 0x2c3   :  { %1063 = vmatprep.mubr.f32.mxu1 %v10396_v25  ;;  %1152 = vmatprep.mubr.f32.mxu0 %v10396_v25  ;;  %v473_v5 = vmul.f32 0.4, %v456_v24  ;;  %v10397_v19 = vpack.c.bf16 %v8120_v2, %v8116_v3  ;;  %v10398_v51 = vpack.c.bf16 %v8131_v26, %v8127_v23  ;;  %vm463_vm15 = vcmp.ge.f32.partialorder %v413_v41, 0.0 }
 0x2c4   :  { %6222 = vmatmul.mubr.msk.f32.gmra.mrb[6].mxu1 %vm980_vm6, %v897_v61  ;;  %6226 = vmatmul.mubr.msk.f32.gmra.mrb[10].mxu0 %vm980_vm6, %v897_v61  ;;  %vm465_vm8 = vcmp.ge.f32.partialorder %v456_v24, 0.0  ;;  %v6565_v42 = vpack.c.bf16 %v849_v49, %v848_v52  ;;  %v470_v3 = vmul.f32 0.4, %v411_v14  ;;  %v472_v2 = vmul.f32 0.4, %v454_v17 }
 0x2c5   :  { %6549 = vmatpush1.bf16.msra.mxu1 %v10397_v19  ;;  %6561 = vmatpush1.bf16.msra.mxu0 %v10398_v51  ;;  %vm462_vm9 = vcmp.ge.f32.partialorder %v411_v14, 0.0  ;;  %vm464_vm10 = vcmp.ge.f32.partialorder %v454_v17, 0.0  ;;  %v10399_v23 = vpack.c.bf16 %v8333_v56, %v8327_v53  ;;  %v8499_v26 = vsel %vm463_vm15, %v413_v41, %v471_v4  ;;  %v8544_v41 = vpop.permute.xlu0 %967 }
 0x2c6   :  { %6551 = vmatprep.subr.bf16.mxu1 %v6550_v60  ;;  %6564 = vmatprep.subr.msk.bf16.mxu0 %vm10341_vm14, %v6562_v57  ;;  %v8501_v58 = vsel %vm465_vm8, %v456_v24, %v473_v5  ;;  %v8512_v53 = vsel %vm462_vm9, %v411_v14, %v470_v3  ;;  %v8514_v56 = vsel %vm464_vm10, %v454_v17, %v472_v2  ;;  %vm1505_vm11 = vcmask 130048  }
 0x2c7   :  { %1069 = vmatprep.mubr.f32.mxu1 %v10396_v25  ;;  %1158 = vmatprep.mubr.f32.mxu0 %v10396_v25  ;;  %vm10345_vm15 = vcmp.lt.s32.totalorder %v8213_v11, 2  ;;  %vm2107_vm10 = vcmp.lt.s32.totalorder %v8213_v11, 126 }
 0x2c8   :  { %6223 = vmatmul.mubr.msk.f32.gmra.mrb[8].mxu1 %vm980_vm6, %v898_v0  ;;  %6227 = vmatmul.mubr.msk.f32.gmra.mrb[12].mxu0 %vm980_vm6, %v898_v0 }
 0x2c9   :  { %6553 = vmatpush1.bf16.msra.mxu1 %v10399_v23  ;;  %6566 = vmatpush1.bf16.msra.mxu0 %v6565_v42 }
 0x2ca   :  { %1183 = vmatprep.subr.mxu1 %v8499_v26  ;;  %1272 = vmatprep.subr.mxu0 %v8501_v58 }
 0x2cb   :  { %1075 = vmatprep.mubr.f32.mxu1 %v10396_v25  ;;  %1164 = vmatprep.mubr.f32.mxu0 %v10396_v25 }
 0x2cc   :  { %6224 = vmatmul.mubr.msk.f32.gmra.mrb[10].mxu1 %vm980_vm6, %v899_v15  ;;  %6228 = vmatmul.mubr.msk.f32.gmra.mrb[14].mxu0 %vm980_vm6, %v899_v15 }
 0x2cd   :  { %1184 = vmatpush1.msra.mxu1 %v8512_v53  ;;  %1273 = vmatpush1.msra.mxu0 %v8514_v56 }
 0x2ce   :  { %1235 = vmatprep.mubr.f32.mxu1 %v10396_v25  ;;  %1324 = vmatprep.mubr.f32.mxu0 %v10396_v25 }
 0x2d0   :  { %6229 = vmatmul.mubr.msk.f32.vlgmr.msra.gmra.mrb[12].mxu1 %vm980_vm6, %v8397_v37  ;;  %6233 = vmatmul.mubr.msk.f32.vlgmr.msra.gmra.mrb[16].mxu0 %vm980_vm6, %v8397_v37  ;;  %v8538_v37 = vpop.permute.xlu1 %962 }
 0x2d1   :  { %1241 = vmatprep.mubr.f32.mxu1 %v10396_v25  ;;  %1330 = vmatprep.mubr.f32.mxu0 %v10396_v25 }
 0x2d4   :  { %6230 = vmatmul.mubr.msk.f32.gmra.mrb[14].mxu1 %vm980_vm6, %v897_v61  ;;  %6234 = vmatmul.mubr.msk.f32.gmra.mrb[18].mxu0 %vm980_vm6, %v897_v61  ;;  %v8550_v20 = vpop.permute.xlu1 %972 }
 0x2d5   :  { %1247 = vmatprep.mubr.f32.mxu1 %v10396_v25  ;;  %1336 = vmatprep.mubr.f32.mxu0 %v10396_v25 }
 0x2d8   :  { %6231 = vmatmul.mubr.msk.f32.gmra.mrb[16].mxu1 %vm980_vm6, %v898_v0  ;;  %6235 = vmatmul.mubr.msk.f32.gmra.mrb[20].mxu0 %vm980_vm6, %v898_v0 }
 0x2d9   :  { %1253 = vmatprep.mubr.f32.mxu1 %v10396_v25  ;;  %1342 = vmatprep.mubr.f32.mxu0 %v10396_v25 }
 0x2dc   :  { %6232 = vmatmul.mubr.msk.f32.gmra.mrb[18].mxu1 %vm980_vm6, %v899_v15  ;;  %6236 = vmatmul.mubr.msk.f32.gmra.mrb[22].mxu0 %vm980_vm6, %v899_v15 }
 0x2dd   :  { %1582 = vmatprep.mubr.f32.mxu1 %v10396_v25  ;;  %1671 = vmatprep.mubr.f32.mxu0 %v10396_v25 }
 0x392   :  { %v1059_v13 = vpop.f32.mrb[4].mxu1  ;;  %v1148_v31 = vpop.f32.mrb[8].mxu0 }
 0x393   :  { %v1060_v46 = vadd.f32 %v1059_v13, %v8538_v37  ;;  %v1149_v32 = vadd.f32 %v1148_v31, %v8538_v37  ;;  %v1061_v38 = vpop.f32.mrb[5].mxu1  ;;  %v1150_v21 = vpop.f32.mrb[9].mxu0 }
 0x394   :  { %v1062_v6 = vadd.f32 %v1061_v38, %v8538_v37  ;;  %v1151_v40 = vadd.f32 %v1150_v21, %v8538_v37  ;;  %v8556_v38 = vpop.permute.xlu0 %977 }
 0x395   :  { %v6237_v27 = vmul.f32 -1.442695, %v1060_v46  ;;  %v6239_v36 = vmul.f32 -1.442695, %v1149_v32 }
 0x396   :  { %v6238_v24 = vmul.f32 -1.442695, %v1062_v6  ;;  %v6240_v54 = vmul.f32 -1.442695, %v1151_v40 }
 0x397   :  { %7305 = vpow2.f32 %v6237_v27  ;;  %v1065_v61 = vpop.f32.mrb[6].mxu1  ;;  %v1154_v33 = vpop.f32.mrb[10].mxu0 }
 0x398   :  { %7307 = vpow2.f32 %v6239_v36  ;;  %v1066_v55 = vadd.f32 %v1065_v61, %v8544_v41  ;;  %v1155_v16 = vadd.f32 %v1154_v33, %v8544_v41  ;;  %v1067_v62 = vpop.f32.mrb[7].mxu1  ;;  %v1156_v57 = vpop.f32.mrb[11].mxu0 }
 0x399   :  { %7309 = vpow2.f32 %v6238_v24  ;;  %v1068_v63 = vadd.f32 %v1067_v62, %v8544_v41  ;;  %v1157_v52 = vadd.f32 %v1156_v57, %v8544_v41 }
 0x39a   :  { %7311 = vpow2.f32 %v6240_v54  ;;  %v6245_v49 = vmul.f32 -1.442695, %v1066_v55  ;;  %v6247_v14 = vmul.f32 -1.442695, %v1155_v16 }
 0x39b   :  { %v6246_v17 = vmul.f32 -1.442695, %v1068_v63  ;;  %v6248_v60 = vmul.f32 -1.442695, %v1157_v52  ;;  %v1071_v4 = vpop.f32.mrb[8].mxu1  ;;  %v1160_v5 = vpop.f32.mrb[12].mxu0 }
 0x39c   :  { %7313 = vpow2.f32 %v6245_v49  ;;  %v1072_v19 = vadd.f32 %v1071_v4, %v8550_v20  ;;  %v1073_v51 = vpop.f32.mrb[9].mxu1  ;;  %v1162_v0 = vpop.f32.mrb[13].mxu0  ;;  %v1161_v42 = vadd.f32 %v1160_v5, %v8550_v20 }
 0x39d   :  { %7315 = vpow2.f32 %v6247_v14  ;;  %v1074_v3 = vadd.f32 %v1073_v51, %v8550_v20  ;;  %v1163_v2 = vadd.f32 %v1162_v0, %v8550_v20 }
 0x39e   :  { %7317 = vpow2.f32 %v6246_v17 }
 0x39f   :  { %7319 = vpow2.f32 %v6248_v60  ;;  %v1077_v23 = vpop.f32.mrb[10].mxu1  ;;  %v1166_v15 = vpop.f32.mrb[14].mxu0 }
 0x3a0   :  { %7321 = vtanh.f32 %v1072_v19  ;;  %v1079_v13 = vpop.f32.mrb[11].mxu1  ;;  %v1168_v31 = vpop.f32.mrb[15].mxu0  ;;  %v1078_v61 = vadd.f32 %v1077_v23, %v8556_v38  ;;  %v1167_v51 = vadd.f32 %v1166_v15, %v8556_v38 }
 0x3a1   :  { %v7306_v46 = vpop.eup %7305  ;;  %7323 = vtanh.f32 %v1161_v42  ;;  %v1080_v23 = vadd.f32 %v1079_v13, %v8556_v38 }
 0x3a2   :  { %v7308_v32 = vpop.eup %7307  ;;  %v1397_v21 = vadd.f32 1.0, %v7306_v46  ;;  %7325 = vtanh.f32 %v1074_v3 }
 0x3a3   :  { %v7310_v6 = vpop.eup %7309  ;;  %v1399_v40 = vadd.f32 1.0, %v7308_v32  ;;  %7327 = vtanh.f32 %v1163_v2  ;;  %v1237_v27 = vpop.f32.mrb[12].mxu1 }
 0x3a4   :  { %v1326_v36 = vpop.f32.mrb[16].mxu0  ;;  %v7312_v24 = vpop.eup %7311  ;;  %7329 = vrcp.f32 %v1397_v21  ;;  %v1398_v54 = vadd.f32 1.0, %v7310_v6  ;;  %v1238_v17 = vadd.f32 %v1237_v27, %v8538_v37  ;;  %v1169_v21 = vadd.f32 %v1168_v31, %v8556_v38 }
 0x3a5   :  { %v1239_v33 = vpop.f32.mrb[13].mxu1  ;;  %v1328_v55 = vpop.f32.mrb[17].mxu0  ;;  %7331 = vrcp.f32 %v1399_v40  ;;  %v1400_v16 = vadd.f32 1.0, %v7312_v24  ;;  %v1327_v0 = vadd.f32 %v1326_v36, %v8538_v37 }
 0x3a6   :  { %v7314_v62 = vpop.eup %7313  ;;  %7333 = vrcp.f32 %v1398_v54  ;;  %v1240_v46 = vadd.f32 %v1239_v33, %v8538_v37  ;;  %v1329_v6 = vadd.f32 %v1328_v55, %v8538_v37  ;;  %v6241_v15 = vmul.f32 -1.442695, %v1238_v17 }
 0x3a7   :  { %v7316_v57 = vpop.eup %7315  ;;  %7335 = vrcp.f32 %v1400_v16  ;;  %v1405_v63 = vadd.f32 1.0, %v7314_v62  ;;  %v1243_v52 = vpop.f32.mrb[14].mxu1  ;;  %v6243_v13 = vmul.f32 -1.442695, %v1327_v0 }
 0x3a8   :  { %v7318_v49 = vpop.eup %7317  ;;  %v1407_v14 = vadd.f32 1.0, %v7316_v57  ;;  %7337 = vtanh.f32 %v1078_v61  ;;  %v1332_v60 = vpop.f32.mrb[18].mxu0  ;;  %v1244_v36 = vadd.f32 %v1243_v52, %v8544_v41  ;;  %v6242_v57 = vmul.f32 -1.442695, %v1240_v46 }
 0x3a9   :  { %v1245_v4 = vpop.f32.mrb[15].mxu1  ;;  %v7320_v5 = vpop.eup %7319  ;;  %7339 = vrcp.f32 %v1405_v63  ;;  %v1406_v19 = vadd.f32 1.0, %v7318_v49  ;;  %v1333_v33 = vadd.f32 %v1332_v60, %v8544_v41  ;;  %v6244_v55 = vmul.f32 -1.442695, %v1329_v6 }
 0x3aa   :  { %v1334_v42 = vpop.f32.mrb[19].mxu0  ;;  %v7322_v3 = vpop.eup %7321  ;;  %7341 = vrcp.f32 %v1407_v14  ;;  %v1408_v2 = vadd.f32 1.0, %v7320_v5  ;;  %v1246_v31 = vadd.f32 %v1245_v4, %v8544_v41  ;;  %v6249_v5 = vmul.f32 -1.442695, %v1244_v36 }
 0x3ab   :  { %v7324_v32 = vpop.eup %7323  ;;  %7343 = vrcp.f32 %v1406_v19  ;;  %v1249_v40 = vpop.f32.mrb[16].mxu1  ;;  %v1335_v63 = vadd.f32 %v1334_v42, %v8544_v41  ;;  %v6251_v4 = vmul.f32 -1.442695, %v1333_v33 }
 0x3ac   :  { %v1338_v27 = vpop.f32.mrb[20].mxu0  ;;  %v7326_v24 = vpop.eup %7325  ;;  %7345 = vrcp.f32 %v1408_v2  ;;  %v6250_v46 = vmul.f32 -1.442695, %v1246_v31  ;;  %v1250_v6 = vadd.f32 %v1249_v40, %v8550_v20 }
 0x3ad   :  { %v1251_v54 = vpop.f32.mrb[17].mxu1  ;;  %v1340_v61 = vpop.f32.mrb[21].mxu0  ;;  %7347 = vtanh.f32 %v1167_v51 }
 0x3ae   :  { %v7328_v16 = vpop.eup %7327  ;;  %7349 = vtanh.f32 %v1080_v23 }
 0x3af   :  { %v7330_v62 = vpop.eup %7329  ;;  %7351 = vtanh.f32 %v1169_v21  ;;  %v1255_v49 = vpop.f32.mrb[18].mxu1  ;;  %v6252_v21 = vmul.f32 -1.442695, %v1335_v63 }
 0x3b0   :  { %v7332_v37 = vpop.eup %7331  ;;  %v8570_v14 = vpop.f32.mrb[22].mxu0  ;;  %v1461_v52 = vmul.f32 %v7330_v62, %v7322_v3  ;;  %7353 = vpow2.f32 %v6241_v15  ;;  %v1256_v31 = vadd.f32 %v1255_v49, %v8556_v38 }
 0x3b1   :  { %v7334_v17 = vpop.eup %7333  ;;  %v8572_v19 = vpop.f32.mrb[19].mxu1  ;;  %v1463_v51 = vmul.f32 %v7332_v37, %v7324_v32  ;;  %7355 = vpow2.f32 %v6243_v13  ;;  %v1339_v32 = vadd.f32 %v1338_v27, %v8550_v20 }
 0x3b2   :  { %v8574_v60 = vpop.f32.mrb[23].mxu0  ;;  %v7336_v0 = vpop.eup %7335  ;;  %v1462_v2 = vmul.f32 %v7334_v17, %v7326_v24  ;;  %7357 = vpow2.f32 %v6242_v57  ;;  %v1252_v24 = vadd.f32 %v1251_v54, %v8550_v20 }
 0x3b3   :  { %v7338_v23 = vpop.eup %7337  ;;  %v1464_v41 = vmul.f32 %v7336_v0, %v7328_v16  ;;  %7359 = vpow2.f32 %v6244_v55  ;;  %v1341_v16 = vadd.f32 %v1340_v61, %v8550_v20 }
 0x3b4   :  { %v7340_v42 = vpop.eup %7339  ;;  %7361 = vpow2.f32 %v6249_v5 }
 0x3b5   :  { %v7342_v3 = vpop.eup %7341  ;;  %v1469_v15 = vmul.f32 %v7340_v42, %v7338_v23  ;;  %7363 = vpow2.f32 %v6251_v4 }
 0x3b6   :  { %v7344_v36 = vpop.eup %7343  ;;  %7365 = vpow2.f32 %v6250_v46 }
 0x3b7   :  { %v7346_v62 = vpop.eup %7345  ;;  %v6569_v13 = vpack.c.bf16 %v1469_v15, %v1461_v52  ;;  %7367 = vpow2.f32 %v6252_v21  ;;  %v1345_v15 = vadd.f32 %v8570_v14, %v8556_v38  ;;  %v1347_v14 = vadd.f32 %v8574_v60, %v8556_v38 }
 0x3b8   :  { %v7348_v33 = vpop.eup %7347  ;;  %7369 = vtanh.f32 %v1250_v6 }
 0x3b9   :  { %v7350_v57 = vpop.eup %7349  ;;  %v1471_v37 = vmul.f32 %v7348_v33, %v7342_v3  ;;  %7371 = vtanh.f32 %v1339_v32 }
 0x3ba   :  { %v7352_v40 = vpop.eup %7351  ;;  %v1470_v55 = vmul.f32 %v7350_v57, %v7344_v36  ;;  %7373 = vtanh.f32 %v1252_v24  ;;  %v1478_v24 = vld [vmem:[%s10287_s11 + $0x8] sm:$0xff]  ;;  %v1479_v57 = vld [vmem:[%s10287_s11 + $0x10] sm:$0xff] }
 0x3bb   :  { %v7354_v63 = vpop.eup %7353  ;;  %v1472_v27 = vmul.f32 %v7352_v40, %v7346_v62  ;;  %v6573_v17 = vpack.c.bf16 %v1471_v37, %v1463_v51  ;;  %7375 = vtanh.f32 %v1341_v16  ;;  %v8584_v51 = vld [vmem:[%s10287_s11] sm:$0xff]  ;;  %v1258_v62 = vadd.f32 %v8572_v19, %v8556_v38 }
 0x3bc   :  { %v7356_v5 = vpop.eup %7355  ;;  %v1401_v0 = vadd.f32 1.0, %v7354_v63  ;;  %v6567_v54 = vpack.c.bf16 %v1470_v55, %v1462_v2  ;;  %7377 = vtanh.f32 %v1256_v31  ;;  %v1480_v63 = vld [vmem:[%s10287_s11 + $0x18] sm:$0xff] }
 0x3bd   :  { %v7358_v52 = vpop.eup %7357  ;;  %v1403_v4 = vadd.f32 1.0, %v7356_v5  ;;  %v6571_v20 = vpack.c.bf16 %v1472_v27, %v1464_v41 }
 0x3be   :  { %v7360_v61 = vpop.eup %7359  ;;  %7379 = vrcp.f32 %v1401_v0  ;;  %v1402_v23 = vadd.f32 1.0, %v7358_v52  ;;  %6568 = vmatprep.subr.bf16.mxu1 %v6567_v54 }
 0x3bf   :  { %v7362_v49 = vpop.eup %7361  ;;  %7381 = vrcp.f32 %v1403_v4  ;;  %v1404_v46 = vadd.f32 1.0, %v7360_v61  ;;  %6572 = vmatprep.subr.bf16.mxu0 %v6571_v20  ;;  %6570 = vmatpush1.bf16.msra.mxu1 %v6569_v13 }
 0x3c0   :  { %v7364_v2 = vpop.eup %7363  ;;  %7383 = vrcp.f32 %v1402_v23  ;;  %v1409_v42 = vadd.f32 1.0, %v7362_v49  ;;  %6574 = vmatpush1.bf16.msra.mxu0 %v6573_v17 }
 0x3c1   :  { %v7366_v41 = vpop.eup %7365  ;;  %7385 = vrcp.f32 %v1404_v46  ;;  %v1411_v21 = vadd.f32 1.0, %v7364_v2 }
 0x3c2   :  { %v7368_v3 = vpop.eup %7367  ;;  %7387 = vrcp.f32 %v1409_v42  ;;  %v1410_v6 = vadd.f32 1.0, %v7366_v41  ;;  %6253 = vmatmul.mubr.msk.f32.vlgmr.msra.gmra.mrb[20].mxu1 %vm1505_vm11, %v8584_v51 }
 0x3c3   :  { %v7370_v36 = vpop.eup %7369  ;;  %7389 = vrcp.f32 %v1411_v21  ;;  %v1412_v32 = vadd.f32 1.0, %v7368_v3  ;;  %6257 = vmatmul.mubr.msk.f32.vlgmr.msra.gmra.mrb[24].mxu0 %vm1505_vm11, %v8584_v51  ;;  %1588 = vmatprep.mubr.f32.mxu1 %v10396_v25 }
 0x3c4   :  { %v7372_v13 = vpop.eup %7371  ;;  %7391 = vrcp.f32 %v1410_v6  ;;  %1677 = vmatprep.mubr.f32.mxu0 %v10396_v25 }
 0x3c5   :  { %v7374_v33 = vpop.eup %7373  ;;  %7393 = vrcp.f32 %v1412_v32 }
 0x3c6   :  { %v7376_v16 = vpop.eup %7375  ;;  %7395 = vtanh.f32 %v1345_v15  ;;  %6254 = vmatmul.mubr.msk.f32.gmra.mrb[22].mxu1 %vm1505_vm11, %v1478_v24 }
 0x3c7   :  { %v7378_v19 = vpop.eup %7377  ;;  %7397 = vtanh.f32 %v1258_v62  ;;  %6258 = vmatmul.mubr.msk.f32.gmra.mrb[26].mxu0 %vm1505_vm11, %v1478_v24  ;;  %1594 = vmatprep.mubr.f32.mxu1 %v10396_v25 }
 0x3c8   :  { %v7380_v31 = vpop.eup %7379  ;;  %7399 = vtanh.f32 %v1347_v14  ;;  %1683 = vmatprep.mubr.f32.mxu0 %v10396_v25  ;;  %v10400_v14 = vmax.f32 %v8021_v22, 0.0 }
 0x3c9   :  { %v7382_v38 = vpop.eup %7381  ;;  %v1465_v60 = vmul.f32 %v7380_v31, %v7370_v36 }
 0x3ca   :  { %v7384_v37 = vpop.eup %7383  ;;  %6255 = vmatmul.mubr.msk.f32.gmra.mrb[24].mxu1 %vm1505_vm11, %v1479_v57  ;;  %v1467_v40 = vmul.f32 %v7382_v38, %v7372_v13  ;;  %v10402_v38 = vmax.f32 %v8017_v18, 0.0 }
 0x3cb   :  { %v7386_v55 = vpop.eup %7385  ;;  %6259 = vmatmul.mubr.msk.f32.gmra.mrb[28].mxu0 %vm1505_vm11, %v1479_v57  ;;  %1600 = vmatprep.mubr.f32.mxu1 %v10396_v25  ;;  %v1466_v27 = vmul.f32 %v7384_v37, %v7374_v33 }
 0x3cc   :  { %v7388_v17 = vpop.eup %7387  ;;  %1689 = vmatprep.mubr.f32.mxu0 %v10396_v25  ;;  %v1468_v5 = vmul.f32 %v7386_v55, %v7376_v16 }
 0x3cd   :  { %v7390_v0 = vpop.eup %7389  ;;  %v1473_v54 = vmul.f32 %v7388_v17, %v7378_v19  ;;  %v8645_v19 = vpop.permute.xlu0 %1492 }
 0x3ce   :  { %v7392_v52 = vpop.eup %7391  ;;  %6256 = vmatmul.mubr.msk.f32.gmra.mrb[26].mxu1 %vm1505_vm11, %v1480_v63 }
 0x3cf   :  { %v7394_v4 = vpop.eup %7393  ;;  %6260 = vmatmul.mubr.msk.f32.gmra.mrb[30].mxu0 %vm1505_vm11, %v1480_v63  ;;  %v6577_v20 = vpack.c.bf16 %v1473_v54, %v1465_v60  ;;  %1760 = vmatprep.mubr.f32.mxu1 %v10396_v25 }
 0x3d0   :  { %v7396_v61 = vpop.eup %7395  ;;  %1849 = vmatprep.mubr.f32.mxu0 %v10396_v25 }
 0x3d1   :  { %v7398_v23 = vpop.eup %7397  ;;  %v1475_v49 = vmul.f32 %v7396_v61, %v7390_v0 }
 0x3d2   :  { %v7400_v46 = vpop.eup %7399  ;;  %v1474_v2 = vmul.f32 %v7398_v23, %v7392_v52  ;;  %v10406_v23 = vmax.f32 %v8029_v34, 0.0 }
 0x3d3   :  { %v1476_v42 = vmul.f32 %v7400_v46, %v7394_v4  ;;  %v6581_v41 = vpack.c.bf16 %v1475_v49, %v1467_v40  ;;  %v10403_v40 = vmax.f32 %v8008_v9, 0.0 }
 0x3d4   :  { %v6575_v21 = vpack.c.bf16 %v1474_v2, %v1466_v27 }
 0x3d5   :  { %v6579_v3 = vpack.c.bf16 %v1476_v42, %v1468_v5  ;;  %v10407_v42 = vmax.f32 %v8023_v28, 0.0 }
 0x3d6   :  { %6576 = vmatprep.subr.bf16.mxu1 %v6575_v21  ;;  %v1934_v21 = vpop.permute.xlu0 %1933 }
 0x3d7   :  { %6580 = vmatprep.subr.bf16.mxu0 %v6579_v3  ;;  %6578 = vmatpush1.bf16.msra.mxu1 %v6577_v20  ;;  %v10405_v20 = vmax.f32 %v8025_v29, 0.0 }
 0x3d8   :  { %6582 = vmatpush1.bf16.msra.mxu0 %v6581_v41 }
 0x3da   :  { %6261 = vmatmul.mubr.msk.f32.vlgmr.msra.gmra.mrb[28].mxu1 %vm1505_vm11, %v8584_v51 }
 0x3db   :  { %6265 = vmatmul.mubr.msk.f32.vlgmr.msra.gmra.mrb[32].mxu0 %vm1505_vm11, %v8584_v51  ;;  %1766 = vmatprep.mubr.f32.mxu1 %v10396_v25  ;;  %v8637_v51 = vpop.permute.xlu1 %1487 }
 0x3dc   :  { %1855 = vmatprep.mubr.f32.mxu0 %v10396_v25 }
 0x3de   :  { %6262 = vmatmul.mubr.msk.f32.gmra.mrb[30].mxu1 %vm1505_vm11, %v1478_v24 }
 0x3df   :  { %6266 = vmatmul.mubr.msk.f32.gmra.mrb[34].mxu0 %vm1505_vm11, %v1478_v24  ;;  %1772 = vmatprep.mubr.f32.mxu1 %v10396_v25  ;;  %v1929_v41 = vpop.permute.xlu1 %1928 }
 0x3e0   :  { %1861 = vmatprep.mubr.f32.mxu0 %v10396_v25 }
 0x3e2   :  { %6263 = vmatmul.mubr.msk.f32.gmra.mrb[32].mxu1 %vm1505_vm11, %v1479_v57 }
 0x3e3   :  { %6267 = vmatmul.mubr.msk.f32.gmra.mrb[36].mxu0 %vm1505_vm11, %v1479_v57  ;;  %1778 = vmatprep.mubr.f32.mxu1 %v10396_v25  ;;  %v10401_v57 = vmax.f32 %v8012_v12, 0.0  ;;  %v10404_v12 = vmax.f32 %v8031_v35, 0.0 }
 0x3e4   :  { %1867 = vmatprep.mubr.f32.mxu0 %v10396_v25 }
 0x3e6   :  { %6264 = vmatmul.mubr.msk.f32.gmra.mrb[34].mxu1 %vm1505_vm11, %v1480_v63 }
 0x3e7   :  { %6268 = vmatmul.mubr.msk.f32.gmra.mrb[38].mxu0 %vm1505_vm11, %v1480_v63  ;;  %2318 = vmatprep.mubr.f32.mxu1 %v10396_v25 }
 0x3e8   :  { %2407 = vmatprep.mubr.f32.mxu0 %v10396_v25 }
 0x495   :  { %v1584_v6 = vpop.f32.mrb[20].mxu1 }
 0x496   :  { %v1585_v15 = vadd.f32 %v1584_v6, %v8637_v51  ;;  %v1673_v36 = vpop.f32.mrb[24].mxu0  ;;  %v1586_v32 = vpop.f32.mrb[21].mxu1 }
 0x497   :  { %v1674_v62 = vadd.f32 %v1673_v36, %v8637_v51  ;;  %v1587_v24 = vadd.f32 %v1586_v32, %v8637_v51  ;;  %v1675_v13 = vpop.f32.mrb[25].mxu0 }
 0x498   :  { %v1874_v33 = vadd.f32 %v1585_v15, %v10400_v14  ;;  %v1676_v16 = vadd.f32 %v1675_v13, %v8637_v51 }
 0x499   :  { %v1876_v31 = vadd.f32 %v1674_v62, %v10401_v57  ;;  %v1875_v60 = vadd.f32 %v1587_v24, %v10402_v38  ;;  %v1590_v37 = vpop.f32.mrb[22].mxu1 }
 0x49a   :  { %v1877_v55 = vadd.f32 %v1676_v16, %v10403_v40  ;;  %v1591_v63 = vadd.f32 %v1590_v37, %v8645_v19  ;;  %v1679_v27 = vpop.f32.mrb[26].mxu0  ;;  %v1592_v17 = vpop.f32.mrb[23].mxu1  ;;  %v8656_v54 = vmul.f32 0.70710677, %v1874_v33 }
 0x49b   :  { %v1680_v22 = vadd.f32 %v1679_v27, %v8645_v19  ;;  %v1593_v5 = vadd.f32 %v1592_v17, %v8645_v19  ;;  %v1681_v0 = vpop.f32.mrb[27].mxu0  ;;  %v8661_v4 = vmul.f32 0.70710677, %v1876_v31  ;;  %v8663_v9 = vmul.f32 0.70710677, %v1875_v60 }
 0x49c   :  { %v1882_v52 = vadd.f32 %v1591_v63, %v10404_v12  ;;  %v1682_v18 = vadd.f32 %v1681_v0, %v8645_v19  ;;  %v8669_v46 = vmul.f32 0.70710677, %v1877_v55  ;;  %v8680_v15 = vadd.f32 %v1929_v41, %v8656_v54 }
 0x49d   :  { %v1884_v61 = vadd.f32 %v1680_v22, %v10405_v20  ;;  %v1883_v49 = vadd.f32 %v1593_v5, %v10406_v23  ;;  %v8688_v36 = vadd.f32 %v1929_v41, %v8661_v4  ;;  %v8691_v28 = vadd.f32 %v1929_v41, %v8663_v9 }
 0x49e   :  { %v8671_v2 = vmul.f32 0.70710677, %v1882_v52  ;;  %v1885_v35 = vadd.f32 %v1682_v18, %v10407_v42  ;;  %v8700_v24 = vadd.f32 %v1929_v41, %v8669_v46  ;;  %v10408_v0 = vmax.f32 %v8047_v44, 0.0 }
 0x49f   :  { %v8675_v3 = vmul.f32 0.70710677, %v1884_v61  ;;  %v8677_v6 = vmul.f32 0.70710677, %v1883_v49  ;;  %v10409_v18 = vmax.f32 %v8100_v8, 0.0  ;;  %v10410_v23 = vmax.f32 %v8038_v39, 0.0 }
 0x4a0   :  { %v8683_v29 = vadd.f32 %v1934_v21, %v8671_v2  ;;  %v8685_v34 = vmul.f32 0.70710677, %v1885_v35 }
 0x4a1   :  { %v8694_v32 = vadd.f32 %v1934_v21, %v8675_v3  ;;  %v8697_v62 = vadd.f32 %v1934_v21, %v8677_v6 }
 0x4a2   :  { %v8703_v13 = vadd.f32 %v1934_v21, %v8685_v34  ;;  %v7029_v14 = vpack.i.bf16 %v8683_v29, %v8680_v15  ;;  %v10411_v21 = vmax.f32 %v8084_v59, 0.0 }
 0x4a3   :  { %v7039_v16 = vpack.i.bf16 %v8697_v62, %v8691_v28  ;;  %v6602_v31 = vpack.c.bf16 %v8694_v32, %v8688_v36  ;;  %v7034_v60 = vpack.i.bf16 %v8694_v32, %v8688_v36 }
 0x4a4   :  { %7030 = vrot.lane.b32.xlu1 %v7029_v14, %s7713_s16  ;;  %v6600_v57 = vpack.c.bf16 %v8703_v13, %v8700_v24  ;;  %v7044_v37 = vpack.i.bf16 %v8703_v13, %v8700_v24 }
 0x4a5   :  { %7040 = vrot.lane.b32.xlu0 %v7039_v16, %s7713_s16 }
 0x4a8   :  { %7035 = vrot.lane.b32.xlu1 %v7034_v60, %s7713_s16 }
 0x4a9   :  { %7045 = vrot.lane.b32.xlu0 %v7044_v37, %s7713_s16 }
 0x4ad   :  { %v1762_v40 = vpop.f32.mrb[28].mxu1  ;;  %7050 = vrot.lane.b32.xlu0 %v7039_v16, %s7722_s0 }
 0x4ae   :  { %v1763_v55 = vadd.f32 %v1762_v40, %v8637_v51  ;;  %v1851_v63 = vpop.f32.mrb[32].mxu0  ;;  %v1764_v27 = vpop.f32.mrb[29].mxu1 }
 0x4af   :  { %v1852_v17 = vadd.f32 %v1851_v63, %v8637_v51  ;;  %v1765_v22 = vadd.f32 %v1764_v27, %v8637_v51  ;;  %v1853_v5 = vpop.f32.mrb[33].mxu0  ;;  %v10413_v27 = vmax.f32 %v8091_v1, 0.0 }
 0x4b0   :  { %v1878_v12 = vadd.f32 %v1763_v55, %v10408_v0  ;;  %v1854_v52 = vadd.f32 %v1853_v5, %v8637_v51  ;;  %v10412_v55 = vmax.f32 %v8064_v50, 0.0  ;;  %v10414_v5 = vld [vmem:[#allocation11_spill] sm:$0xff] }
 0x4b1   :  { %v1879_v20 = vadd.f32 %v1765_v22, %v10409_v18  ;;  %v1768_v61 = vpop.f32.mrb[30].mxu1  ;;  %7065 = vrot.lane.b32.xlu0 %v7044_v37, %s7722_s0  ;;  %v1880_v16 = vadd.f32 %v1852_v17, %v10411_v21  ;;  %v10415_v59 = vmax.f32 %v10414_v5, 0.0 }
 0x4b2   :  { %v1881_v49 = vadd.f32 %v1854_v52, %v10410_v23  ;;  %v1769_v42 = vadd.f32 %v1768_v61, %v8645_v19  ;;  %v1857_v35 = vpop.f32.mrb[34].mxu0  ;;  %v1770_v41 = vpop.f32.mrb[31].mxu1  ;;  %v8742_v8 = vmul.f32 0.70710677, %v1878_v12  ;;  %v10416_v12 = vld [vmem:[#allocation10_spill] sm:$0xff] }
 0x4b3   :  { %v1858_v44 = vadd.f32 %v1857_v35, %v8645_v19  ;;  %v1771_v51 = vadd.f32 %v1770_v41, %v8645_v19  ;;  %v1859_v40 = vpop.f32.mrb[35].mxu0  ;;  %v8747_v63 = vmul.f32 0.70710677, %v1879_v20  ;;  %v10417_v18 = vmax.f32 %v10416_v12, 0.0  ;;  %v1939_v61 = vpop.permute.xlu1 %1938  ;;  %v6316_v12 = vld [vmem:[%s10288_s12 + $0x28] sm:$0xff] }
 0x4b4   :  { %v1886_v37 = vadd.f32 %v1769_v42, %v10412_v55  ;;  %v1860_v39 = vadd.f32 %v1859_v40, %v8645_v19  ;;  %v8754_v0 = vmul.f32 0.70710677, %v1881_v49  ;;  %v1944_v23 = vpop.permute.xlu0 %1943  ;;  %v8760_v19 = vmul.f32 0.70710677, %v1880_v16 }
 0x4b5   :  { %v1888_v22 = vadd.f32 %v1858_v44, %v10413_v27  ;;  %v1887_v17 = vadd.f32 %v1771_v51, %v10415_v59  ;;  %7075 = vrot.lane.b32.xlu0 %v7029_v14, %s7722_s0  ;;  %v8767_v42 = vadd.f32 %v1939_v61, %v8742_v8  ;;  %v8775_v35 = vadd.f32 %v1939_v61, %v8747_v63  ;;  %v6276_v59 = vld [vmem:[%s10286_s10 + $0x28] sm:$0xff] }
 0x4b6   :  { %v8756_v52 = vmul.f32 0.70710677, %v1886_v37  ;;  %v1889_v50 = vadd.f32 %v1860_v39, %v10417_v18  ;;  %v8784_v16 = vadd.f32 %v1939_v61, %v8754_v0  ;;  %v8792_v40 = vadd.f32 %v1939_v61, %v8760_v19  ;;  %v3185_v18 = vld [vmem:[%s10279_s2 + $0x28] sm:$0xff] }
 0x4b7   :  { %v8762_v20 = vmul.f32 0.70710677, %v1888_v22  ;;  %v8764_v1 = vmul.f32 0.70710677, %v1887_v17  ;;  %v6278_v17 = vld [vmem:[%s10286_s10 + $0x38] sm:$0xff]  ;;  %v6336_v61 = vld [vmem:[%s10279_s2 + $0xa8] sm:$0xff] }
 0x4b8   :  { %v8770_v14 = vadd.f32 %v1944_v23, %v8756_v52  ;;  %v8772_v49 = vmul.f32 0.70710677, %v1889_v50  ;;  %v6275_v50 = vld [vmem:[%s10286_s10 + $0x20] sm:$0xff] }
 0x4b9   :  { %v8778_v41 = vadd.f32 %v1944_v23, %v8762_v20  ;;  %v8781_v21 = vadd.f32 %v1944_v23, %v8764_v1 }
 0x4ba   :  { %v8787_v44 = vadd.f32 %v1944_v23, %v8772_v49  ;;  %v7069_v5 = vpack.i.bf16 %v8770_v14, %v8767_v42  ;;  %v6277_v23 = vld [vmem:[%s10286_s10 + $0x30] sm:$0xff] }
 0x4bb   :  { %v7094_v55 = vpack.i.bf16 %v8781_v21, %v8775_v35 }
 0x4bc   :  { %v7054_v37 = vpack.i.bf16 %v8787_v44, %v8784_v16 }
 0x4bd   :  { %7095 = vrot.lane.b32.xlu0 %v7094_v55, %s7713_s16 }
 0x4be   :  { %7055 = vrot.lane.b32.xlu1 %v7054_v37, %s7713_s16 }
 0x4c1   :  { %7100 = vrot.lane.b32.xlu0 %v7094_v55, %s7722_s0  ;;  %v6315_v55 = vld [vmem:[%s10288_s12 + $0x20] sm:$0xff] }
 0x4c2   :  { %7060 = vrot.lane.b32.xlu1 %v7034_v60, %s7722_s0  ;;  %v7084_v60 = vpack.i.bf16 %v8778_v41, %v8792_v40 }
 0x4c5   :  { %7105 = vrot.lane.b32.xlu0 %v7054_v37, %s7722_s0  ;;  %v3184_v37 = vld [vmem:[%s10279_s2 + $0x20] sm:$0xff] }
 0x4c6   :  { %7070 = vrot.lane.b32.xlu1 %v7069_v5, %s7722_s0 }
 0x4c9   :  { %2229 = vperm.xlu0 %6948, %v6276_v59  }
 0x4ca   :  { %7080 = vrot.lane.b32.xlu1 %v7069_v5, %s7713_s16  ;;  %v6335_v5 = vld [vmem:[%s10279_s2 + $0xa0] sm:$0xff] }
 0x4cd   :  { %2239 = vperm.xlu0 %6948, %v6278_v17  }
 0x4ce   :  { %7085 = vrot.lane.b32.xlu1 %v7084_v60, %s7713_s16 }
 0x4d1   :  { %2755 = vperm.xlu0 %6948, %v6316_v12  }
 0x4d2   :  { %7090 = vrot.lane.b32.xlu1 %v7084_v60, %s7722_s0 }
 0x4d5   :  { %3195 = vperm.xlu0 %6948, %v3185_v18  }
 0x4d6   :  { %2224 = vperm.xlu1 %6937, %v6275_v50  }
 0x4d9   :  { %3205 = vperm.xlu0 %6948, %v6336_v61  }
 0x4da   :  { %2234 = vperm.xlu1 %6937, %v6277_v23  }
 0x4de   :  { %2750 = vperm.xlu1 %6937, %v6315_v55  }
 0x4e2   :  { %3190 = vperm.xlu1 %6937, %v3184_v37  }
 0x4e6   :  { %3200 = vperm.xlu1 %6937, %v6335_v5  }
 0x516   :  { %v7031_v59 = vpop.permute.xlu1 %7030 }
 0x517   :  { %v7033_v17 = vunpack.i.h.bf16 %v7031_v59  ;;  %v7032_v60 = vunpack.i.l.bf16 %v7031_v59  ;;  %v7041_v12 = vpop.permute.xlu0 %7040 }
 0x518   :  { %v7043_v18 = vunpack.i.h.bf16 %v7041_v12  ;;  %v7042_v50 = vunpack.i.l.bf16 %v7041_v12 }
 0x51a   :  { %v7036_v61 = vpop.permute.xlu1 %7035  ;;  %v2023_v23 = vsel %vm10345_vm15, %v7032_v60, %v7042_v50  ;;  %v2024_v55 = vsel %vm10345_vm15, %v7033_v17, %v7043_v18 }
 0x51b   :  { %v7038_v37 = vunpack.i.h.bf16 %v7036_v61  ;;  %v7037_v22 = vunpack.i.l.bf16 %v7036_v61  ;;  %v8852_v27 = vpop.permute.xlu0 %7045  ;;  %v6583_v5 = vpack.c.bf16 %v2024_v55, %v2023_v23 }
 0x51c   :  { %v10337_v51 = vunpack.i.h.bf16 %v8852_v27  ;;  %v10335_v39 = vunpack.i.l.bf16 %v8852_v27 }
 0x51d   :  { %v2022_v59 = vsel %vm10345_vm15, %v7043_v18, %v7038_v37  ;;  %v2021_v12 = vsel %vm10345_vm15, %v7042_v50, %v7037_v22  ;;  %6584 = vmatprep.subr.bf16.mxu1 %v6583_v5 }
 0x51e   :  { %v2019_v33 = vsel %vm10345_vm15, %v7037_v22, %v10335_v39  ;;  %v2020_v61 = vsel %vm10345_vm15, %v7038_v37, %v10337_v51  ;;  %v6598_v55 = vpack.c.bf16 %v2022_v59, %v2021_v12  ;;  %v10418_v37 = vand.u32 511, %v8213_v11 }
 0x51f   :  { %v6596_v23 = vpack.c.bf16 %v2020_v61, %v2019_v33  ;;  %v7051_v38 = vpop.permute.xlu0 %7050  ;;  %v10424_v51 = vmov 0 }
 0x520   :  { %vm8880_vm8 = vcmp.ge.s32.totalorder %v10418_v37, 2  ;;  %v7053_v13 = vunpack.i.h.bf16 %v7051_v38 }
 0x521   :  { %6597 = vmatprep.subr.bf16.mxu0 %v6596_v23  ;;  %vm10338_vm9 = vmpackc.low %vm8880_vm8, %vm8880_vm8 }
 0x522   :  { %6599 = vmatpush1.bf16.msra.mxu0 %v6598_v55 }
 0x523   :  { %6601 = vmatprep.subr.bf16.mxu0 %v6600_v57  ;;  %v7066_v18 = vpop.permute.xlu0 %7065  ;;  %v7052_v57 = vunpack.i.l.bf16 %v7051_v38  ;;  %v10421_v38 = vpack.c.bf16 %v8697_v62, %v8691_v28 }
 0x526   :  { %6603 = vmatpush1.bf16.msra.mxu0 %v6602_v31 }
 0x527   :  { %v8874_v22 = vpop.permute.xlu0 %7075 }
 0x528   :  { %v10339_v12 = vunpack.i.h.bf16 %v8874_v22  ;;  %v10340_v61 = vunpack.i.l.bf16 %v8874_v22 }
 0x52a   :  { %v2120_v28 = vsel %vm2107_vm10, %v10340_v61, %v7052_v57  ;;  %v2121_v62 = vsel %vm2107_vm10, %v10339_v12, %v7053_v13 }
 0x52f   :  { %v7096_v23 = vpop.permute.xlu0 %7095 }
 0x530   :  { %v8876_v50 = vpop.permute.xlu1 %7055  ;;  %v7098_v61 = vunpack.i.h.bf16 %v7096_v23 }
 0x531   :  { %v10333_v5 = vunpack.i.h.bf16 %v8876_v50  ;;  %v10334_v24 = vunpack.i.l.bf16 %v8876_v50 }
 0x533   :  { %v2026_v36 = vsel %vm10345_vm15, %v10333_v5, %v7033_v17  ;;  %v2025_v32 = vsel %vm10345_vm15, %v10334_v24, %v7032_v60  ;;  %v10422_v24 = vld [vmem:[#allocation12_spill] sm:$0xff] }
 0x534   :  { %v6585_v31 = vpack.c.bf16 %v2026_v36, %v2025_v32  ;;  %v7061_v59 = vpop.permute.xlu1 %7060  ;;  %v7068_v36 = vunpack.i.h.bf16 %v7066_v18  ;;  %v7067_v32 = vunpack.i.l.bf16 %v7066_v18  ;;  %v10423_v39 = vand.u32 511, %v10422_v24 }
 0x535   :  { %v7063_v55 = vunpack.i.h.bf16 %v7061_v59  ;;  %v7062_v17 = vunpack.i.l.bf16 %v7061_v59 }
 0x536   :  { %6587 = vmatpush1.bf16.msk.msra.mxu1 %vm10338_vm9, %v6585_v31  ;;  %vm8916_vm12 = vcmp.lt.s32.totalorder %v10423_v39, 510 }
 0x537   :  { %6589 = vmatprep.subr.bf16.mxu1 %v10421_v38  ;;  %v2118_v60 = vsel %vm2107_vm10, %v7052_v57, %v7062_v17  ;;  %v2119_v37 = vsel %vm2107_vm10, %v7053_v13, %v7063_v55  ;;  %v10425_v51 = vsel %vm8916_vm12, 4294967295, %v10424_v51  ;;  %v2117_v39 = vsel %vm2107_vm10, %v7063_v55, %v7068_v36  ;;  %v8937_v57 = vpop.permute.xlu0 %7100  ;;  %vm10342_vm9 = vmpackc.low %vm8916_vm12, %vm8916_vm12 }
 0x538   :  { %v8912_v59 = vpop.permute.xlu1 %7070  ;;  %v6592_v5 = vpack.c.bf16 %v2119_v37, %v2118_v60  ;;  %10426 = vst [vmem:[#allocation11_spill] sm:$0xff] %v10425_v51  ;;  %v2116_v24 = vsel %vm2107_vm10, %v7062_v17, %v7067_v32  ;;  %v10427_v38 = vpack.c.bf16 %v8683_v29, %v8680_v15  ;;  %v6594_v55 = vpack.c.bf16 %v2121_v62, %v2120_v28  ;;  %v10430_v62 = vld [vmem:[#allocation15_spill] sm:$0xff] }
 0x539   :  { %v7073_v18 = vunpack.i.h.bf16 %v8912_v59  ;;  %v10343_v31 = vunpack.i.l.bf16 %v8912_v59  ;;  %v7097_v17 = vunpack.i.l.bf16 %v7096_v23  ;;  %v6607_v37 = vpack.c.bf16 %v2117_v39, %v2116_v24 }
 0x53a   :  { %6591 = vmatpush1.bf16.msra.mxu1 %v10427_v38  ;;  %v10431_v39 = vand.u32 511, %v10430_v62  ;;  %v10432_v24 = vmov 0 }
 0x53b   :  { %v2115_v13 = vsel %vm2107_vm10, %v7068_v36, %v7073_v18  ;;  %v2114_v60 = vsel %vm2107_vm10, %v7067_v32, %v10343_v31  ;;  %6593 = vmatprep.subr.bf16.mxu1 %v6592_v5  ;;  %v10428_v5 = vunpack.i.h.bf16 %v8852_v27  ;;  %v10429_v32 = vunpack.i.l.bf16 %v8852_v27  ;;  %v8976_v27 = vld [vmem:[%s10285_s9 + $0x20] sm:$0xff] }
 0x53c   :  { %v6604_v15 = vpack.c.bf16 %v2115_v13, %v2114_v60  ;;  %v7081_v29 = vpop.permute.xlu1 %7080  ;;  %vm8968_vm14 = vcmp.ge.s32.totalorder %v10431_v39, 2 }
 0x53d   :  { %v7083_v38 = vunpack.i.h.bf16 %v7081_v29  ;;  %v7082_v12 = vunpack.i.l.bf16 %v7081_v29  ;;  %v10433_v24 = vsel %vm8968_vm14, 4294967295, %v10432_v24 }
 0x53e   :  { %6595 = vmatpush1.bf16.msra.mxu1 %v6594_v55  ;;  %6606 = vmatprep.subr.msk.bf16.mxu0 %vm10342_vm9, %v6604_v15  ;;  %10434 = vst [vmem:[#allocation10_spill] sm:$0xff] %v10433_v24  ;;  %v7106_v55 = vpop.permute.xlu0 %7105  ;;  %vm10344_vm9 = vmpackc.low %vm8968_vm14, %vm8968_vm14 }
 0x53f   :  { %v2018_v36 = vsel %vm10345_vm15, %v10428_v5, %v7083_v38  ;;  %v2017_v28 = vsel %vm10345_vm15, %v10429_v32, %v7082_v12  ;;  %2266 = vmatprep.subr.mxu1 %v8390_v30  ;;  %6608 = vmatpush1.bf16.msra.mxu0 %v6607_v37  ;;  %v2015_v23 = vsel %vm10345_vm15, %v7082_v12, %v7097_v17  ;;  %v7103_v5 = vunpack.i.h.bf16 %v8937_v57 }
 0x540   :  { %v7086_v13 = vpop.permute.xlu1 %7085  ;;  %2355 = vmatprep.subr.mxu0 %v8392_v48  ;;  %v2016_v60 = vsel %vm10345_vm15, %v7083_v38, %v7098_v61  ;;  %v6611_v37 = vpack.c.bf16 %v2018_v36, %v2017_v28  ;;  %v10435_v38 = vunpack.i.l.bf16 %v8876_v50  ;;  %v7102_v28 = vunpack.i.l.bf16 %v8937_v57 }
 0x541   :  { %v7088_v15 = vunpack.i.h.bf16 %v7086_v13  ;;  %v7087_v12 = vunpack.i.l.bf16 %v7086_v13  ;;  %v6609_v29 = vpack.c.bf16 %v2016_v60, %v2015_v23  ;;  %v7108_v23 = vunpack.i.h.bf16 %v7106_v55  ;;  %v6272_v60 = vld [vmem:[%s10285_s9 + $0x28] sm:$0xff] }
 0x542   :  { %2267 = vmatpush1.msra.mxu1 %v8402_v10  ;;  %v7107_v31 = vunpack.i.l.bf16 %v7106_v55 }
 0x543   :  { %v2014_v32 = vsel %vm10345_vm15, %v7098_v61, %v7088_v15  ;;  %v2013_v62 = vsel %vm10345_vm15, %v7097_v17, %v7087_v12  ;;  %6279 = vmatmul.mubr.msk.f32.vlgmr.msra.gmra.mrb[36].mxu1 %vm980_vm6, %v8976_v27  ;;  %2356 = vmatpush1.msra.mxu0 %v8405_v7  ;;  %v2011_v36 = vsel %vm10345_vm15, %v7087_v12, %v10435_v38  ;;  %v10436_v61 = vunpack.i.h.bf16 %v8876_v50 }
 0x544   :  { %v6624_v39 = vpack.c.bf16 %v2014_v32, %v2013_v62  ;;  %6610 = vmatprep.subr.bf16.mxu1 %v6609_v29  ;;  %v7091_v13 = vpop.permute.xlu1 %7090  ;;  %6283 = vmatmul.mubr.msk.f32.vlgmr.msra.gmra.mrb[40].mxu0 %vm980_vm6, %v8976_v27  ;;  %v10437_v50 = vpack.c.bf16 %v8781_v21, %v8775_v35  ;;  %v10438_v29 = vunpack.i.l.bf16 %v8912_v59  ;;  %v6273_v21 = vld [vmem:[%s10285_s9 + $0x30] sm:$0xff]  ;;  %v10439_v32 = vand.u32 511, %v8359_v45 }
 0x545   :  { %v2012_v17 = vsel %vm10345_vm15, %v7088_v15, %v10436_v61  ;;  %v7093_v12 = vunpack.i.h.bf16 %v7091_v13  ;;  %v7092_v38 = vunpack.i.l.bf16 %v7091_v13  ;;  %6613 = vmatpush1.bf16.msk.msra.mxu1 %vm10344_vm9, %v6611_v37  ;;  %2324 = vmatprep.mubr.f32.mxu1 %v10396_v25  ;;  %v2113_v15 = vsel %vm2107_vm10, %v7073_v18, %v7103_v5 }
 0x546   :  { %v6622_v57 = vpack.c.bf16 %v2012_v17, %v2011_v36  ;;  %6615 = vmatprep.subr.bf16.mxu1 %v10437_v50  ;;  %2413 = vmatprep.mubr.f32.mxu0 %v10396_v25  ;;  %v2112_v37 = vsel %vm2107_vm10, %v10438_v29, %v7102_v28  ;;  %vm9035_vm9 = vcmp.lt.s32.totalorder %v10439_v32, 510  ;;  %v10440_v62 = vmov 0 }
 0x547   :  { %6280 = vmatmul.mubr.msk.f32.gmra.mrb[38].mxu1 %vm980_vm6, %v6272_v60  ;;  %v2110_v55 = vsel %vm2107_vm10, %v7102_v28, %v7092_v38  ;;  %v2111_v35 = vsel %vm2107_vm10, %v7103_v5, %v7093_v12  ;;  %v10441_v62 = vsel %vm9035_vm9, 4294967295, %v10440_v62  ;;  %v10443_v59 = vunpack.i.l.bf16 %v8874_v22  ;;  %vm6631_vm15 = vmpackc.low %vm9035_vm9, %vm9035_vm9 }
 0x548   :  { %6623 = vmatprep.subr.bf16.mxu0 %v6622_v57  ;;  %2330 = vmatprep.mubr.f32.mxu1 %v10396_v25  ;;  %10442 = vst [vmem:[#allocation12_spill] sm:$0xff] %v10441_v62  ;;  %v10444_v36 = vunpack.i.h.bf16 %v8874_v22  ;;  %v10445_v28 = vpack.c.bf16 %v8770_v14, %v8767_v42  ;;  %v6618_v45 = vpack.c.bf16 %v2111_v35, %v2110_v55  ;;  %v9109_v50 = vpop.permute.xlu0 %2229 }
 0x549   :  { %6625 = vmatpush1.bf16.msra.mxu0 %v6624_v39  ;;  %v2122_v18 = vsel %vm2107_vm10, %v7107_v31, %v10443_v59  ;;  %v10446_v39 = vpack.c.bf16 %v8787_v44, %v8784_v16  ;;  %v6620_v13 = vpack.c.bf16 %v2113_v15, %v2112_v37  ;;  %v2109_v22 = vsel %vm2107_vm10, %v7093_v12, %v7108_v23  ;;  %v6274_v16 = vld [vmem:[%s10285_s9 + $0x38] sm:$0xff] }
 0x54a   :  { %v2123_v5 = vsel %vm2107_vm10, %v7108_v23, %v10444_v36  ;;  %6284 = vmatmul.mubr.msk.f32.gmra.mrb[42].mxu0 %vm980_vm6, %v6272_v60  ;;  %6617 = vmatpush1.bf16.msra.mxu1 %v10445_v28  ;;  %v2108_v61 = vsel %vm2107_vm10, %v7092_v38, %v7107_v31  ;;  %v10447_v14 = vpack.c.bf16 %v8778_v41, %v8792_v40 }
 0x54b   :  { %6627 = vmatprep.subr.bf16.mxu0 %v10446_v39  ;;  %2419 = vmatprep.mubr.f32.mxu0 %v10396_v25  ;;  %v6630_v42 = vpack.c.bf16 %v2123_v5, %v2122_v18  ;;  %v6633_v44 = vpack.c.bf16 %v2109_v22, %v2108_v61 }
 0x54c   :  { %6619 = vmatprep.subr.bf16.mxu1 %v6618_v45  ;;  %6281 = vmatmul.mubr.msk.f32.gmra.mrb[40].mxu1 %vm980_vm6, %v6273_v21 }
 0x54d   :  { %6629 = vmatpush1.bf16.msra.mxu0 %v10447_v14  ;;  %2336 = vmatprep.mubr.f32.mxu1 %v10396_v25 }
 0x54e   :  { %6285 = vmatmul.mubr.msk.f32.gmra.mrb[44].mxu0 %vm980_vm6, %v6273_v21  ;;  %6621 = vmatpush1.bf16.msra.mxu1 %v6620_v13 }
 0x54f   :  { %6632 = vmatprep.subr.msk.bf16.mxu0 %vm6631_vm15, %v6630_v42  ;;  %2444 = vmatprep.subr.mxu1 %v8499_v26 }
 0x550   :  { %6282 = vmatmul.mubr.msk.f32.gmra.mrb[42].mxu1 %vm980_vm6, %v6274_v16  ;;  %2425 = vmatprep.mubr.f32.mxu0 %v10396_v25 }
 0x551   :  { %6634 = vmatpush1.bf16.msra.mxu0 %v6633_v44  ;;  %2496 = vmatprep.mubr.f32.mxu1 %v10396_v25 }
 0x552   :  { %6286 = vmatmul.mubr.msk.f32.gmra.mrb[46].mxu0 %vm980_vm6, %v6274_v16  ;;  %2445 = vmatpush1.msra.mxu1 %v8512_v53 }
 0x553   :  { %2533 = vmatprep.subr.mxu0 %v8501_v58  ;;  %2585 = vmatprep.mubr.f32.mxu0 %v10396_v25 }
 0x554   :  { %6287 = vmatmul.mubr.msk.f32.vlgmr.msra.gmra.mrb[44].mxu1 %vm980_vm6, %v8976_v27 }
 0x555   :  { %2534 = vmatpush1.msra.mxu0 %v8514_v56  ;;  %2502 = vmatprep.mubr.f32.mxu1 %v10396_v25  ;;  %v9103_v41 = vpop.permute.xlu1 %2224 }
 0x556   :  { %6291 = vmatmul.mubr.msk.f32.vlgmr.msra.gmra.mrb[48].mxu0 %vm980_vm6, %v8976_v27 }
 0x557   :  { %2591 = vmatprep.mubr.f32.mxu0 %v10396_v25 }
 0x558   :  { %6288 = vmatmul.mubr.msk.f32.gmra.mrb[46].mxu1 %vm980_vm6, %v6272_v60 }
 0x559   :  { %2508 = vmatprep.mubr.f32.mxu1 %v10396_v25  ;;  %v9114_v28 = vpop.permute.xlu1 %2234 }
 0x55a   :  { %6292 = vmatmul.mubr.msk.f32.gmra.mrb[50].mxu0 %vm980_vm6, %v6272_v60 }
 0x55b   :  { %2597 = vmatprep.mubr.f32.mxu0 %v10396_v25 }
 0x55c   :  { %6289 = vmatmul.mubr.msk.f32.gmra.mrb[48].mxu1 %vm980_vm6, %v6273_v21 }
 0x55d   :  { %2514 = vmatprep.mubr.f32.mxu1 %v10396_v25 }
 0x55e   :  { %6293 = vmatmul.mubr.msk.f32.gmra.mrb[52].mxu0 %vm980_vm6, %v6273_v21 }
 0x55f   :  { %2603 = vmatprep.mubr.f32.mxu0 %v10396_v25 }
 0x560   :  { %6290 = vmatmul.mubr.msk.f32.gmra.mrb[50].mxu1 %vm980_vm6, %v6274_v16 }
 0x561   :  { %2844 = vmatprep.mubr.f32.mxu1 %v10396_v25 }
 0x562   :  { %6294 = vmatmul.mubr.msk.f32.gmra.mrb[54].mxu0 %vm980_vm6, %v6274_v16 }
 0x563   :  { %2933 = vmatprep.mubr.f32.mxu0 %v10396_v25 }
 0x616   :  { %v2320_v40 = vpop.f32.mrb[36].mxu1 }
 0x617   :  { %v2321_v31 = vadd.f32 %v2320_v40, %v9103_v41  ;;  %v2322_v27 = vpop.f32.mrb[37].mxu1  ;;  %v2409_v23 = vpop.f32.mrb[40].mxu0 }
 0x618   :  { %v2323_v17 = vadd.f32 %v2322_v27, %v9103_v41  ;;  %v2410_v60 = vadd.f32 %v2409_v23, %v9103_v41  ;;  %v2411_v12 = vpop.f32.mrb[41].mxu0  ;;  %v9120_v27 = vpop.permute.xlu0 %2239 }
 0x619   :  { %v6295_v38 = vmul.f32 -1.442695, %v2321_v31  ;;  %v2412_v57 = vadd.f32 %v2411_v12, %v9103_v41 }
 0x61a   :  { %v6296_v55 = vmul.f32 -1.442695, %v2323_v17  ;;  %v6297_v15 = vmul.f32 -1.442695, %v2410_v60  ;;  %v2326_v29 = vpop.f32.mrb[38].mxu1 }
 0x61b   :  { %7401 = vpow2.f32 %v6295_v38  ;;  %v6298_v37 = vmul.f32 -1.442695, %v2412_v57  ;;  %v2327_v35 = vadd.f32 %v2326_v29, %v9109_v50  ;;  %v2328_v21 = vpop.f32.mrb[39].mxu1 }
 0x61c   :  { %7403 = vpow2.f32 %v6296_v55  ;;  %v2329_v32 = vadd.f32 %v2328_v21, %v9109_v50 }
 0x61d   :  { %v2415_v59 = vpop.f32.mrb[42].mxu0  ;;  %7405 = vpow2.f32 %v6297_v15  ;;  %v6303_v18 = vmul.f32 -1.442695, %v2327_v35 }
 0x61e   :  { %v2416_v36 = vadd.f32 %v2415_v59, %v9109_v50  ;;  %v2417_v5 = vpop.f32.mrb[43].mxu0  ;;  %7407 = vpow2.f32 %v6298_v37  ;;  %v6304_v45 = vmul.f32 -1.442695, %v2329_v32 }
 0x61f   :  { %v2418_v39 = vadd.f32 %v2417_v5, %v9109_v50  ;;  %v2332_v13 = vpop.f32.mrb[40].mxu1  ;;  %7409 = vpow2.f32 %v6303_v18 }
 0x620   :  { %v6305_v22 = vmul.f32 -1.442695, %v2416_v36  ;;  %v2333_v61 = vadd.f32 %v2332_v13, %v9114_v28  ;;  %v2334_v42 = vpop.f32.mrb[41].mxu1  ;;  %7411 = vpow2.f32 %v6304_v45 }
 0x621   :  { %v6306_v14 = vmul.f32 -1.442695, %v2418_v39  ;;  %v2335_v16 = vadd.f32 %v2334_v42, %v9114_v28  ;;  %v2421_v44 = vpop.f32.mrb[44].mxu0 }
 0x622   :  { %7413 = vpow2.f32 %v6305_v22  ;;  %v2422_v40 = vadd.f32 %v2421_v44, %v9114_v28  ;;  %v2423_v31 = vpop.f32.mrb[45].mxu0 }
 0x623   :  { %7415 = vpow2.f32 %v6306_v14  ;;  %v2424_v23 = vadd.f32 %v2423_v31, %v9114_v28  ;;  %v2338_v17 = vpop.f32.mrb[42].mxu1 }
 0x624   :  { %7417 = vtanh.f32 %v2333_v61  ;;  %v2339_v60 = vadd.f32 %v2338_v17, %v9120_v27  ;;  %v2340_v12 = vpop.f32.mrb[43].mxu1 }
 0x625   :  { %7419 = vtanh.f32 %v2335_v16  ;;  %v2427_v38 = vpop.f32.mrb[46].mxu0  ;;  %v7402_v57 = vpop.eup %7401 }
 0x626   :  { %7421 = vtanh.f32 %v2422_v40  ;;  %v2429_v55 = vpop.f32.mrb[47].mxu0  ;;  %v7404_v15 = vpop.eup %7403  ;;  %v2658_v29 = vadd.f32 1.0, %v7402_v57 }
 0x627   :  { %7423 = vtanh.f32 %v2424_v23  ;;  %v2498_v37 = vpop.f32.mrb[44].mxu1  ;;  %v7406_v35 = vpop.eup %7405  ;;  %v2659_v21 = vadd.f32 1.0, %v7404_v15  ;;  %v2341_v23 = vadd.f32 %v2340_v12, %v9120_v27 }
 0x628   :  { %7425 = vtanh.f32 %v2339_v60  ;;  %v2500_v32 = vpop.f32.mrb[45].mxu1  ;;  %v7408_v59 = vpop.eup %7407  ;;  %v2660_v18 = vadd.f32 1.0, %v7406_v35  ;;  %v2499_v16 = vadd.f32 %v2498_v37, %v9103_v41  ;;  %v2430_v37 = vadd.f32 %v2429_v55, %v9120_v27 }
 0x629   :  { %7427 = vrcp.f32 %v2658_v29  ;;  %v2587_v36 = vpop.f32.mrb[48].mxu0  ;;  %v7410_v5 = vpop.eup %7409  ;;  %v2661_v45 = vadd.f32 1.0, %v7408_v59  ;;  %v2501_v17 = vadd.f32 %v2500_v32, %v9103_v41  ;;  %v2428_v29 = vadd.f32 %v2427_v38, %v9120_v27 }
 0x62a   :  { %7429 = vrcp.f32 %v2659_v21  ;;  %v2589_v39 = vpop.f32.mrb[49].mxu0  ;;  %v7412_v13 = vpop.eup %7411  ;;  %v2666_v22 = vadd.f32 1.0, %v7410_v5  ;;  %v2588_v35 = vadd.f32 %v2587_v36, %v9103_v41  ;;  %v6299_v12 = vmul.f32 -1.442695, %v2499_v16 }
 0x62b   :  { %7431 = vrcp.f32 %v2660_v18  ;;  %v2504_v61 = vpop.f32.mrb[46].mxu1  ;;  %v2667_v14 = vadd.f32 1.0, %v7412_v13  ;;  %v2590_v18 = vadd.f32 %v2589_v39, %v9103_v41 }
 0x62c   :  { %v7414_v42 = vpop.eup %7413  ;;  %7433 = vrcp.f32 %v2661_v45  ;;  %v2506_v44 = vpop.f32.mrb[47].mxu1  ;;  %v2505_v32 = vadd.f32 %v2504_v61, %v9109_v50 }
 0x62d   :  { %v7416_v40 = vpop.eup %7415  ;;  %7435 = vrcp.f32 %v2666_v22  ;;  %v2668_v31 = vadd.f32 1.0, %v7414_v42  ;;  %v2593_v60 = vpop.f32.mrb[50].mxu0  ;;  %v6300_v42 = vmul.f32 -1.442695, %v2501_v17  ;;  %v2507_v38 = vadd.f32 %v2506_v44, %v9109_v50 }
 0x62e   :  { %v7418_v57 = vpop.eup %7417  ;;  %7437 = vrcp.f32 %v2667_v14  ;;  %v2669_v15 = vadd.f32 1.0, %v7416_v40  ;;  %v2595_v21 = vpop.f32.mrb[51].mxu0  ;;  %v6301_v40 = vmul.f32 -1.442695, %v2588_v35  ;;  %v2594_v55 = vadd.f32 %v2593_v60, %v9109_v50 }
 0x62f   :  { %v7420_v59 = vpop.eup %7419  ;;  %7439 = vrcp.f32 %v2668_v31  ;;  %v2510_v5 = vpop.f32.mrb[48].mxu1  ;;  %v6302_v39 = vmul.f32 -1.442695, %v2590_v18  ;;  %v2596_v16 = vadd.f32 %v2595_v21, %v9109_v50  ;;  %v6307_v62 = vmul.f32 -1.442695, %v2505_v32 }
 0x630   :  { %v7422_v45 = vpop.eup %7421  ;;  %7441 = vrcp.f32 %v2669_v15  ;;  %v2512_v13 = vpop.f32.mrb[49].mxu1  ;;  %v6308_v24 = vmul.f32 -1.442695, %v2507_v38  ;;  %v6309_v51 = vmul.f32 -1.442695, %v2594_v55 }
 0x631   :  { %v7424_v22 = vpop.eup %7423  ;;  %7443 = vtanh.f32 %v2341_v23  ;;  %v2599_v36 = vpop.f32.mrb[52].mxu0  ;;  %v6310_v21 = vmul.f32 -1.442695, %v2596_v16  ;;  %v2513_v38 = vadd.f32 %v2512_v13, %v9114_v28 }
 0x632   :  { %v7426_v14 = vpop.eup %7425  ;;  %7445 = vtanh.f32 %v2428_v29  ;;  %v2601_v31 = vpop.f32.mrb[53].mxu0 }
 0x633   :  { %v7428_v41 = vpop.eup %7427  ;;  %7447 = vtanh.f32 %v2430_v37  ;;  %v2516_v15 = vpop.f32.mrb[50].mxu1 }
 0x634   :  { %v7430_v61 = vpop.eup %7429  ;;  %7449 = vpow2.f32 %v6299_v12  ;;  %v9135_v23 = vpop.f32.mrb[51].mxu1  ;;  %v2722_v17 = vmul.f32 %v7428_v41, %v7418_v57  ;;  %v2511_v57 = vadd.f32 %v2510_v5, %v9114_v28 }
 0x635   :  { %v7432_v44 = vpop.eup %7431  ;;  %7451 = vpow2.f32 %v6300_v42  ;;  %v9137_v29 = vpop.f32.mrb[54].mxu0  ;;  %v2723_v35 = vmul.f32 %v7430_v61, %v7420_v59 }
 0x636   :  { %v7434_v60 = vpop.eup %7433  ;;  %7453 = vpow2.f32 %v6301_v40  ;;  %v9139_v37 = vpop.f32.mrb[55].mxu0  ;;  %v2724_v18 = vmul.f32 %v7432_v44, %v7422_v45  ;;  %v2600_v40 = vadd.f32 %v2599_v36, %v9114_v28  ;;  %v2602_v45 = vadd.f32 %v2601_v31, %v9114_v28 }
 0x637   :  { %v7436_v50 = vpop.eup %7435  ;;  %7455 = vpow2.f32 %v6302_v39  ;;  %v2725_v12 = vmul.f32 %v7434_v60, %v7424_v22 }
 0x638   :  { %v7438_v32 = vpop.eup %7437  ;;  %7457 = vpow2.f32 %v6307_v62  ;;  %v2730_v41 = vmul.f32 %v7436_v50, %v7426_v14  ;;  %v2517_v62 = vadd.f32 %v2516_v15, %v9120_v27  ;;  %v9149_v50 = vld [vmem:[%s10287_s11 + $0x20] sm:$0xff] }
 0x639   :  { %v7440_v42 = vpop.eup %7439  ;;  %7459 = vpow2.f32 %v6308_v24 }
 0x63a   :  { %v7442_v59 = vpop.eup %7441  ;;  %7461 = vpow2.f32 %v6309_v51  ;;  %v6637_v55 = vpack.c.bf16 %v2730_v41, %v2722_v17 }
 0x63b   :  { %v7444_v61 = vpop.eup %7443  ;;  %7463 = vpow2.f32 %v6310_v21 }
 0x63c   :  { %v7446_v39 = vpop.eup %7445  ;;  %7465 = vtanh.f32 %v2511_v57  ;;  %v2731_v22 = vmul.f32 %v7444_v61, %v7438_v32  ;;  %v2606_v61 = vadd.f32 %v9137_v29, %v9120_v27  ;;  %v6313_v29 = vld [vmem:[%s10287_s11 + $0x30] sm:$0xff] }
 0x63d   :  { %v7448_v5 = vpop.eup %7447  ;;  %7467 = vtanh.f32 %v2513_v38  ;;  %v2732_v14 = vmul.f32 %v7446_v39, %v7440_v42  ;;  %v2519_v38 = vadd.f32 %v9135_v23, %v9120_v27  ;;  %v2608_v23 = vadd.f32 %v9139_v37, %v9120_v27 }
 0x63e   :  { %v7450_v24 = vpop.eup %7449  ;;  %7469 = vtanh.f32 %v2600_v40  ;;  %v6635_v13 = vpack.c.bf16 %v2731_v22, %v2723_v35  ;;  %v2733_v16 = vmul.f32 %v7448_v5, %v7442_v59  ;;  %v9159_v59 = vld [vmem:[%s10287_s11 + $0x28] sm:$0xff] }
 0x63f   :  { %v7452_v51 = vpop.eup %7451  ;;  %v2662_v44 = vadd.f32 1.0, %v7450_v24  ;;  %7471 = vtanh.f32 %v2602_v45  ;;  %v6641_v36 = vpack.c.bf16 %v2732_v14, %v2724_v18  ;;  %v6314_v24 = vld [vmem:[%s10287_s11 + $0x38] sm:$0xff] }
 0x640   :  { %v7454_v17 = vpop.eup %7453  ;;  %v2663_v60 = vadd.f32 1.0, %v7452_v51  ;;  %7473 = vtanh.f32 %v2517_v62  ;;  %6636 = vmatprep.subr.bf16.mxu1 %v6635_v13  ;;  %v6639_v28 = vpack.c.bf16 %v2733_v16, %v2725_v12 }
 0x641   :  { %v7456_v31 = vpop.eup %7455  ;;  %7475 = vrcp.f32 %v2662_v44  ;;  %v2664_v15 = vadd.f32 1.0, %v7454_v17  ;;  %6638 = vmatpush1.bf16.msra.mxu1 %v6637_v55 }
 0x642   :  { %v7458_v35 = vpop.eup %7457  ;;  %7477 = vrcp.f32 %v2663_v60  ;;  %v2665_v21 = vadd.f32 1.0, %v7456_v31  ;;  %6640 = vmatprep.subr.bf16.mxu0 %v6639_v28 }
 0x643   :  { %v7460_v32 = vpop.eup %7459  ;;  %7479 = vrcp.f32 %v2664_v15  ;;  %v2670_v18 = vadd.f32 1.0, %v7458_v35  ;;  %6642 = vmatpush1.bf16.msra.mxu0 %v6641_v36 }
 0x644   :  { %v7462_v57 = vpop.eup %7461  ;;  %7481 = vrcp.f32 %v2665_v21  ;;  %v2671_v12 = vadd.f32 1.0, %v7460_v32  ;;  %6319 = vmatmul.mubr.msk.f32.vlgmr.msra.gmra.mrb[52].mxu1 %vm1505_vm11, %v9149_v50 }
 0x645   :  { %v7464_v41 = vpop.eup %7463  ;;  %7483 = vrcp.f32 %v2670_v18  ;;  %v2672_v42 = vadd.f32 1.0, %v7462_v57  ;;  %2850 = vmatprep.mubr.f32.mxu1 %v10396_v25 }
 0x646   :  { %v7466_v40 = vpop.eup %7465  ;;  %7485 = vrcp.f32 %v2671_v12  ;;  %v2673_v55 = vadd.f32 1.0, %v7464_v41  ;;  %6323 = vmatmul.mubr.msk.f32.vlgmr.msra.gmra.mrb[56].mxu0 %vm1505_vm11, %v9149_v50 }
 0x647   :  { %v7468_v45 = vpop.eup %7467  ;;  %7487 = vrcp.f32 %v2672_v42  ;;  %2939 = vmatprep.mubr.f32.mxu0 %v10396_v25 }
 0x648   :  { %v7470_v39 = vpop.eup %7469  ;;  %7489 = vrcp.f32 %v2673_v55  ;;  %6320 = vmatmul.mubr.msk.f32.gmra.mrb[54].mxu1 %vm1505_vm11, %v9159_v59 }
 0x649   :  { %v7472_v62 = vpop.eup %7471  ;;  %7491 = vtanh.f32 %v2519_v38  ;;  %2856 = vmatprep.mubr.f32.mxu1 %v10396_v25 }
 0x64a   :  { %v7474_v22 = vpop.eup %7473  ;;  %7493 = vtanh.f32 %v2606_v61  ;;  %6324 = vmatmul.mubr.msk.f32.gmra.mrb[58].mxu0 %vm1505_vm11, %v9159_v59 }
 0x64b   :  { %v7476_v27 = vpop.eup %7475  ;;  %7495 = vtanh.f32 %v2608_v23  ;;  %2945 = vmatprep.mubr.f32.mxu0 %v10396_v25 }
 0x64c   :  { %v7478_v37 = vpop.eup %7477  ;;  %6321 = vmatmul.mubr.msk.f32.gmra.mrb[24].mxu1 %vm1505_vm11, %v6313_v29  ;;  %v2726_v5 = vmul.f32 %v7476_v27, %v7466_v40 }
 0x64d   :  { %v7480_v14 = vpop.eup %7479  ;;  %2862 = vmatprep.mubr.f32.mxu1 %v10396_v25  ;;  %v2727_v13 = vmul.f32 %v7478_v37, %v7468_v45 }
 0x64e   :  { %v7482_v16 = vpop.eup %7481  ;;  %6325 = vmatmul.mubr.msk.f32.gmra.mrb[28].mxu0 %vm1505_vm11, %v6313_v29  ;;  %v2728_v51 = vmul.f32 %v7480_v14, %v7470_v39 }
 0x64f   :  { %v7484_v44 = vpop.eup %7483  ;;  %2951 = vmatprep.mubr.f32.mxu0 %v10396_v25  ;;  %v2729_v36 = vmul.f32 %v7482_v16, %v7472_v62 }
 0x650   :  { %v7486_v17 = vpop.eup %7485  ;;  %6322 = vmatmul.mubr.msk.f32.gmra.mrb[26].mxu1 %vm1505_vm11, %v6314_v24  ;;  %v2734_v60 = vmul.f32 %v7484_v44, %v7474_v22 }
 0x651   :  { %v7488_v28 = vpop.eup %7487  ;;  %3022 = vmatprep.mubr.f32.mxu1 %v10396_v25 }
 0x652   :  { %v7490_v31 = vpop.eup %7489  ;;  %6326 = vmatmul.mubr.msk.f32.gmra.mrb[30].mxu0 %vm1505_vm11, %v6314_v24  ;;  %v6645_v15 = vpack.c.bf16 %v2734_v60, %v2726_v5 }
 0x653   :  { %v7492_v35 = vpop.eup %7491  ;;  %3111 = vmatprep.mubr.f32.mxu0 %v10396_v25 }
 0x654   :  { %v7494_v21 = vpop.eup %7493  ;;  %v2735_v32 = vmul.f32 %v7492_v35, %v7486_v17 }
 0x655   :  { %v7496_v18 = vpop.eup %7495  ;;  %v2736_v57 = vmul.f32 %v7494_v21, %v7488_v28 }
 0x656   :  { %v6643_v12 = vpack.c.bf16 %v2735_v32, %v2727_v13  ;;  %v2737_v41 = vmul.f32 %v7496_v18, %v7490_v31 }
 0x657   :  { %v6649_v42 = vpack.c.bf16 %v2736_v57, %v2728_v51 }
 0x658   :  { %6644 = vmatprep.subr.bf16.mxu1 %v6643_v12  ;;  %v6647_v38 = vpack.c.bf16 %v2737_v41, %v2729_v36 }
 0x659   :  { %6646 = vmatpush1.bf16.msra.mxu1 %v6645_v15 }
 0x65a   :  { %6648 = vmatprep.subr.bf16.mxu0 %v6647_v38 }
 0x65b   :  { %6650 = vmatpush1.bf16.msra.mxu0 %v6649_v42 }
 0x65c   :  { %6327 = vmatmul.mubr.msk.f32.vlgmr.msra.gmra.mrb[56].mxu1 %vm1505_vm11, %v9149_v50 }
 0x65d   :  { %3028 = vmatprep.mubr.f32.mxu1 %v10396_v25 }
 0x65e   :  { %6331 = vmatmul.mubr.msk.f32.vlgmr.msra.gmra.mrb[60].mxu0 %vm1505_vm11, %v9149_v50  ;;  %v9208_v50 = vpop.permute.xlu1 %2750 }
 0x65f   :  { %3117 = vmatprep.mubr.f32.mxu0 %v10396_v25 }
 0x660   :  { %6328 = vmatmul.mubr.msk.f32.gmra.mrb[58].mxu1 %vm1505_vm11, %v9159_v59 }
 0x661   :  { %3034 = vmatprep.mubr.f32.mxu1 %v10396_v25 }
 0x662   :  { %6332 = vmatmul.mubr.msk.f32.gmra.mrb[62].mxu0 %vm1505_vm11, %v9159_v59  ;;  %v3191_v35 = vpop.permute.xlu1 %3190 }
 0x663   :  { %3123 = vmatprep.mubr.f32.mxu0 %v10396_v25 }
 0x664   :  { %6329 = vmatmul.mubr.msk.f32.gmra.mrb[32].mxu1 %vm1505_vm11, %v6313_v29 }
 0x665   :  { %3040 = vmatprep.mubr.f32.mxu1 %v10396_v25 }
 0x666   :  { %6333 = vmatmul.mubr.msk.f32.gmra.mrb[36].mxu0 %vm1505_vm11, %v6313_v29  ;;  %v9214_v29 = vpop.permute.xlu0 %2755 }
 0x667   :  { %3129 = vmatprep.mubr.f32.mxu0 %v10396_v25 }
 0x668   :  { %6330 = vmatmul.mubr.msk.f32.gmra.mrb[34].mxu1 %vm1505_vm11, %v6314_v24 }
 0x669   :  { %3578 = vmatprep.mubr.f32.mxu1 %v10396_v25 }
 0x66a   :  { %6334 = vmatmul.mubr.msk.f32.gmra.mrb[38].mxu0 %vm1505_vm11, %v6314_v24  ;;  %v3196_v15 = vpop.permute.xlu0 %3195 }
 0x66b   :  { %3667 = vmatprep.mubr.f32.mxu0 %v10396_v25 }
 0x717   :  { %v2846_v59 = vpop.f32.mrb[52].mxu1 }
 0x718   :  { %v2847_v40 = vadd.f32 %v2846_v59, %v9208_v50  ;;  %v2848_v55 = vpop.f32.mrb[53].mxu1 }
 0x719   :  { %v2849_v61 = vadd.f32 %v2848_v55, %v9208_v50  ;;  %v2935_v45 = vpop.f32.mrb[56].mxu0 }
 0x71a   :  { %v3136_v23 = vadd.f32 %v2847_v40, %v8656_v54  ;;  %v2936_v39 = vadd.f32 %v2935_v45, %v9208_v50  ;;  %v2937_v62 = vpop.f32.mrb[57].mxu0 }
 0x71b   :  { %v3137_v22 = vadd.f32 %v2849_v61, %v8663_v9  ;;  %v2938_v27 = vadd.f32 %v2937_v62, %v9208_v50  ;;  %v2852_v37 = vpop.f32.mrb[54].mxu1 }
 0x71c   :  { %v3138_v5 = vadd.f32 %v2936_v39, %v8661_v4  ;;  %v2853_v14 = vadd.f32 %v2852_v37, %v9214_v29  ;;  %v2854_v24 = vpop.f32.mrb[55].mxu1  ;;  %v9222_v51 = vmul.f32 0.70710677, %v3136_v23 }
 0x71d   :  { %v3139_v13 = vadd.f32 %v2938_v27, %v8669_v46  ;;  %v2855_v16 = vadd.f32 %v2854_v24, %v9214_v29  ;;  %v2941_v54 = vpop.f32.mrb[58].mxu0  ;;  %v9226_v17 = vmul.f32 0.70710677, %v3137_v22 }
 0x71e   :  { %v3144_v44 = vadd.f32 %v2853_v14, %v8671_v2  ;;  %v2942_v36 = vadd.f32 %v2941_v54, %v9214_v29  ;;  %v2943_v9 = vpop.f32.mrb[59].mxu0  ;;  %v9230_v28 = vmul.f32 0.70710677, %v3138_v5  ;;  %v9241_v18 = vadd.f32 %v3191_v35, %v9222_v51 }
 0x71f   :  { %v3145_v60 = vadd.f32 %v2855_v16, %v8677_v6  ;;  %v2944_v4 = vadd.f32 %v2943_v9, %v9214_v29  ;;  %v9235_v21 = vmul.f32 0.70710677, %v3139_v13  ;;  %v9249_v12 = vadd.f32 %v3191_v35, %v9226_v17 }
 0x720   :  { %v9232_v31 = vmul.f32 0.70710677, %v3144_v44  ;;  %v3146_v46 = vadd.f32 %v2942_v36, %v8675_v3  ;;  %v9257_v42 = vadd.f32 %v3191_v35, %v9230_v28 }
 0x721   :  { %v9237_v2 = vmul.f32 0.70710677, %v3145_v60  ;;  %v3147_v32 = vadd.f32 %v2944_v4, %v8685_v34  ;;  %v9265_v59 = vadd.f32 %v3191_v35, %v9235_v21 }
 0x722   :  { %v9244_v6 = vadd.f32 %v3196_v15, %v9232_v31  ;;  %v9246_v57 = vmul.f32 0.70710677, %v3146_v46 }
 0x723   :  { %v9252_v3 = vadd.f32 %v3196_v15, %v9237_v2  ;;  %v9254_v41 = vmul.f32 0.70710677, %v3147_v32 }
 0x724   :  { %v9260_v34 = vadd.f32 %v3196_v15, %v9246_v57  ;;  %v7119_v22 = vpack.i.bf16 %v9244_v6, %v9241_v18 }
 0x725   :  { %v9268_v40 = vadd.f32 %v3196_v15, %v9254_v41  ;;  %v7124_v62 = vpack.i.bf16 %v9252_v3, %v9249_v12 }
 0x726   :  { %v7109_v61 = vpack.i.bf16 %v9260_v34, %v9257_v42 }
 0x727   :  { %v7114_v23 = vpack.i.bf16 %v9268_v40, %v9265_v59  ;;  %v6668_v39 = vpack.c.bf16 %v9268_v40, %v9265_v59 }
 0x728   :  { %7110 = vrot.lane.b32.xlu1 %v7109_v61, %s7720_s18 }
 0x729   :  { %7115 = vrot.lane.b32.xlu0 %v7114_v23, %s7720_s18 }
 0x72c   :  { %7125 = vrot.lane.b32.xlu1 %v7124_v62, %s7720_s18 }
 0x72d   :  { %7120 = vrot.lane.b32.xlu0 %v7119_v22, %s7720_s18 }
 0x72f   :  { %v3024_v27 = vpop.f32.mrb[56].mxu1 }
 0x730   :  { %v3025_v37 = vadd.f32 %v3024_v27, %v9208_v50  ;;  %v3026_v5 = vpop.f32.mrb[57].mxu1  ;;  %7130 = vrot.lane.b32.xlu1 %v7114_v23, %s7721_s7 }
 0x731   :  { %v3027_v14 = vadd.f32 %v3026_v5, %v9208_v50  ;;  %v3113_v24 = vpop.f32.mrb[60].mxu0 }
 0x732   :  { %v3140_v13 = vadd.f32 %v3025_v37, %v8742_v8  ;;  %v3114_v16 = vadd.f32 %v3113_v24, %v9208_v50  ;;  %v3115_v54 = vpop.f32.mrb[61].mxu0  ;;  %v3206_v24 = vpop.permute.xlu0 %3205 }
 0x733   :  { %v3141_v44 = vadd.f32 %v3027_v14, %v8747_v63  ;;  %v3116_v36 = vadd.f32 %v3115_v54, %v9208_v50  ;;  %v3030_v9 = vpop.f32.mrb[58].mxu1 }
 0x734   :  { %v3142_v60 = vadd.f32 %v3114_v16, %v8760_v19  ;;  %v3031_v4 = vadd.f32 %v3030_v9, %v9214_v29  ;;  %v3032_v46 = vpop.f32.mrb[59].mxu1  ;;  %v9299_v23 = vmul.f32 0.70710677, %v3140_v13  ;;  %v3201_v13 = vpop.permute.xlu1 %3200 }
 0x735   :  { %v3143_v15 = vadd.f32 %v3116_v36, %v8754_v0  ;;  %v3033_v35 = vadd.f32 %v3032_v46, %v9214_v29  ;;  %v3119_v32 = vpop.f32.mrb[62].mxu0  ;;  %v9303_v37 = vmul.f32 0.70710677, %v3141_v44 }
 0x736   :  { %v3148_v8 = vadd.f32 %v3031_v4, %v8756_v52  ;;  %v3120_v27 = vadd.f32 %v3119_v32, %v9214_v29  ;;  %v3121_v63 = vpop.f32.mrb[63].mxu0  ;;  %v9307_v5 = vmul.f32 0.70710677, %v3142_v60  ;;  %v9318_v44 = vadd.f32 %v3201_v13, %v9299_v23 }
 0x737   :  { %v3149_v50 = vadd.f32 %v3033_v35, %v8764_v1  ;;  %v3122_v19 = vadd.f32 %v3121_v63, %v9214_v29  ;;  %v9312_v16 = vmul.f32 0.70710677, %v3143_v15  ;;  %v9326_v36 = vadd.f32 %v3201_v13, %v9303_v37 }
 0x738   :  { %v9309_v14 = vmul.f32 0.70710677, %v3148_v8  ;;  %v3150_v0 = vadd.f32 %v3120_v27, %v8762_v20  ;;  %v9334_v60 = vadd.f32 %v3201_v13, %v9307_v5 }
 0x739   :  { %v9314_v52 = vmul.f32 0.70710677, %v3149_v50  ;;  %v3151_v54 = vadd.f32 %v3122_v19, %v8772_v49  ;;  %v9344_v15 = vadd.f32 %v3201_v13, %v9312_v16  ;;  %v6382_v13 = vld [vmem:[%s10288_s12 + $0x48] sm:$0xff] }
 0x73a   :  { %v9321_v1 = vadd.f32 %v3206_v24, %v9309_v14  ;;  %v9323_v29 = vmul.f32 0.70710677, %v3150_v0  ;;  %v6344_v0 = vld [vmem:[%s10286_s10 + $0x58] sm:$0xff] }
 0x73b   :  { %v9329_v20 = vadd.f32 %v3206_v24, %v9314_v52  ;;  %v9331_v9 = vmul.f32 0.70710677, %v3151_v54  ;;  %v4444_v54 = vld [vmem:[%s10279_s2 + $0x30] sm:$0xff] }
 0x73c   :  { %v9337_v49 = vadd.f32 %v3206_v24, %v9323_v29  ;;  %v7139_v4 = vpack.i.bf16 %v9321_v1, %v9318_v44 }
 0x73d   :  { %v9347_v35 = vadd.f32 %v3206_v24, %v9331_v9  ;;  %v7164_v19 = vpack.i.bf16 %v9329_v20, %v9326_v36  ;;  %v6381_v24 = vld [vmem:[%s10288_s12 + $0x40] sm:$0xff] }
 0x73e   :  { %7140 = vrot.lane.b32.xlu0 %v7139_v4, %s7721_s7  ;;  %v7149_v50 = vpack.i.bf16 %v9337_v49, %v9334_v60 }
 0x73f   :  { %v7134_v27 = vpack.i.bf16 %v9347_v35, %v9344_v15 }
 0x741   :  { %7135 = vrot.lane.b32.xlu1 %v7134_v27, %s7720_s18 }
 0x742   :  { %7145 = vrot.lane.b32.xlu0 %v7109_v61, %s7721_s7  ;;  %v6341_v61 = vld [vmem:[%s10286_s10 + $0x40] sm:$0xff] }
 0x745   :  { %7150 = vrot.lane.b32.xlu1 %v7149_v50, %s7720_s18 }
 0x746   :  { %7155 = vrot.lane.b32.xlu0 %v7124_v62, %s7721_s7  ;;  %v6342_v62 = vld [vmem:[%s10286_s10 + $0x48] sm:$0xff] }
 0x749   :  { %7165 = vrot.lane.b32.xlu1 %v7164_v19, %s7720_s18 }
 0x74a   :  { %7160 = vrot.lane.b32.xlu0 %v7119_v22, %s7721_s7  ;;  %v6343_v22 = vld [vmem:[%s10286_s10 + $0x50] sm:$0xff] }
 0x74d   :  { %7170 = vrot.lane.b32.xlu1 %v7139_v4, %s7720_s18  ;;  %v4445_v4 = vld [vmem:[%s10279_s2 + $0x38] sm:$0xff] }
 0x74e   :  { %7175 = vrot.lane.b32.xlu0 %v7134_v27, %s7721_s7  ;;  %v6401_v27 = vld [vmem:[%s10279_s2 + $0xb0] sm:$0xff] }
 0x751   :  { %7180 = vrot.lane.b32.xlu1 %v7149_v50, %s7721_s7  ;;  %v6402_v50 = vld [vmem:[%s10279_s2 + $0xb8] sm:$0xff] }
 0x752   :  { %7185 = vrot.lane.b32.xlu0 %v7164_v19, %s7721_s7 }
 0x755   :  { %3484 = vperm.xlu1 %6937, %v6341_v61  }
 0x756   :  { %3489 = vperm.xlu0 %6948, %v6342_v62  }
 0x759   :  { %3494 = vperm.xlu1 %6937, %v6343_v22  }
 0x75a   :  { %3499 = vperm.xlu0 %6948, %v6344_v0  }
 0x75d   :  { %4010 = vperm.xlu1 %6937, %v6381_v24  }
 0x75e   :  { %4015 = vperm.xlu0 %6948, %v6382_v13  }
 0x761   :  { %4450 = vperm.xlu1 %6937, %v4444_v54  }
 0x762   :  { %4455 = vperm.xlu0 %6948, %v4445_v4  }
 0x765   :  { %4460 = vperm.xlu1 %6937, %v6401_v27  }
 0x766   :  { %4465 = vperm.xlu0 %6948, %v6402_v50  }
 0x79a   :  { %v7111_v19 = vpop.permute.xlu1 %7110 }
 0x79b   :  { %v7113_v61 = vunpack.i.h.bf16 %v7111_v19  ;;  %v7112_v62 = vunpack.i.l.bf16 %v7111_v19  ;;  %v9402_v22 = vpop.permute.xlu0 %7115 }
 0x79c   :  { %v10353_v0 = vunpack.i.h.bf16 %v9402_v22  ;;  %v10352_v24 = vunpack.i.l.bf16 %v9402_v22 }
 0x79e   :  { %v7126_v13 = vpop.permute.xlu1 %7125  ;;  %v3280_v54 = vsel %vm750_vm0, %v7112_v62, %v10352_v24  ;;  %v3281_v4 = vsel %vm750_vm0, %v7113_v61, %v10353_v0 }
 0x79f   :  { %v7128_v27 = vunpack.i.h.bf16 %v7126_v13  ;;  %v7127_v50 = vunpack.i.l.bf16 %v7126_v13  ;;  %v7121_v19 = vpop.permute.xlu0 %7120  ;;  %v6664_v46 = vpack.c.bf16 %v3281_v4, %v3280_v54 }
 0x7a0   :  { %v7123_v32 = vunpack.i.h.bf16 %v7121_v19  ;;  %v7122_v8 = vunpack.i.l.bf16 %v7121_v19 }
 0x7a1   :  { %v3282_v63 = vsel %vm750_vm0, %v7127_v50, %v7112_v62  ;;  %v3283_v38 = vsel %vm750_vm0, %v7128_v27, %v7113_v61  ;;  %6665 = vmatprep.subr.bf16.mxu0 %v6664_v46  ;;  %v10448_v62 = vpack.c.bf16 %v9260_v34, %v9257_v42 }
 0x7a2   :  { %v6666_v55 = vpack.c.bf16 %v3283_v38, %v3282_v63  ;;  %v3284_v24 = vsel %vm750_vm0, %v7122_v8, %v7127_v50  ;;  %v3285_v0 = vsel %vm750_vm0, %v7123_v32, %v7128_v27  ;;  %v7131_v61 = vpop.permute.xlu1 %7130 }
 0x7a3   :  { %v6651_v45 = vpack.c.bf16 %v3285_v0, %v3284_v24  ;;  %v7133_v38 = vunpack.i.h.bf16 %v7131_v61  ;;  %v7132_v63 = vunpack.i.l.bf16 %v7131_v61 }
 0x7a4   :  { %6667 = vmatpush1.bf16.msra.mxu0 %v6666_v55 }
 0x7a5   :  { %6652 = vmatprep.subr.bf16.mxu1 %v6651_v45  ;;  %6669 = vmatprep.subr.bf16.mxu0 %v6668_v39 }
 0x7a8   :  { %6671 = vmatpush1.bf16.msra.mxu0 %v10448_v62 }
 0x7b0   :  { %v9428_v46 = vpop.permute.xlu0 %7140 }
 0x7b1   :  { %v10355_v13 = vunpack.i.h.bf16 %v9428_v46  ;;  %v10354_v54 = vunpack.i.l.bf16 %v9428_v46  ;;  %v10460_v43 = vunpack.i.h.bf16 %v9428_v46 }
 0x7b3   :  { %v3374_v55 = vsel %vm847_vm1, %v7132_v63, %v10354_v54  ;;  %v3375_v42 = vsel %vm847_vm1, %v7133_v38, %v10355_v13  ;;  %v7136_v34 = vpop.permute.xlu1 %7135 }
 0x7b4   :  { %v6672_v59 = vpack.c.bf16 %v3375_v42, %v3374_v55  ;;  %v7138_v40 = vunpack.i.h.bf16 %v7136_v34  ;;  %v7137_v45 = vunpack.i.l.bf16 %v7136_v34  ;;  %v7146_v39 = vpop.permute.xlu0 %7145 }
 0x7b5   :  { %v7148_v0 = vunpack.i.h.bf16 %v7146_v39  ;;  %v7147_v24 = vunpack.i.l.bf16 %v7146_v39 }
 0x7b6   :  { %v3287_v4 = vsel %vm750_vm0, %v7138_v40, %v7123_v32  ;;  %v3286_v27 = vsel %vm750_vm0, %v7137_v45, %v7122_v8  ;;  %6674 = vmatprep.subr.msk.bf16.mxu0 %vm6537_vm3, %v6672_v59  ;;  %v10451_v59 = vpack.c.bf16 %v9252_v3, %v9249_v12 }
 0x7b7   :  { %v6653_v19 = vpack.c.bf16 %v3287_v4, %v3286_v27  ;;  %v3376_v62 = vsel %vm847_vm1, %v7147_v24, %v7132_v63  ;;  %v3377_v61 = vsel %vm847_vm1, %v7148_v0, %v7133_v38  ;;  %v7151_v55 = vpop.permute.xlu1 %7150 }
 0x7b8   :  { %v6675_v42 = vpack.c.bf16 %v3377_v61, %v3376_v62  ;;  %v7153_v34 = vunpack.i.h.bf16 %v7151_v55  ;;  %v7152_v32 = vunpack.i.l.bf16 %v7151_v55  ;;  %v7156_v39 = vpop.permute.xlu0 %7155  ;;  %v10452_v61 = vpack.c.bf16 %v9244_v6, %v9241_v18 }
 0x7b9   :  { %v7158_v54 = vunpack.i.h.bf16 %v7156_v39  ;;  %v7157_v8 = vunpack.i.l.bf16 %v7156_v39  ;;  %6655 = vmatpush1.bf16.msk.msra.mxu1 %vm6518_vm5, %v6653_v19 }
 0x7ba   :  { %6657 = vmatprep.subr.bf16.mxu1 %v10451_v59  ;;  %6676 = vmatpush1.bf16.msra.mxu0 %v6675_v42  ;;  %v3272_v38 = vsel %vm750_vm0, %v7152_v32, %v7137_v45  ;;  %v3273_v63 = vsel %vm750_vm0, %v7153_v34, %v7138_v40  ;;  %v9473_v45 = vld [vmem:[%s10285_s9 + $0x40] sm:$0xff] }
 0x7bb   :  { %v7166_v4 = vpop.permute.xlu1 %7165  ;;  %3615 = vmatprep.subr.mxu0 %v8392_v48  ;;  %v3378_v27 = vsel %vm847_vm1, %v7157_v8, %v7147_v24  ;;  %v3379_v13 = vsel %vm847_vm1, %v7158_v54, %v7148_v0  ;;  %v6690_v55 = vpack.c.bf16 %v3273_v63, %v3272_v38 }
 0x7bc   :  { %v7168_v50 = vunpack.i.h.bf16 %v7166_v4  ;;  %v7167_v19 = vunpack.i.l.bf16 %v7166_v4  ;;  %v7161_v12 = vpop.permute.xlu0 %7160  ;;  %v6660_v3 = vpack.c.bf16 %v3379_v13, %v3378_v27  ;;  %v10454_v13 = vunpack.i.l.bf16 %v9402_v22 }
 0x7bd   :  { %v7163_v62 = vunpack.i.h.bf16 %v7161_v12  ;;  %v7162_v40 = vunpack.i.l.bf16 %v7161_v12  ;;  %6659 = vmatpush1.bf16.msra.mxu1 %v10452_v61 }
 0x7be   :  { %v3274_v24 = vsel %vm750_vm0, %v7167_v19, %v7152_v32  ;;  %v3275_v0 = vsel %vm750_vm0, %v7168_v50, %v7153_v34  ;;  %6661 = vmatprep.subr.bf16.mxu1 %v6660_v3  ;;  %3616 = vmatpush1.msra.mxu0 %v8405_v7  ;;  %v9493_v34 = vld [vmem:[%s10285_s9 + $0x48] sm:$0xff]  ;;  %v10455_v3 = vpack.c.bf16 %v9347_v35, %v9344_v15 }
 0x7bf   :  { %v6692_v42 = vpack.c.bf16 %v3275_v0, %v3274_v24  ;;  %v3380_v39 = vsel %vm847_vm1, %v7162_v40, %v7157_v8  ;;  %v3381_v59 = vsel %vm847_vm1, %v7163_v62, %v7158_v54  ;;  %v7171_v4 = vpop.permute.xlu1 %7170  ;;  %6349 = vmatmul.mubr.msk.f32.vlgmr.msra.gmra.mrb[64].mxu0 %vm980_vm6, %v9473_v45  ;;  %6691 = vmatprep.subr.bf16.mxu0 %v6690_v55  ;;  %v10453_v54 = vunpack.i.h.bf16 %v9402_v22 }
 0x7c0   :  { %v6662_v18 = vpack.c.bf16 %v3381_v59, %v3380_v39  ;;  %v7173_v6 = vunpack.i.h.bf16 %v7171_v4  ;;  %v7172_v32 = vunpack.i.l.bf16 %v7171_v4  ;;  %v7176_v38 = vpop.permute.xlu0 %7175  ;;  %3673 = vmatprep.mubr.f32.mxu0 %v10396_v25  ;;  %v10456_v4 = vpack.c.bf16 %v9337_v49, %v9334_v60 }
 0x7c1   :  { %v7178_v8 = vunpack.i.h.bf16 %v7176_v38  ;;  %v7177_v63 = vunpack.i.l.bf16 %v7176_v38  ;;  %6693 = vmatpush1.bf16.msra.mxu0 %v6692_v42  ;;  %v10459_v38 = vpack.c.bf16 %v9329_v20, %v9326_v36  ;;  %v10462_v20 = vpack.c.bf16 %v9321_v1, %v9318_v44 }
 0x7c2   :  { %v3279_v27 = vsel %vm750_vm0, %v10453_v54, %v7173_v6  ;;  %v3278_v12 = vsel %vm750_vm0, %v10454_v13, %v7172_v32  ;;  %6695 = vmatprep.subr.bf16.mxu0 %v10455_v3  ;;  %6663 = vmatpush1.bf16.msra.mxu1 %v6662_v18  ;;  %v3276_v22 = vsel %vm750_vm0, %v7172_v32, %v7167_v19 }
 0x7c3   :  { %v3382_v61 = vsel %vm847_vm1, %v7177_v63, %v7162_v40  ;;  %v3383_v55 = vsel %vm847_vm1, %v7178_v8, %v7163_v62  ;;  %v7181_v24 = vpop.permute.xlu1 %7180  ;;  %3526 = vmatprep.subr.mxu1 %v8390_v30  ;;  %6350 = vmatmul.mubr.msk.f32.gmra.mrb[66].mxu0 %vm980_vm6, %v9493_v34  ;;  %v6339_v40 = vld [vmem:[%s10285_s9 + $0x50] sm:$0xff]  ;;  %v3277_v62 = vsel %vm750_vm0, %v7173_v6, %v7168_v50  ;;  %vm10458_vm0 = vmpackc.low %vm8366_vm7, %vm8366_vm7 }
 0x7c4   :  { %v6698_v0 = vpack.c.bf16 %v3383_v55, %v3382_v61  ;;  %v7183_v42 = vunpack.i.h.bf16 %v7181_v24  ;;  %v7182_v15 = vunpack.i.l.bf16 %v7181_v24  ;;  %v7186_v35 = vpop.permute.xlu0 %7185  ;;  %3679 = vmatprep.mubr.f32.mxu0 %v10396_v25  ;;  %v6677_v50 = vpack.c.bf16 %v3277_v62, %v3276_v22 }
 0x7c5   :  { %v7188_v39 = vunpack.i.h.bf16 %v7186_v35  ;;  %v7187_v59 = vunpack.i.l.bf16 %v7186_v35  ;;  %6697 = vmatpush1.bf16.msra.mxu0 %v10456_v4  ;;  %v6679_v6 = vpack.c.bf16 %v3279_v27, %v3278_v12 }
 0x7c6   :  { %v3369_v19 = vsel %vm847_vm1, %v7183_v42, %v7178_v8  ;;  %v3368_v18 = vsel %vm847_vm1, %v7182_v15, %v7177_v63  ;;  %3527 = vmatpush1.msra.mxu1 %v8402_v10  ;;  %6700 = vmatprep.subr.msk.bf16.mxu0 %vm10457_vm2, %v6698_v0  ;;  %v10461_v63 = vunpack.i.l.bf16 %v9428_v46 }
 0x7c7   :  { %v6701_v32 = vpack.c.bf16 %v3369_v19, %v3368_v18  ;;  %6345 = vmatmul.mubr.msk.f32.vlgmr.msra.gmra.mrb[60].mxu1 %vm980_vm6, %v9473_v45  ;;  %6351 = vmatmul.mubr.msk.f32.gmra.mrb[68].mxu0 %vm980_vm6, %v6339_v40  ;;  %v3370_v60 = vsel %vm847_vm1, %v7187_v59, %v7182_v15  ;;  %v3371_v49 = vsel %vm847_vm1, %v7188_v39, %v7183_v42 }
 0x7c8   :  { %6678 = vmatprep.subr.bf16.mxu1 %v6677_v50  ;;  %3584 = vmatprep.mubr.f32.mxu1 %v10396_v25  ;;  %v3373_v8 = vsel %vm847_vm1, %v10460_v43, %v7188_v39  ;;  %v3372_v54 = vsel %vm847_vm1, %v10461_v63, %v7187_v59  ;;  %v6686_v36 = vpack.c.bf16 %v3371_v49, %v3370_v60  ;;  %vm10463_vm1 = vcmp.lt.s32.totalorder %v8213_v11, 2 }
 0x7c9   :  { %6681 = vmatpush1.bf16.msk.msra.mxu1 %vm10458_vm0, %v6679_v6  ;;  %6702 = vmatpush1.bf16.msra.mxu0 %v6701_v32  ;;  %v6688_v27 = vpack.c.bf16 %v3373_v8, %v3372_v54  ;;  %vm10464_vm3 = vmmov %vm10463_vm1 }
 0x7ca   :  { %6683 = vmatprep.subr.bf16.mxu1 %v10459_v38  ;;  %3793 = vmatprep.subr.mxu0 %v8501_v58  ;;  %vm10465_vm4 = vmmov %vm10463_vm1 }
 0x7cb   :  { %3685 = vmatprep.mubr.f32.mxu0 %v10396_v25  ;;  %6346 = vmatmul.mubr.msk.f32.gmra.mrb[62].mxu1 %vm980_vm6, %v9493_v34  ;;  %vm10466_vm5 = vmmov %vm10463_vm1 }
 0x7cc   :  { %6352 = vmatmul.mubr.msk.f32.gmra.mrb[70].mxu0 %vm980_vm6, %v6340_v47  ;;  %3590 = vmatprep.mubr.f32.mxu1 %v10396_v25  ;;  %vm10467_vm7 = vmmov %vm10463_vm1 }
 0x7cd   :  { %6685 = vmatpush1.bf16.msra.mxu1 %v10462_v20  ;;  %3794 = vmatpush1.msra.mxu0 %v8514_v56  ;;  %vm10468_vm13 = vmmov %vm10463_vm1 }
 0x7ce   :  { %6687 = vmatprep.subr.bf16.mxu1 %v6686_v36  ;;  %3845 = vmatprep.mubr.f32.mxu0 %v10396_v25  ;;  %vm10469_vm2 = vmmov %vm10463_vm1 }
 0x7cf   :  { %6347 = vmatmul.mubr.msk.f32.gmra.mrb[64].mxu1 %vm980_vm6, %v6339_v40  ;;  %vm10470_vm0 = vmmov %vm10463_vm1 }
 0x7d0   :  { %6357 = vmatmul.mubr.msk.f32.vlgmr.msra.gmra.mrb[72].mxu0 %vm980_vm6, %v9473_v45  ;;  %3596 = vmatprep.mubr.f32.mxu1 %v10396_v25 }
 0x7d1   :  { %6689 = vmatpush1.bf16.msra.mxu1 %v6688_v27  ;;  %3851 = vmatprep.mubr.f32.mxu0 %v10396_v25 }
 0x7d2   :  { %3704 = vmatprep.subr.mxu1 %v8499_v26 }
 0x7d3   :  { %6348 = vmatmul.mubr.msk.f32.gmra.mrb[66].mxu1 %vm980_vm6, %v6340_v47 }
 0x7d4   :  { %6358 = vmatmul.mubr.msk.f32.gmra.mrb[74].mxu0 %vm980_vm6, %v9493_v34  ;;  %3756 = vmatprep.mubr.f32.mxu1 %v10396_v25  ;;  %v9598_v44 = vpop.permute.xlu1 %3484 }
 0x7d5   :  { %3705 = vmatpush1.msra.mxu1 %v8512_v53  ;;  %3857 = vmatprep.mubr.f32.mxu0 %v10396_v25  ;;  %v9602_v12 = vpop.permute.xlu0 %3489 }
 0x7d7   :  { %6353 = vmatmul.mubr.msk.f32.vlgmr.msra.gmra.mrb[68].mxu1 %vm980_vm6, %v9473_v45 }
 0x7d8   :  { %6359 = vmatmul.mubr.msk.f32.gmra.mrb[76].mxu0 %vm980_vm6, %v6339_v40  ;;  %3762 = vmatprep.mubr.f32.mxu1 %v10396_v25  ;;  %v9606_v0 = vpop.permute.xlu1 %3494 }
 0x7d9   :  { %3863 = vmatprep.mubr.f32.mxu0 %v10396_v25  ;;  %v9612_v6 = vpop.permute.xlu0 %3499 }
 0x7db   :  { %6354 = vmatmul.mubr.msk.f32.gmra.mrb[70].mxu1 %vm980_vm6, %v9493_v34 }
 0x7dc   :  { %6360 = vmatmul.mubr.msk.f32.gmra.mrb[78].mxu0 %vm980_vm6, %v6340_v47  ;;  %3768 = vmatprep.mubr.f32.mxu1 %v10396_v25 }
 0x7dd   :  { %4193 = vmatprep.mubr.f32.mxu0 %v10396_v25 }
 0x7df   :  { %6355 = vmatmul.mubr.msk.f32.gmra.mrb[72].mxu1 %vm980_vm6, %v6339_v40 }
 0x7e0   :  { %3774 = vmatprep.mubr.f32.mxu1 %v10396_v25 }
 0x7e3   :  { %6356 = vmatmul.mubr.msk.f32.gmra.mrb[74].mxu1 %vm980_vm6, %v6340_v47 }
 0x7e4   :  { %4104 = vmatprep.mubr.f32.mxu1 %v10396_v25 }
 0x892   :  { %v3669_v1 = vpop.f32.mrb[64].mxu0 }
 0x893   :  { %v3670_v46 = vadd.f32 %v3669_v1, %v9598_v44  ;;  %v3671_v45 = vpop.f32.mrb[65].mxu0 }
 0x894   :  { %v3672_v34 = vadd.f32 %v3671_v45, %v9598_v44 }
 0x895   :  { %v6363_v13 = vmul.f32 -1.442695, %v3670_v46 }
 0x896   :  { %v6364_v3 = vmul.f32 -1.442695, %v3672_v34  ;;  %v3675_v61 = vpop.f32.mrb[66].mxu0 }
 0x897   :  { %7497 = vpow2.f32 %v6363_v13  ;;  %v3676_v55 = vadd.f32 %v3675_v61, %v9602_v12  ;;  %v3677_v24 = vpop.f32.mrb[67].mxu0 }
 0x898   :  { %7499 = vpow2.f32 %v6364_v3  ;;  %v3678_v22 = vadd.f32 %v3677_v24, %v9602_v12 }
 0x899   :  { %v6371_v42 = vmul.f32 -1.442695, %v3676_v55 }
 0x89a   :  { %v6372_v15 = vmul.f32 -1.442695, %v3678_v22  ;;  %v3580_v35 = vpop.f32.mrb[60].mxu1  ;;  %v3681_v40 = vpop.f32.mrb[68].mxu0 }
 0x89b   :  { %7501 = vpow2.f32 %v6371_v42  ;;  %v3581_v62 = vadd.f32 %v3580_v35, %v9598_v44  ;;  %v3682_v39 = vadd.f32 %v3681_v40, %v9606_v0  ;;  %v3582_v59 = vpop.f32.mrb[61].mxu1  ;;  %v3683_v4 = vpop.f32.mrb[69].mxu0 }
 0x89c   :  { %7503 = vpow2.f32 %v6372_v15  ;;  %v3583_v19 = vadd.f32 %v3582_v59, %v9598_v44  ;;  %v3684_v50 = vadd.f32 %v3683_v4, %v9606_v0 }
 0x89d   :  { %v6361_v18 = vmul.f32 -1.442695, %v3581_v62  ;;  %7505 = vtanh.f32 %v3682_v39 }
 0x89e   :  { %v6362_v32 = vmul.f32 -1.442695, %v3583_v19  ;;  %v3586_v47 = vpop.f32.mrb[62].mxu1 }
 0x89f   :  { %7507 = vpow2.f32 %v6361_v18  ;;  %v3587_v60 = vadd.f32 %v3586_v47, %v9602_v12  ;;  %v3687_v49 = vpop.f32.mrb[70].mxu0  ;;  %v3588_v38 = vpop.f32.mrb[63].mxu1 }
 0x8a0   :  { %7509 = vpow2.f32 %v6362_v32  ;;  %v3688_v43 = vadd.f32 %v3687_v49, %v9612_v6  ;;  %v3589_v8 = vadd.f32 %v3588_v38, %v9602_v12  ;;  %v3689_v63 = vpop.f32.mrb[71].mxu0 }
 0x8a1   :  { %v7498_v54 = vpop.eup %7497  ;;  %7511 = vtanh.f32 %v3684_v50  ;;  %v6369_v36 = vmul.f32 -1.442695, %v3587_v60  ;;  %v3690_v34 = vadd.f32 %v3689_v63, %v9612_v6 }
 0x8a2   :  { %v7500_v20 = vpop.eup %7499  ;;  %v3920_v27 = vadd.f32 1.0, %v7498_v54  ;;  %7513 = vtanh.f32 %v3688_v43  ;;  %v6370_v1 = vmul.f32 -1.442695, %v3589_v8  ;;  %v3592_v46 = vpop.f32.mrb[64].mxu1 }
 0x8a3   :  { %v3921_v45 = vadd.f32 1.0, %v7500_v20  ;;  %7515 = vpow2.f32 %v6369_v36  ;;  %v3847_v13 = vpop.f32.mrb[72].mxu0  ;;  %v3594_v3 = vpop.f32.mrb[65].mxu1  ;;  %v3593_v15 = vadd.f32 %v3592_v46, %v9606_v0 }
 0x8a4   :  { %7517 = vrcp.f32 %v3920_v27  ;;  %v3848_v61 = vadd.f32 %v3847_v13, %v9598_v44  ;;  %v3849_v55 = vpop.f32.mrb[73].mxu0  ;;  %v3595_v60 = vadd.f32 %v3594_v3, %v9606_v0 }
 0x8a5   :  { %v7502_v24 = vpop.eup %7501  ;;  %7519 = vrcp.f32 %v3921_v45  ;;  %v3850_v39 = vadd.f32 %v3849_v55, %v9598_v44 }
 0x8a6   :  { %v7504_v22 = vpop.eup %7503  ;;  %v3928_v42 = vadd.f32 1.0, %v7502_v24  ;;  %7521 = vpow2.f32 %v6370_v1  ;;  %v3598_v35 = vpop.f32.mrb[66].mxu1  ;;  %v6367_v62 = vmul.f32 -1.442695, %v3848_v61 }
 0x8a7   :  { %v3929_v40 = vadd.f32 1.0, %v7504_v22  ;;  %7523 = vtanh.f32 %v3690_v34  ;;  %v3853_v59 = vpop.f32.mrb[74].mxu0  ;;  %v3600_v4 = vpop.f32.mrb[67].mxu1  ;;  %v6368_v63 = vmul.f32 -1.442695, %v3850_v39  ;;  %v3599_v46 = vadd.f32 %v3598_v35, %v9612_v6 }
 0x8a8   :  { %v7506_v19 = vpop.eup %7505  ;;  %7525 = vrcp.f32 %v3928_v42  ;;  %v3855_v18 = vpop.f32.mrb[75].mxu0  ;;  %v3854_v49 = vadd.f32 %v3853_v59, %v9602_v12 }
 0x8a9   :  { %v7508_v50 = vpop.eup %7507  ;;  %7527 = vrcp.f32 %v3929_v40  ;;  %v3856_v45 = vadd.f32 %v3855_v18, %v9602_v12 }
 0x8aa   :  { %v7510_v32 = vpop.eup %7509  ;;  %v3918_v47 = vadd.f32 1.0, %v7508_v50  ;;  %7529 = vtanh.f32 %v3593_v15  ;;  %v3758_v38 = vpop.f32.mrb[68].mxu1  ;;  %v6375_v3 = vmul.f32 -1.442695, %v3854_v49 }
 0x8ab   :  { %v7512_v43 = vpop.eup %7511  ;;  %v3919_v8 = vadd.f32 1.0, %v7510_v32  ;;  %7531 = vpow2.f32 %v6367_v62  ;;  %v3859_v54 = vpop.f32.mrb[76].mxu0  ;;  %v3759_v61 = vadd.f32 %v3758_v38, %v9598_v44  ;;  %v3601_v62 = vadd.f32 %v3600_v4, %v9612_v6 }
 0x8ac   :  { %v3760_v36 = vpop.f32.mrb[69].mxu1  ;;  %v7514_v20 = vpop.eup %7513  ;;  %7533 = vrcp.f32 %v3918_v47  ;;  %v6376_v50 = vmul.f32 -1.442695, %v3856_v45 }
 0x8ad   :  { %v3861_v27 = vpop.f32.mrb[77].mxu0  ;;  %v7516_v1 = vpop.eup %7515  ;;  %7535 = vrcp.f32 %v3919_v8  ;;  %v3761_v32 = vadd.f32 %v3760_v36, %v9598_v44 }
 0x8ae   :  { %v7518_v34 = vpop.eup %7517  ;;  %v3926_v13 = vadd.f32 1.0, %v7516_v1  ;;  %7537 = vtanh.f32 %v3595_v60  ;;  %v3764_v55 = vpop.f32.mrb[70].mxu1  ;;  %v6365_v60 = vmul.f32 -1.442695, %v3759_v61  ;;  %v3862_v44 = vadd.f32 %v3861_v27, %v9606_v0 }
 0x8af   :  { %v7520_v24 = vpop.eup %7519  ;;  %7539 = vpow2.f32 %v6368_v63  ;;  %v3865_v22 = vpop.f32.mrb[78].mxu0  ;;  %v3984_v15 = vmul.f32 %v7518_v34, %v7506_v19  ;;  %v3860_v19 = vadd.f32 %v3859_v54, %v9606_v0  ;;  %v3765_v8 = vadd.f32 %v3764_v55, %v9602_v12 }
 0x8b0   :  { %v3766_v42 = vpop.f32.mrb[71].mxu1  ;;  %v7522_v40 = vpop.eup %7521  ;;  %7541 = vrcp.f32 %v3926_v13  ;;  %v3985_v35 = vmul.f32 %v7520_v24, %v7512_v43  ;;  %v3866_v27 = vadd.f32 %v3865_v22, %v9612_v6 }
 0x8b1   :  { %v3867_v39 = vpop.f32.mrb[79].mxu0  ;;  %v7524_v59 = vpop.eup %7523  ;;  %v3927_v18 = vadd.f32 1.0, %v7522_v40  ;;  %7543 = vtanh.f32 %v3599_v46  ;;  %v6366_v46 = vmul.f32 -1.442695, %v3761_v32  ;;  %v6373_v55 = vmul.f32 -1.442695, %v3765_v8 }
 0x8b2   :  { %v7526_v47 = vpop.eup %7525  ;;  %7545 = vpow2.f32 %v6375_v3  ;;  %v3770_v49 = vpop.f32.mrb[72].mxu1  ;;  %v3767_v3 = vadd.f32 %v3766_v42, %v9602_v12  ;;  %v9638_v12 = vld [vmem:[%s10287_s11 + $0x40] sm:$0xff]  ;;  %v9648_v8 = vld [vmem:[%s10287_s11 + $0x48] sm:$0xff] }
 0x8b3   :  { %v7528_v38 = vpop.eup %7527  ;;  %7547 = vrcp.f32 %v3927_v18  ;;  %v3772_v63 = vpop.f32.mrb[73].mxu1  ;;  %v3992_v4 = vmul.f32 %v7526_v47, %v7514_v20  ;;  %v3868_v47 = vadd.f32 %v3867_v39, %v9612_v6 }
 0x8b4   :  { %v7530_v1 = vpop.eup %7529  ;;  %7549 = vtanh.f32 %v3601_v62  ;;  %v3993_v43 = vmul.f32 %v7528_v38, %v7524_v59  ;;  %v6374_v18 = vmul.f32 -1.442695, %v3767_v3 }
 0x8b5   :  { %v7532_v34 = vpop.eup %7531  ;;  %7551 = vpow2.f32 %v6376_v50  ;;  %v6709_v36 = vpack.c.bf16 %v3992_v4, %v3984_v15 }
 0x8b6   :  { %v7534_v45 = vpop.eup %7533  ;;  %v3924_v13 = vadd.f32 1.0, %v7532_v34  ;;  %7553 = vpow2.f32 %v6365_v60  ;;  %v3776_v61 = vpop.f32.mrb[74].mxu1  ;;  %v6707_v54 = vpack.c.bf16 %v3993_v43, %v3985_v35 }
 0x8b7   :  { %v7536_v24 = vpop.eup %7535  ;;  %7555 = vtanh.f32 %v3860_v19  ;;  %v9632_v20 = vpop.f32.mrb[75].mxu1  ;;  %v3982_v40 = vmul.f32 %v7534_v45, %v7530_v1  ;;  %v3771_v19 = vadd.f32 %v3770_v49, %v9606_v0 }
 0x8b8   :  { %v7538_v62 = vpop.eup %7537  ;;  %7557 = vrcp.f32 %v3924_v13  ;;  %6708 = vmatprep.subr.bf16.mxu0 %v6707_v54  ;;  %v9657_v13 = vld [vmem:[%s10287_s11 + $0x50] sm:$0xff] }
 0x8b9   :  { %v7540_v59 = vpop.eup %7539  ;;  %7559 = vpow2.f32 %v6366_v46  ;;  %6710 = vmatpush1.bf16.msra.mxu0 %v6709_v36  ;;  %v3983_v42 = vmul.f32 %v7538_v62, %v7536_v24  ;;  %v3773_v36 = vadd.f32 %v3772_v63, %v9606_v0  ;;  %v3777_v24 = vadd.f32 %v3776_v61, %v9612_v6  ;;  %v6380_v63 = vld [vmem:[%s10287_s11 + $0x58] sm:$0xff] }
 0x8ba   :  { %v7542_v15 = vpop.eup %7541  ;;  %v3925_v35 = vadd.f32 1.0, %v7540_v59  ;;  %7561 = vtanh.f32 %v3862_v44  ;;  %v3779_v61 = vadd.f32 %v9632_v20, %v9612_v6 }
 0x8bb   :  { %v7544_v50 = vpop.eup %7543  ;;  %7563 = vpow2.f32 %v6373_v55 }
 0x8bc   :  { %v7546_v32 = vpop.eup %7545  ;;  %7565 = vrcp.f32 %v3925_v35  ;;  %6389 = vmatmul.mubr.msk.f32.vlgmr.msra.gmra.mrb[80].mxu0 %vm1505_vm11, %v9638_v12  ;;  %v3990_v22 = vmul.f32 %v7544_v50, %v7542_v15 }
 0x8bd   :  { %v7548_v60 = vpop.eup %7547  ;;  %v3932_v38 = vadd.f32 1.0, %v7546_v32  ;;  %7567 = vtanh.f32 %v3866_v27  ;;  %4199 = vmatprep.mubr.f32.mxu0 %v10396_v25 }
 0x8be   :  { %v7550_v4 = vpop.eup %7549  ;;  %7569 = vpow2.f32 %v6374_v18  ;;  %v6705_v1 = vpack.c.bf16 %v3990_v22, %v3982_v40 }
 0x8bf   :  { %v7552_v39 = vpop.eup %7551  ;;  %7571 = vrcp.f32 %v3932_v38  ;;  %v3991_v43 = vmul.f32 %v7550_v4, %v7548_v60 }
 0x8c0   :  { %v7554_v34 = vpop.eup %7553  ;;  %v3933_v46 = vadd.f32 1.0, %v7552_v39  ;;  %7573 = vtanh.f32 %v3868_v47  ;;  %6390 = vmatmul.mubr.msk.f32.gmra.mrb[82].mxu0 %vm1505_vm11, %v9648_v8 }
 0x8c1   :  { %v7556_v49 = vpop.eup %7555  ;;  %v3922_v44 = vadd.f32 1.0, %v7554_v34  ;;  %7575 = vtanh.f32 %v3771_v19  ;;  %v6703_v45 = vpack.c.bf16 %v3991_v43, %v3983_v42  ;;  %4205 = vmatprep.mubr.f32.mxu0 %v10396_v25 }
 0x8c2   :  { %v7558_v3 = vpop.eup %7557  ;;  %7577 = vrcp.f32 %v3933_v46 }
 0x8c3   :  { %v7560_v54 = vpop.eup %7559  ;;  %7579 = vrcp.f32 %v3922_v44  ;;  %6704 = vmatprep.subr.bf16.mxu1 %v6703_v45  ;;  %v3988_v55 = vmul.f32 %v7558_v3, %v7556_v49 }
 0x8c4   :  { %v7562_v40 = vpop.eup %7561  ;;  %v3923_v62 = vadd.f32 1.0, %v7560_v54  ;;  %6706 = vmatpush1.bf16.msra.mxu1 %v6705_v1  ;;  %6391 = vmatmul.mubr.msk.f32.gmra.mrb[28].mxu0 %vm1505_vm11, %v9657_v13  ;;  %7581 = vtanh.f32 %v3773_v36 }
 0x8c5   :  { %v7564_v0 = vpop.eup %7563  ;;  %4211 = vmatprep.mubr.f32.mxu0 %v10396_v25 }
 0x8c6   :  { %v7566_v59 = vpop.eup %7565  ;;  %7583 = vrcp.f32 %v3923_v62  ;;  %v3930_v27 = vadd.f32 1.0, %v7564_v0  ;;  %v9708_v0 = vpop.permute.xlu0 %4015 }
 0x8c7   :  { %v7568_v42 = vpop.eup %7567  ;;  %7585 = vtanh.f32 %v3777_v24  ;;  %6385 = vmatmul.mubr.msk.f32.vlgmr.msra.gmra.mrb[76].mxu1 %vm1505_vm11, %v9638_v12  ;;  %v3989_v15 = vmul.f32 %v7566_v59, %v7562_v40 }
 0x8c8   :  { %v7570_v35 = vpop.eup %7569  ;;  %7587 = vrcp.f32 %v3930_v27  ;;  %4110 = vmatprep.mubr.f32.mxu1 %v10396_v25  ;;  %6392 = vmatmul.mubr.msk.f32.gmra.mrb[30].mxu0 %vm1505_vm11, %v6380_v63 }
 0x8c9   :  { %v7572_v18 = vpop.eup %7571  ;;  %v3931_v50 = vadd.f32 1.0, %v7570_v35  ;;  %4371 = vmatprep.mubr.f32.mxu0 %v10396_v25  ;;  %7589 = vtanh.f32 %v3779_v61 }
 0x8ca   :  { %v7574_v32 = vpop.eup %7573  ;;  %v3996_v47 = vmul.f32 %v7572_v18, %v7568_v42 }
 0x8cb   :  { %v7576_v6 = vpop.eup %7575  ;;  %7591 = vrcp.f32 %v3931_v50  ;;  %6386 = vmatmul.mubr.msk.f32.gmra.mrb[78].mxu1 %vm1505_vm11, %v9648_v8 }
 0x8cc   :  { %v7578_v20 = vpop.eup %7577  ;;  %v6717_v22 = vpack.c.bf16 %v3996_v47, %v3988_v55  ;;  %4116 = vmatprep.mubr.f32.mxu1 %v10396_v25  ;;  %v4456_v47 = vpop.permute.xlu0 %4455 }
 0x8cd   :  { %v7580_v60 = vpop.eup %7579  ;;  %v3997_v38 = vmul.f32 %v7578_v20, %v7574_v32 }
 0x8ce   :  { %v3986_v19 = vmul.f32 %v7580_v60, %v7576_v6  ;;  %v7582_v4 = vpop.eup %7581 }
 0x8cf   :  { %v6715_v1 = vpack.c.bf16 %v3997_v38, %v3989_v15  ;;  %6387 = vmatmul.mubr.msk.f32.gmra.mrb[24].mxu1 %vm1505_vm11, %v9657_v13 }
 0x8d0   :  { %v7584_v39 = vpop.eup %7583  ;;  %4122 = vmatprep.mubr.f32.mxu1 %v10396_v25 }
 0x8d1   :  { %v7586_v43 = vpop.eup %7585  ;;  %6716 = vmatprep.subr.bf16.mxu0 %v6715_v1  ;;  %v3987_v34 = vmul.f32 %v7584_v39, %v7582_v4 }
 0x8d2   :  { %v7588_v46 = vpop.eup %7587  ;;  %6718 = vmatpush1.bf16.msra.mxu0 %v6717_v22 }
 0x8d3   :  { %6388 = vmatmul.mubr.msk.f32.gmra.mrb[26].mxu1 %vm1505_vm11, %v6380_v63  ;;  %v3994_v49 = vmul.f32 %v7588_v46, %v7586_v43  ;;  %v7590_v44 = vpop.eup %7589 }
 0x8d4   :  { %4282 = vmatprep.mubr.f32.mxu1 %v10396_v25 }
 0x8d5   :  { %v7592_v36 = vpop.eup %7591  ;;  %6397 = vmatmul.mubr.msk.f32.vlgmr.msra.gmra.mrb[84].mxu0 %vm1505_vm11, %v9638_v12  ;;  %v6713_v45 = vpack.c.bf16 %v3994_v49, %v3986_v19 }
 0x8d6   :  { %4377 = vmatprep.mubr.f32.mxu0 %v10396_v25  ;;  %v3995_v3 = vmul.f32 %v7592_v36, %v7590_v44 }
 0x8d8   :  { %v6711_v54 = vpack.c.bf16 %v3995_v3, %v3987_v34 }
 0x8d9   :  { %6398 = vmatmul.mubr.msk.f32.gmra.mrb[86].mxu0 %vm1505_vm11, %v9648_v8 }
 0x8da   :  { %6712 = vmatprep.subr.bf16.mxu1 %v6711_v54  ;;  %4383 = vmatprep.mubr.f32.mxu0 %v10396_v25 }
 0x8db   :  { %6714 = vmatpush1.bf16.msra.mxu1 %v6713_v45 }
 0x8dd   :  { %6399 = vmatmul.mubr.msk.f32.gmra.mrb[36].mxu0 %vm1505_vm11, %v9657_v13 }
 0x8de   :  { %6393 = vmatmul.mubr.msk.f32.vlgmr.msra.gmra.mrb[80].mxu1 %vm1505_vm11, %v9638_v12  ;;  %4389 = vmatprep.mubr.f32.mxu0 %v10396_v25  ;;  %v9703_v12 = vpop.permute.xlu1 %4010 }
 0x8df   :  { %4288 = vmatprep.mubr.f32.mxu1 %v10396_v25 }
 0x8e1   :  { %6400 = vmatmul.mubr.msk.f32.gmra.mrb[38].mxu0 %vm1505_vm11, %v6380_v63 }
 0x8e2   :  { %6394 = vmatmul.mubr.msk.f32.gmra.mrb[82].mxu1 %vm1505_vm11, %v9648_v8  ;;  %4927 = vmatprep.mubr.f32.mxu0 %v10396_v25  ;;  %v4451_v32 = vpop.permute.xlu1 %4450 }
 0x8e3   :  { %4294 = vmatprep.mubr.f32.mxu1 %v10396_v25 }
 0x8e6   :  { %6395 = vmatmul.mubr.msk.f32.gmra.mrb[32].mxu1 %vm1505_vm11, %v9657_v13 }
 0x8e7   :  { %4300 = vmatprep.mubr.f32.mxu1 %v10396_v25 }
 0x8ea   :  { %6396 = vmatmul.mubr.msk.f32.gmra.mrb[34].mxu1 %vm1505_vm11, %v6380_v63 }
 0x8eb   :  { %4838 = vmatprep.mubr.f32.mxu1 %v10396_v25 }
 0x98f   :  { %v4195_v24 = vpop.f32.mrb[80].mxu0 }
 0x990   :  { %v4196_v55 = vadd.f32 %v4195_v24, %v9703_v12  ;;  %v4197_v40 = vpop.f32.mrb[81].mxu0 }
 0x991   :  { %v4198_v8 = vadd.f32 %v4197_v40, %v9703_v12 }
 0x992   :  { %v4398_v62 = vadd.f32 %v4196_v55, %v9230_v28 }
 0x993   :  { %v4399_v13 = vadd.f32 %v4198_v8, %v9235_v21  ;;  %v4201_v59 = vpop.f32.mrb[82].mxu0 }
 0x994   :  { %v4202_v27 = vadd.f32 %v4201_v59, %v9708_v0  ;;  %v4203_v63 = vpop.f32.mrb[83].mxu0  ;;  %v4414_v42 = vmul.f32 0.70710677, %v4398_v62 }
 0x995   :  { %v4204_v61 = vadd.f32 %v4203_v63, %v9708_v0  ;;  %v4415_v35 = vmul.f32 0.70710677, %v4399_v13 }
 0x996   :  { %v4406_v15 = vadd.f32 %v4202_v27, %v9246_v57  ;;  %v9715_v6 = vadd.f32 %v4451_v32, %v4414_v42 }
 0x997   :  { %v4407_v18 = vadd.f32 %v4204_v61, %v9254_v41  ;;  %v9719_v22 = vadd.f32 %v4451_v32, %v4415_v35 }
 0x998   :  { %v4422_v50 = vmul.f32 0.70710677, %v4406_v15 }
 0x999   :  { %v4423_v28 = vmul.f32 0.70710677, %v4407_v18 }
 0x99a   :  { %v9717_v20 = vadd.f32 %v4456_v47, %v4422_v50  ;;  %v4106_v21 = vpop.f32.mrb[76].mxu1 }
 0x99b   :  { %v9721_v60 = vadd.f32 %v4456_v47, %v4423_v28  ;;  %v4107_v38 = vadd.f32 %v4106_v21, %v9703_v12  ;;  %v4108_v19 = vpop.f32.mrb[77].mxu1 }
 0x99c   :  { %v4109_v57 = vadd.f32 %v4108_v19, %v9703_v12  ;;  %v9727_v41 = vpack.i.bf16 %v9717_v20, %v9715_v6  ;;  %v6738_v4 = vpack.c.bf16 %v9717_v20, %v9715_v6 }
 0x99d   :  { %v4396_v1 = vadd.f32 %v4107_v38, %v9222_v51  ;;  %v7204_v39 = vpack.i.bf16 %v9721_v60, %v9719_v22  ;;  %v6736_v43 = vpack.c.bf16 %v9721_v60, %v9719_v22 }
 0x99e   :  { %v4397_v34 = vadd.f32 %v4109_v57, %v9226_v17  ;;  %v4112_v46 = vpop.f32.mrb[78].mxu1 }
 0x99f   :  { %v4113_v49 = vadd.f32 %v4112_v46, %v9708_v0  ;;  %v4114_v44 = vpop.f32.mrb[79].mxu1  ;;  %v4412_v45 = vmul.f32 0.70710677, %v4396_v1  ;;  %v4466_v1 = vpop.permute.xlu0 %4465 }
 0x9a0   :  { %v4115_v36 = vadd.f32 %v4114_v44, %v9708_v0  ;;  %v4413_v54 = vmul.f32 0.70710677, %v4397_v34 }
 0x9a1   :  { %v4404_v3 = vadd.f32 %v4113_v49, %v9232_v31  ;;  %v9741_v40 = vadd.f32 %v4451_v32, %v4412_v45 }
 0x9a2   :  { %v4405_v51 = vadd.f32 %v4115_v36, %v9237_v2  ;;  %v9745_v62 = vadd.f32 %v4451_v32, %v4413_v54 }
 0x9a3   :  { %v4420_v24 = vmul.f32 0.70710677, %v4404_v3 }
 0x9a4   :  { %v4421_v55 = vmul.f32 0.70710677, %v4405_v51 }
 0x9a5   :  { %v9743_v8 = vadd.f32 %v4456_v47, %v4420_v24 }
 0x9a6   :  { %v9747_v17 = vadd.f32 %v4456_v47, %v4421_v55 }
 0x9a7   :  { %v7189_v13 = vpack.i.bf16 %v9743_v8, %v9741_v40  ;;  %v6726_v59 = vpack.c.bf16 %v9743_v8, %v9741_v40 }
 0x9a8   :  { %v4373_v31 = vpop.f32.mrb[84].mxu0  ;;  %v7199_v2 = vpack.i.bf16 %v9747_v17, %v9745_v62  ;;  %v6724_v27 = vpack.c.bf16 %v9747_v17, %v9745_v62 }
 0x9a9   :  { %v4374_v63 = vadd.f32 %v4373_v31, %v9703_v12  ;;  %v4375_v61 = vpop.f32.mrb[85].mxu0  ;;  %7190 = vrot.lane.b32.xlu1 %v7189_v13, %s7713_s16 }
 0x9aa   :  { %v4376_v42 = vadd.f32 %v4375_v61, %v9703_v12  ;;  %7200 = vrot.lane.b32.xlu0 %v7199_v2, %s7713_s16 }
 0x9ab   :  { %v4402_v15 = vadd.f32 %v4374_v63, %v9307_v5  ;;  %v4461_v5 = vpop.permute.xlu1 %4460 }
 0x9ac   :  { %v4403_v35 = vadd.f32 %v4376_v42, %v9312_v16  ;;  %v4379_v18 = vpop.f32.mrb[86].mxu0 }
 0x9ad   :  { %v4380_v50 = vadd.f32 %v4379_v18, %v9708_v0  ;;  %v4381_v32 = vpop.f32.mrb[87].mxu0  ;;  %7195 = vrot.lane.b32.xlu1 %v9727_v41, %s7713_s16  ;;  %v4418_v28 = vmul.f32 0.70710677, %v4402_v15 }
 0x9ae   :  { %v4382_v47 = vadd.f32 %v4381_v32, %v9708_v0  ;;  %7205 = vrot.lane.b32.xlu0 %v7204_v39, %s7713_s16  ;;  %v4419_v38 = vmul.f32 0.70710677, %v4403_v35 }
 0x9af   :  { %v4410_v21 = vadd.f32 %v4380_v50, %v9323_v29  ;;  %v9772_v44 = vadd.f32 %v4461_v5, %v4418_v28  ;;  %v6407_v28 = vld [vmem:[%s10286_s10 + $0x60] sm:$0xff] }
 0x9b0   :  { %v4411_v19 = vadd.f32 %v4382_v47, %v9331_v9  ;;  %v9777_v29 = vadd.f32 %v4461_v5, %v4419_v38  ;;  %v6409_v38 = vld [vmem:[%s10286_s10 + $0x70] sm:$0xff] }
 0x9b1   :  { %v4426_v57 = vmul.f32 0.70710677, %v4410_v21  ;;  %v4284_v16 = vpop.f32.mrb[80].mxu1  ;;  %v6410_v21 = vld [vmem:[%s10286_s10 + $0x78] sm:$0xff] }
 0x9b2   :  { %v4427_v34 = vmul.f32 0.70710677, %v4411_v19  ;;  %v4285_v46 = vadd.f32 %v4284_v16, %v9703_v12  ;;  %v4286_v49 = vpop.f32.mrb[81].mxu1  ;;  %7210 = vrot.lane.b32.xlu0 %v7199_v2, %s7722_s0  ;;  %v1484_v19 = vld [vmem:[%s10288_s12 + $0x18] sm:$0xff]  ;;  %v6317_v16 = vld [vmem:[%s10288_s12 + $0x30] sm:$0xff] }
 0x9b3   :  { %v9774_v36 = vadd.f32 %v4466_v1, %v4426_v57  ;;  %v4287_v45 = vadd.f32 %v4286_v49, %v9703_v12  ;;  %v6318_v57 = vld [vmem:[%s10288_s12 + $0x38] sm:$0xff]  ;;  %v6449_v49 = vld [vmem:[%s10288_s12 + $0x70] sm:$0xff] }
 0x9b4   :  { %v9779_v3 = vadd.f32 %v4466_v1, %v4427_v34  ;;  %v4400_v9 = vadd.f32 %v4285_v46, %v9299_v23  ;;  %v6383_v34 = vld [vmem:[%s10288_s12 + $0x50] sm:$0xff]  ;;  %v6450_v46 = vld [vmem:[%s10288_s12 + $0x78] sm:$0xff] }
 0x9b5   :  { %v4401_v54 = vadd.f32 %v4287_v45, %v9303_v37  ;;  %v4290_v51 = vpop.f32.mrb[82].mxu1  ;;  %v7244_v24 = vpack.i.bf16 %v9774_v36, %v9772_v44  ;;  %v6764_v55 = vpack.c.bf16 %v9774_v36, %v9772_v44  ;;  %v5673_v45 = vld [vmem:[%s10290_s14 + $0x8] sm:$0xff] }
 0x9b6   :  { %v4291_v31 = vadd.f32 %v4290_v51, %v9708_v0  ;;  %v4292_v2 = vpop.f32.mrb[83].mxu1  ;;  %v7214_v12 = vpack.i.bf16 %v9779_v3, %v9777_v29  ;;  %7225 = vrot.lane.b32.xlu0 %v7204_v39, %s7722_s0  ;;  %v6762_v23 = vpack.c.bf16 %v9779_v3, %v9777_v29  ;;  %v4416_v37 = vmul.f32 0.70710677, %v4400_v9  ;;  %v5672_v9 = vld [vmem:[%s10290_s14] sm:$0xff]  ;;  %v6406_v29 = vld [vmem:[%s10285_s9 + $0x78] sm:$0xff] }
 0x9b7   :  { %v4293_v63 = vadd.f32 %v4292_v2, %v9708_v0  ;;  %v4417_v42 = vmul.f32 0.70710677, %v4401_v54  ;;  %v6015_v54 = vld [vmem:[%s10291_s15 + $0x8] sm:$0xff]  ;;  %v6014_v51 = vld [vmem:[%s10291_s15] sm:$0xff] }
 0x9b8   :  { %v4408_v61 = vadd.f32 %v4291_v31, %v9309_v14  ;;  %7215 = vrot.lane.b32.xlu1 %v7214_v12, %s7713_s16  ;;  %v9798_v50 = vadd.f32 %v4461_v5, %v4416_v37 }
 0x9b9   :  { %v4409_v15 = vadd.f32 %v4293_v63, %v9314_v52  ;;  %v9804_v0 = vadd.f32 %v4461_v5, %v4417_v42  ;;  %v1483_v5 = vld [vmem:[%s10288_s12 + $0x10] sm:$0xff] }
 0x9ba   :  { %v4424_v35 = vmul.f32 0.70710677, %v4408_v61  ;;  %7235 = vrot.lane.b32.xlu0 %v7189_v13, %s7722_s0 }
 0x9bb   :  { %v4425_v18 = vmul.f32 0.70710677, %v4409_v15 }
 0x9bc   :  { %v9800_v39 = vadd.f32 %v4466_v1, %v4424_v35  ;;  %7220 = vrot.lane.b32.xlu1 %v9727_v41, %s7722_s0  ;;  %v6408_v41 = vld [vmem:[%s10286_s10 + $0x68] sm:$0xff] }
 0x9bd   :  { %v9806_v32 = vadd.f32 %v4466_v1, %v4425_v18  ;;  %v6384_v1 = vld [vmem:[%s10288_s12 + $0x58] sm:$0xff] }
 0x9be   :  { %v7229_v14 = vpack.i.bf16 %v9800_v39, %v9798_v50  ;;  %v6752_v52 = vpack.c.bf16 %v9800_v39, %v9798_v50 }
 0x9bf   :  { %v7254_v13 = vpack.i.bf16 %v9806_v32, %v9804_v0  ;;  %v6750_v47 = vpack.c.bf16 %v9806_v32, %v9804_v0  ;;  %v6405_v32 = vld [vmem:[%s10285_s9 + $0x70] sm:$0xff] }
 0x9c0   :  { %7230 = vrot.lane.b32.xlu1 %v7229_v14, %s7722_s0 }
 0x9c1   :  { %7255 = vrot.lane.b32.xlu0 %v7254_v13, %s7713_s16 }
 0x9c4   :  { %7240 = vrot.lane.b32.xlu1 %v7229_v14, %s7713_s16 }
 0x9c5   :  { %7260 = vrot.lane.b32.xlu0 %v7254_v13, %s7722_s0 }
 0x9c8   :  { %7245 = vrot.lane.b32.xlu1 %v7244_v24, %s7713_s16 }
 0x9c9   :  { %7265 = vrot.lane.b32.xlu0 %v7214_v12, %s7722_s0 }
 0x9cc   :  { %7250 = vrot.lane.b32.xlu1 %v7244_v24, %s7722_s0  ;;  %v6098_v24 = vld [vmem:[#allocation5] sm:$0x1] }
 0x9cd   :  { %4749 = vperm.xlu0 %6948, %v6408_v41  }
 0x9d0   :  { %4744 = vperm.xlu1 %6937, %v6407_v28  }
 0x9d1   :  { %4759 = vperm.xlu0 %6948, %v6410_v21  }
 0x9d4   :  { %4754 = vperm.xlu1 %6937, %v6409_v38  }
 0x9d5   :  { %1502 = vperm.xlu0 %6948, %v1484_v19  }
 0x9d8   :  { %1497 = vperm.xlu1 %6937, %v1483_v5  }
 0x9d9   :  { %2765 = vperm.xlu0 %6948, %v6318_v57  }
 0x9dc   :  { %2760 = vperm.xlu1 %6937, %v6317_v16  }
 0x9dd   :  { %4025 = vperm.xlu0 %6948, %v6384_v1  }
 0x9e0   :  { %4020 = vperm.xlu1 %6937, %v6383_v34  }
 0x9e1   :  { %5283 = vperm.xlu0 %6948, %v6450_v46  }
 0x9e4   :  { %5278 = vperm.xlu1 %6937, %v6449_v49  }
 0x9e5   :  { %5681 = vperm.xlu0 %6948, %v5673_v45  }
 0x9e8   :  { %5676 = vperm.xlu1 %6937, %v5672_v9  }
 0x9e9   :  { %6023 = vperm.xlu0 %6948, %v6015_v54  }
 0x9ec   :  { %6018 = vperm.xlu1 %6937, %v6014_v51  }
 0x9f0   :  { %6101 = vperm.xlu1 %6937, %v6098_v24  }
 0xa1b   :  { %v7191_v31 = vpop.permute.xlu1 %7190 }
 0xa1c   :  { %v7193_v2 = vunpack.i.h.bf16 %v7191_v31  ;;  %v7192_v12 = vunpack.i.l.bf16 %v7191_v31  ;;  %v7201_v63 = vpop.permute.xlu0 %7200 }
 0xa1d   :  { %v7203_v37 = vunpack.i.h.bf16 %v7201_v63  ;;  %v7202_v61 = vunpack.i.l.bf16 %v7201_v63 }
 0xa1f   :  { %v7196_v42 = vpop.permute.xlu1 %7195  ;;  %v4544_v15 = vsel %vm10463_vm1, %v7192_v12, %v7202_v61  ;;  %v4545_v35 = vsel %vm10464_vm3, %v7193_v2, %v7203_v37  ;;  %vm10471_vm1 = vmpackc.low %vm8880_vm8, %vm8880_vm8 }
 0xa20   :  { %v7198_v18 = vunpack.i.h.bf16 %v7196_v42  ;;  %v7197_v14 = vunpack.i.l.bf16 %v7196_v42  ;;  %v9875_v13 = vpop.permute.xlu0 %7205  ;;  %v6719_v41 = vpack.c.bf16 %v4545_v35, %v4544_v15  ;;  %vm10473_vm8 = vmpackc.low %vm8916_vm12, %vm8916_vm12 }
 0xa21   :  { %v7208_v28 = vunpack.i.h.bf16 %v9875_v13  ;;  %v7207_v21 = vunpack.i.l.bf16 %v9875_v13  ;;  %vm10474_vm3 = vmmov %vm10470_vm0 }
 0xa22   :  { %v4543_v38 = vsel %vm10465_vm4, %v7203_v37, %v7198_v18  ;;  %v4542_v19 = vsel %vm10466_vm5, %v7202_v61, %v7197_v14  ;;  %6720 = vmatprep.subr.bf16.mxu1 %v6719_v41  ;;  %vm10475_vm4 = vmmov %vm10470_vm0 }
 0xa23   :  { %v4540_v5 = vsel %vm10467_vm7, %v7197_v14, %v7207_v21  ;;  %v4541_v57 = vsel %vm10468_vm13, %v7198_v18, %v7208_v28  ;;  %v6734_v34 = vpack.c.bf16 %v4543_v38, %v4542_v19  ;;  %vm10476_vm5 = vmmov %vm10470_vm0 }
 0xa24   :  { %v7211_v16 = vpop.permute.xlu0 %7210  ;;  %v6732_v1 = vpack.c.bf16 %v4541_v57, %v4540_v5  ;;  %vm10477_vm12 = vmmov %vm10470_vm0 }
 0xa25   :  { %v7213_v6 = vunpack.i.h.bf16 %v7211_v16  ;;  %v7212_v20 = vunpack.i.l.bf16 %v7211_v16  ;;  %vm10478_vm7 = vmmov %vm10470_vm0 }
 0xa26   :  { %6733 = vmatprep.subr.bf16.mxu0 %v6732_v1  ;;  %vm10479_vm13 = vmmov %vm10470_vm0 }
 0xa27   :  { %6735 = vmatpush1.bf16.msra.mxu0 %v6734_v34 }
 0xa28   :  { %v7226_v46 = vpop.permute.xlu0 %7225  ;;  %6737 = vmatprep.subr.bf16.mxu0 %v6736_v43 }
 0xa29   :  { %v7228_v37 = vunpack.i.h.bf16 %v7226_v46  ;;  %v7227_v61 = vunpack.i.l.bf16 %v7226_v46 }
 0xa2a   :  { %v9890_v49 = vpop.permute.xlu1 %7215 }
 0xa2b   :  { %v7218_v45 = vunpack.i.h.bf16 %v9890_v49  ;;  %v7217_v9 = vunpack.i.l.bf16 %v9890_v49  ;;  %6739 = vmatpush1.bf16.msra.mxu0 %v6738_v4 }
 0xa2c   :  { %v9897_v54 = vpop.permute.xlu0 %7235 }
 0xa2d   :  { %v4547_v51 = vsel %vm10469_vm2, %v7218_v45, %v7193_v2  ;;  %v4546_v22 = vsel %vm10470_vm0, %v7217_v9, %v7192_v12  ;;  %v7238_v60 = vunpack.i.h.bf16 %v9897_v54  ;;  %v7237_v43 = vunpack.i.l.bf16 %v9897_v54  ;;  %vm10480_vm2 = vmmov %vm10470_vm0 }
 0xa2e   :  { %v6721_v24 = vpack.c.bf16 %v4547_v51, %v4546_v22  ;;  %v7221_v31 = vpop.permute.xlu1 %7220  ;;  %vm10482_vm0 = vmpackc.low %vm8968_vm14, %vm8968_vm14 }
 0xa2f   :  { %v7223_v4 = vunpack.i.h.bf16 %v7221_v31  ;;  %v7222_v63 = vunpack.i.l.bf16 %v7221_v31  ;;  %v4640_v2 = vsel %vm2107_vm10, %v7237_v43, %v7212_v20  ;;  %v4641_v12 = vsel %vm2107_vm10, %v7238_v60, %v7213_v6  ;;  %v9960_v31 = vld [vmem:[%s10285_s9 + $0x60] sm:$0xff] }
 0xa30   :  { %6723 = vmatpush1.bf16.msk.msra.mxu1 %vm10471_vm1, %v6721_v24  ;;  %v6730_v13 = vpack.c.bf16 %v4641_v12, %v4640_v2  ;;  %vm10483_vm1 = vmmov %vm10480_vm2 }
 0xa31   :  { %6725 = vmatprep.subr.bf16.mxu1 %v6724_v27  ;;  %v4638_v42 = vsel %vm2107_vm10, %v7212_v20, %v7222_v63  ;;  %v4639_v33 = vsel %vm2107_vm10, %v7213_v6, %v7223_v4  ;;  %v4637_v18 = vsel %vm2107_vm10, %v7223_v4, %v7228_v37  ;;  %v4636_v14 = vsel %vm2107_vm10, %v7222_v63, %v7227_v61 }
 0xa32   :  { %v9929_v15 = vpop.permute.xlu1 %7230  ;;  %v6728_v62 = vpack.c.bf16 %v4639_v33, %v4638_v42  ;;  %v6743_v1 = vpack.c.bf16 %v4637_v18, %v4636_v14  ;;  %v6404_v33 = vld [vmem:[%s10285_s9 + $0x68] sm:$0xff] }
 0xa33   :  { %v7233_v17 = vunpack.i.h.bf16 %v9929_v15  ;;  %v7232_v27 = vunpack.i.l.bf16 %v9929_v15  ;;  %v7256_v35 = vpop.permute.xlu0 %7255 }
 0xa34   :  { %6727 = vmatpush1.bf16.msra.mxu1 %v6726_v59  ;;  %v7257_v19 = vunpack.i.l.bf16 %v7256_v35  ;;  %v7258_v57 = vunpack.i.h.bf16 %v7256_v35 }
 0xa35   :  { %v4635_v41 = vsel %vm2107_vm10, %v7228_v37, %v7233_v17  ;;  %v4634_v38 = vsel %vm2107_vm10, %v7227_v61, %v7232_v27  ;;  %6729 = vmatprep.subr.bf16.mxu1 %v6728_v62 }
 0xa36   :  { %v6740_v5 = vpack.c.bf16 %v4635_v41, %v4634_v38  ;;  %v7241_v16 = vpop.permute.xlu1 %7240 }
 0xa37   :  { %v7243_v34 = vunpack.i.h.bf16 %v7241_v16  ;;  %v7242_v46 = vunpack.i.l.bf16 %v7241_v16  ;;  %v7261_v51 = vpop.permute.xlu0 %7260 }
 0xa38   :  { %6731 = vmatpush1.bf16.msra.mxu1 %v6730_v13  ;;  %6742 = vmatprep.subr.msk.bf16.mxu0 %vm10473_vm8, %v6740_v5  ;;  %v7263_v61 = vunpack.i.h.bf16 %v7261_v51  ;;  %v7262_v2 = vunpack.i.l.bf16 %v7261_v51 }
 0xa39   :  { %v4539_v40 = vsel %vm10474_vm3, %v7208_v28, %v7243_v34  ;;  %v4538_v8 = vsel %vm10475_vm4, %v7207_v21, %v7242_v46  ;;  %4786 = vmatprep.subr.mxu1 %v8390_v30  ;;  %6744 = vmatpush1.bf16.msra.mxu0 %v6743_v1  ;;  %v4536_v59 = vsel %vm10476_vm5, %v7242_v46, %v7257_v19 }
 0xa3a   :  { %v7246_v24 = vpop.permute.xlu1 %7245  ;;  %4875 = vmatprep.subr.mxu0 %v8392_v48  ;;  %v4537_v28 = vsel %vm10477_vm12, %v7243_v34, %v7258_v57  ;;  %v6747_v30 = vpack.c.bf16 %v4539_v40, %v4538_v8  ;;  %v4632_v49 = vsel %vm2107_vm10, %v7232_v27, %v7262_v2 }
 0xa3b   :  { %v7248_v6 = vunpack.i.h.bf16 %v7246_v24  ;;  %v7247_v20 = vunpack.i.l.bf16 %v7246_v24  ;;  %v6745_v21 = vpack.c.bf16 %v4537_v28, %v4536_v59  ;;  %v7266_v4 = vpop.permute.xlu0 %7265 }
 0xa3c   :  { %4787 = vmatpush1.msra.mxu1 %v8402_v10  ;;  %v7268_v10 = vunpack.i.h.bf16 %v7266_v4  ;;  %v7267_v12 = vunpack.i.l.bf16 %v7266_v4 }
 0xa3d   :  { %v4535_v63 = vsel %vm10478_vm7, %v7258_v57, %v7248_v6  ;;  %v4534_v48 = vsel %vm10479_vm13, %v7257_v19, %v7247_v20  ;;  %6411 = vmatmul.mubr.msk.f32.vlgmr.msra.gmra.mrb[84].mxu1 %vm980_vm6, %v9960_v31  ;;  %4876 = vmatpush1.msra.mxu0 %v8405_v7  ;;  %v4532_v37 = vsel %vm10480_vm2, %v7247_v20, %v7217_v9 }
 0xa3e   :  { %6746 = vmatprep.subr.bf16.mxu1 %v6745_v21  ;;  %v7251_v42 = vpop.permute.xlu1 %7250  ;;  %6415 = vmatmul.mubr.msk.f32.vlgmr.msra.gmra.mrb[88].mxu0 %vm980_vm6, %v9960_v31  ;;  %v6760_v15 = vpack.c.bf16 %v4535_v63, %v4534_v48  ;;  %v4533_v9 = vsel %vm10483_vm1, %v7248_v6, %v7218_v45  ;;  %v4633_v45 = vsel %vm2107_vm10, %v7233_v17, %v7263_v61 }
 0xa3f   :  { %v7253_v7 = vunpack.i.h.bf16 %v7251_v42  ;;  %v7252_v62 = vunpack.i.l.bf16 %v7251_v42  ;;  %6749 = vmatpush1.bf16.msk.msra.mxu1 %vm10482_vm0, %v6747_v30  ;;  %4844 = vmatprep.mubr.f32.mxu1 %v10396_v25  ;;  %v6758_v18 = vpack.c.bf16 %v4533_v9, %v4532_v37  ;;  %v4643_v27 = vsel %vm2107_vm10, %v7268_v10, %v7238_v60 }
 0xa40   :  { %6751 = vmatprep.subr.bf16.mxu1 %v6750_v47  ;;  %4933 = vmatprep.mubr.f32.mxu0 %v10396_v25  ;;  %v4642_v47 = vsel %vm2107_vm10, %v7267_v12, %v7237_v43  ;;  %v6756_v17 = vpack.c.bf16 %v4633_v45, %v4632_v49 }
 0xa41   :  { %6412 = vmatmul.mubr.msk.f32.gmra.mrb[86].mxu1 %vm980_vm6, %v6404_v33  ;;  %v4630_v14 = vsel %vm2107_vm10, %v7262_v2, %v7252_v62  ;;  %v4631_v13 = vsel %vm2107_vm10, %v7263_v61, %v7253_v7  ;;  %6759 = vmatprep.subr.bf16.mxu0 %v6758_v18  ;;  %v6766_v43 = vpack.c.bf16 %v4643_v27, %v4642_v47 }
 0xa42   :  { %6416 = vmatmul.mubr.msk.f32.gmra.mrb[90].mxu0 %vm980_vm6, %v6404_v33  ;;  %v6754_v0 = vpack.c.bf16 %v4631_v13, %v4630_v14  ;;  %4850 = vmatprep.mubr.f32.mxu1 %v10396_v25  ;;  %v4629_v54 = vsel %vm2107_vm10, %v7253_v7, %v7268_v10  ;;  %v4628_v60 = vsel %vm2107_vm10, %v7252_v62, %v7267_v12 }
 0xa43   :  { %6761 = vmatpush1.bf16.msra.mxu0 %v6760_v15  ;;  %6753 = vmatpush1.bf16.msra.mxu1 %v6752_v52  ;;  %v6769_v11 = vpack.c.bf16 %v4629_v54, %v4628_v60 }
 0xa44   :  { %6763 = vmatprep.subr.bf16.mxu0 %v6762_v23  ;;  %6755 = vmatprep.subr.bf16.mxu1 %v6754_v0 }
 0xa45   :  { %6413 = vmatmul.mubr.msk.f32.gmra.mrb[88].mxu1 %vm980_vm6, %v6405_v32  ;;  %4939 = vmatprep.mubr.f32.mxu0 %v10396_v25 }
 0xa46   :  { %4856 = vmatprep.mubr.f32.mxu1 %v10396_v25  ;;  %6417 = vmatmul.mubr.msk.f32.gmra.mrb[92].mxu0 %vm980_vm6, %v6405_v32 }
 0xa47   :  { %6765 = vmatpush1.bf16.msra.mxu0 %v6764_v55  ;;  %6757 = vmatpush1.bf16.msra.mxu1 %v6756_v17 }
 0xa48   :  { %6768 = vmatprep.subr.msk.bf16.mxu0 %vm6631_vm15, %v6766_v43  ;;  %4964 = vmatprep.subr.mxu1 %v8499_v26 }
 0xa49   :  { %6414 = vmatmul.mubr.msk.f32.gmra.mrb[90].mxu1 %vm980_vm6, %v6406_v29  ;;  %4945 = vmatprep.mubr.f32.mxu0 %v10396_v25 }
 0xa4a   :  { %5016 = vmatprep.mubr.f32.mxu1 %v10396_v25  ;;  %6418 = vmatmul.mubr.msk.f32.gmra.mrb[94].mxu0 %vm980_vm6, %v6406_v29 }
 0xa4b   :  { %6770 = vmatpush1.bf16.msra.mxu0 %v6769_v11  ;;  %4965 = vmatpush1.msra.mxu1 %v8512_v53 }
 0xa4c   :  { %5053 = vmatprep.subr.mxu0 %v8501_v58  ;;  %5105 = vmatprep.mubr.f32.mxu0 %v10396_v25  ;;  %v10075_v52 = vpop.permute.xlu0 %4749 }
 0xa4d   :  { %6419 = vmatmul.mubr.msk.f32.vlgmr.msra.gmra.mrb[92].mxu1 %vm980_vm6, %v9960_v31 }
 0xa4e   :  { %5022 = vmatprep.mubr.f32.mxu1 %v10396_v25 }
 0xa4f   :  { %5054 = vmatpush1.msra.mxu0 %v8514_v56  ;;  %v10069_v26 = vpop.permute.xlu1 %4744 }
 0xa50   :  { %6423 = vmatmul.mubr.msk.f32.vlgmr.msra.gmra.mrb[96].mxu0 %vm980_vm6, %v9960_v31  ;;  %v10085_v4 = vpop.permute.xlu0 %4759 }
 0xa51   :  { %6420 = vmatmul.mubr.msk.f32.gmra.mrb[94].mxu1 %vm980_vm6, %v6404_v33  ;;  %5111 = vmatprep.mubr.f32.mxu0 %v10396_v25 }
 0xa52   :  { %5028 = vmatprep.mubr.f32.mxu1 %v10396_v25 }
 0xa53   :  { %v10081_v8 = vpop.permute.xlu1 %4754 }
 0xa54   :  { %6424 = vmatmul.mubr.msk.f32.gmra.mrb[98].mxu0 %vm980_vm6, %v6404_v33 }
 0xa55   :  { %6421 = vmatmul.mubr.msk.f32.gmra.mrb[96].mxu1 %vm980_vm6, %v6405_v32  ;;  %5117 = vmatprep.mubr.f32.mxu0 %v10396_v25 }
 0xa56   :  { %5034 = vmatprep.mubr.f32.mxu1 %v10396_v25 }
 0xa58   :  { %6425 = vmatmul.mubr.msk.f32.gmra.mrb[100].mxu0 %vm980_vm6, %v6405_v32 }
 0xa59   :  { %6422 = vmatmul.mubr.msk.f32.gmra.mrb[98].mxu1 %vm980_vm6, %v6406_v29  ;;  %5123 = vmatprep.mubr.f32.mxu0 %v10396_v25 }
 0xa5a   :  { %5362 = vmatprep.mubr.f32.mxu1 %v10396_v25 }
 0xa5c   :  { %6426 = vmatmul.mubr.msk.f32.gmra.mrb[102].mxu0 %vm980_vm6, %v6406_v29 }
 0xa5d   :  { %5447 = vmatprep.mubr.f32.mxu0 %v10396_v25 }
 0xb10   :  { %v4840_v58 = vpop.f32.mrb[84].mxu1 }
 0xb11   :  { %v4841_v53 = vadd.f32 %v4840_v58, %v10069_v26  ;;  %v4842_v56 = vpop.f32.mrb[85].mxu1  ;;  %v4929_v44 = vpop.f32.mrb[88].mxu0 }
 0xb12   :  { %v4843_v36 = vadd.f32 %v4842_v56, %v10069_v26  ;;  %v4930_v55 = vadd.f32 %v4929_v44, %v10069_v26  ;;  %v4931_v23 = vpop.f32.mrb[89].mxu0 }
 0xb13   :  { %v6427_v50 = vmul.f32 -1.442695, %v4841_v53  ;;  %v4932_v39 = vadd.f32 %v4931_v23, %v10069_v26 }
 0xb14   :  { %v6428_v41 = vmul.f32 -1.442695, %v4843_v36  ;;  %v6429_v38 = vmul.f32 -1.442695, %v4930_v55  ;;  %v4846_v19 = vpop.f32.mrb[86].mxu1 }
 0xb15   :  { %7593 = vpow2.f32 %v6427_v50  ;;  %v6430_v5 = vmul.f32 -1.442695, %v4932_v39  ;;  %v4847_v57 = vadd.f32 %v4846_v19, %v10075_v52  ;;  %v4848_v16 = vpop.f32.mrb[87].mxu1  ;;  %v4935_v1 = vpop.f32.mrb[90].mxu0 }
 0xb16   :  { %7595 = vpow2.f32 %v6428_v41  ;;  %v4849_v34 = vadd.f32 %v4848_v16, %v10075_v52  ;;  %v4936_v46 = vadd.f32 %v4935_v1, %v10075_v52  ;;  %v4937_v51 = vpop.f32.mrb[91].mxu0 }
 0xb17   :  { %7597 = vpow2.f32 %v6429_v38  ;;  %v6435_v22 = vmul.f32 -1.442695, %v4847_v57  ;;  %v4938_v40 = vadd.f32 %v4937_v51, %v10075_v52 }
 0xb18   :  { %7599 = vpow2.f32 %v6430_v5  ;;  %v6436_v59 = vmul.f32 -1.442695, %v4849_v34  ;;  %v6437_v24 = vmul.f32 -1.442695, %v4936_v46  ;;  %v4852_v31 = vpop.f32.mrb[88].mxu1 }
 0xb19   :  { %7601 = vpow2.f32 %v6435_v22  ;;  %v6438_v28 = vmul.f32 -1.442695, %v4938_v40  ;;  %v4853_v6 = vadd.f32 %v4852_v31, %v10081_v8  ;;  %v4854_v20 = vpop.f32.mrb[89].mxu1  ;;  %v4941_v30 = vpop.f32.mrb[92].mxu0 }
 0xb1a   :  { %7603 = vpow2.f32 %v6436_v59  ;;  %v4855_v21 = vadd.f32 %v4854_v20, %v10081_v8  ;;  %v4942_v63 = vadd.f32 %v4941_v30, %v10081_v8  ;;  %v4943_v48 = vpop.f32.mrb[93].mxu0 }
 0xb1b   :  { %7605 = vpow2.f32 %v6437_v24  ;;  %v4944_v61 = vadd.f32 %v4943_v48, %v10081_v8 }
 0xb1c   :  { %7607 = vpow2.f32 %v6438_v28  ;;  %v4858_v37 = vpop.f32.mrb[90].mxu1 }
 0xb1d   :  { %7609 = vtanh.f32 %v4853_v6  ;;  %v4859_v2 = vadd.f32 %v4858_v37, %v10085_v4  ;;  %v4860_v10 = vpop.f32.mrb[91].mxu1  ;;  %v4947_v42 = vpop.f32.mrb[94].mxu0 }
 0xb1e   :  { %7611 = vtanh.f32 %v4855_v21  ;;  %v4949_v7 = vpop.f32.mrb[95].mxu0  ;;  %v4861_v58 = vadd.f32 %v4860_v10, %v10085_v4  ;;  %v4948_v36 = vadd.f32 %v4947_v42, %v10085_v4 }
 0xb1f   :  { %v7594_v12 = vpop.eup %7593  ;;  %7613 = vtanh.f32 %v4942_v63  ;;  %v4950_v39 = vadd.f32 %v4949_v7, %v10085_v4 }
 0xb20   :  { %v7596_v33 = vpop.eup %7595  ;;  %v5178_v15 = vadd.f32 1.0, %v7594_v12  ;;  %7615 = vtanh.f32 %v4944_v61  ;;  %v5018_v62 = vpop.f32.mrb[92].mxu1 }
 0xb21   :  { %v7598_v35 = vpop.eup %7597  ;;  %v5179_v9 = vadd.f32 1.0, %v7596_v33  ;;  %7617 = vtanh.f32 %v4859_v2  ;;  %v5020_v18 = vpop.f32.mrb[93].mxu1  ;;  %v5019_v60 = vadd.f32 %v5018_v62, %v10069_v26 }
 0xb22   :  { %v7600_v14 = vpop.eup %7599  ;;  %7619 = vrcp.f32 %v5178_v15  ;;  %v5180_v13 = vadd.f32 1.0, %v7598_v35  ;;  %v5021_v53 = vadd.f32 %v5020_v18, %v10069_v26 }
 0xb23   :  { %v7602_v49 = vpop.eup %7601  ;;  %7621 = vrcp.f32 %v5179_v9  ;;  %v5181_v45 = vadd.f32 1.0, %v7600_v14  ;;  %v5107_v0 = vpop.f32.mrb[96].mxu0  ;;  %v6431_v57 = vmul.f32 -1.442695, %v5019_v60 }
 0xb24   :  { %v7604_v32 = vpop.eup %7603  ;;  %7623 = vrcp.f32 %v5180_v13  ;;  %v5186_v47 = vadd.f32 1.0, %v7602_v49  ;;  %v5109_v27 = vpop.f32.mrb[97].mxu0  ;;  %v5108_v55 = vadd.f32 %v5107_v0, %v10069_v26  ;;  %v6432_v46 = vmul.f32 -1.442695, %v5021_v53 }
 0xb25   :  { %v5024_v17 = vpop.f32.mrb[94].mxu1  ;;  %v7606_v43 = vpop.eup %7605  ;;  %7625 = vrcp.f32 %v5181_v45  ;;  %v5187_v54 = vadd.f32 1.0, %v7604_v32  ;;  %v5110_v41 = vadd.f32 %v5109_v27, %v10069_v26 }
 0xb26   :  { %v5026_v29 = vpop.f32.mrb[95].mxu1  ;;  %v7608_v3 = vpop.eup %7607  ;;  %7627 = vrcp.f32 %v5186_v47  ;;  %v5188_v11 = vadd.f32 1.0, %v7606_v43  ;;  %v5025_v16 = vadd.f32 %v5024_v17, %v10075_v52  ;;  %v6433_v40 = vmul.f32 -1.442695, %v5108_v55 }
 0xb27   :  { %v7610_v56 = vpop.eup %7609  ;;  %7629 = vrcp.f32 %v5187_v54  ;;  %v5189_v44 = vadd.f32 1.0, %v7608_v3  ;;  %v5113_v23 = vpop.f32.mrb[98].mxu0  ;;  %v5027_v51 = vadd.f32 %v5026_v29, %v10075_v52  ;;  %v6434_v31 = vmul.f32 -1.442695, %v5110_v41 }
 0xb28   :  { %v7612_v50 = vpop.eup %7611  ;;  %7631 = vrcp.f32 %v5188_v11  ;;  %v5115_v38 = vpop.f32.mrb[99].mxu0  ;;  %v5114_v59 = vadd.f32 %v5113_v23, %v10075_v52  ;;  %v6439_v30 = vmul.f32 -1.442695, %v5025_v16 }
 0xb29   :  { %v5030_v19 = vpop.f32.mrb[96].mxu1  ;;  %v7614_v5 = vpop.eup %7613  ;;  %7633 = vrcp.f32 %v5189_v44  ;;  %v5116_v28 = vadd.f32 %v5115_v38, %v10075_v52  ;;  %v6440_v61 = vmul.f32 -1.442695, %v5027_v51 }
 0xb2a   :  { %v5032_v1 = vpop.f32.mrb[97].mxu1  ;;  %v7616_v34 = vpop.eup %7615  ;;  %7635 = vtanh.f32 %v4861_v58  ;;  %v6441_v12 = vmul.f32 -1.442695, %v5114_v59  ;;  %v5031_v9 = vadd.f32 %v5030_v19, %v10081_v8 }
 0xb2b   :  { %v7618_v22 = vpop.eup %7617  ;;  %7637 = vtanh.f32 %v4948_v36  ;;  %v5119_v24 = vpop.f32.mrb[100].mxu0  ;;  %v6442_v52 = vmul.f32 -1.442695, %v5116_v28  ;;  %v5033_v13 = vadd.f32 %v5032_v1, %v10081_v8  ;;  %v6445_v28 = vld [vmem:[%s10287_s11 + $0x70] sm:$0xff] }
 0xb2c   :  { %v7620_v26 = vpop.eup %7619  ;;  %7639 = vtanh.f32 %v4950_v39  ;;  %v5121_v6 = vpop.f32.mrb[101].mxu0  ;;  %v5120_v45 = vadd.f32 %v5119_v24, %v10081_v8 }
 0xb2d   :  { %v5036_v20 = vpop.f32.mrb[98].mxu1  ;;  %v7622_v21 = vpop.eup %7621  ;;  %7641 = vpow2.f32 %v6431_v57  ;;  %v5242_v48 = vmul.f32 %v7620_v26, %v7610_v56  ;;  %v5122_v47 = vadd.f32 %v5121_v6, %v10081_v8 }
 0xb2e   :  { %v10101_v63 = vpop.f32.mrb[99].mxu1  ;;  %v7624_v37 = vpop.eup %7623  ;;  %7643 = vpow2.f32 %v6432_v46  ;;  %v5243_v2 = vmul.f32 %v7622_v21, %v7612_v50  ;;  %v5037_v17 = vadd.f32 %v5036_v20, %v10085_v4  ;;  %v10115_v50 = vld [vmem:[%s10287_s11 + $0x60] sm:$0xff]  ;;  %v10125_v46 = vld [vmem:[%s10287_s11 + $0x68] sm:$0xff] }
 0xb2f   :  { %v7626_v10 = vpop.eup %7625  ;;  %7645 = vpow2.f32 %v6433_v40  ;;  %v10103_v42 = vpop.f32.mrb[102].mxu0  ;;  %v5244_v33 = vmul.f32 %v7624_v37, %v7614_v5 }
 0xb30   :  { %v7628_v15 = vpop.eup %7627  ;;  %7647 = vpow2.f32 %v6434_v31  ;;  %v10105_v7 = vpop.f32.mrb[103].mxu0  ;;  %v5245_v62 = vmul.f32 %v7626_v10, %v7616_v34  ;;  %v5039_v34 = vadd.f32 %v10101_v63, %v10085_v4  ;;  %v5126_v40 = vadd.f32 %v10103_v42, %v10085_v4  ;;  %v6446_v63 = vld [vmem:[%s10287_s11 + $0x78] sm:$0xff] }
 0xb31   :  { %v7630_v35 = vpop.eup %7629  ;;  %7649 = vpow2.f32 %v6439_v30  ;;  %v5250_v18 = vmul.f32 %v7628_v15, %v7618_v22  ;;  %v5128_v24 = vadd.f32 %v10105_v7, %v10085_v4 }
 0xb32   :  { %v7632_v14 = vpop.eup %7631  ;;  %7651 = vpow2.f32 %v6440_v61 }
 0xb33   :  { %v7634_v49 = vpop.eup %7633  ;;  %7653 = vpow2.f32 %v6441_v12  ;;  %v6773_v0 = vpack.c.bf16 %v5250_v18, %v5242_v48 }
 0xb34   :  { %v7636_v32 = vpop.eup %7635  ;;  %7655 = vpow2.f32 %v6442_v52 }
 0xb35   :  { %v7638_v27 = vpop.eup %7637  ;;  %7657 = vtanh.f32 %v5031_v9  ;;  %v5251_v43 = vmul.f32 %v7636_v32, %v7630_v35  ;;  %v1503_v32 = vpop.permute.xlu0 %1502 }
 0xb36   :  { %v7640_v54 = vpop.eup %7639  ;;  %7659 = vtanh.f32 %v5033_v13  ;;  %v5252_v60 = vmul.f32 %v7638_v27, %v7632_v14 }
 0xb37   :  { %v7642_v29 = vpop.eup %7641  ;;  %7661 = vtanh.f32 %v5120_v45  ;;  %v6771_v3 = vpack.c.bf16 %v5251_v43, %v5243_v2  ;;  %v5253_v11 = vmul.f32 %v7640_v54, %v7634_v49 }
 0xb38   :  { %v7644_v58 = vpop.eup %7643  ;;  %v5182_v53 = vadd.f32 1.0, %v7642_v29  ;;  %7663 = vtanh.f32 %v5122_v47  ;;  %v6777_v56 = vpack.c.bf16 %v5252_v60, %v5244_v33 }
 0xb39   :  { %v7646_v44 = vpop.eup %7645  ;;  %v5183_v36 = vadd.f32 1.0, %v7644_v58  ;;  %7665 = vtanh.f32 %v5037_v17  ;;  %6772 = vmatprep.subr.bf16.mxu1 %v6771_v3  ;;  %v6775_v8 = vpack.c.bf16 %v5253_v11, %v5245_v62  ;;  %v2766_v27 = vpop.permute.xlu0 %2765 }
 0xb3a   :  { %v7648_v55 = vpop.eup %7647  ;;  %7667 = vrcp.f32 %v5182_v53  ;;  %v5184_v23 = vadd.f32 1.0, %v7646_v44  ;;  %6774 = vmatpush1.bf16.msra.mxu1 %v6773_v0  ;;  %v1498_v0 = vpop.permute.xlu1 %1497 }
 0xb3b   :  { %v7650_v39 = vpop.eup %7649  ;;  %7669 = vrcp.f32 %v5183_v36  ;;  %v5185_v41 = vadd.f32 1.0, %v7648_v55  ;;  %6776 = vmatprep.subr.bf16.mxu0 %v6775_v8  ;;  %v6811_v36 = vadd.f32 %v2766_v27, %v1503_v32 }
 0xb3c   :  { %v7652_v38 = vpop.eup %7651  ;;  %7671 = vrcp.f32 %v5184_v23  ;;  %v5190_v19 = vadd.f32 1.0, %v7650_v39  ;;  %6778 = vmatpush1.bf16.msra.mxu0 %v6777_v56 }
 0xb3d   :  { %v7654_v5 = vpop.eup %7653  ;;  %7673 = vrcp.f32 %v5185_v41  ;;  %v5191_v57 = vadd.f32 1.0, %v7652_v38  ;;  %6451 = vmatmul.mubr.msk.f32.vlgmr.msra.gmra.mrb[100].mxu1 %vm1505_vm11, %v10115_v50  ;;  %v4026_v60 = vpop.permute.xlu0 %4025 }
 0xb3e   :  { %v7656_v16 = vpop.eup %7655  ;;  %7675 = vrcp.f32 %v5190_v19  ;;  %v5192_v1 = vadd.f32 1.0, %v7654_v5  ;;  %5366 = vmatprep.mubr.f32.mxu1 %v10396_v25  ;;  %v2761_v47 = vpop.permute.xlu1 %2760  ;;  %v6812_v39 = vadd.f32 %v6811_v36, %v4026_v60 }
 0xb3f   :  { %v7658_v51 = vpop.eup %7657  ;;  %7677 = vrcp.f32 %v5191_v57  ;;  %v5193_v22 = vadd.f32 1.0, %v7656_v16  ;;  %6455 = vmatmul.mubr.msk.f32.vlgmr.msra.gmra.mrb[104].mxu0 %vm1505_vm11, %v10115_v50  ;;  %v6803_v58 = vadd.f32 %v2761_v47, %v1498_v0 }
 0xb40   :  { %v7660_v59 = vpop.eup %7659  ;;  %7679 = vrcp.f32 %v5192_v1  ;;  %5451 = vmatprep.mubr.f32.mxu0 %v10396_v25 }
 0xb41   :  { %v7662_v26 = vpop.eup %7661  ;;  %7681 = vrcp.f32 %v5193_v22  ;;  %6452 = vmatmul.mubr.msk.f32.gmra.mrb[102].mxu1 %vm1505_vm11, %v10125_v46  ;;  %v5284_v23 = vpop.permute.xlu0 %5283 }
 0xb42   :  { %v7664_v31 = vpop.eup %7663  ;;  %7683 = vtanh.f32 %v5039_v34  ;;  %5370 = vmatprep.mubr.f32.mxu1 %v10396_v25  ;;  %v4021_v17 = vpop.permute.xlu1 %4020  ;;  %v10174_v5 = vadd.f32 %v6812_v39, %v5284_v23 }
 0xb43   :  { %v7666_v6 = vpop.eup %7665  ;;  %7685 = vtanh.f32 %v5126_v40  ;;  %6456 = vmatmul.mubr.msk.f32.gmra.mrb[106].mxu0 %vm1505_vm11, %v10125_v46  ;;  %v6804_v8 = vadd.f32 %v6803_v58, %v4021_v17 }
 0xb44   :  { %v7668_v4 = vpop.eup %7667  ;;  %7687 = vtanh.f32 %v5128_v24  ;;  %5455 = vmatprep.mubr.f32.mxu0 %v10396_v25 }
 0xb45   :  { %v7670_v20 = vpop.eup %7669  ;;  %6453 = vmatmul.mubr.msk.f32.gmra.mrb[24].mxu1 %vm1505_vm11, %v6445_v28  ;;  %v5246_v21 = vmul.f32 %v7668_v4, %v7658_v51 }
 0xb46   :  { %v7672_v30 = vpop.eup %7671  ;;  %5376 = vmatprep.mubr.f32.mxu1 %v10396_v25  ;;  %v5247_v48 = vmul.f32 %v7670_v20, %v7660_v59  ;;  %v5279_v56 = vpop.permute.xlu1 %5278 }
 0xb47   :  { %v7674_v37 = vpop.eup %7673  ;;  %6457 = vmatmul.mubr.msk.f32.gmra.mrb[28].mxu0 %vm1505_vm11, %v6445_v28  ;;  %v5248_v61 = vmul.f32 %v7672_v30, %v7662_v26  ;;  %v6805_v41 = vadd.f32 %v6804_v8, %v5279_v56 }
 0xb48   :  { %v7676_v2 = vpop.eup %7675  ;;  %5461 = vmatprep.mubr.f32.mxu0 %v10396_v25  ;;  %v5249_v10 = vmul.f32 %v7674_v37, %v7664_v31 }
 0xb49   :  { %v7678_v12 = vpop.eup %7677  ;;  %6454 = vmatmul.mubr.msk.f32.gmra.mrb[26].mxu1 %vm1505_vm11, %v6446_v63  ;;  %v5254_v42 = vmul.f32 %v7676_v2, %v7666_v6 }
 0xb4a   :  { %v7680_v33 = vpop.eup %7679  ;;  %5532 = vmatprep.mubr.f32.mxu1 %v10396_v25 }
 0xb4b   :  { %v7682_v15 = vpop.eup %7681  ;;  %6458 = vmatmul.mubr.msk.f32.gmra.mrb[30].mxu0 %vm1505_vm11, %v6446_v63  ;;  %v6781_v52 = vpack.c.bf16 %v5254_v42, %v5246_v21  ;;  %v5670_v42 = vld [vmem:[%s10289_s13] sm:$0xff] }
 0xb4c   :  { %v7684_v7 = vpop.eup %7683  ;;  %5617 = vmatprep.mubr.f32.mxu0 %v10396_v25 }
 0xb4d   :  { %v7686_v62 = vpop.eup %7685  ;;  %v5255_v35 = vmul.f32 %v7684_v7, %v7678_v12 }
 0xb4e   :  { %v7688_v9 = vpop.eup %7687  ;;  %v5256_v18 = vmul.f32 %v7686_v62, %v7680_v33 }
 0xb4f   :  { %v6779_v14 = vpack.c.bf16 %v5255_v35, %v5247_v48  ;;  %v5257_v13 = vmul.f32 %v7688_v9, %v7682_v15 }
 0xb50   :  { %v6785_v49 = vpack.c.bf16 %v5256_v18, %v5248_v61 }
 0xb51   :  { %6780 = vmatprep.subr.bf16.mxu1 %v6779_v14  ;;  %v6783_v45 = vpack.c.bf16 %v5257_v13, %v5249_v10 }
 0xb52   :  { %6782 = vmatpush1.bf16.msra.mxu1 %v6781_v52  ;;  %v5671_v52 = vld [vmem:[%s10289_s13 + $0x8] sm:$0xff]  ;;  %s7724_s13 = smov [#allocation6]  }
 0xb53   :  { %6784 = vmatprep.subr.bf16.mxu0 %v6783_v45  ;;  %s6181_s26 = sshll.u32 %s7724_s13, 4  ;;  %s6182_s26 = int_to_ptr.vmem [resolvable:$true] %s6181_s26 }
 0xb54   :  { %6786 = vmatpush1.bf16.msra.mxu0 %v6785_v49  ;;  %s7689_s27 = scalar_lea.vmem %s6182_s26, 128  ;;  %p7694_p1 = scmp.lt.s32.totalorder %s6182_s26, %s6182_s26 }
 0xb55   :  { %6459 = vmatmul.mubr.msk.f32.vlgmr.msra.gmra.mrb[104].mxu1 %vm1505_vm11, %v10115_v50  ;;  %p7690_p0 = scmp.ne.s32.totalorder %s6182_s26, %s7689_s27  ;;  %p7695_p2 = scmp.lt.s32.totalorder %s7689_s27, %s7689_s27 }
 0xb56   :  { %5536 = vmatprep.mubr.f32.mxu1 %v10396_v25 }
 0xb57   :  { %6463 = vmatmul.mubr.msk.f32.vlgmr.msra.gmra.mrb[108].mxu0 %vm1505_vm11, %v10115_v50  ;;  %p7696_p3 = por %p7695_p2, %p7694_p1 }
 0xb58   :  { %5621 = vmatprep.mubr.f32.mxu0 %v10396_v25 }
 0xb59   :  { %6460 = vmatmul.mubr.msk.f32.gmra.mrb[106].mxu1 %vm1505_vm11, %v10125_v46  ;;  %p7697_p4 = pnand %p7696_p3, %p7690_p0 }
 0xb5a   :  { %5540 = vmatprep.mubr.f32.mxu1 %v10396_v25 }
 0xb5b   :  { %6464 = vmatmul.mubr.msk.f32.gmra.mrb[110].mxu0 %vm1505_vm11, %v10125_v46 }
 0xb5c   :  { %5625 = vmatprep.mubr.f32.mxu0 %v10396_v25 }
 0xb5d   :  { %6461 = vmatmul.mubr.msk.f32.gmra.mrb[32].mxu1 %vm1505_vm11, %v6445_v28 }
 0xb5e   :  { %5546 = vmatprep.mubr.f32.mxu1 %v10396_v25 }
 0xb5f   :  { %6465 = vmatmul.mubr.msk.f32.gmra.mrb[36].mxu0 %vm1505_vm11, %v6445_v28 }
 0xb60   :  { %5631 = vmatprep.mubr.f32.mxu0 %v10396_v25 }
 0xb61   :  { %6462 = vmatmul.mubr.msk.f32.gmra.mrb[34].mxu1 %vm1505_vm11, %v6446_v63 }
 0xb62   :  { %5754 = vmatprep.mubr.f32.mxu1 %v10396_v25 }
 0xb63   :  { %6466 = vmatmul.mubr.msk.f32.gmra.mrb[38].mxu0 %vm1505_vm11, %v6446_v63 }
 0xb64   :  { %5831 = vmatprep.mubr.f32.mxu0 %v10396_v25 }
 0xc10   :  { %v5364_v43 = vpop.f32.mrb[100].mxu1 }
 0xc11   :  { %v5365_v54 = vpop.f32.mrb[101].mxu1 }
 0xc12   :  { %v5449_v29 = vpop.f32.mrb[104].mxu0 }
 0xc13   :  { %v5450_v3 = vpop.f32.mrb[105].mxu0 }
 0xc14   :  { %v5368_v11 = vpop.f32.mrb[102].mxu1 }
 0xc15   :  { %v5369_v53 = vpop.f32.mrb[103].mxu1 }
 0xc16   :  { %v5453_v44 = vpop.f32.mrb[106].mxu0 }
 0xc17   :  { %v5454_v55 = vpop.f32.mrb[107].mxu0 }
 0xc18   :  { %v5372_v50 = vpop.f32.mrb[24].mxu1 }
 0xc19   :  { %v5374_v38 = vpop.f32.mrb[25].mxu1  ;;  %v6806_v57 = vadd.f32 %v6805_v41, %v5372_v50 }
 0xc1a   :  { %v5457_v19 = vpop.f32.mrb[28].mxu0  ;;  %v6810_v1 = vadd.f32 %v6805_v41, %v5374_v38 }
 0xc1b   :  { %v5459_v16 = vpop.f32.mrb[29].mxu0  ;;  %v6822_v46 = vadd.f32 %v6805_v41, %v5457_v19  ;;  %v5654_v26 = vmul.f32 0.5, %v6806_v57 }
 0xc1c   :  { %v5378_v34 = vpop.f32.mrb[26].mxu1  ;;  %v6826_v40 = vadd.f32 %v6805_v41, %v5459_v16  ;;  %v5655_v4 = vmul.f32 0.5, %v6810_v1 }
 0xc1d   :  { %v6814_v51 = vadd.f32 %v10174_v5, %v5378_v34  ;;  %v5380_v22 = vpop.f32.mrb[27].mxu1  ;;  %v5656_v30 = vmul.f32 0.5, %v6822_v46  ;;  %v10207_v46 = vpop.permute.xlu0 %5681 }
 0xc1e   :  { %v6818_v59 = vadd.f32 %v10174_v5, %v5380_v22  ;;  %v5463_v24 = vpop.f32.mrb[30].mxu0  ;;  %v5657_v37 = vmul.f32 0.5, %v6826_v40 }
 0xc1f   :  { %v5662_v31 = vmul.f32 0.5, %v6814_v51  ;;  %v6830_v28 = vadd.f32 %v10174_v5, %v5463_v24  ;;  %v5465_v6 = vpop.f32.mrb[31].mxu0 }
 0xc20   :  { %v5663_v20 = vmul.f32 0.5, %v6818_v59  ;;  %v6834_v21 = vadd.f32 %v10174_v5, %v5465_v6 }
 0xc21   :  { %v6789_v63 = vpack.c.bf16 %v5662_v31, %v5654_v26  ;;  %v5664_v48 = vmul.f32 0.5, %v6830_v28 }
 0xc22   :  { %v6787_v61 = vpack.c.bf16 %v5663_v20, %v5655_v4  ;;  %v5665_v2 = vmul.f32 0.5, %v6834_v21 }
 0xc23   :  { %v6793_v10 = vpack.c.bf16 %v5664_v48, %v5656_v30 }
 0xc24   :  { %v6791_v12 = vpack.c.bf16 %v5665_v2, %v5657_v37  ;;  %6788 = vmatprep.subr.bf16.mxu1 %v6787_v61  ;;  %v10215_v37 = vpop.permute.xlu0 %6023 }
 0xc25   :  { %6790 = vmatpush1.bf16.msra.mxu1 %v6789_v63 }
 0xc26   :  { %6792 = vmatprep.subr.bf16.mxu0 %v6791_v12 }
 0xc27   :  { %6794 = vmatpush1.bf16.msra.mxu0 %v6793_v10 }
 0xc28   :  { %v5534_v33 = vpop.f32.mrb[104].mxu1  ;;  %6467 = vmatmul.mubr.msk.f32.vlgmr.msra.gmra.mrb[108].mxu1 %vm1505_vm11, %v5670_v42 }
 0xc29   :  { %v5535_v15 = vpop.f32.mrb[105].mxu1  ;;  %5760 = vmatprep.mubr.f32.mxu1 %v10396_v25 }
 0xc2a   :  { %v5619_v7 = vpop.f32.mrb[108].mxu0  ;;  %6469 = vmatmul.mubr.msk.f32.vlgmr.msra.gmra.mrb[112].mxu0 %vm1505_vm11, %v5670_v42 }
 0xc2b   :  { %v5620_v62 = vpop.f32.mrb[109].mxu0  ;;  %5837 = vmatprep.mubr.f32.mxu0 %v10396_v25 }
 0xc2c   :  { %v5538_v35 = vpop.f32.mrb[106].mxu1  ;;  %6468 = vmatmul.mubr.msk.f32.gmra.mrb[110].mxu1 %vm1505_vm11, %v5671_v52 }
 0xc2d   :  { %v5539_v9 = vpop.f32.mrb[107].mxu1  ;;  %5908 = vmatprep.mubr.f32.mxu1 %v10396_v25 }
 0xc2e   :  { %v5623_v18 = vpop.f32.mrb[110].mxu0  ;;  %6470 = vmatmul.mubr.msk.f32.gmra.mrb[114].mxu0 %vm1505_vm11, %v5671_v52 }
 0xc2f   :  { %v5624_v14 = vpop.f32.mrb[111].mxu0  ;;  %5985 = vmatprep.mubr.f32.mxu0 %v10396_v25 }
 0xc30   :  { %v5542_v13 = vpop.f32.mrb[32].mxu1 }
 0xc31   :  { %v5544_v49 = vpop.f32.mrb[33].mxu1  ;;  %v6838_v0 = vadd.f32 %v6805_v41, %v5542_v13 }
 0xc32   :  { %v5627_v45 = vpop.f32.mrb[36].mxu0  ;;  %v6842_v47 = vadd.f32 %v6805_v41, %v5544_v49 }
 0xc33   :  { %v5629_v32 = vpop.f32.mrb[37].mxu0  ;;  %v6854_v17 = vadd.f32 %v6805_v41, %v5627_v45  ;;  %v5658_v11 = vmul.f32 0.5, %v6838_v0 }
 0xc34   :  { %v5548_v27 = vpop.f32.mrb[34].mxu1  ;;  %v6858_v60 = vadd.f32 %v6805_v41, %v5629_v32  ;;  %v5659_v44 = vmul.f32 0.5, %v6842_v47 }
 0xc35   :  { %v6846_v43 = vadd.f32 %v10174_v5, %v5548_v27  ;;  %v5550_v54 = vpop.f32.mrb[35].mxu1  ;;  %v5660_v55 = vmul.f32 0.5, %v6854_v17 }
 0xc36   :  { %v6850_v29 = vadd.f32 %v10174_v5, %v5550_v54  ;;  %v5633_v3 = vpop.f32.mrb[38].mxu0  ;;  %v5661_v39 = vmul.f32 0.5, %v6858_v60 }
 0xc37   :  { %v5666_v58 = vmul.f32 0.5, %v6846_v43  ;;  %v6862_v53 = vadd.f32 %v10174_v5, %v5633_v3  ;;  %v5635_v56 = vpop.f32.mrb[39].mxu0 }
 0xc38   :  { %v5667_v36 = vmul.f32 0.5, %v6850_v29  ;;  %v6866_v8 = vadd.f32 %v10174_v5, %v5635_v56  ;;  %v10204_v5 = vpop.permute.xlu1 %5676  ;;  %v7723_v56 = vmov 1966171168  }
 0xc39   :  { %v6797_v23 = vpack.c.bf16 %v5666_v58, %v5658_v11  ;;  %v5668_v50 = vmul.f32 0.5, %v6862_v53 }
 0xc3a   :  { %v6795_v38 = vpack.c.bf16 %v5667_v36, %v5659_v44  ;;  %v5669_v19 = vmul.f32 0.5, %v6866_v8  ;;  %v6129_v44 = vunpack.c.l.s4 %v7723_v56 }
 0xc3b   :  { %v6801_v57 = vpack.c.bf16 %v5668_v50, %v5660_v55 }
 0xc3c   :  { %v6799_v41 = vpack.c.bf16 %v5669_v19, %v5661_v39  ;;  %6796 = vmatprep.subr.bf16.mxu1 %v6795_v38  ;;  %v10217_v61 = vpop.permute.xlu1 %6018  ;;  %v10485_v19 = vld [vmem:[#allocation9_spill] sm:$0xff] }
 0xc3d   :  { %6798 = vmatpush1.bf16.msra.mxu1 %v6797_v23 }
 0xc3e   :  { %6800 = vmatprep.subr.bf16.mxu0 %v6799_v41 }
 0xc3f   :  { %6802 = vmatpush1.bf16.msra.mxu0 %v6801_v57  ;;  %v10486_v57 = vsub.s32 0, %v10485_v19 }
 0xc40   :  { %6471 = vmatmul.mubr.msk.f32.vlgmr.msra.gmra.mrb[112].mxu1 %vm1505_vm11, %v5670_v42  ;;  %v6102_v36 = vpop.permute.xlu1 %6101 }
 0xc41   :  { %5914 = vmatprep.mubr.f32.mxu1 %v10396_v25  ;;  %v10230_v41 = vrot.slane %v6102_v36, %v10486_v57 }
 0xc42   :  { %6473 = vmatmul.mubr.msk.f32.vlgmr.msra.gmra.mrb[116].mxu0 %vm1505_vm11, %v5670_v42 }
 0xc43   :  { %5991 = vmatprep.mubr.f32.mxu0 %v10396_v25 }
 0xc44   :  { %6472 = vmatmul.mubr.msk.f32.gmra.mrb[114].mxu1 %vm1505_vm11, %v5671_v52 }
 0xc46   :  { %6474 = vmatmul.mubr.msk.f32.gmra.mrb[118].mxu0 %vm1505_vm11, %v5671_v52 }
 0xcfb   :  { %v5756_v16 = vpop.f32.mrb[108].mxu1 }
 0xcfc   :  { %v5757_v1 = vadd.f32 %v5756_v16, %v10204_v5  ;;  %v5758_v34 = vpop.f32.mrb[109].mxu1 }
 0xcfd   :  { %v5759_v51 = vadd.f32 %v5758_v34, %v10204_v5  ;;  %v5833_v22 = vpop.f32.mrb[112].mxu0  ;;  %v6130_v34 = vunpack.c.0.s8 %v6129_v44 }
 0xcfe   :  { %v5834_v40 = vadd.f32 %v5833_v22, %v10204_v5  ;;  %v5835_v59 = vpop.f32.mrb[113].mxu0  ;;  %v5998_v26 = vmax.f32 %v5757_v1, 0.0 }
 0xcff   :  { %v5836_v25 = vadd.f32 %v5835_v59, %v10204_v5  ;;  %v5762_v24 = vpop.f32.mrb[110].mxu1  ;;  %v5999_v6 = vmax.f32 %v5759_v51, 0.0 }
 0xd00   :  { %v5763_v31 = vadd.f32 %v5762_v24, %v10207_v46  ;;  %v5764_v28 = vpop.f32.mrb[111].mxu1  ;;  %v6000_v21 = vmax.f32 %v5834_v40, 0.0  ;;  %v6026_v42 = vmul.f32 %v10217_v61, %v5998_v26 }
 0xd01   :  { %v5765_v4 = vadd.f32 %v5764_v28, %v10207_v46  ;;  %v5839_v20 = vpop.f32.mrb[114].mxu0  ;;  %v6001_v2 = vmax.f32 %v5836_v25, 0.0  ;;  %v6027_v52 = vmul.f32 %v10217_v61, %v5999_v6 }
 0xd02   :  { %v6006_v30 = vmax.f32 %v5763_v31, 0.0  ;;  %v5840_v63 = vadd.f32 %v5839_v20, %v10207_v46  ;;  %v5841_v48 = vpop.f32.mrb[115].mxu0  ;;  %v6028_v35 = vmul.f32 %v10217_v61, %v6000_v21 }
 0xd03   :  { %v6007_v10 = vmax.f32 %v5765_v4, 0.0  ;;  %v5842_v12 = vadd.f32 %v5841_v48, %v10207_v46  ;;  %v6029_v14 = vmul.f32 %v10217_v61, %v6001_v2 }
 0xd04   :  { %v6034_v33 = vmul.f32 %v10215_v37, %v6006_v30  ;;  %v6008_v15 = vmax.f32 %v5840_v63, 0.0  ;;  %v10239_v63 = vsub.s32 %v6130_v34, %v10485_v19 }
 0xd05   :  { %v6035_v7 = vmul.f32 %v10215_v37, %v6007_v10  ;;  %v6009_v62 = vmax.f32 %v5842_v12, 0.0 }
 0xd06   :  { %v6042_v9 = vadd.f32 %v6034_v33, %v6026_v42  ;;  %v6036_v18 = vmul.f32 %v10215_v37, %v6008_v15 }
 0xd07   :  { %v6049_v13 = vadd.f32 %v6035_v7, %v6027_v52  ;;  %v6037_v49 = vmul.f32 %v10215_v37, %v6009_v62 }
 0xd08   :  { %v6043_v45 = vrot.slane %v6042_v9, 4  ;;  %v6056_v0 = vadd.f32 %v6036_v18, %v6028_v35 }
 0xd09   :  { %v6050_v32 = vrot.slane %v6049_v13, 4  ;;  %v6063_v47 = vadd.f32 %v6037_v49, %v6029_v14 }
 0xd0a   :  { %v6044_v27 = vadd.f32 %v6043_v45, %v6042_v9  ;;  %v6057_v17 = vrot.slane %v6056_v0, 4 }
 0xd0b   :  { %v6051_v43 = vadd.f32 %v6050_v32, %v6049_v13  ;;  %v6064_v54 = vrot.slane %v6063_v47, 4 }
 0xd0c   :  { %v6045_v60 = vrot.slane %v6044_v27, 2  ;;  %v6058_v29 = vadd.f32 %v6057_v17, %v6056_v0 }
 0xd0d   :  { %v6052_v3 = vrot.slane %v6051_v43, 2  ;;  %v6065_v11 = vadd.f32 %v6064_v54, %v6063_v47 }
 0xd0e   :  { %v6046_v58 = vadd.f32 %v6045_v60, %v6044_v27  ;;  %v6059_v53 = vrot.slane %v6058_v29, 2 }
 0xd0f   :  { %v6053_v8 = vadd.f32 %v6052_v3, %v6051_v43  ;;  %v6066_v55 = vrot.slane %v6065_v11, 2 }
 0xd10   :  { %v6047_v23 = vrot.slane %v6046_v58, 1  ;;  %v6060_v50 = vadd.f32 %v6059_v53, %v6058_v29 }
 0xd11   :  { %v6054_v39 = vrot.slane %v6053_v8, 1  ;;  %v6067_v38 = vadd.f32 %v6066_v55, %v6065_v11 }
 0xd12   :  { %v6048_v16 = vadd.f32 %v6047_v23, %v6046_v58  ;;  %v6061_v1 = vrot.slane %v6060_v50, 1 }
 0xd13   :  { %v6055_v51 = vadd.f32 %v6054_v39, %v6053_v8  ;;  %v6068_v22 = vrot.slane %v6067_v38, 1  ;;  %v5910_v40 = vpop.f32.mrb[112].mxu1 }
 0xd14   :  { %v6062_v59 = vadd.f32 %v6061_v1, %v6060_v50  ;;  %v5911_v25 = vadd.f32 %v5910_v40, %v10204_v5  ;;  %v5912_v24 = vpop.f32.mrb[113].mxu1  ;;  %v6108_v26 = vadd.f32 %v10230_v41, %v6048_v16 }
 0xd15   :  { %v6069_v31 = vadd.f32 %v6068_v22, %v6067_v38  ;;  %v5913_v28 = vadd.f32 %v5912_v24, %v10204_v5  ;;  %v5987_v6 = vpop.f32.mrb[116].mxu0  ;;  %v6109_v4 = vadd.f32 %v10230_v41, %v6055_v51 }
 0xd16   :  { %v5988_v20 = vadd.f32 %v5987_v6, %v10204_v5  ;;  %v5989_v21 = vpop.f32.mrb[117].mxu0  ;;  %v6110_v30 = vadd.f32 %v10230_v41, %v6062_v59  ;;  %v6002_v42 = vmax.f32 %v5911_v25, 0.0 }
 0xd17   :  { %v5990_v48 = vadd.f32 %v5989_v21, %v10204_v5  ;;  %v5916_v2 = vpop.f32.mrb[114].mxu1  ;;  %v6111_v10 = vadd.f32 %v10230_v41, %v6069_v31  ;;  %v6124_v12 = vcombine.low %v6108_v26, %v6109_v4  ;;  %v6003_v52 = vmax.f32 %v5913_v28, 0.0 }
 0xd18   :  { %v5917_v33 = vadd.f32 %v5916_v2, %v10207_v46  ;;  %v5918_v15 = vpop.f32.mrb[115].mxu1  ;;  %v6004_v9 = vmax.f32 %v5988_v20, 0.0  ;;  %v6030_v47 = vmul.f32 %v10217_v61, %v6002_v42 }
 0xd19   :  { %v5919_v7 = vadd.f32 %v5918_v15, %v10207_v46  ;;  %v5993_v62 = vpop.f32.mrb[118].mxu0  ;;  %v6125_v35 = vcombine.low %v6110_v30, %v6111_v10  ;;  %v6134_v5 = vrot.slane %v6124_v12, %v10239_v63  ;;  %v6005_v49 = vmax.f32 %v5990_v48, 0.0 }
 0xd1a   :  { %v6010_v18 = vmax.f32 %v5917_v33, 0.0  ;;  %v5994_v14 = vadd.f32 %v5993_v62, %v10207_v46  ;;  %v5995_v13 = vpop.f32.mrb[119].mxu0  ;;  %v6031_v43 = vmul.f32 %v10217_v61, %v6003_v52  ;;  %v6032_v3 = vmul.f32 %v10217_v61, %v6004_v9 }
 0xd1b   :  { %v6011_v45 = vmax.f32 %v5919_v7, 0.0  ;;  %v5996_v0 = vadd.f32 %v5995_v13, %v10207_v46  ;;  %v6141_v32 = vrot.slane %v6125_v35, %v10239_v63  ;;  %v6033_v46 = vmul.f32 %v10217_v61, %v6005_v49 }
 0xd1c   :  { %v6038_v27 = vmul.f32 %v10215_v37, %v6010_v18  ;;  %v6012_v17 = vmax.f32 %v5994_v14, 0.0 }
 0xd1d   :  { %v6039_v54 = vmul.f32 %v10215_v37, %v6011_v45  ;;  %v6013_v60 = vmax.f32 %v5996_v0, 0.0  ;;  %v6156_v29 = vcombine.low %v6134_v5, %v6141_v32 }
 0xd1e   :  { %v6070_v11 = vadd.f32 %v6038_v27, %v6030_v47  ;;  %v6040_v58 = vmul.f32 %v10215_v37, %v6012_v17 }
 0xd1f   :  { %v6077_v53 = vadd.f32 %v6039_v54, %v6031_v43  ;;  %v6041_v56 = vmul.f32 %v10215_v37, %v6013_v60  ;;  %v6164_v15 = vrot.slane %v6156_v29, %v10239_v63 }
 0xd20   :  { %v6071_v44 = vrot.slane %v6070_v11, 4  ;;  %v6084_v36 = vadd.f32 %v6040_v58, %v6032_v3 }
 0xd21   :  { %v6078_v8 = vrot.slane %v6077_v53, 4  ;;  %v6091_v55 = vadd.f32 %v6041_v56, %v6033_v46 }
 0xd22   :  { %v6072_v23 = vadd.f32 %v6071_v44, %v6070_v11  ;;  %v6085_v50 = vrot.slane %v6084_v36, 4 }
 0xd23   :  { %v6079_v39 = vadd.f32 %v6078_v8, %v6077_v53  ;;  %v6092_v38 = vrot.slane %v6091_v55, 4 }
 0xd24   :  { %v6073_v19 = vrot.slane %v6072_v23, 2  ;;  %v6086_v57 = vadd.f32 %v6085_v50, %v6084_v36 }
 0xd25   :  { %v6080_v16 = vrot.slane %v6079_v39, 2  ;;  %v6093_v1 = vadd.f32 %v6092_v38, %v6091_v55 }
 0xd26   :  { %v6074_v34 = vadd.f32 %v6073_v19, %v6072_v23  ;;  %v6087_v51 = vrot.slane %v6086_v57, 2 }
 0xd27   :  { %v6081_v22 = vadd.f32 %v6080_v16, %v6079_v39  ;;  %v6094_v40 = vrot.slane %v6093_v1, 2 }
 0xd28   :  { %v6075_v61 = vrot.slane %v6074_v34, 1  ;;  %v6088_v59 = vadd.f32 %v6087_v51, %v6086_v57 }
 0xd29   :  { %v6082_v25 = vrot.slane %v6081_v22, 1  ;;  %v6095_v37 = vadd.f32 %v6094_v40, %v6093_v1 }
 0xd2a   :  { %v6076_v24 = vadd.f32 %v6075_v61, %v6074_v34  ;;  %v6089_v26 = vrot.slane %v6088_v59, 1 }
 0xd2b   :  { %v6083_v31 = vadd.f32 %v6082_v25, %v6081_v22  ;;  %v6096_v28 = vrot.slane %v6095_v37, 1 }
 0xd2c   :  { %v6090_v6 = vadd.f32 %v6089_v26, %v6088_v59  ;;  %v6112_v4 = vadd.f32 %v10230_v41, %v6076_v24 }
 0xd2d   :  { %v6097_v20 = vadd.f32 %v6096_v28, %v6095_v37  ;;  %v6113_v21 = vadd.f32 %v10230_v41, %v6083_v31 }
 0xd2e   :  { %v6114_v30 = vadd.f32 %v10230_v41, %v6090_v6 }
 0xd2f   :  { %v6115_v48 = vadd.f32 %v10230_v41, %v6097_v20  ;;  %v6126_v2 = vcombine.low %v6112_v4, %v6113_v21 }
 0xd31   :  { %v6127_v10 = vcombine.low %v6114_v30, %v6115_v48  ;;  %v6148_v12 = vrot.slane %v6126_v2, %v10239_v63 }
 0xd33   :  { %v6155_v42 = vrot.slane %v6127_v10, %v10239_v63 }
 0xd35   :  { %v6157_v33 = vcombine.low %v6148_v12, %v6155_v42 }
 0xd37   :  { %v6171_v52 = vrot.slane %v6157_v33, %v10239_v63 }
 0xd39   :  { %v6172_v7 = vcombine.low %v6164_v15, %v6171_v52 }
 0xd3b   :  { %6174 = vst [vmem:[#allocation6] sm:$0xff] %v6172_v7 }
 0xd3c   :  { %7700 = shalt.err (!%p7697_p4)
}
 0xd3d   :  { %s7701_s29 = scalar_lea.hbm %s10292_s17, 128 }
 0xd3e   :  { %p7702_p5 = scmp.ne.s32.totalorder %s10292_s17, %s7701_s29  ;;  %p7705_p6 = scmp.lt.u32.totalorder %s7701_s29, %s10292_s17 }
 0xd40   :  { %p7707_p7 = pnand %p7705_p6, %p7702_p5 }
 0xd42   :  { %7710 = shalt.err (!%p7707_p7)
}
 0xd43   :  { %6184 = dma.vmem_to_hbm [thread:$0]  %s6182_s26, 128, %s10292_s17, [#allocation7]  }
 0xd44   :  { %7711 = dma.done.wait [#allocation7], 128  }
 0xd45   :  { %7712 = vsyncadd [#allocation7], 4294967168 }
 0xd46   :  { %6188 = vsyncpa [#allocation7], 1 }

</bundles_post_ra>
